<compile_context>
chip_gen: v7x
topology: tpu7x:2x2x1
jax: 0.10.0
libtpu: 0.0.40
codegen_flags: <defaults>
</compile_context>

<pallas_src>
import math
import functools

import jax
import jax.numpy as jnp
import numpy as np
from jax import lax
from jax.experimental import pallas as pl
from jax.experimental.pallas import tpu as pltpu


# ----------------------------------------------------------------------------
# Tiling helpers
# ----------------------------------------------------------------------------
def _pick_tile(dim, cap, multiple):
    """Largest tile <= cap that divides `dim` and is a multiple of `multiple`;
    falls back to the full dimension."""
    if dim <= cap:
        return dim
    t = (cap // multiple) * multiple
    while t >= multiple:
        if dim % t == 0:
            return t
        t -= multiple
    # TODO(synk): awkward (prime-ish) dims fall back to the full dimension,
    # which can exceed the VMEM budget for very long sequences.
    return dim


def _sublane_multiple(dtype):
    return 16 if jnp.dtype(dtype).itemsize <= 2 else 8


@functools.lru_cache(maxsize=None)
def _vmem_budget_bytes():
    """Generation-aware VMEM budget (v5e/v6e: 128 MiB, v7x: 64 MiB per TC)."""
    try:
        cap = pltpu.get_tpu_info().vmem_capacity_bytes
    except Exception:
        cap = 64 * 1024 * 1024          # v7x-safe fallback
    return max(int(cap) * 3 // 4, 32 * 1024 * 1024)


def _flash_tiles(sq, sk, io_width, acc_width, num_heads, dtype, budget):
    """Pick (tq, tkv) so double-buffered q/k/v/o blocks + f32 scratch fit VMEM.
    io_width / acc_width are the last-dim widths of the I/O blocks and the f32
    accumulator (E for the packed-head kernel, head_dim for the head-split)."""
    itemsize = jnp.dtype(dtype).itemsize
    sub = _sublane_multiple(dtype)
    lane_mult = 128 if (sk % 128 == 0 and sk >= 128) else sub
    cap = 512 if budget >= (96 << 20) else 256
    while True:
        tq = _pick_tile(sq, cap, sub)
        tkv = _pick_tile(sk, cap, lane_mult)
        io = 2 * itemsize * (2 * tq * io_width + 2 * tkv * io_width)  # dbl-buf
        scratch = 4 * (tq * acc_width + 2 * num_heads * tq * 128)     # acc+m/l
        if io + scratch <= budget or cap <= max(sub, 128):
            return tq, tkv
        cap //= 2


# ----------------------------------------------------------------------------
# Kernel 1: tiled y = x @ Wt + b   (Wt is the PRE-TRANSPOSED weight, (K, N))
#   grid = (M//tm, N//tn, K//tk), K (reduction) innermost, f32 VMEM accumulator
# ----------------------------------------------------------------------------
def matmul_bias_kernel(x_ref, w_ref, b_ref, o_ref, acc_ref):
    k = pl.program_id(2)

    @pl.when(k == 0)
    def _():
        acc_ref[...] = jnp.zeros(acc_ref.shape, jnp.float32)

    acc_ref[...] += jnp.dot(x_ref[...], w_ref[...],
                            preferred_element_type=jnp.float32)

    @pl.when(k == pl.num_programs(2) - 1)
    def _():
        o_ref[...] = (acc_ref[...] + b_ref[...]).astype(o_ref.dtype)


def matmul_bias(x, w_t, b):
    """x: (M, K), w_t: (K, N) pre-transposed weight, b: (1, N) f32."""
    M, K = x.shape
    _, N = w_t.shape
    budget = _vmem_budget_bytes()
    cap = 512 if budget >= (96 << 20) else 256
    tm = _pick_tile(M, cap, _sublane_multiple(x.dtype))
    tn = _pick_tile(N, cap, 128)
    tk = _pick_tile(K, cap, 128)
    grid = (M // tm, N // tn, K // tk)
    return pl.pallas_call(
        matmul_bias_kernel,
        out_shape=jax.ShapeDtypeStruct((M, N), x.dtype),
        grid_spec=pltpu.PrefetchScalarGridSpec(
            num_scalar_prefetch=0,
            grid=grid,
            in_specs=[
                pl.BlockSpec((tm, tk), lambda i, j, k: (i, k)),
                pl.BlockSpec((tk, tn), lambda i, j, k: (k, j)),
                pl.BlockSpec((1, tn), lambda i, j, k: (0, j)),
            ],
            out_specs=pl.BlockSpec((tm, tn), lambda i, j, k: (i, j)),
            scratch_shapes=[pltpu.VMEM((tm, tn), jnp.float32)],
        ),
        compiler_params=pltpu.CompilerParams(
            dimension_semantics=("parallel", "parallel", "arbitrary"),
            vmem_limit_bytes=budget,
        ),
    )(x, w_t, b)


# ----------------------------------------------------------------------------
# Kernel 2a: flash attention, head-split grid (lane-dense; used when D % 128 == 0)
#   grid = (B, H, Sq//tq, Sk//tkv); scale is pre-folded into Wq.
# ----------------------------------------------------------------------------
def _flash_head_kernel(q_ref, k_ref, v_ref, o_ref, m_ref, l_ref, acc_ref):
    kv = pl.program_id(3)

    @pl.when(kv == 0)
    def _():
        m_ref[...] = jnp.full(m_ref.shape, -jnp.inf, jnp.float32)
        l_ref[...] = jnp.zeros(l_ref.shape, jnp.float32)
        acc_ref[...] = jnp.zeros(acc_ref.shape, jnp.float32)

    s = lax.dot_general(q_ref[...], k_ref[...], (((1,), (1,)), ((), ())),
                        preferred_element_type=jnp.float32)        # (tq, tkv)

    m_prev = m_ref[...]
    l_prev = l_ref[...]
    m_new = jnp.maximum(m_prev, jnp.max(s, axis=-1, keepdims=True))
    alpha = jnp.exp(m_prev - m_new)
    p = jnp.exp(s - m_new)                                          # (tq, tkv)
    l_new = alpha * l_prev + jnp.sum(p, axis=-1, keepdims=True)
    pv = jnp.dot(p.astype(v_ref.dtype), v_ref[...],
                 preferred_element_type=jnp.float32)                # (tq, D)
    acc_ref[...] = alpha * acc_ref[...] + pv
    m_ref[...] = m_new
    l_ref[...] = l_new

    @pl.when(kv == pl.num_programs(3) - 1)
    def _():
        o_ref[...] = (acc_ref[...] / l_ref[...]).astype(o_ref.dtype)


# ----------------------------------------------------------------------------
# Kernel 2b: flash attention, heads packed along the lane axis (general fallback)
#   grid = (B, Sq//tq, Sk//tkv); m/l scratch is (H, tq, 1), leading-axis indexed.
# ----------------------------------------------------------------------------
def _flash_packed_kernel(q_ref, k_ref, v_ref, o_ref, m_ref, l_ref, acc_ref,
                         *, num_heads, head_dim):
    kv = pl.program_id(2)
    last = pl.num_programs(2) - 1

    @pl.when(kv == 0)
    def _():
        m_ref[...] = jnp.full(m_ref.shape, -jnp.inf, jnp.float32)
        l_ref[...] = jnp.zeros(l_ref.shape, jnp.float32)
        acc_ref[...] = jnp.zeros(acc_ref.shape, jnp.float32)

    for h in range(num_heads):
        lo = h * head_dim
        hi = lo + head_dim
        q_h = q_ref[:, lo:hi]                 # (tq, D); scale baked into Wq
        k_h = k_ref[:, lo:hi]                 # (tkv, D)
        v_h = v_ref[:, lo:hi]                 # (tkv, D)

        s = lax.dot_general(q_h, k_h, (((1,), (1,)), ((), ())),
                            preferred_element_type=jnp.float32)     # (tq, tkv)

        m_prev = m_ref[h]                     # (tq, 1) leading-axis slice
        l_prev = l_ref[h]
        m_new = jnp.maximum(m_prev, jnp.max(s, axis=-1, keepdims=True))
        alpha = jnp.exp(m_prev - m_new)
        p = jnp.exp(s - m_new)
        l_new = alpha * l_prev + jnp.sum(p, axis=-1, keepdims=True)
        pv = jnp.dot(p.astype(v_h.dtype), v_h,
                     preferred_element_type=jnp.float32)            # (tq, D)
        acc_new = alpha * acc_ref[:, lo:hi] + pv

        m_ref[h] = m_new
        l_ref[h] = l_new
        acc_ref[:, lo:hi] = acc_new

        @pl.when(kv == last)
        def _():
            o_ref[:, lo:hi] = (acc_new / l_new).astype(o_ref.dtype)


def _flash_call(kernel, operands, grid, in_specs, out_specs, scratch, dims,
                out_shape, budget):
    return pl.pallas_call(
        kernel,
        out_shape=out_shape,
        grid_spec=pltpu.PrefetchScalarGridSpec(
            num_scalar_prefetch=0, grid=grid,
            in_specs=in_specs, out_specs=out_specs, scratch_shapes=scratch),
        compiler_params=pltpu.CompilerParams(
            dimension_semantics=dims, vmem_limit_bytes=budget),
    )(*operands)


def flash_attention(q, k, v, num_heads):
    """q: (B, Sq, E), k/v: (B, Sk, E), heads packed along E; q pre-scaled."""
    B, Sq, E = q.shape
    _, Sk, _ = k.shape
    D = E // num_heads
    dtype = q.dtype
    budget = _vmem_budget_bytes()
    out_shape = jax.ShapeDtypeStruct((B, Sq, E), dtype)

    if D % 128 == 0:
        tq, tkv = _flash_tiles(Sq, Sk, D, D, 1, dtype, budget)
        grid = (B, num_heads, Sq // tq, Sk // tkv)
        blk_q, blk_kv = (pl.Squeezed(), tq, D), (pl.Squeezed(), tkv, D)
        in_specs = [
            pl.BlockSpec(blk_q, lambda b, h, iq, ik: (b, iq, h)),
            pl.BlockSpec(blk_kv, lambda b, h, iq, ik: (b, ik, h)),
            pl.BlockSpec(blk_kv, lambda b, h, iq, ik: (b, ik, h)),
        ]
        out_specs = pl.BlockSpec(blk_q, lambda b, h, iq, ik: (b, iq, h))
        scratch = [pltpu.VMEM((tq, 1), jnp.float32),
                   pltpu.VMEM((tq, 1), jnp.float32),
                   pltpu.VMEM((tq, D), jnp.float32)]
        return _flash_call(_flash_head_kernel, (q, k, v), grid, in_specs,
                           out_specs, scratch,
                           ("parallel", "parallel", "parallel", "arbitrary"),
                           out_shape, budget)

    tq, tkv = _flash_tiles(Sq, Sk, E, E, num_heads, dtype, budget)
    grid = (B, Sq // tq, Sk // tkv)
    blk_q, blk_kv = (pl.Squeezed(), tq, E), (pl.Squeezed(), tkv, E)
    in_specs = [
        pl.BlockSpec(blk_q, lambda b, iq, ik: (b, iq, 0)),
        pl.BlockSpec(blk_kv, lambda b, iq, ik: (b, ik, 0)),
        pl.BlockSpec(blk_kv, lambda b, iq, ik: (b, ik, 0)),
    ]
    out_specs = pl.BlockSpec(blk_q, lambda b, iq, ik: (b, iq, 0))
    scratch = [pltpu.VMEM((num_heads, tq, 1), jnp.float32),
               pltpu.VMEM((num_heads, tq, 1), jnp.float32),
               pltpu.VMEM((tq, E), jnp.float32)]
    kernel = functools.partial(_flash_packed_kernel,
                               num_heads=num_heads, head_dim=D)
    return _flash_call(kernel, (q, k, v), grid, in_specs, out_specs, scratch,
                       ("parallel", "parallel", "arbitrary"), out_shape, budget)


def flash_attention_fused(qkv, num_heads, embed_dim):
    """qkv: (B, S, 3E) packed projection output fed directly (no q/k/v copies)."""
    B, S, threeE = qkv.shape
    E = embed_dim
    assert threeE == 3 * E
    D = E // num_heads
    dtype = qkv.dtype
    budget = _vmem_budget_bytes()
    out_shape = jax.ShapeDtypeStruct((B, S, E), dtype)
    H = num_heads

    if D % 128 == 0:
        tq, tkv = _flash_tiles(S, S, D, D, 1, dtype, budget)
        grid = (B, H, S // tq, S // tkv)
        blk_q, blk_kv = (pl.Squeezed(), tq, D), (pl.Squeezed(), tkv, D)
        in_specs = [
            pl.BlockSpec(blk_q, lambda b, h, iq, ik: (b, iq, h)),
            pl.BlockSpec(blk_kv, lambda b, h, iq, ik: (b, ik, H + h)),
            pl.BlockSpec(blk_kv, lambda b, h, iq, ik: (b, ik, 2 * H + h)),
        ]
        out_specs = pl.BlockSpec(blk_q, lambda b, h, iq, ik: (b, iq, h))
        scratch = [pltpu.VMEM((tq, 1), jnp.float32),
                   pltpu.VMEM((tq, 1), jnp.float32),
                   pltpu.VMEM((tq, D), jnp.float32)]
        return _flash_call(_flash_head_kernel, (qkv, qkv, qkv), grid, in_specs,
                           out_specs, scratch,
                           ("parallel", "parallel", "parallel", "arbitrary"),
                           out_shape, budget)

    if E % 128 == 0:
        tq, tkv = _flash_tiles(S, S, E, E, num_heads, dtype, budget)
        grid = (B, S // tq, S // tkv)
        blk_q, blk_kv = (pl.Squeezed(), tq, E), (pl.Squeezed(), tkv, E)
        in_specs = [
            pl.BlockSpec(blk_q, lambda b, iq, ik: (b, iq, 0)),
            pl.BlockSpec(blk_kv, lambda b, iq, ik: (b, ik, 1)),
            pl.BlockSpec(blk_kv, lambda b, iq, ik: (b, ik, 2)),
        ]
        out_specs = pl.BlockSpec(blk_q, lambda b, iq, ik: (b, iq, 0))
        scratch = [pltpu.VMEM((num_heads, tq, 1), jnp.float32),
                   pltpu.VMEM((num_heads, tq, 1), jnp.float32),
                   pltpu.VMEM((tq, E), jnp.float32)]
        kernel = functools.partial(_flash_packed_kernel,
                                   num_heads=num_heads, head_dim=D)
        return _flash_call(kernel, (qkv, qkv, qkv), grid, in_specs, out_specs,
                           scratch, ("parallel", "parallel", "arbitrary"),
                           out_shape, budget)

    # Small / lane-unaligned E: fall back to wrapper slicing (cheap here).
    return flash_attention(qkv[..., :E], qkv[..., E:2 * E], qkv[..., 2 * E:],
                           num_heads)


# ----------------------------------------------------------------------------
# One-time parameter preparation (outside the forward / jit)
# ----------------------------------------------------------------------------
def prepare_params(params, num_heads, dtype=jnp.float32):
    """Transpose nn.Linear weights to (in, out), bake 1/sqrt(head_dim) into
    Wq/bq, and pre-concatenate the fused (E, 3E) QKV weight."""
    E = params["wq"].shape[0]
    scale = 1.0 / math.sqrt(E // num_heads)
    f32 = jnp.float32
    wq_t = (params["wq"].T * scale).astype(dtype)
    wk_t = params["wk"].T.astype(dtype)
    wv_t = params["wv"].T.astype(dtype)
    wo_t = params["wo"].T.astype(dtype)
    bq = (params["bq"] * scale).astype(f32)[None, :]
    bk = params["bk"].astype(f32)[None, :]
    bv = params["bv"].astype(f32)[None, :]
    bo = params["bo"].astype(f32)[None, :]
    return {
        "wq_t": wq_t, "wk_t": wk_t, "wv_t": wv_t, "wo_t": wo_t,
        "bq": bq, "bk": bk, "bv": bv, "bo": bo,
        "w_qkv_t": jnp.concatenate([wq_t, wk_t, wv_t], axis=1),
        "b_qkv": jnp.concatenate([bq, bk, bv], axis=1),
    }


# ----------------------------------------------------------------------------
# Forward wrappers (mask=None, eval-mode dropout)
# ----------------------------------------------------------------------------
def _dense(x3d, w_t, b):
    B, S, _ = x3d.shape
    return matmul_bias(x3d.reshape(B * S, -1), w_t, b).reshape(B, S, -1)


def multi_head_self_attention(x, prep, num_heads):
    """Self-attention path: fused QKV projection, packed QKV fed to attention."""
    E = x.shape[-1]
    qkv = _dense(x, prep["w_qkv_t"], prep["b_qkv"])          # (B, S, 3E)
    attn = flash_attention_fused(qkv, num_heads, E)          # (B, S, E)
    return _dense(attn, prep["wo_t"], prep["bo"])


def multi_head_attention(query, key, value, prep, num_heads):
    """General (cross-attention capable) path: separate projections."""
    q = _dense(query, prep["wq_t"], prep["bq"])
    k = _dense(key, prep["wk_t"], prep["bk"])
    v = _dense(value, prep["wv_t"], prep["bv"])
    attn = flash_attention(q, k, v, num_heads)
    return _dense(attn, prep["wo_t"], prep["bo"])


# ----------------------------------------------------------------------------
# Deterministic parameter init (nn.Linear-like uniform)
# ----------------------------------------------------------------------------
def init_params(key, embedding_dim):
    E = embedding_dim
    bound = 1.0 / math.sqrt(E)
    ks = jax.random.split(key, 8)
    u = lambda k, shape: jax.random.uniform(k, shape, jnp.float32, -bound, bound)
    return {
        "wq": u(ks[0], (E, E)), "bq": u(ks[1], (E,)),
        "wk": u(ks[2], (E, E)), "bk": u(ks[3], (E,)),
        "wv": u(ks[4], (E, E)), "bv": u(ks[5], (E,)),
        "wo": u(ks[6], (E, E)), "bo": u(ks[7], (E,)),
    }


# ----------------------------------------------------------------------------
# Pure-JAX reference (correctness check)
# ----------------------------------------------------------------------------
def reference_mha(query, key, value, params, num_heads):
    B, S, E = query.shape
    D = E // num_heads
    lin = lambda x, w, b: x @ w.T + b
    q = lin(query, params["wq"], params["bq"]).reshape(B, -1, num_heads, D).transpose(0, 2, 1, 3)
    k = lin(key, params["wk"], params["bk"]).reshape(B, -1, num_heads, D).transpose(0, 2, 1, 3)
    v = lin(value, params["wv"], params["bv"]).reshape(B, -1, num_heads, D).transpose(0, 2, 1, 3)
    s = jnp.einsum("bhqd,bhkd->bhqk", q / np.sqrt(D), k)
    p = jax.nn.softmax(s, axis=-1)
    o = jnp.einsum("bhqk,bhkd->bhqd", p, v)
    o = o.transpose(0, 2, 1, 3).reshape(B, -1, E)
    return lin(o, params["wo"], params["bo"])


if __name__ == "__main__":
    # Case 1: E=128, H=4 (head_dim=32) -> packed-QKV feed, lane-packed head kernel.
    B, S, E, H = 2, 128, 128, 4
    root = jax.random.PRNGKey(0)
    kq, kk, kv, kp = jax.random.split(root, 4)
    q_in = jax.random.normal(kq, (B, S, E), jnp.float32)
    k_in = jax.random.normal(kk, (B, S, E), jnp.float32)
    v_in = jax.random.normal(kv, (B, S, E), jnp.float32)
    params = init_params(kp, E)
    prep_f32 = prepare_params(params, H, jnp.float32)

    self_fn = jax.jit(functools.partial(multi_head_self_attention, num_heads=H))
    out_self = self_fn(q_in, prep_f32)
    jax.block_until_ready(out_self)
    ref_self = reference_mha(q_in, q_in, q_in, params, H)
    assert out_self.shape == (B, S, E)
    np.testing.assert_allclose(np.asarray(out_self), np.asarray(ref_self),
                               rtol=2e-3, atol=2e-3)

    # Case 2: cross-attention (separate projections), f32.
    cross_fn = jax.jit(functools.partial(multi_head_attention, num_heads=H))
    out_cross = cross_fn(q_in, k_in, v_in, prep_f32)
    jax.block_until_ready(out_cross)
    ref_cross = reference_mha(q_in, k_in, v_in, params, H)
    np.testing.assert_allclose(np.asarray(out_cross), np.asarray(ref_cross),
                               rtol=2e-3, atol=2e-3)

    # Case 3: head_dim = 128 -> head-split lane-dense flash kernel path.
    E2, H2 = 256, 2
    kx2, kp2 = jax.random.split(jax.random.PRNGKey(1), 2)
    x2 = jax.random.normal(kx2, (B, S, E2), jnp.float32)
    params2 = init_params(kp2, E2)
    prep2 = prepare_params(params2, H2, jnp.float32)
    self_fn2 = jax.jit(functools.partial(multi_head_self_attention, num_heads=H2))
    out2 = self_fn2(x2, prep2)
    jax.block_until_ready(out2)
    ref2 = reference_mha(x2, x2, x2, params2, H2)
    np.testing.assert_allclose(np.asarray(out2), np.asarray(ref2),
                               rtol=2e-3, atol=2e-3)

    # Case 4: bf16 smoke run (bf16 MXU operands, f32 accumulation).
    prep_bf16 = prepare_params(params, H, jnp.bfloat16)
    out_bf16 = self_fn(q_in.astype(jnp.bfloat16), prep_bf16)
    jax.block_until_ready(out_bf16)
    np.testing.assert_allclose(np.asarray(out_bf16.astype(jnp.float32)),
                               np.asarray(ref_self), rtol=5e-2, atol=5e-2)

    print("KERNEL_OK")
</pallas_src>

<mosaic_0001>
module attributes {stable_mosaic.version = 11 : i64} {
  func.func @matmul_bias_kernel(%arg0: i32, %arg1: i32, %arg2: i32, %arg3: memref<256x128xf32, #tpu.memory_space<vmem>>, %arg4: memref<128x128xf32, #tpu.memory_space<vmem>>, %arg5: memref<1x128xf32, #tpu.memory_space<vmem>>, %arg6: memref<256x128xf32, #tpu.memory_space<vmem>>, %arg7: memref<256x128xf32, #tpu.memory_space<vmem>>) attributes {dimension_semantics = [#tpu.dimension_semantics<parallel>, #tpu.dimension_semantics<parallel>, #tpu.dimension_semantics<arbitrary>], iteration_bounds = array<i64: 1, 1, 1>, scalar_prefetch = 0 : i64, scratch_operands = 1 : i64, tpu.core_type = #tpu.core_type<tc>, window_params = [{transform_indices = @transform_0, window_bounds = array<i64: 256, 128>}, {transform_indices = @transform_1, window_bounds = array<i64: 128, 128>}, {transform_indices = @transform_2, window_bounds = array<i64: 1, 128>}, {transform_indices = @transform_3, window_bounds = array<i64: 256, 128>}]} {
    %c0_i32 = arith.constant 0 : i32
    %0 = arith.cmpi eq, %arg2, %c0_i32 : i32
    %1 = arith.extui %0 : i1 to i32
    %c0_i32_0 = arith.constant 0 : i32
    %2 = arith.cmpi ne, %1, %c0_i32_0 : i32
    scf.if %2 {
      %cst_10 = arith.constant 0.000000e+00 : f32
      %12 = vector.broadcast %cst_10 : f32 to vector<256x128xf32>
      %c0_11 = arith.constant 0 : index
      %c0_12 = arith.constant 0 : index
      %13 = vector.load %arg7[%c0_11, %c0_12] : memref<256x128xf32, #tpu.memory_space<vmem>>, vector<256x128xf32>
      tpu.vector_store %arg7[%c0_11, %c0_12], %12 {strides = array<i32>} : memref<256x128xf32, #tpu.memory_space<vmem>>, vector<256x128xf32>,
    } else {
    }
    %c0 = arith.constant 0 : index
    %c0_1 = arith.constant 0 : index
    %3 = vector.load %arg7[%c0, %c0_1] : memref<256x128xf32, #tpu.memory_space<vmem>>, vector<256x128xf32>
    %c0_2 = arith.constant 0 : index
    %c0_3 = arith.constant 0 : index
    %4 = vector.load %arg3[%c0_2, %c0_3] : memref<256x128xf32, #tpu.memory_space<vmem>>, vector<256x128xf32>
    %c0_4 = arith.constant 0 : index
    %c0_5 = arith.constant 0 : index
    %5 = vector.load %arg4[%c0_4, %c0_5] : memref<128x128xf32, #tpu.memory_space<vmem>>, vector<128x128xf32>
    %cst = arith.constant dense<0.000000e+00> : vector<256x128xf32>
    %6 = tpu.matmul %4, %5, %cst {dimension_numbers = #tpu.dot_dimension_numbers<[1], [0], [0], [1], [0, 0, 1, 1], [], []>} : vector<256x128xf32>, vector<128x128xf32>, vector<256x128xf32> -> vector<256x128xf32>
    %7 = arith.addf %3, %6 : vector<256x128xf32>
    %c0_6 = arith.constant 0 : index
    %c0_7 = arith.constant 0 : index
    %8 = vector.load %arg7[%c0_6, %c0_7] : memref<256x128xf32, #tpu.memory_space<vmem>>, vector<256x128xf32>
    tpu.vector_store %arg7[%c0_6, %c0_7], %7 {strides = array<i32>} : memref<256x128xf32, #tpu.memory_space<vmem>>, vector<256x128xf32>,
    %c0_i32_8 = arith.constant 0 : i32
    %9 = arith.cmpi eq, %arg2, %c0_i32_8 : i32
    %10 = arith.extui %9 : i1 to i32
    %c0_i32_9 = arith.constant 0 : i32
    %11 = arith.cmpi ne, %10, %c0_i32_9 : i32
    scf.if %11 {
      %c0_10 = arith.constant 0 : index
      %c0_11 = arith.constant 0 : index
      %12 = vector.load %arg7[%c0_10, %c0_11] : memref<256x128xf32, #tpu.memory_space<vmem>>, vector<256x128xf32>
      %c0_12 = arith.constant 0 : index
      %c0_13 = arith.constant 0 : index
      %13 = vector.load %arg5[%c0_12, %c0_13] : memref<1x128xf32, #tpu.memory_space<vmem>>, vector<1x128xf32>
      %14 = vector.broadcast %13 : vector<1x128xf32> to vector<256x128xf32>
      %15 = arith.addf %12, %14 : vector<256x128xf32>
      %c0_14 = arith.constant 0 : index
      %c0_15 = arith.constant 0 : index
      %16 = vector.load %arg6[%c0_14, %c0_15] : memref<256x128xf32, #tpu.memory_space<vmem>>, vector<256x128xf32>
      tpu.vector_store %arg6[%c0_14, %c0_15], %15 {strides = array<i32>} : memref<256x128xf32, #tpu.memory_space<vmem>>, vector<256x128xf32>,
    } else {
    }
    return
  }
  func.func @transform_0(%arg0: i32, %arg1: i32, %arg2: i32) -> (i32, i32) {
    %c0_i32 = arith.constant 0 : i32
    return %arg0, %arg2 : i32, i32
  }
  func.func @transform_1(%arg0: i32, %arg1: i32, %arg2: i32) -> (i32, i32) {
    %c0_i32 = arith.constant 0 : i32
    return %arg2, %arg1 : i32, i32
  }
  func.func @transform_2(%arg0: i32, %arg1: i32, %arg2: i32) -> (i32, i32) {
    %c0_i32 = arith.constant 0 : i32
    %c0_i32_0 = arith.constant 0 : i32
    return %c0_i32, %arg1 : i32, i32
  }
  func.func @transform_3(%arg0: i32, %arg1: i32, %arg2: i32) -> (i32, i32) {
    %c0_i32 = arith.constant 0 : i32
    return %arg0, %arg1 : i32, i32
  }
}

module attributes {stable_mosaic.version = 11 : i64} {
  func.func @matmul_bias_kernel(%arg0: i32, %arg1: i32, %arg2: i32, %arg3: memref<256x128xf32, #tpu.memory_space<vmem>>, %arg4: memref<128x128xf32, #tpu.memory_space<vmem>>, %arg5: memref<1x128xf32, #tpu.memory_space<vmem>>, %arg6: memref<256x128xf32, #tpu.memory_space<vmem>>, %arg7: memref<256x128xf32, #tpu.memory_space<vmem>>) attributes {dimension_semantics = [#tpu.dimension_semantics<parallel>, #tpu.dimension_semantics<parallel>, #tpu.dimension_semantics<arbitrary>], iteration_bounds = array<i64: 1, 3, 1>, scalar_prefetch = 0 : i64, scratch_operands = 1 : i64, tpu.core_type = #tpu.core_type<tc>, window_params = [{transform_indices = @transform_0, window_bounds = array<i64: 256, 128>}, {transform_indices = @transform_1, window_bounds = array<i64: 128, 128>}, {transform_indices = @transform_2, window_bounds = array<i64: 1, 128>}, {transform_indices = @transform_3, window_bounds = array<i64: 256, 128>}]} {
    %c0_i32 = arith.constant 0 : i32
    %0 = arith.cmpi eq, %arg2, %c0_i32 : i32
    %1 = arith.extui %0 : i1 to i32
    %c0_i32_0 = arith.constant 0 : i32
    %2 = arith.cmpi ne, %1, %c0_i32_0 : i32
    scf.if %2 {
      %cst_10 = arith.constant 0.000000e+00 : f32
      %12 = vector.broadcast %cst_10 : f32 to vector<256x128xf32>
      %c0_11 = arith.constant 0 : index
      %c0_12 = arith.constant 0 : index
      %13 = vector.load %arg7[%c0_11, %c0_12] : memref<256x128xf32, #tpu.memory_space<vmem>>, vector<256x128xf32>
      tpu.vector_store %arg7[%c0_11, %c0_12], %12 {strides = array<i32>} : memref<256x128xf32, #tpu.memory_space<vmem>>, vector<256x128xf32>,
    } else {
    }
    %c0 = arith.constant 0 : index
    %c0_1 = arith.constant 0 : index
    %3 = vector.load %arg7[%c0, %c0_1] : memref<256x128xf32, #tpu.memory_space<vmem>>, vector<256x128xf32>
    %c0_2 = arith.constant 0 : index
    %c0_3 = arith.constant 0 : index
    %4 = vector.load %arg3[%c0_2, %c0_3] : memref<256x128xf32, #tpu.memory_space<vmem>>, vector<256x128xf32>
    %c0_4 = arith.constant 0 : index
    %c0_5 = arith.constant 0 : index
    %5 = vector.load %arg4[%c0_4, %c0_5] : memref<128x128xf32, #tpu.memory_space<vmem>>, vector<128x128xf32>
    %cst = arith.constant dense<0.000000e+00> : vector<256x128xf32>
    %6 = tpu.matmul %4, %5, %cst {dimension_numbers = #tpu.dot_dimension_numbers<[1], [0], [0], [1], [0, 0, 1, 1], [], []>} : vector<256x128xf32>, vector<128x128xf32>, vector<256x128xf32> -> vector<256x128xf32>
    %7 = arith.addf %3, %6 : vector<256x128xf32>
    %c0_6 = arith.constant 0 : index
    %c0_7 = arith.constant 0 : index
    %8 = vector.load %arg7[%c0_6, %c0_7] : memref<256x128xf32, #tpu.memory_space<vmem>>, vector<256x128xf32>
    tpu.vector_store %arg7[%c0_6, %c0_7], %7 {strides = array<i32>} : memref<256x128xf32, #tpu.memory_space<vmem>>, vector<256x128xf32>,
    %c0_i32_8 = arith.constant 0 : i32
    %9 = arith.cmpi eq, %arg2, %c0_i32_8 : i32
    %10 = arith.extui %9 : i1 to i32
    %c0_i32_9 = arith.constant 0 : i32
    %11 = arith.cmpi ne, %10, %c0_i32_9 : i32
    scf.if %11 {
      %c0_10 = arith.constant 0 : index
      %c0_11 = arith.constant 0 : index
      %12 = vector.load %arg7[%c0_10, %c0_11] : memref<256x128xf32, #tpu.memory_space<vmem>>, vector<256x128xf32>
      %c0_12 = arith.constant 0 : index
      %c0_13 = arith.constant 0 : index
      %13 = vector.load %arg5[%c0_12, %c0_13] : memref<1x128xf32, #tpu.memory_space<vmem>>, vector<1x128xf32>
      %14 = vector.broadcast %13 : vector<1x128xf32> to vector<256x128xf32>
      %15 = arith.addf %12, %14 : vector<256x128xf32>
      %c0_14 = arith.constant 0 : index
      %c0_15 = arith.constant 0 : index
      %16 = vector.load %arg6[%c0_14, %c0_15] : memref<256x128xf32, #tpu.memory_space<vmem>>, vector<256x128xf32>
      tpu.vector_store %arg6[%c0_14, %c0_15], %15 {strides = array<i32>} : memref<256x128xf32, #tpu.memory_space<vmem>>, vector<256x128xf32>,
    } else {
    }
    return
  }
  func.func @transform_0(%arg0: i32, %arg1: i32, %arg2: i32) -> (i32, i32) {
    %c0_i32 = arith.constant 0 : i32
    return %arg0, %arg2 : i32, i32
  }
  func.func @transform_1(%arg0: i32, %arg1: i32, %arg2: i32) -> (i32, i32) {
    %c0_i32 = arith.constant 0 : i32
    return %arg2, %arg1 : i32, i32
  }
  func.func @transform_2(%arg0: i32, %arg1: i32, %arg2: i32) -> (i32, i32) {
    %c0_i32 = arith.constant 0 : i32
    %c0_i32_0 = arith.constant 0 : i32
    return %c0_i32, %arg1 : i32, i32
  }
  func.func @transform_3(%arg0: i32, %arg1: i32, %arg2: i32) -> (i32, i32) {
    %c0_i32 = arith.constant 0 : i32
    return %arg0, %arg1 : i32, i32
  }
}

module attributes {stable_mosaic.version = 11 : i64} {
  func.func @_flash_packed_kernel(%arg0: i32, %arg1: i32, %arg2: i32, %arg3: memref<1x128x128xf32, #tpu.memory_space<vmem>>, %arg4: memref<1x128x128xf32, #tpu.memory_space<vmem>>, %arg5: memref<1x128x128xf32, #tpu.memory_space<vmem>>, %arg6: memref<1x128x128xf32, #tpu.memory_space<vmem>>, %arg7: memref<4x128x1xf32, #tpu.memory_space<vmem>>, %arg8: memref<4x128x1xf32, #tpu.memory_space<vmem>>, %arg9: memref<128x128xf32, #tpu.memory_space<vmem>>) attributes {dimension_semantics = [#tpu.dimension_semantics<parallel>, #tpu.dimension_semantics<parallel>, #tpu.dimension_semantics<arbitrary>], iteration_bounds = array<i64: 2, 1, 1>, scalar_prefetch = 0 : i64, scratch_operands = 3 : i64, tpu.core_type = #tpu.core_type<tc>, window_params = [{transform_indices = @transform_0, window_bounds = array<i64: 1, 128, 128>}, {transform_indices = @transform_1, window_bounds = array<i64: 1, 128, 128>}, {transform_indices = @transform_2, window_bounds = array<i64: 1, 128, 128>}, {transform_indices = @transform_3, window_bounds = array<i64: 1, 128, 128>}]} {
    %c0_i32 = arith.constant 0 : i32
    %0 = arith.cmpi eq, %arg2, %c0_i32 : i32
    %1 = arith.extui %0 : i1 to i32
    %c0_i32_0 = arith.constant 0 : i32
    %2 = arith.cmpi ne, %1, %c0_i32_0 : i32
    scf.if %2 {
      %cst_117 = arith.constant 0xFF800000 : f32
      %155 = vector.broadcast %cst_117 : f32 to vector<4x128x1xf32>
      %c0_118 = arith.constant 0 : index
      %c0_119 = arith.constant 0 : index
      %c0_120 = arith.constant 0 : index
      %156 = vector.load %arg7[%c0_118, %c0_119, %c0_120] : memref<4x128x1xf32, #tpu.memory_space<vmem>>, vector<4x128x1xf32>
      tpu.vector_store %arg7[%c0_118, %c0_119, %c0_120], %155 {strides = array<i32>} : memref<4x128x1xf32, #tpu.memory_space<vmem>>, vector<4x128x1xf32>,
      %cst_121 = arith.constant 0.000000e+00 : f32
      %157 = vector.broadcast %cst_121 : f32 to vector<4x128x1xf32>
      %c0_122 = arith.constant 0 : index
      %c0_123 = arith.constant 0 : index
      %c0_124 = arith.constant 0 : index
      %158 = vector.load %arg8[%c0_122, %c0_123, %c0_124] : memref<4x128x1xf32, #tpu.memory_space<vmem>>, vector<4x128x1xf32>
      tpu.vector_store %arg8[%c0_122, %c0_123, %c0_124], %157 {strides = array<i32>} : memref<4x128x1xf32, #tpu.memory_space<vmem>>, vector<4x128x1xf32>,
      %cst_125 = arith.constant 0.000000e+00 : f32
      %159 = vector.broadcast %cst_125 : f32 to vector<128x128xf32>
      %c0_126 = arith.constant 0 : index
      %c0_127 = arith.constant 0 : index
      %160 = vector.load %arg9[%c0_126, %c0_127] : memref<128x128xf32, #tpu.memory_space<vmem>>, vector<128x128xf32>
      tpu.vector_store %arg9[%c0_126, %c0_127], %159 {strides = array<i32>} : memref<128x128xf32, #tpu.memory_space<vmem>>, vector<128x128xf32>,
    } else {
    }
    %c0 = arith.constant 0 : index
    %c0_1 = arith.constant 0 : index
    %c0_2 = arith.constant 0 : index
    %3 = vector.load %arg3[%c0, %c0_1, %c0_2] : memref<1x128x128xf32, #tpu.memory_space<vmem>>, vector<1x128x32xf32>
    %4 = vector.shape_cast %3 : vector<1x128x32xf32> to vector<128x32xf32>
    %c0_3 = arith.constant 0 : index
    %c0_4 = arith.constant 0 : index
    %c0_5 = arith.constant 0 : index
    %5 = vector.load %arg4[%c0_3, %c0_4, %c0_5] : memref<1x128x128xf32, #tpu.memory_space<vmem>>, vector<1x128x32xf32>
    %6 = vector.shape_cast %5 : vector<1x128x32xf32> to vector<128x32xf32>
    %c0_6 = arith.constant 0 : index
    %c0_7 = arith.constant 0 : index
    %c0_8 = arith.constant 0 : index
    %7 = vector.load %arg5[%c0_6, %c0_7, %c0_8] : memref<1x128x128xf32, #tpu.memory_space<vmem>>, vector<1x128x32xf32>
    %8 = vector.shape_cast %7 : vector<1x128x32xf32> to vector<128x32xf32>
    %cst = arith.constant dense<0.000000e+00> : vector<128x128xf32>
    %9 = tpu.matmul %4, %6, %cst {dimension_numbers = #tpu.dot_dimension_numbers<[1], [1], [0], [0], [0, 0, 1, 0], [], []>} : vector<128x32xf32>, vector<128x32xf32>, vector<128x128xf32> -> vector<128x128xf32>
    %c0_9 = arith.constant 0 : index
    %c0_10 = arith.constant 0 : index
    %c0_11 = arith.constant 0 : index
    %10 = vector.load %arg7[%c0_9, %c0_10, %c0_11] : memref<4x128x1xf32, #tpu.memory_space<vmem>>, vector<1x128x1xf32>
    %11 = vector.shape_cast %10 : vector<1x128x1xf32> to vector<128x1xf32>
    %c0_12 = arith.constant 0 : index
    %c0_13 = arith.constant 0 : index
    %c0_14 = arith.constant 0 : index
    %12 = vector.load %arg8[%c0_12, %c0_13, %c0_14] : memref<4x128x1xf32, #tpu.memory_space<vmem>>, vector<1x128x1xf32>
    %13 = vector.shape_cast %12 : vector<1x128x1xf32> to vector<128x1xf32>
    %cst_15 = arith.constant dense<0xFF800000> : vector<128xf32>
    %14 = vector.multi_reduction <maximumf>, %9, %cst_15 [1] : vector<128x128xf32> to vector<128xf32>
    %15 = vector.shape_cast %14 : vector<128xf32> to vector<128x1xf32>
    %16 = arith.maximumf %11, %15 : vector<128x1xf32>
    %17 = arith.subf %11, %16 : vector<128x1xf32>
    %18 = math.exp %17 : vector<128x1xf32>
    %19 = vector.broadcast %16 : vector<128x1xf32> to vector<128x128xf32>
    %20 = arith.subf %9, %19 : vector<128x128xf32>
    %21 = math.exp %20 : vector<128x128xf32>
    %22 = arith.mulf %18, %13 : vector<128x1xf32>
    %cst_16 = arith.constant dense<0.000000e+00> : vector<128xf32>
    %23 = vector.multi_reduction <add>, %21, %cst_16 [1] : vector<128x128xf32> to vector<128xf32>
    %24 = vector.shape_cast %23 : vector<128xf32> to vector<128x1xf32>
    %25 = arith.addf %22, %24 : vector<128x1xf32>
    %cst_17 = arith.constant dense<0.000000e+00> : vector<128x32xf32>
    %26 = tpu.matmul %21, %8, %cst_17 {dimension_numbers = #tpu.dot_dimension_numbers<[1], [0], [0], [1], [0, 0, 1, 1], [], []>} : vector<128x128xf32>, vector<128x32xf32>, vector<128x32xf32> -> vector<128x32xf32>
    %c0_18 = arith.constant 0 : index
    %c0_19 = arith.constant 0 : index
    %27 = vector.load %arg9[%c0_18, %c0_19] : memref<128x128xf32, #tpu.memory_space<vmem>>, vector<128x32xf32>
    %28 = vector.broadcast %18 : vector<128x1xf32> to vector<128x32xf32>
    %29 = arith.mulf %28, %27 : vector<128x32xf32>
    %30 = arith.addf %29, %26 : vector<128x32xf32>
    %c0_20 = arith.constant 0 : index
    %c0_21 = arith.constant 0 : index
    %c0_22 = arith.constant 0 : index
    %31 = vector.load %arg7[%c0_20, %c0_21, %c0_22] : memref<4x128x1xf32, #tpu.memory_space<vmem>>, vector<1x128x1xf32>
    %32 = vector.shape_cast %31 : vector<1x128x1xf32> to vector<128x1xf32>
    %33 = vector.shape_cast %16 : vector<128x1xf32> to vector<1x128x1xf32>
    tpu.vector_store %arg7[%c0_20, %c0_21, %c0_22], %33 {strides = array<i32>} : memref<4x128x1xf32, #tpu.memory_space<vmem>>, vector<1x128x1xf32>,
    %c0_23 = arith.constant 0 : index
    %c0_24 = arith.constant 0 : index
    %c0_25 = arith.constant 0 : index
    %34 = vector.load %arg8[%c0_23, %c0_24, %c0_25] : memref<4x128x1xf32, #tpu.memory_space<vmem>>, vector<1x128x1xf32>
    %35 = vector.shape_cast %34 : vector<1x128x1xf32> to vector<128x1xf32>
    %36 = vector.shape_cast %25 : vector<128x1xf32> to vector<1x128x1xf32>
    tpu.vector_store %arg8[%c0_23, %c0_24, %c0_25], %36 {strides = array<i32>} : memref<4x128x1xf32, #tpu.memory_space<vmem>>, vector<1x128x1xf32>,
    %c0_26 = arith.constant 0 : index
    %c0_27 = arith.constant 0 : index
    %37 = vector.load %arg9[%c0_26, %c0_27] : memref<128x128xf32, #tpu.memory_space<vmem>>, vector<128x32xf32>
    tpu.vector_store %arg9[%c0_26, %c0_27], %30 {strides = array<i32>} : memref<128x128xf32, #tpu.memory_space<vmem>>, vector<128x32xf32>,
    %c0_i32_28 = arith.constant 0 : i32
    %38 = arith.cmpi eq, %arg2, %c0_i32_28 : i32
    %39 = arith.extui %38 : i1 to i32
    %c0_i32_29 = arith.constant 0 : i32
    %40 = arith.cmpi ne, %39, %c0_i32_29 : i32
    scf.if %40 {
      %155 = vector.broadcast %25 : vector<128x1xf32> to vector<128x32xf32>
      %156 = arith.divf %30, %155 : vector<128x32xf32>
      %c0_117 = arith.constant 0 : index
      %c0_118 = arith.constant 0 : index
      %c0_119 = arith.constant 0 : index
      %157 = vector.load %arg6[%c0_117, %c0_118, %c0_119] : memref<1x128x128xf32, #tpu.memory_space<vmem>>, vector<1x128x32xf32>
      %158 = vector.shape_cast %157 : vector<1x128x32xf32> to vector<128x32xf32>
      %159 = vector.shape_cast %156 : vector<128x32xf32> to vector<1x128x32xf32>
      tpu.vector_store %arg6[%c0_117, %c0_118, %c0_119], %159 {strides = array<i32>} : memref<1x128x128xf32, #tpu.memory_space<vmem>>, vector<1x128x32xf32>,
    } else {
    }
    %c0_30 = arith.constant 0 : index
    %c0_31 = arith.constant 0 : index
    %c32 = arith.constant 32 : index
    %41 = vector.load %arg3[%c0_30, %c0_31, %c32] : memref<1x128x128xf32, #tpu.memory_space<vmem>>, vector<1x128x32xf32>
    %42 = vector.shape_cast %41 : vector<1x128x32xf32> to vector<128x32xf32>
    %c0_32 = arith.constant 0 : index
    %c0_33 = arith.constant 0 : index
    %c32_34 = arith.constant 32 : index
    %43 = vector.load %arg4[%c0_32, %c0_33, %c32_34] : memref<1x128x128xf32, #tpu.memory_space<vmem>>, vector<1x128x32xf32>
    %44 = vector.shape_cast %43 : vector<1x128x32xf32> to vector<128x32xf32>
    %c0_35 = arith.constant 0 : index
    %c0_36 = arith.constant 0 : index
    %c32_37 = arith.constant 32 : index
    %45 = vector.load %arg5[%c0_35, %c0_36, %c32_37] : memref<1x128x128xf32, #tpu.memory_space<vmem>>, vector<1x128x32xf32>
    %46 = vector.shape_cast %45 : vector<1x128x32xf32> to vector<128x32xf32>
    %cst_38 = arith.constant dense<0.000000e+00> : vector<128x128xf32>
    %47 = tpu.matmul %42, %44, %cst_38 {dimension_numbers = #tpu.dot_dimension_numbers<[1], [1], [0], [0], [0, 0, 1, 0], [], []>} : vector<128x32xf32>, vector<128x32xf32>, vector<128x128xf32> -> vector<128x128xf32>
    %c1 = arith.constant 1 : index
    %c0_39 = arith.constant 0 : index
    %c0_40 = arith.constant 0 : index
    %48 = vector.load %arg7[%c1, %c0_39, %c0_40] : memref<4x128x1xf32, #tpu.memory_space<vmem>>, vector<1x128x1xf32>
    %49 = vector.shape_cast %48 : vector<1x128x1xf32> to vector<128x1xf32>
    %c1_41 = arith.constant 1 : index
    %c0_42 = arith.constant 0 : index
    %c0_43 = arith.constant 0 : index
    %50 = vector.load %arg8[%c1_41, %c0_42, %c0_43] : memref<4x128x1xf32, #tpu.memory_space<vmem>>, vector<1x128x1xf32>
    %51 = vector.shape_cast %50 : vector<1x128x1xf32> to vector<128x1xf32>
    %cst_44 = arith.constant dense<0xFF800000> : vector<128xf32>
    %52 = vector.multi_reduction <maximumf>, %47, %cst_44 [1] : vector<128x128xf32> to vector<128xf32>
    %53 = vector.shape_cast %52 : vector<128xf32> to vector<128x1xf32>
    %54 = arith.maximumf %49, %53 : vector<128x1xf32>
    %55 = arith.subf %49, %54 : vector<128x1xf32>
    %56 = math.exp %55 : vector<128x1xf32>
    %57 = vector.broadcast %54 : vector<128x1xf32> to vector<128x128xf32>
    %58 = arith.subf %47, %57 : vector<128x128xf32>
    %59 = math.exp %58 : vector<128x128xf32>
    %60 = arith.mulf %56, %51 : vector<128x1xf32>
    %cst_45 = arith.constant dense<0.000000e+00> : vector<128xf32>
    %61 = vector.multi_reduction <add>, %59, %cst_45 [1] : vector<128x128xf32> to vector<128xf32>
    %62 = vector.shape_cast %61 : vector<128xf32> to vector<128x1xf32>
    %63 = arith.addf %60, %62 : vector<128x1xf32>
    %cst_46 = arith.constant dense<0.000000e+00> : vector<128x32xf32>
    %64 = tpu.matmul %59, %46, %cst_46 {dimension_numbers = #tpu.dot_dimension_numbers<[1], [0], [0], [1], [0, 0, 1, 1], [], []>} : vector<128x128xf32>, vector<128x32xf32>, vector<128x32xf32> -> vector<128x32xf32>
    %c0_47 = arith.constant 0 : index
    %c32_48 = arith.constant 32 : index
    %65 = vector.load %arg9[%c0_47, %c32_48] : memref<128x128xf32, #tpu.memory_space<vmem>>, vector<128x32xf32>
    %66 = vector.broadcast %56 : vector<128x1xf32> to vector<128x32xf32>
    %67 = arith.mulf %66, %65 : vector<128x32xf32>
    %68 = arith.addf %67, %64 : vector<128x32xf32>
    %c1_49 = arith.constant 1 : index
    %c0_50 = arith.constant 0 : index
    %c0_51 = arith.constant 0 : index
    %69 = vector.load %arg7[%c1_49, %c0_50, %c0_51] : memref<4x128x1xf32, #tpu.memory_space<vmem>>, vector<1x128x1xf32>
    %70 = vector.shape_cast %69 : vector<1x128x1xf32> to vector<128x1xf32>
    %71 = vector.shape_cast %54 : vector<128x1xf32> to vector<1x128x1xf32>
    tpu.vector_store %arg7[%c1_49, %c0_50, %c0_51], %71 {strides = array<i32>} : memref<4x128x1xf32, #tpu.memory_space<vmem>>, vector<1x128x1xf32>,
    %c1_52 = arith.constant 1 : index
    %c0_53 = arith.constant 0 : index
    %c0_54 = arith.constant 0 : index
    %72 = vector.load %arg8[%c1_52, %c0_53, %c0_54] : memref<4x128x1xf32, #tpu.memory_space<vmem>>, vector<1x128x1xf32>
    %73 = vector.shape_cast %72 : vector<1x128x1xf32> to vector<128x1xf32>
    %74 = vector.shape_cast %63 : vector<128x1xf32> to vector<1x128x1xf32>
    tpu.vector_store %arg8[%c1_52, %c0_53, %c0_54], %74 {strides = array<i32>} : memref<4x128x1xf32, #tpu.memory_space<vmem>>, vector<1x128x1xf32>,
    %c0_55 = arith.constant 0 : index
    %c32_56 = arith.constant 32 : index
    %75 = vector.load %arg9[%c0_55, %c32_56] : memref<128x128xf32, #tpu.memory_space<vmem>>, vector<128x32xf32>
    tpu.vector_store %arg9[%c0_55, %c32_56], %68 {strides = array<i32>} : memref<128x128xf32, #tpu.memory_space<vmem>>, vector<128x32xf32>,
    %c0_i32_57 = arith.constant 0 : i32
    %76 = arith.cmpi eq, %arg2, %c0_i32_57 : i32
    %77 = arith.extui %76 : i1 to i32
    %c0_i32_58 = arith.constant 0 : i32
    %78 = arith.cmpi ne, %77, %c0_i32_58 : i32
    scf.if %78 {
      %155 = vector.broadcast %63 : vector<128x1xf32> to vector<128x32xf32>
      %156 = arith.divf %68, %155 : vector<128x32xf32>
      %c0_117 = arith.constant 0 : index
      %c0_118 = arith.constant 0 : index
      %c32_119 = arith.constant 32 : index
      %157 = vector.load %arg6[%c0_117, %c0_118, %c32_119] : memref<1x128x128xf32, #tpu.memory_space<vmem>>, vector<1x128x32xf32>
      %158 = vector.shape_cast %157 : vector<1x128x32xf32> to vector<128x32xf32>
      %159 = vector.shape_cast %156 : vector<128x32xf32> to vector<1x128x32xf32>
      tpu.vector_store %arg6[%c0_117, %c0_118, %c32_119], %159 {strides = array<i32>} : memref<1x128x128xf32, #tpu.memory_space<vmem>>, vector<1x128x32xf32>,
    } else {
    }
    %c0_59 = arith.constant 0 : index
    %c0_60 = arith.constant 0 : index
    %c64 = arith.constant 64 : index
    %79 = vector.load %arg3[%c0_59, %c0_60, %c64] : memref<1x128x128xf32, #tpu.memory_space<vmem>>, vector<1x128x32xf32>
    %80 = vector.shape_cast %79 : vector<1x128x32xf32> to vector<128x32xf32>
    %c0_61 = arith.constant 0 : index
    %c0_62 = arith.constant 0 : index
    %c64_63 = arith.constant 64 : index
    %81 = vector.load %arg4[%c0_61, %c0_62, %c64_63] : memref<1x128x128xf32, #tpu.memory_space<vmem>>, vector<1x128x32xf32>
    %82 = vector.shape_cast %81 : vector<1x128x32xf32> to vector<128x32xf32>
    %c0_64 = arith.constant 0 : index
    %c0_65 = arith.constant 0 : index
    %c64_66 = arith.constant 64 : index
    %83 = vector.load %arg5[%c0_64, %c0_65, %c64_66] : memref<1x128x128xf32, #tpu.memory_space<vmem>>, vector<1x128x32xf32>
    %84 = vector.shape_cast %83 : vector<1x128x32xf32> to vector<128x32xf32>
    %cst_67 = arith.constant dense<0.000000e+00> : vector<128x128xf32>
    %85 = tpu.matmul %80, %82, %cst_67 {dimension_numbers = #tpu.dot_dimension_numbers<[1], [1], [0], [0], [0, 0, 1, 0], [], []>} : vector<128x32xf32>, vector<128x32xf32>, vector<128x128xf32> -> vector<128x128xf32>
    %c2 = arith.constant 2 : index
    %c0_68 = arith.constant 0 : index
    %c0_69 = arith.constant 0 : index
    %86 = vector.load %arg7[%c2, %c0_68, %c0_69] : memref<4x128x1xf32, #tpu.memory_space<vmem>>, vector<1x128x1xf32>
    %87 = vector.shape_cast %86 : vector<1x128x1xf32> to vector<128x1xf32>
    %c2_70 = arith.constant 2 : index
    %c0_71 = arith.constant 0 : index
    %c0_72 = arith.constant 0 : index
    %88 = vector.load %arg8[%c2_70, %c0_71, %c0_72] : memref<4x128x1xf32, #tpu.memory_space<vmem>>, vector<1x128x1xf32>
    %89 = vector.shape_cast %88 : vector<1x128x1xf32> to vector<128x1xf32>
    %cst_73 = arith.constant dense<0xFF800000> : vector<128xf32>
    %90 = vector.multi_reduction <maximumf>, %85, %cst_73 [1] : vector<128x128xf32> to vector<128xf32>
    %91 = vector.shape_cast %90 : vector<128xf32> to vector<128x1xf32>
    %92 = arith.maximumf %87, %91 : vector<128x1xf32>
    %93 = arith.subf %87, %92 : vector<128x1xf32>
    %94 = math.exp %93 : vector<128x1xf32>
    %95 = vector.broadcast %92 : vector<128x1xf32> to vector<128x128xf32>
    %96 = arith.subf %85, %95 : vector<128x128xf32>
    %97 = math.exp %96 : vector<128x128xf32>
    %98 = arith.mulf %94, %89 : vector<128x1xf32>
    %cst_74 = arith.constant dense<0.000000e+00> : vector<128xf32>
    %99 = vector.multi_reduction <add>, %97, %cst_74 [1] : vector<128x128xf32> to vector<128xf32>
    %100 = vector.shape_cast %99 : vector<128xf32> to vector<128x1xf32>
    %101 = arith.addf %98, %100 : vector<128x1xf32>
    %cst_75 = arith.constant dense<0.000000e+00> : vector<128x32xf32>
    %102 = tpu.matmul %97, %84, %cst_75 {dimension_numbers = #tpu.dot_dimension_numbers<[1], [0], [0], [1], [0, 0, 1, 1], [], []>} : vector<128x128xf32>, vector<128x32xf32>, vector<128x32xf32> -> vector<128x32xf32>
    %c0_76 = arith.constant 0 : index
    %c64_77 = arith.constant 64 : index
    %103 = vector.load %arg9[%c0_76, %c64_77] : memref<128x128xf32, #tpu.memory_space<vmem>>, vector<128x32xf32>
    %104 = vector.broadcast %94 : vector<128x1xf32> to vector<128x32xf32>
    %105 = arith.mulf %104, %103 : vector<128x32xf32>
    %106 = arith.addf %105, %102 : vector<128x32xf32>
    %c2_78 = arith.constant 2 : index
    %c0_79 = arith.constant 0 : index
    %c0_80 = arith.constant 0 : index
    %107 = vector.load %arg7[%c2_78, %c0_79, %c0_80] : memref<4x128x1xf32, #tpu.memory_space<vmem>>, vector<1x128x1xf32>
    %108 = vector.shape_cast %107 : vector<1x128x1xf32> to vector<128x1xf32>
    %109 = vector.shape_cast %92 : vector<128x1xf32> to vector<1x128x1xf32>
    tpu.vector_store %arg7[%c2_78, %c0_79, %c0_80], %109 {strides = array<i32>} : memref<4x128x1xf32, #tpu.memory_space<vmem>>, vector<1x128x1xf32>,
    %c2_81 = arith.constant 2 : index
    %c0_82 = arith.constant 0 : index
    %c0_83 = arith.constant 0 : index
    %110 = vector.load %arg8[%c2_81, %c0_82, %c0_83] : memref<4x128x1xf32, #tpu.memory_space<vmem>>, vector<1x128x1xf32>
    %111 = vector.shape_cast %110 : vector<1x128x1xf32> to vector<128x1xf32>
    %112 = vector.shape_cast %101 : vector<128x1xf32> to vector<1x128x1xf32>
    tpu.vector_store %arg8[%c2_81, %c0_82, %c0_83], %112 {strides = array<i32>} : memref<4x128x1xf32, #tpu.memory_space<vmem>>, vector<1x128x1xf32>,
    %c0_84 = arith.constant 0 : index
    %c64_85 = arith.constant 64 : index
    %113 = vector.load %arg9[%c0_84, %c64_85] : memref<128x128xf32, #tpu.memory_space<vmem>>, vector<128x32xf32>
    tpu.vector_store %arg9[%c0_84, %c64_85], %106 {strides = array<i32>} : memref<128x128xf32, #tpu.memory_space<vmem>>, vector<128x32xf32>,
    %c0_i32_86 = arith.constant 0 : i32
    %114 = arith.cmpi eq, %arg2, %c0_i32_86 : i32
    %115 = arith.extui %114 : i1 to i32
    %c0_i32_87 = arith.constant 0 : i32
    %116 = arith.cmpi ne, %115, %c0_i32_87 : i32
    scf.if %116 {
      %155 = vector.broadcast %101 : vector<128x1xf32> to vector<128x32xf32>
      %156 = arith.divf %106, %155 : vector<128x32xf32>
      %c0_117 = arith.constant 0 : index
      %c0_118 = arith.constant 0 : index
      %c64_119 = arith.constant 64 : index
      %157 = vector.load %arg6[%c0_117, %c0_118, %c64_119] : memref<1x128x128xf32, #tpu.memory_space<vmem>>, vector<1x128x32xf32>
      %158 = vector.shape_cast %157 : vector<1x128x32xf32> to vector<128x32xf32>
      %159 = vector.shape_cast %156 : vector<128x32xf32> to vector<1x128x32xf32>
      tpu.vector_store %arg6[%c0_117, %c0_118, %c64_119], %159 {strides = array<i32>} : memref<1x128x128xf32, #tpu.memory_space<vmem>>, vector<1x128x32xf32>,
    } else {
    }
    %c0_88 = arith.constant 0 : index
    %c0_89 = arith.constant 0 : index
    %c96 = arith.constant 96 : index
    %117 = vector.load %arg3[%c0_88, %c0_89, %c96] : memref<1x128x128xf32, #tpu.memory_space<vmem>>, vector<1x128x32xf32>
    %118 = vector.shape_cast %117 : vector<1x128x32xf32> to vector<128x32xf32>
    %c0_90 = arith.constant 0 : index
    %c0_91 = arith.constant 0 : index
    %c96_92 = arith.constant 96 : index
    %119 = vector.load %arg4[%c0_90, %c0_91, %c96_92] : memref<1x128x128xf32, #tpu.memory_space<vmem>>, vector<1x128x32xf32>
    %120 = vector.shape_cast %119 : vector<1x128x32xf32> to vector<128x32xf32>
    %c0_93 = arith.constant 0 : index
    %c0_94 = arith.constant 0 : index
    %c96_95 = arith.constant 96 : index
    %121 = vector.load %arg5[%c0_93, %c0_94, %c96_95] : memref<1x128x128xf32, #tpu.memory_space<vmem>>, vector<1x128x32xf32>
    %122 = vector.shape_cast %121 : vector<1x128x32xf32> to vector<128x32xf32>
    %cst_96 = arith.constant dense<0.000000e+00> : vector<128x128xf32>
    %123 = tpu.matmul %118, %120, %cst_96 {dimension_numbers = #tpu.dot_dimension_numbers<[1], [1], [0], [0], [0, 0, 1, 0], [], []>} : vector<128x32xf32>, vector<128x32xf32>, vector<128x128xf32> -> vector<128x128xf32>
    %c3 = arith.constant 3 : index
    %c0_97 = arith.constant 0 : index
    %c0_98 = arith.constant 0 : index
    %124 = vector.load %arg7[%c3, %c0_97, %c0_98] : memref<4x128x1xf32, #tpu.memory_space<vmem>>, vector<1x128x1xf32>
    %125 = vector.shape_cast %124 : vector<1x128x1xf32> to vector<128x1xf32>
    %c3_99 = arith.constant 3 : index
    %c0_100 = arith.constant 0 : index
    %c0_101 = arith.constant 0 : index
    %126 = vector.load %arg8[%c3_99, %c0_100, %c0_101] : memref<4x128x1xf32, #tpu.memory_space<vmem>>, vector<1x128x1xf32>
    %127 = vector.shape_cast %126 : vector<1x128x1xf32> to vector<128x1xf32>
    %cst_102 = arith.constant dense<0xFF800000> : vector<128xf32>
    %128 = vector.multi_reduction <maximumf>, %123, %cst_102 [1] : vector<128x128xf32> to vector<128xf32>
    %129 = vector.shape_cast %128 : vector<128xf32> to vector<128x1xf32>
    %130 = arith.maximumf %125, %129 : vector<128x1xf32>
    %131 = arith.subf %125, %130 : vector<128x1xf32>
    %132 = math.exp %131 : vector<128x1xf32>
    %133 = vector.broadcast %130 : vector<128x1xf32> to vector<128x128xf32>
    %134 = arith.subf %123, %133 : vector<128x128xf32>
    %135 = math.exp %134 : vector<128x128xf32>
    %136 = arith.mulf %132, %127 : vector<128x1xf32>
    %cst_103 = arith.constant dense<0.000000e+00> : vector<128xf32>
    %137 = vector.multi_reduction <add>, %135, %cst_103 [1] : vector<128x128xf32> to vector<128xf32>
    %138 = vector.shape_cast %137 : vector<128xf32> to vector<128x1xf32>
    %139 = arith.addf %136, %138 : vector<128x1xf32>
    %cst_104 = arith.constant dense<0.000000e+00> : vector<128x32xf32>
    %140 = tpu.matmul %135, %122, %cst_104 {dimension_numbers = #tpu.dot_dimension_numbers<[1], [0], [0], [1], [0, 0, 1, 1], [], []>} : vector<128x128xf32>, vector<128x32xf32>, vector<128x32xf32> -> vector<128x32xf32>
    %c0_105 = arith.constant 0 : index
    %c96_106 = arith.constant 96 : index
    %141 = vector.load %arg9[%c0_105, %c96_106] : memref<128x128xf32, #tpu.memory_space<vmem>>, vector<128x32xf32>
    %142 = vector.broadcast %132 : vector<128x1xf32> to vector<128x32xf32>
    %143 = arith.mulf %142, %141 : vector<128x32xf32>
    %144 = arith.addf %143, %140 : vector<128x32xf32>
    %c3_107 = arith.constant 3 : index
    %c0_108 = arith.constant 0 : index
    %c0_109 = arith.constant 0 : index
    %145 = vector.load %arg7[%c3_107, %c0_108, %c0_109] : memref<4x128x1xf32, #tpu.memory_space<vmem>>, vector<1x128x1xf32>
    %146 = vector.shape_cast %145 : vector<1x128x1xf32> to vector<128x1xf32>
    %147 = vector.shape_cast %130 : vector<128x1xf32> to vector<1x128x1xf32>
    tpu.vector_store %arg7[%c3_107, %c0_108, %c0_109], %147 {strides = array<i32>} : memref<4x128x1xf32, #tpu.memory_space<vmem>>, vector<1x128x1xf32>,
    %c3_110 = arith.constant 3 : index
    %c0_111 = arith.constant 0 : index
    %c0_112 = arith.constant 0 : index
    %148 = vector.load %arg8[%c3_110, %c0_111, %c0_112] : memref<4x128x1xf32, #tpu.memory_space<vmem>>, vector<1x128x1xf32>
    %149 = vector.shape_cast %148 : vector<1x128x1xf32> to vector<128x1xf32>
    %150 = vector.shape_cast %139 : vector<128x1xf32> to vector<1x128x1xf32>
    tpu.vector_store %arg8[%c3_110, %c0_111, %c0_112], %150 {strides = array<i32>} : memref<4x128x1xf32, #tpu.memory_space<vmem>>, vector<1x128x1xf32>,
    %c0_113 = arith.constant 0 : index
    %c96_114 = arith.constant 96 : index
    %151 = vector.load %arg9[%c0_113, %c96_114] : memref<128x128xf32, #tpu.memory_space<vmem>>, vector<128x32xf32>
    tpu.vector_store %arg9[%c0_113, %c96_114], %144 {strides = array<i32>} : memref<128x128xf32, #tpu.memory_space<vmem>>, vector<128x32xf32>,
    %c0_i32_115 = arith.constant 0 : i32
    %152 = arith.cmpi eq, %arg2, %c0_i32_115 : i32
    %153 = arith.extui %152 : i1 to i32
    %c0_i32_116 = arith.constant 0 : i32
    %154 = arith.cmpi ne, %153, %c0_i32_116 : i32
    scf.if %154 {
      %155 = vector.broadcast %139 : vector<128x1xf32> to vector<128x32xf32>
      %156 = arith.divf %144, %155 : vector<128x32xf32>
      %c0_117 = arith.constant 0 : index
      %c0_118 = arith.constant 0 : index
      %c96_119 = arith.constant 96 : index
      %157 = vector.load %arg6[%c0_117, %c0_118, %c96_119] : memref<1x128x128xf32, #tpu.memory_space<vmem>>, vector<1x128x32xf32>
      %158 = vector.shape_cast %157 : vector<1x128x32xf32> to vector<128x32xf32>
      %159 = vector.shape_cast %156 : vector<128x32xf32> to vector<1x128x32xf32>
      tpu.vector_store %arg6[%c0_117, %c0_118, %c96_119], %159 {strides = array<i32>} : memref<1x128x128xf32, #tpu.memory_space<vmem>>, vector<1x128x32xf32>,
    } else {
    }
    return
  }
  func.func @transform_0(%arg0: i32, %arg1: i32, %arg2: i32) -> (i32, i32, i32) {
    %c0_i32 = arith.constant 0 : i32
    %c0_i32_0 = arith.constant 0 : i32
    return %arg0, %arg1, %c0_i32 : i32, i32, i32
  }
  func.func @transform_1(%arg0: i32, %arg1: i32, %arg2: i32) -> (i32, i32, i32) {
    %c1_i32 = arith.constant 1 : i32
    %c0_i32 = arith.constant 0 : i32
    return %arg0, %arg2, %c1_i32 : i32, i32, i32
  }
  func.func @transform_2(%arg0: i32, %arg1: i32, %arg2: i32) -> (i32, i32, i32) {
    %c2_i32 = arith.constant 2 : i32
    %c0_i32 = arith.constant 0 : i32
    return %arg0, %arg2, %c2_i32 : i32, i32, i32
  }
  func.func @transform_3(%arg0: i32, %arg1: i32, %arg2: i32) -> (i32, i32, i32) {
    %c0_i32 = arith.constant 0 : i32
    %c0_i32_0 = arith.constant 0 : i32
    return %arg0, %arg1, %c0_i32 : i32, i32, i32
  }
}

</mosaic_0001>

<bundles_post_ra>
// kernel: multi_head_self_attention.5
= control target key start
LH: loop header
LB: loop body
LE: loop exit
PB: predicated region body
PF: predicated region fallthrough
CT: control target
= control target key end

     0   :  { %s962_s0 = inlined_call_operand.vmem [shape: f32[256,128], index: 0, kind: input, shape index: {}]   ;;  %s963_s1 = inlined_call_operand.vmem [shape: f32[128,128], index: 1, kind: input, shape index: {}]   ;;  %s964_s2 = inlined_call_operand.vmem [shape: f32[1,128], index: 2, kind: input, shape index: {}]   ;;  %s965_s3 = inlined_call_operand.hbm [shape: f32[256,128], index: 3, kind: output, shape index: {}]  }
   0x1   :  { %v115_v0 = vld [vmem:[%s963_s1] sm:$0xff]  ;;  %v116_v1 = vld [vmem:[%s963_s1 + $0x8] sm:$0xff]  ;;  %v117_v2 = vld [vmem:[%s963_s1 + $0x10] sm:$0xff] }
   0x2   :  { %v671_v3 = vpack.c.bf16 %v116_v1, %v115_v0  ;;  %v118_v4 = vld [vmem:[%s963_s1 + $0x18] sm:$0xff]  ;;  %v119_v6 = vld [vmem:[%s963_s1 + $0x20] sm:$0xff]  ;;  %v120_v7 = vld [vmem:[%s963_s1 + $0x28] sm:$0xff] }
   0x3   :  { %v675_v5 = vpack.c.bf16 %v118_v4, %v117_v2  ;;  %v679_v8 = vpack.c.bf16 %v120_v7, %v119_v6  ;;  %v83_v9 = vld [vmem:[%s962_s0] sm:$0xff]  ;;  %v121_v11 = vld [vmem:[%s963_s1 + $0x30] sm:$0xff]  ;;  %v122_v12 = vld [vmem:[%s963_s1 + $0x38] sm:$0xff] }
   0x4   :  { %672 = vmatprep.subr.bf16.mxu0 %v671_v3  ;;  %703 = vmatprep.subr.bf16.mxu1 %v671_v3  ;;  %v99_v10 = vld [vmem:[%s962_s0 + $0x80] sm:$0xff]  ;;  %v683_v13 = vpack.c.bf16 %v122_v12, %v121_v11  ;;  %v124_v15 = vld [vmem:[%s963_s1 + $0x48] sm:$0xff]  ;;  %v125_v17 = vld [vmem:[%s963_s1 + $0x50] sm:$0xff] }
   0x5   :  { %674 = vmatpush3.bf16.msra.mxu0 %v671_v3  ;;  %711 = vmatpush3.bf16.msra.mxu1 %v671_v3  ;;  %v123_v14 = vld [vmem:[%s963_s1 + $0x40] sm:$0xff]  ;;  %v126_v18 = vld [vmem:[%s963_s1 + $0x58] sm:$0xff] }
   0x6   :  { %676 = vmatprep.subr.bf16.mxu0 %v675_v5  ;;  %704 = vmatprep.subr.bf16.mxu1 %v675_v5  ;;  %v687_v16 = vpack.c.bf16 %v124_v15, %v123_v14 }
   0x7   :  { %623 = vmatprep.mubr.f32.mxu0 %v83_v9  ;;  %647 = vmatprep.mubr.f32.mxu1 %v99_v10 }
   0x9   :  { %678 = vmatpush3.bf16.msra.mxu0 %v675_v5  ;;  %712 = vmatpush3.bf16.msra.mxu1 %v675_v5 }
   0xa   :  { %680 = vmatprep.subr.bf16.mxu0 %v679_v8  ;;  %705 = vmatprep.subr.bf16.mxu1 %v679_v8 }
   0xd   :  { %682 = vmatpush3.bf16.msra.mxu0 %v679_v8  ;;  %713 = vmatpush3.bf16.msra.mxu1 %v679_v8 }
   0xe   :  { %684 = vmatprep.subr.bf16.mxu0 %v683_v13  ;;  %706 = vmatprep.subr.bf16.mxu1 %v683_v13 }
  0x11   :  { %686 = vmatpush3.bf16.msra.mxu0 %v683_v13  ;;  %714 = vmatpush3.bf16.msra.mxu1 %v683_v13 }
  0x12   :  { %8 = vsyncpa [#allocation4], 0  ;;  %688 = vmatprep.subr.bf16.mxu0 %v687_v16  ;;  %707 = vmatprep.subr.bf16.mxu1 %v687_v16  ;;  %v691_v19 = vpack.c.bf16 %v126_v18, %v125_v17  ;;  %v127_v20 = vld [vmem:[%s963_s1 + $0x60] sm:$0xff]  ;;  %v128_v21 = vld [vmem:[%s963_s1 + $0x68] sm:$0xff] }
  0x13   :  { %v695_v22 = vpack.c.bf16 %v128_v21, %v127_v20  ;;  %v129_v23 = vld [vmem:[%s963_s1 + $0x70] sm:$0xff]  ;;  %v130_v24 = vld [vmem:[%s963_s1 + $0x78] sm:$0xff]  ;;  %v84_v26 = vld [vmem:[%s962_s0 + $0x8] sm:$0xff] }
  0x14   :  { %v699_v25 = vpack.c.bf16 %v130_v24, %v129_v23  ;;  %v100_v27 = vld [vmem:[%s962_s0 + $0x88] sm:$0xff]  ;;  %v85_v28 = vld [vmem:[%s962_s0 + $0x10] sm:$0xff]  ;;  %v86_v30 = vld [vmem:[%s962_s0 + $0x18] sm:$0xff] }
  0x15   :  { %690 = vmatpush3.bf16.msra.mxu0 %v687_v16  ;;  %715 = vmatpush3.bf16.msra.mxu1 %v687_v16  ;;  %v101_v29 = vld [vmem:[%s962_s0 + $0x90] sm:$0xff]  ;;  %v102_v31 = vld [vmem:[%s962_s0 + $0x98] sm:$0xff]  ;;  %v87_v32 = vld [vmem:[%s962_s0 + $0x20] sm:$0xff] }
  0x16   :  { %692 = vmatprep.subr.bf16.mxu0 %v691_v19  ;;  %708 = vmatprep.subr.bf16.mxu1 %v691_v19  ;;  %v103_v33 = vld [vmem:[%s962_s0 + $0xa0] sm:$0xff]  ;;  %v88_v34 = vld [vmem:[%s962_s0 + $0x28] sm:$0xff]  ;;  %v89_v36 = vld [vmem:[%s962_s0 + $0x30] sm:$0xff] }
  0x17   :  { %v104_v35 = vld [vmem:[%s962_s0 + $0xa8] sm:$0xff]  ;;  %v105_v37 = vld [vmem:[%s962_s0 + $0xb0] sm:$0xff]  ;;  %v90_v38 = vld [vmem:[%s962_s0 + $0x38] sm:$0xff] }
  0x18   :  { %v106_v39 = vld [vmem:[%s962_s0 + $0xb8] sm:$0xff]  ;;  %v91_v40 = vld [vmem:[%s962_s0 + $0x40] sm:$0xff]  ;;  %v92_v42 = vld [vmem:[%s962_s0 + $0x48] sm:$0xff] }
  0x19   :  { %694 = vmatpush3.bf16.msra.mxu0 %v691_v19  ;;  %716 = vmatpush3.bf16.msra.mxu1 %v691_v19  ;;  %v107_v41 = vld [vmem:[%s962_s0 + $0xc0] sm:$0xff]  ;;  %v108_v43 = vld [vmem:[%s962_s0 + $0xc8] sm:$0xff]  ;;  %v93_v44 = vld [vmem:[%s962_s0 + $0x50] sm:$0xff] }
  0x1a   :  { %696 = vmatprep.subr.bf16.mxu0 %v695_v22  ;;  %709 = vmatprep.subr.bf16.mxu1 %v695_v22  ;;  %v109_v45 = vld [vmem:[%s962_s0 + $0xd0] sm:$0xff]  ;;  %v94_v46 = vld [vmem:[%s962_s0 + $0x58] sm:$0xff]  ;;  %v95_v48 = vld [vmem:[%s962_s0 + $0x60] sm:$0xff] }
  0x1b   :  { %v110_v47 = vld [vmem:[%s962_s0 + $0xd8] sm:$0xff]  ;;  %v111_v49 = vld [vmem:[%s962_s0 + $0xe0] sm:$0xff]  ;;  %v96_v50 = vld [vmem:[%s962_s0 + $0x68] sm:$0xff] }
  0x1c   :  { %v112_v51 = vld [vmem:[%s962_s0 + $0xe8] sm:$0xff]  ;;  %v97_v52 = vld [vmem:[%s962_s0 + $0x70] sm:$0xff]  ;;  %v98_v54 = vld [vmem:[%s962_s0 + $0x78] sm:$0xff] }
  0x1d   :  { %698 = vmatpush3.bf16.msra.mxu0 %v695_v22  ;;  %717 = vmatpush3.bf16.msra.mxu1 %v695_v22  ;;  %v113_v53 = vld [vmem:[%s962_s0 + $0xf0] sm:$0xff]  ;;  %v114_v55 = vld [vmem:[%s962_s0 + $0xf8] sm:$0xff]  ;;  %v916_v56 = vld [vmem:[%s964_s2] ss:$0 sm:$0xff]  ;;  %s746_s0 = smov [#allocation3]  }
  0x1e   :  { %700 = vmatprep.subr.bf16.mxu0 %v699_v25  ;;  %710 = vmatprep.subr.bf16.mxu1 %v699_v25  ;;  %s531_s2 = sshll.u32 %s746_s0, 4  ;;  %s532_s2 = int_to_ptr.vmem [resolvable:$true] %s531_s2 }
  0x1f   :  { %s722_s26 = scalar_lea.vmem %s532_s2, 4096  ;;  %p727_p1 = scmp.lt.s32.totalorder %s532_s2, %s532_s2 }
  0x20   :  { %p723_p0 = scmp.ne.s32.totalorder %s532_s2, %s722_s26  ;;  %p728_p2 = scmp.lt.s32.totalorder %s722_s26, %s722_s26 }
  0x21   :  { %702 = vmatpush3.bf16.msra.mxu0 %v699_v25  ;;  %718 = vmatpush3.bf16.msra.mxu1 %v699_v25 }
  0x22   :  { %p729_p3 = por %p728_p2, %p727_p1 }
  0x24   :  { %624 = vmatmul.mubr.f32.vlgmr.msra.gmra.mrb[0].mxu0 %v84_v26  ;;  %648 = vmatmul.mubr.f32.vlgmr.msra.gmra.mrb[0].mxu1 %v100_v27  ;;  %p730_p4 = pnand %p729_p3, %p723_p0 }
  0x25   :  { %626 = vmatprep.mubr.f32.mxu0 %v85_v28  ;;  %650 = vmatprep.mubr.f32.mxu1 %v101_v29 }
  0x28   :  { %627 = vmatmul.mubr.f32.gmra.mrb[2].mxu0 %v86_v30  ;;  %651 = vmatmul.mubr.f32.gmra.mrb[2].mxu1 %v102_v31 }
  0x29   :  { %629 = vmatprep.mubr.f32.mxu0 %v87_v32  ;;  %653 = vmatprep.mubr.f32.mxu1 %v103_v33 }
  0x2c   :  { %630 = vmatmul.mubr.f32.gmra.mrb[4].mxu0 %v88_v34  ;;  %654 = vmatmul.mubr.f32.gmra.mrb[4].mxu1 %v104_v35 }
  0x2d   :  { %632 = vmatprep.mubr.f32.mxu0 %v89_v36  ;;  %656 = vmatprep.mubr.f32.mxu1 %v105_v37 }
  0x30   :  { %633 = vmatmul.mubr.f32.gmra.mrb[6].mxu0 %v90_v38  ;;  %657 = vmatmul.mubr.f32.gmra.mrb[6].mxu1 %v106_v39 }
  0x31   :  { %635 = vmatprep.mubr.f32.mxu0 %v91_v40  ;;  %659 = vmatprep.mubr.f32.mxu1 %v107_v41 }
  0x34   :  { %636 = vmatmul.mubr.f32.gmra.mrb[8].mxu0 %v92_v42  ;;  %660 = vmatmul.mubr.f32.gmra.mrb[8].mxu1 %v108_v43 }
  0x35   :  { %638 = vmatprep.mubr.f32.mxu0 %v93_v44  ;;  %662 = vmatprep.mubr.f32.mxu1 %v109_v45 }
  0x38   :  { %639 = vmatmul.mubr.f32.gmra.mrb[10].mxu0 %v94_v46  ;;  %663 = vmatmul.mubr.f32.gmra.mrb[10].mxu1 %v110_v47 }
  0x39   :  { %641 = vmatprep.mubr.f32.mxu0 %v95_v48  ;;  %665 = vmatprep.mubr.f32.mxu1 %v111_v49 }
  0x3c   :  { %642 = vmatmul.mubr.f32.gmra.mrb[12].mxu0 %v96_v50  ;;  %666 = vmatmul.mubr.f32.gmra.mrb[12].mxu1 %v112_v51 }
  0x3d   :  { %644 = vmatprep.mubr.f32.mxu0 %v97_v52  ;;  %668 = vmatprep.mubr.f32.mxu1 %v113_v53 }
  0x40   :  { %645 = vmatmul.mubr.f32.gmra.mrb[14].mxu0 %v98_v54  ;;  %669 = vmatmul.mubr.f32.gmra.mrb[14].mxu1 %v114_v55 }
  0xf7   :  { %v625_v57 = vpop.f32.mrb[0].mxu0  ;;  %v649_v58 = vpop.f32.mrb[0].mxu1 }
  0xf8   :  { %v463_v59 = vadd.f32 %v625_v57, %v916_v56  ;;  %v479_v60 = vadd.f32 %v649_v58, %v916_v56  ;;  %v197_v61 = vpop.f32.mrb[1].mxu0  ;;  %v277_v62 = vpop.f32.mrb[1].mxu1 }
  0xf9   :  { %v462_v63 = vadd.f32 %v916_v56, %v197_v61  ;;  %v478_v0 = vadd.f32 %v916_v56, %v277_v62 }
  0xfa   :  { %495 = vst [vmem:[#allocation3 + $0x8] sm:$0xff] %v463_v59  ;;  %511 = vst [vmem:[#allocation3 + $0x88] sm:$0xff] %v479_v60 }
  0xfb   :  { %494 = vst [vmem:[#allocation3] sm:$0xff] %v462_v63  ;;  %510 = vst [vmem:[#allocation3 + $0x80] sm:$0xff] %v478_v0  ;;  %v628_v1 = vpop.f32.mrb[2].mxu0  ;;  %v652_v2 = vpop.f32.mrb[2].mxu1 }
  0xfc   :  { %v465_v3 = vadd.f32 %v628_v1, %v916_v56  ;;  %v481_v4 = vadd.f32 %v652_v2, %v916_v56  ;;  %v207_v5 = vpop.f32.mrb[3].mxu0  ;;  %v287_v6 = vpop.f32.mrb[3].mxu1 }
  0xfd   :  { %v464_v7 = vadd.f32 %v916_v56, %v207_v5  ;;  %v480_v8 = vadd.f32 %v916_v56, %v287_v6 }
  0xfe   :  { %497 = vst [vmem:[#allocation3 + $0x18] sm:$0xff] %v465_v3  ;;  %513 = vst [vmem:[#allocation3 + $0x98] sm:$0xff] %v481_v4 }
  0xff   :  { %496 = vst [vmem:[#allocation3 + $0x10] sm:$0xff] %v464_v7  ;;  %512 = vst [vmem:[#allocation3 + $0x90] sm:$0xff] %v480_v8  ;;  %v631_v9 = vpop.f32.mrb[4].mxu0  ;;  %v655_v10 = vpop.f32.mrb[4].mxu1 }
 0x100   :  { %v467_v11 = vadd.f32 %v631_v9, %v916_v56  ;;  %v483_v12 = vadd.f32 %v655_v10, %v916_v56  ;;  %v217_v13 = vpop.f32.mrb[5].mxu0  ;;  %v297_v14 = vpop.f32.mrb[5].mxu1 }
 0x101   :  { %v466_v15 = vadd.f32 %v916_v56, %v217_v13  ;;  %v482_v16 = vadd.f32 %v916_v56, %v297_v14 }
 0x102   :  { %499 = vst [vmem:[#allocation3 + $0x28] sm:$0xff] %v467_v11  ;;  %515 = vst [vmem:[#allocation3 + $0xa8] sm:$0xff] %v483_v12 }
 0x103   :  { %498 = vst [vmem:[#allocation3 + $0x20] sm:$0xff] %v466_v15  ;;  %514 = vst [vmem:[#allocation3 + $0xa0] sm:$0xff] %v482_v16  ;;  %v634_v17 = vpop.f32.mrb[6].mxu0  ;;  %v658_v18 = vpop.f32.mrb[6].mxu1 }
 0x104   :  { %v469_v19 = vadd.f32 %v634_v17, %v916_v56  ;;  %v485_v20 = vadd.f32 %v658_v18, %v916_v56  ;;  %v227_v21 = vpop.f32.mrb[7].mxu0  ;;  %v307_v22 = vpop.f32.mrb[7].mxu1 }
 0x105   :  { %v468_v23 = vadd.f32 %v916_v56, %v227_v21  ;;  %v484_v24 = vadd.f32 %v916_v56, %v307_v22 }
 0x106   :  { %501 = vst [vmem:[#allocation3 + $0x38] sm:$0xff] %v469_v19  ;;  %517 = vst [vmem:[#allocation3 + $0xb8] sm:$0xff] %v485_v20 }
 0x107   :  { %500 = vst [vmem:[#allocation3 + $0x30] sm:$0xff] %v468_v23  ;;  %516 = vst [vmem:[#allocation3 + $0xb0] sm:$0xff] %v484_v24  ;;  %v637_v25 = vpop.f32.mrb[8].mxu0  ;;  %v661_v26 = vpop.f32.mrb[8].mxu1 }
 0x108   :  { %v471_v27 = vadd.f32 %v637_v25, %v916_v56  ;;  %v487_v28 = vadd.f32 %v661_v26, %v916_v56  ;;  %v237_v29 = vpop.f32.mrb[9].mxu0  ;;  %v317_v30 = vpop.f32.mrb[9].mxu1 }
 0x109   :  { %v470_v31 = vadd.f32 %v916_v56, %v237_v29  ;;  %v486_v32 = vadd.f32 %v916_v56, %v317_v30 }
 0x10a   :  { %503 = vst [vmem:[#allocation3 + $0x48] sm:$0xff] %v471_v27  ;;  %519 = vst [vmem:[#allocation3 + $0xc8] sm:$0xff] %v487_v28 }
 0x10b   :  { %502 = vst [vmem:[#allocation3 + $0x40] sm:$0xff] %v470_v31  ;;  %518 = vst [vmem:[#allocation3 + $0xc0] sm:$0xff] %v486_v32  ;;  %v640_v33 = vpop.f32.mrb[10].mxu0  ;;  %v664_v34 = vpop.f32.mrb[10].mxu1 }
 0x10c   :  { %v473_v35 = vadd.f32 %v640_v33, %v916_v56  ;;  %v489_v36 = vadd.f32 %v664_v34, %v916_v56  ;;  %v247_v37 = vpop.f32.mrb[11].mxu0  ;;  %v327_v38 = vpop.f32.mrb[11].mxu1 }
 0x10d   :  { %v472_v39 = vadd.f32 %v916_v56, %v247_v37  ;;  %v488_v40 = vadd.f32 %v916_v56, %v327_v38 }
 0x10e   :  { %505 = vst [vmem:[#allocation3 + $0x58] sm:$0xff] %v473_v35  ;;  %521 = vst [vmem:[#allocation3 + $0xd8] sm:$0xff] %v489_v36 }
 0x10f   :  { %504 = vst [vmem:[#allocation3 + $0x50] sm:$0xff] %v472_v39  ;;  %520 = vst [vmem:[#allocation3 + $0xd0] sm:$0xff] %v488_v40  ;;  %v643_v41 = vpop.f32.mrb[12].mxu0  ;;  %v667_v42 = vpop.f32.mrb[12].mxu1 }
 0x110   :  { %v475_v43 = vadd.f32 %v643_v41, %v916_v56  ;;  %v491_v44 = vadd.f32 %v667_v42, %v916_v56  ;;  %v257_v45 = vpop.f32.mrb[13].mxu0  ;;  %v337_v46 = vpop.f32.mrb[13].mxu1 }
 0x111   :  { %v474_v47 = vadd.f32 %v916_v56, %v257_v45  ;;  %v490_v48 = vadd.f32 %v916_v56, %v337_v46 }
 0x112   :  { %507 = vst [vmem:[#allocation3 + $0x68] sm:$0xff] %v475_v43  ;;  %523 = vst [vmem:[#allocation3 + $0xe8] sm:$0xff] %v491_v44 }
 0x113   :  { %506 = vst [vmem:[#allocation3 + $0x60] sm:$0xff] %v474_v47  ;;  %522 = vst [vmem:[#allocation3 + $0xe0] sm:$0xff] %v490_v48  ;;  %v646_v49 = vpop.f32.mrb[14].mxu0  ;;  %v670_v50 = vpop.f32.mrb[14].mxu1 }
 0x114   :  { %v477_v51 = vadd.f32 %v646_v49, %v916_v56  ;;  %v493_v52 = vadd.f32 %v670_v50, %v916_v56  ;;  %v267_v53 = vpop.f32.mrb[15].mxu0  ;;  %v347_v54 = vpop.f32.mrb[15].mxu1 }
 0x115   :  { %v476_v55 = vadd.f32 %v916_v56, %v267_v53  ;;  %v492_v57 = vadd.f32 %v916_v56, %v347_v54 }
 0x116   :  { %509 = vst [vmem:[#allocation3 + $0x78] sm:$0xff] %v477_v51  ;;  %525 = vst [vmem:[#allocation3 + $0xf8] sm:$0xff] %v493_v52 }
 0x117   :  { %508 = vst [vmem:[#allocation3 + $0x70] sm:$0xff] %v476_v55  ;;  %524 = vst [vmem:[#allocation3 + $0xf0] sm:$0xff] %v492_v57 }
 0x118   :  { %733 = shalt.err (!%p730_p4)
}
 0x119   :  { %s734_s29 = scalar_lea.hbm %s965_s3, 4096 }
 0x11a   :  { %p735_p5 = scmp.ne.s32.totalorder %s965_s3, %s734_s29  ;;  %p738_p6 = scmp.lt.u32.totalorder %s734_s29, %s965_s3 }
 0x11c   :  { %p740_p7 = pnand %p738_p6, %p735_p5 }
 0x11e   :  { %743 = shalt.err (!%p740_p7)
}
 0x11f   :  { %s747_s7 = smov 128   ;;  %s748_s8 = smov 8  }
 0x120   :  { %537 = dma.vmem_to_hbm [thread:$0]  %s532_s2, 4096, %s965_s3, [#allocation4], %s747_s7, %s747_s7, %s748_s8  }
 0x121   :  { %744 = dma.done.wait [#allocation4], 4096  }
 0x122   :  { %745 = vsyncadd [#allocation4], 4294963200 }
 0x123   :  { %541 = vsyncpa [#allocation4], 1 }

// kernel: multi_head_self_attention.3
= control target key start
LH: loop header
LB: loop body
LE: loop exit
PB: predicated region body
PF: predicated region fallthrough
CT: control target
= control target key end

     0   :  { %8 = vsyncpa [#allocation4], 0  ;;  %s1777_s0 = inlined_call_operand.hbm [shape: f32[256,128], index: 0, kind: input, shape index: {}]   ;;  %s1778_s1 = inlined_call_operand.hbm [shape: f32[128,384], index: 1, kind: input, shape index: {}]   ;;  %s1779_s2 = inlined_call_operand.vmem [shape: f32[1,384], index: 2, kind: input, shape index: {}]   ;;  %s1780_s3 = inlined_call_operand.vmem [shape: f32[256,384], index: 3, kind: output, shape index: {}]  }
   0x1   :  { %9 = vsyncpa [#allocation6], 0 }
   0x2   :  { %11 = vsyncpa [#allocation6 + $0x1], 0  ;;  %s1434_s12 = smov 0   ;;  %s1436_s13 = smov 0  }
   0x3   :  { %s1438_s14 = smov 0   ;;  %s1440_s15 = smov 0  }
   0x4   :  { %s1442_s16 = smov 0   ;;  %s1444_s17 = smov 0  }
   0x5 LB: > { %s1034_s18 = sadd.s32 4294967295, %s1407_s17   ;;  %p80_p0 = scmp.ne.s32.totalorder %s1395_s14, %s1391_s13  ;;  %s1407_s17 = sphi %s1444_s17, %s17_s17   ;;  %s1403_s16 = sphi %s1442_s16, %s1803_s16   ;;  %s1399_s15 = sphi %s1440_s15, %s1802_s15   ;;  %s1395_s14 = sphi %s1438_s14, %s1801_s14   ;;  %s1391_s13 = sphi %s1436_s13, %s1800_s13   ;;  %s1387_s12 = sphi %s1434_s12, %s1799_s12  }
   0x6   : > { %p81_p1 = scmp.eq.s32.totalorder %s1407_s17, 0  ;;  %p86_p2 = scmp.ne.s32.totalorder %s1391_s13, %s1387_s12 }
   0x7   : > { %p1467_p3 = scmp.eq.s32.totalorder %s1034_s18, 0  ;;  %p138_p4 = scmp.eq.s32.totalorder %s1034_s18, 2 }
   0x8   : > { %p82_p5 = por %p81_p1, %p80_p0  ;;  %p1036_p6 = scmp.ge.s32.totalorder %s1407_s17, 1 }
   0x9   : > { %s1786_s19 = scalar_select %p1467_p3, 1, 0 }
   0xa   : > { %p1474_p7 = por %p1467_p3, %p86_p2  ;;  %p1478_p8 = por %p138_p4, %p80_p0 }
   0xb   : > { %p151_p9 = scmp.lt.s32.totalorder %s1407_s17, 4  ;;  %s1409_s23 = smov [#allocation3]  }
   0xc   : > { %s1787_s20 = scalar_select %p1474_p7, 1, 0 }
   0xd   : > { %s1788_s21 = scalar_select %p1478_p8, 1, 0 }
   0xe   : > { %p1483_p10 = pnand %p1036_p6, %p151_p9  ;;  %s167_s24 = sshll.u32 %s1409_s23, 4  ;;  %s1487_s24 = int_to_ptr.vmem [resolvable:$true] %s167_s24 }
   0xf   : > { %p1241_p12 = scmp.lt.s32.totalorder %s1407_s17, 3  ;;  %s32_s27 = sadd.s32 1, %s1403_s16 }
  0x10   : > { %s1789_s22 = scalar_select %p1483_p10, 1, 0 }
  0x11   : > { %p1232_p11 = pneg %p1483_p10  ;;  %p1498_p0 = pnand %p1241_p12, %p82_p5 }
  0x12   : > { %p1503_p1 = scmp.ge.s32.totalorder %s32_s27, 3  ;;  %s1295_s4 = scalar_lea.hbm %s1777_s0, 4096 }
  0x13   : > { %p1494_p13 = pnand %p1232_p11, %p1467_p3  ;;  %p1296_p2 = scmp.ne.s32.totalorder %s1777_s0, %s1295_s4 }
  0x14   : > { %s1791_s26 = scalar_select %p1498_p0, 1, 0 }
  0x15   : > { %s1792_s28 = scalar_select %p1503_p1, 1, 0 }
  0x16   : > { %p1297_p4 = pneg %p1494_p13  ;;  %p1302_p9 = scmp.lt.u32.totalorder %s1295_s4, %s1777_s0 }
  0x18   : > { %p1298_p6 = pnand %p1297_p4, %p1296_p2 }
  0x1a   : > { %p1299_p5 = pneg %p1298_p6 }
  0x1c   : > { %p1304_p11 = pnand %p1302_p9, %p1299_p5 }
  0x1e   : > { %1307 = shalt.err (!%p1304_p11)
}
  0x1f   : > { %s1308_s9 = scalar_lea.vmem %s1487_s24, 4096  ;;  %p1316_p3 = scmp.lt.s32.totalorder %s1487_s24, %s1487_s24 }
  0x20   : > { %p1309_p12 = scmp.ne.s32.totalorder %s1487_s24, %s1308_s9  ;;  %p1317_p10 = scmp.lt.s32.totalorder %s1308_s9, %s1308_s9 }
  0x22   : > { %p1311_p8 = pnand %p1309_p12, %p1297_p4  ;;  %p1318_p0 = por %p1317_p10, %p1316_p3 }
  0x24   : > { %p1312_p7 = pneg %p1311_p8 }
  0x26   : > { %p1319_p1 = pnand %p1318_p0, %p1312_p7 }
  0x28   : > { %1322 = shalt.err (!%p1319_p1)
}
  0x29   : > { %s1410_s10 = smov 128   ;;  %s1411_s11 = smov 8  }
  0x2a   : > { %1235 = dma.hbm_to_vmem [thread:$0]  (!%p1494_p13), %s1777_s0, 4096, %s1487_s24, [#allocation4], %s1410_s10, %s1410_s10, %s1411_s11  }
  0x2b   : > { %s73_s23 = sadd.s32 1, %s1395_s14  ;;  %p1793_p3 = scmp.ne.s32.totalorder %s1792_s28, 0 }
  0x2c   : > { %s181_s29 = sand.u32 1, %s1395_s14   ;;  %s1040_s30 = sshll.u32 %s1403_s16, 7 }
  0x2d   : > { %s1805_s27 = smov (%p1793_p3, %s32_s27), 0  ;;  %s1039_s5 = sshll.u32 %s181_s29, 7 }
  0x2e   : > { %s69_s4 = ssub.s32 %s1403_s16, %s1805_s27  ;;  %s1543_s7 = scalar_lea.hbm %s1778_s1, %s1040_s30 }
  0x2f   : > { %p71_p7 = scmp.eq.s32.totalorder %s69_s4, 0  ;;  %s185_s28 = scalar_lea.vmem [#allocation5], %s1039_s5 }
  0x30   : > { %s194_s8 = sshll.u32 %s185_s28, 4  ;;  %s1550_s9 = scalar_lea.sflag [#allocation6], %s181_s29  ;;  %s1548_s8 = int_to_ptr.vmem [resolvable:$true] %s194_s8 }
  0x31   : > { %s1546_s24 = scalar_select %p71_p7, %s1395_s14, %s73_s23  }
  0x32   : > { %s1323_s12 = scalar_lea.hbm %s1543_s7, 2048  ;;  %p1794_p10 = scmp.ne.s32.totalorder %s1791_s26, 0 }
  0x33   : > { %p1324_p8 = scmp.ne.s32.totalorder %s1543_s7, %s1323_s12  ;;  %s1328_s4 = scalar_lea.hbm %s1778_s1, 6144 }
  0x34   : > { %p1325_p13 = pneg %p1794_p10  ;;  %p1329_p2 = scmp.lt.u32.totalorder %s1543_s7, %s1778_s1 }
  0x35   : > { %p1330_p4 = scmp.lt.u32.totalorder %s1328_s4, %s1323_s12  ;;  %p1332_p5 = scmp.lt.u32.totalorder %s1323_s12, %s1543_s7 }
  0x36   : > { %p1326_p0 = pnand %p1325_p13, %p1324_p8 }
  0x37   : > { %p1331_p6 = por %p1330_p4, %p1329_p2 }
  0x38   : > { %p1327_p1 = pneg %p1326_p0 }
  0x39   : > { %p1333_p9 = por %p1332_p5, %p1331_p6 }
  0x3b   : > { %p1334_p11 = pnand %p1333_p9, %p1327_p1 }
  0x3d   : > { %1337 = shalt.err (!%p1334_p11)
}
  0x3e   : > { %s1338_s29 = scalar_lea.vmem %s1548_s8, 2048  ;;  %s1412_s5 = smov [#allocation5]  }
  0x3f   : > { %p1339_p12 = scmp.ne.s32.totalorder %s1548_s8, %s1338_s29  ;;  %s1343_s6 = sshll.u32 %s1412_s5, 4  ;;  %s1344_s6 = int_to_ptr.vmem [resolvable:$false] %s1343_s6 }
  0x40   : > { %s1345_s28 = scalar_lea.vmem %s1344_s6, 4096  ;;  %p1346_p8 = scmp.lt.s32.totalorder %s1548_s8, %s1344_s6 }
  0x41   : > { %p1341_p3 = pnand %p1339_p12, %p1325_p13  ;;  %p1347_p0 = scmp.lt.s32.totalorder %s1345_s28, %s1338_s29 }
  0x43   : > { %p1342_p7 = pneg %p1341_p3  ;;  %p1348_p2 = por %p1347_p0, %p1346_p8 }
  0x45   : > { %p1349_p4 = pnand %p1348_p2, %p1342_p7 }
  0x47   : > { %1352 = shalt.err (!%p1349_p4)
}
  0x48   : > { %s1413_s12 = smov 384   ;;  %p1795_p13 = scmp.ne.s32.totalorder %s1789_s22, 0 }
  0x49   : > { %1239 = dma.hbm_to_vmem [thread:$0]  (!%p1794_p10), %s1543_s7, 2048, %s1548_s8, %s1550_s9, %s1413_s12, %s1410_s10, %s1411_s11  }
  0x4a   : > { %212 = sbr.rel (%p1795_p13) target bundleno = 374 (0x176), region = 32  ;;  %p1796_p1 = scmp.ne.s32.totalorder (!%p1795_p13), %s1786_s19, 0 }
  0x51   : > { %1378 = dma.done.wait (%p1796_p1), [#allocation4], 4096  }
  0x52   : > { %1380 = vsyncadd (%p1796_p1), [#allocation4], 4294963200  ;;  %s1587_s18 = sand.u32 1, %s1391_s13   ;;  %p1797_p10 = scmp.ne.s32.totalorder %s1787_s20, 0 }
  0x53   : > { %s1043_s26 = sshll.u32 %s1587_s18, 7  ;;  %s219_s30 = scalar_lea.sflag [#allocation6], %s1587_s18 }
  0x54   : > { %s1591_s4 = scalar_lea.vmem [#allocation5], %s1043_s26 }
  0x55   : > { %1382 = dma.done.wait (%p1797_p10), %s219_s30, 2048  }
  0x56   : > { %1384 = vsyncadd (%p1797_p10), %s219_s30, 4294965248  ;;  %v353_v0 = vld [vmem:[%s1591_s4] sm:$0xff]  ;;  %v354_v1 = vld [vmem:[%s1591_s4 + $0x8] sm:$0xff]  ;;  %p249_p6 = scmp.lt.s32.totalorder %s1399_s15, 2  ;;  %s1044_s11 = sshll.u32 %s1587_s18, 8 }
  0x57   : > { %v355_v2 = vld [vmem:[%s1591_s4 + $0x10] sm:$0xff]  ;;  %v1178_v3 = vpack.c.bf16 %v354_v1, %v353_v0  ;;  %v356_v4 = vld [vmem:[%s1591_s4 + $0x18] sm:$0xff]  ;;  %v357_v6 = vld [vmem:[%s1591_s4 + $0x20] sm:$0xff]  ;;  %s1625_s7 = scalar_lea.vmem [#allocation7], %s1044_s11  ;;  %p1798_p5 = scmp.ne.s32.totalorder %s1788_s21, 0 }
  0x58   : > { %v1182_v5 = vpack.c.bf16 %v356_v4, %v355_v2  ;;  %v358_v7 = vld [vmem:[%s1591_s4 + $0x28] sm:$0xff]  ;;  %v321_v9 = vld [vmem:[#allocation3] sm:$0xff]  ;;  %v359_v11 = vld [vmem:[%s1591_s4 + $0x30] sm:$0xff]  ;;  %s250_s19 = scalar_select %p249_p6, %s1399_s15, 2 }
  0x59   : > { %1179 = vmatprep.subr.bf16.mxu0 %v1178_v3  ;;  %1210 = vmatprep.subr.bf16.mxu1 %v1178_v3  ;;  %v1186_v8 = vpack.c.bf16 %v358_v7, %v357_v6  ;;  %v337_v10 = vld [vmem:[#allocation3 + $0x80] sm:$0xff]  ;;  %v360_v12 = vld [vmem:[%s1591_s4 + $0x38] sm:$0xff]  ;;  %v362_v15 = vld [vmem:[%s1591_s4 + $0x48] sm:$0xff]  ;;  %s1047_s8 = sshll.u32 (%p1798_p5), %s1399_s15, 3 }
  0x5a   : > { %1181 = vmatpush3.bf16.msra.mxu0 %v1178_v3  ;;  %1218 = vmatpush3.bf16.msra.mxu1 %v1178_v3  ;;  %v1190_v13 = vpack.c.bf16 %v360_v12, %v359_v11  ;;  %v361_v14 = vld [vmem:[%s1591_s4 + $0x40] sm:$0xff]  ;;  %v363_v17 = vld [vmem:[%s1591_s4 + $0x50] sm:$0xff]  ;;  %v364_v18 = vld [vmem:[%s1591_s4 + $0x58] sm:$0xff]  ;;  %s251_s10 = scalar_lea.vmem %s1779_s2, %s250_s19  ;;  %s1696_s25 = scalar_lea.vmem (%p1798_p5), %s1780_s3, %s1047_s8 }
  0x5b   : > { %1183 = vmatprep.subr.bf16.mxu0 %v1182_v5  ;;  %1211 = vmatprep.subr.bf16.mxu1 %v1182_v5  ;;  %v1194_v16 = vpack.c.bf16 %v362_v15, %v361_v14  ;;  %v1198_v19 = vpack.c.bf16 %v364_v18, %v363_v17  ;;  %v365_v20 = vld [vmem:[%s1591_s4 + $0x60] sm:$0xff]  ;;  %v366_v21 = vld [vmem:[%s1591_s4 + $0x68] sm:$0xff]  ;;  %v367_v23 = vld [vmem:[%s1591_s4 + $0x70] sm:$0xff] }
  0x5c   : > { %1130 = vmatprep.mubr.f32.mxu0 %v321_v9  ;;  %1154 = vmatprep.mubr.f32.mxu1 %v337_v10  ;;  %v1202_v22 = vpack.c.bf16 %v366_v21, %v365_v20  ;;  %v368_v24 = vld [vmem:[%s1591_s4 + $0x78] sm:$0xff]  ;;  %v322_v26 = vld [vmem:[#allocation3 + $0x8] sm:$0xff]  ;;  %v323_v28 = vld [vmem:[#allocation3 + $0x10] sm:$0xff] }
  0x5d   : > { %v1206_v25 = vpack.c.bf16 %v368_v24, %v367_v23  ;;  %v338_v27 = vld [vmem:[#allocation3 + $0x88] sm:$0xff]  ;;  %v339_v29 = vld [vmem:[#allocation3 + $0x90] sm:$0xff]  ;;  %v324_v30 = vld [vmem:[#allocation3 + $0x18] sm:$0xff] }
  0x5e   : > { %1185 = vmatpush3.bf16.msra.mxu0 %v1182_v5  ;;  %1219 = vmatpush3.bf16.msra.mxu1 %v1182_v5  ;;  %v340_v31 = vld [vmem:[#allocation3 + $0x98] sm:$0xff]  ;;  %v325_v32 = vld [vmem:[#allocation3 + $0x20] sm:$0xff]  ;;  %v326_v34 = vld [vmem:[#allocation3 + $0x28] sm:$0xff] }
  0x5f   : > { %1187 = vmatprep.subr.bf16.mxu0 %v1186_v8  ;;  %1212 = vmatprep.subr.bf16.mxu1 %v1186_v8  ;;  %v341_v33 = vld [vmem:[#allocation3 + $0xa0] sm:$0xff]  ;;  %v342_v35 = vld [vmem:[#allocation3 + $0xa8] sm:$0xff]  ;;  %v327_v36 = vld [vmem:[#allocation3 + $0x30] sm:$0xff] }
  0x60   : > { %v343_v37 = vld [vmem:[#allocation3 + $0xb0] sm:$0xff]  ;;  %v328_v38 = vld [vmem:[#allocation3 + $0x38] sm:$0xff]  ;;  %v329_v40 = vld [vmem:[#allocation3 + $0x40] sm:$0xff] }
  0x61   : > { %v344_v39 = vld [vmem:[#allocation3 + $0xb8] sm:$0xff]  ;;  %v345_v41 = vld [vmem:[#allocation3 + $0xc0] sm:$0xff]  ;;  %v330_v42 = vld [vmem:[#allocation3 + $0x48] sm:$0xff] }
  0x62   : > { %1189 = vmatpush3.bf16.msra.mxu0 %v1186_v8  ;;  %1220 = vmatpush3.bf16.msra.mxu1 %v1186_v8  ;;  %v346_v43 = vld [vmem:[#allocation3 + $0xc8] sm:$0xff]  ;;  %v331_v44 = vld [vmem:[#allocation3 + $0x50] sm:$0xff]  ;;  %v332_v46 = vld [vmem:[#allocation3 + $0x58] sm:$0xff] }
  0x63   : > { %1191 = vmatprep.subr.bf16.mxu0 %v1190_v13  ;;  %1213 = vmatprep.subr.bf16.mxu1 %v1190_v13  ;;  %v347_v45 = vld [vmem:[#allocation3 + $0xd0] sm:$0xff]  ;;  %v348_v47 = vld [vmem:[#allocation3 + $0xd8] sm:$0xff]  ;;  %v333_v48 = vld [vmem:[#allocation3 + $0x60] sm:$0xff] }
  0x64   : > { %v349_v49 = vld [vmem:[#allocation3 + $0xe0] sm:$0xff]  ;;  %v334_v50 = vld [vmem:[#allocation3 + $0x68] sm:$0xff]  ;;  %v335_v52 = vld [vmem:[#allocation3 + $0x70] sm:$0xff] }
  0x65   : > { %v350_v51 = vld [vmem:[#allocation3 + $0xe8] sm:$0xff]  ;;  %v351_v53 = vld [vmem:[#allocation3 + $0xf0] sm:$0xff]  ;;  %v336_v54 = vld [vmem:[#allocation3 + $0x78] sm:$0xff] }
  0x66   : > { %1193 = vmatpush3.bf16.msra.mxu0 %v1190_v13  ;;  %1221 = vmatpush3.bf16.msra.mxu1 %v1190_v13  ;;  %v352_v55 = vld [vmem:[#allocation3 + $0xf8] sm:$0xff]  ;;  %v1619_v56 = vld [vmem:[%s251_s10] ss:$0 sm:$0xff] }
  0x67   : > { %1195 = vmatprep.subr.bf16.mxu0 %v1194_v16  ;;  %1214 = vmatprep.subr.bf16.mxu1 %v1194_v16 }
  0x6a   : > { %1197 = vmatpush3.bf16.msra.mxu0 %v1194_v16  ;;  %1222 = vmatpush3.bf16.msra.mxu1 %v1194_v16 }
  0x6b   : > { %1199 = vmatprep.subr.bf16.mxu0 %v1198_v19  ;;  %1215 = vmatprep.subr.bf16.mxu1 %v1198_v19 }
  0x6e   : > { %1201 = vmatpush3.bf16.msra.mxu0 %v1198_v19  ;;  %1223 = vmatpush3.bf16.msra.mxu1 %v1198_v19 }
  0x6f   : > { %1203 = vmatprep.subr.bf16.mxu0 %v1202_v22  ;;  %1216 = vmatprep.subr.bf16.mxu1 %v1202_v22 }
  0x72   : > { %1205 = vmatpush3.bf16.msra.mxu0 %v1202_v22  ;;  %1224 = vmatpush3.bf16.msra.mxu1 %v1202_v22 }
  0x73   : > { %1207 = vmatprep.subr.bf16.mxu0 %v1206_v25  ;;  %1217 = vmatprep.subr.bf16.mxu1 %v1206_v25 }
  0x76   : > { %1209 = vmatpush3.bf16.msra.mxu0 %v1206_v25  ;;  %1225 = vmatpush3.bf16.msra.mxu1 %v1206_v25 }
  0x79   : > { %1131 = vmatmul.mubr.f32.vlgmr.msra.gmra.mrb[0].mxu0 %v322_v26  ;;  %1155 = vmatmul.mubr.f32.vlgmr.msra.gmra.mrb[0].mxu1 %v338_v27 }
  0x7a   : > { %1133 = vmatprep.mubr.f32.mxu0 %v323_v28  ;;  %1157 = vmatprep.mubr.f32.mxu1 %v339_v29 }
  0x7d   : > { %1134 = vmatmul.mubr.f32.gmra.mrb[2].mxu0 %v324_v30  ;;  %1158 = vmatmul.mubr.f32.gmra.mrb[2].mxu1 %v340_v31 }
  0x7e   : > { %1136 = vmatprep.mubr.f32.mxu0 %v325_v32  ;;  %1160 = vmatprep.mubr.f32.mxu1 %v341_v33 }
  0x81   : > { %1137 = vmatmul.mubr.f32.gmra.mrb[4].mxu0 %v326_v34  ;;  %1161 = vmatmul.mubr.f32.gmra.mrb[4].mxu1 %v342_v35 }
  0x82   : > { %1139 = vmatprep.mubr.f32.mxu0 %v327_v36  ;;  %1163 = vmatprep.mubr.f32.mxu1 %v343_v37 }
  0x85   : > { %1140 = vmatmul.mubr.f32.gmra.mrb[6].mxu0 %v328_v38  ;;  %1164 = vmatmul.mubr.f32.gmra.mrb[6].mxu1 %v344_v39 }
  0x86   : > { %1142 = vmatprep.mubr.f32.mxu0 %v329_v40  ;;  %1166 = vmatprep.mubr.f32.mxu1 %v345_v41 }
  0x89   : > { %1143 = vmatmul.mubr.f32.gmra.mrb[8].mxu0 %v330_v42  ;;  %1167 = vmatmul.mubr.f32.gmra.mrb[8].mxu1 %v346_v43 }
  0x8a   : > { %1145 = vmatprep.mubr.f32.mxu0 %v331_v44  ;;  %1169 = vmatprep.mubr.f32.mxu1 %v347_v45 }
  0x8d   : > { %1146 = vmatmul.mubr.f32.gmra.mrb[10].mxu0 %v332_v46  ;;  %1170 = vmatmul.mubr.f32.gmra.mrb[10].mxu1 %v348_v47 }
  0x8e   : > { %1148 = vmatprep.mubr.f32.mxu0 %v333_v48  ;;  %1172 = vmatprep.mubr.f32.mxu1 %v349_v49 }
  0x91   : > { %1149 = vmatmul.mubr.f32.gmra.mrb[12].mxu0 %v334_v50  ;;  %1173 = vmatmul.mubr.f32.gmra.mrb[12].mxu1 %v350_v51 }
  0x92   : > { %1151 = vmatprep.mubr.f32.mxu0 %v335_v52  ;;  %1175 = vmatprep.mubr.f32.mxu1 %v351_v53 }
  0x95   : > { %1152 = vmatmul.mubr.f32.gmra.mrb[14].mxu0 %v336_v54  ;;  %1176 = vmatmul.mubr.f32.gmra.mrb[14].mxu1 %v352_v55 }
 0x14c   : > { %v1132_v57 = vpop.f32.mrb[0].mxu0  ;;  %v1156_v58 = vpop.f32.mrb[0].mxu1 }
 0x14d   : > { %v701_v59 = vadd.f32 %v1132_v57, %v1619_v56  ;;  %v717_v60 = vadd.f32 %v1156_v58, %v1619_v56  ;;  %v435_v61 = vpop.f32.mrb[1].mxu0  ;;  %v515_v62 = vpop.f32.mrb[1].mxu1 }
 0x14e   : > { %v700_v63 = vadd.f32 %v1619_v56, %v435_v61  ;;  %v716_v0 = vadd.f32 %v1619_v56, %v515_v62 }
 0x14f   : > { %733 = vst [vmem:[%s1625_s7 + $0x8] sm:$0xff] %v701_v59  ;;  %749 = vst [vmem:[%s1625_s7 + $0x88] sm:$0xff] %v717_v60 }
 0x150   : > { %732 = vst [vmem:[%s1625_s7] sm:$0xff] %v700_v63  ;;  %748 = vst [vmem:[%s1625_s7 + $0x80] sm:$0xff] %v716_v0  ;;  %v1135_v1 = vpop.f32.mrb[2].mxu0  ;;  %v1159_v2 = vpop.f32.mrb[2].mxu1 }
 0x151   : > { %v703_v3 = vadd.f32 %v1135_v1, %v1619_v56  ;;  %v719_v4 = vadd.f32 %v1159_v2, %v1619_v56  ;;  %v445_v5 = vpop.f32.mrb[3].mxu0  ;;  %v525_v6 = vpop.f32.mrb[3].mxu1 }
 0x152   : > { %v702_v7 = vadd.f32 %v1619_v56, %v445_v5  ;;  %v718_v8 = vadd.f32 %v1619_v56, %v525_v6 }
 0x153   : > { %735 = vst [vmem:[%s1625_s7 + $0x18] sm:$0xff] %v703_v3  ;;  %751 = vst [vmem:[%s1625_s7 + $0x98] sm:$0xff] %v719_v4 }
 0x154   : > { %734 = vst [vmem:[%s1625_s7 + $0x10] sm:$0xff] %v702_v7  ;;  %750 = vst [vmem:[%s1625_s7 + $0x90] sm:$0xff] %v718_v8  ;;  %v1138_v9 = vpop.f32.mrb[4].mxu0  ;;  %v1162_v10 = vpop.f32.mrb[4].mxu1 }
 0x155   : > { %v705_v11 = vadd.f32 %v1138_v9, %v1619_v56  ;;  %v721_v12 = vadd.f32 %v1162_v10, %v1619_v56  ;;  %v455_v13 = vpop.f32.mrb[5].mxu0  ;;  %v535_v14 = vpop.f32.mrb[5].mxu1 }
 0x156   : > { %v704_v15 = vadd.f32 %v1619_v56, %v455_v13  ;;  %v720_v16 = vadd.f32 %v1619_v56, %v535_v14  ;;  %v899_v10 = vld [vmem:[%s1625_s7 + $0x88] sm:$0xff] (%p1798_p5) }
 0x157   : > { %737 = vst [vmem:[%s1625_s7 + $0x28] sm:$0xff] %v705_v11  ;;  %753 = vst [vmem:[%s1625_s7 + $0xa8] sm:$0xff] %v721_v12  ;;  %v865_v58 = vld [vmem:[%s1625_s7] sm:$0xff] (%p1798_p5) }
 0x158   : > { %736 = vst [vmem:[%s1625_s7 + $0x20] sm:$0xff] %v704_v15  ;;  %752 = vst [vmem:[%s1625_s7 + $0xa0] sm:$0xff] %v720_v16  ;;  %v1141_v17 = vpop.f32.mrb[6].mxu0  ;;  %v1165_v18 = vpop.f32.mrb[6].mxu1  ;;  %v897_v9 = vld [vmem:[%s1625_s7 + $0x80] sm:$0xff] (%p1798_p5) }
 0x159   : > { %v707_v19 = vadd.f32 %v1141_v17, %v1619_v56  ;;  %v723_v20 = vadd.f32 %v1165_v18, %v1619_v56  ;;  %v465_v21 = vpop.f32.mrb[7].mxu0  ;;  %v545_v22 = vpop.f32.mrb[7].mxu1  ;;  %866 = vst [vmem:[%s1696_s25] sm:$0xff] (%p1798_p5), %v865_v58  ;;  %898 = vst [vmem:[%s1696_s25 + $0x180] sm:$0xff] (%p1798_p5), %v897_v9 }
 0x15a   : > { %v706_v23 = vadd.f32 %v1619_v56, %v465_v21  ;;  %v722_v24 = vadd.f32 %v1619_v56, %v545_v22  ;;  %v871_v60 = vld [vmem:[%s1625_s7 + $0x18] sm:$0xff] (%p1798_p5)  ;;  %900 = vst [vmem:[%s1696_s25 + $0x198] sm:$0xff] (%p1798_p5), %v899_v10 }
 0x15b   : > { %739 = vst [vmem:[%s1625_s7 + $0x38] sm:$0xff] %v707_v19  ;;  %755 = vst [vmem:[%s1625_s7 + $0xb8] sm:$0xff] %v723_v20  ;;  %v869_v59 = vld [vmem:[%s1625_s7 + $0x10] sm:$0xff] (%p1798_p5)  ;;  %v903_v12 = vld [vmem:[%s1625_s7 + $0x98] sm:$0xff] (%p1798_p5) }
 0x15c   : > { %738 = vst [vmem:[%s1625_s7 + $0x30] sm:$0xff] %v706_v23  ;;  %754 = vst [vmem:[%s1625_s7 + $0xb0] sm:$0xff] %v722_v24  ;;  %v1144_v25 = vpop.f32.mrb[8].mxu0  ;;  %v1168_v26 = vpop.f32.mrb[8].mxu1  ;;  %v901_v11 = vld [vmem:[%s1625_s7 + $0x90] sm:$0xff] (%p1798_p5) }
 0x15d   : > { %v709_v27 = vadd.f32 %v1144_v25, %v1619_v56  ;;  %v725_v28 = vadd.f32 %v1168_v26, %v1619_v56  ;;  %v475_v29 = vpop.f32.mrb[9].mxu0  ;;  %v555_v30 = vpop.f32.mrb[9].mxu1  ;;  %870 = vst [vmem:[%s1696_s25 + $0x30] sm:$0xff] (%p1798_p5), %v869_v59  ;;  %872 = vst [vmem:[%s1696_s25 + $0x48] sm:$0xff] (%p1798_p5), %v871_v60 }
 0x15e   : > { %v708_v31 = vadd.f32 %v1619_v56, %v475_v29  ;;  %v724_v32 = vadd.f32 %v1619_v56, %v555_v30  ;;  %v875_v62 = vld [vmem:[%s1625_s7 + $0x28] sm:$0xff] (%p1798_p5)  ;;  %902 = vst [vmem:[%s1696_s25 + $0x1b0] sm:$0xff] (%p1798_p5), %v901_v11  ;;  %904 = vst [vmem:[%s1696_s25 + $0x1c8] sm:$0xff] (%p1798_p5), %v903_v12 }
 0x15f   : > { %741 = vst [vmem:[%s1625_s7 + $0x48] sm:$0xff] %v709_v27  ;;  %757 = vst [vmem:[%s1625_s7 + $0xc8] sm:$0xff] %v725_v28  ;;  %v873_v61 = vld [vmem:[%s1625_s7 + $0x20] sm:$0xff] (%p1798_p5)  ;;  %v907_v14 = vld [vmem:[%s1625_s7 + $0xa8] sm:$0xff] (%p1798_p5) }
 0x160   : > { %740 = vst [vmem:[%s1625_s7 + $0x40] sm:$0xff] %v708_v31  ;;  %756 = vst [vmem:[%s1625_s7 + $0xc0] sm:$0xff] %v724_v32  ;;  %v1147_v33 = vpop.f32.mrb[10].mxu0  ;;  %v1171_v34 = vpop.f32.mrb[10].mxu1  ;;  %v905_v13 = vld [vmem:[%s1625_s7 + $0xa0] sm:$0xff] (%p1798_p5) }
 0x161   : > { %v711_v35 = vadd.f32 %v1147_v33, %v1619_v56  ;;  %v727_v36 = vadd.f32 %v1171_v34, %v1619_v56  ;;  %v485_v37 = vpop.f32.mrb[11].mxu0  ;;  %v565_v38 = vpop.f32.mrb[11].mxu1  ;;  %874 = vst [vmem:[%s1696_s25 + $0x60] sm:$0xff] (%p1798_p5), %v873_v61  ;;  %876 = vst [vmem:[%s1696_s25 + $0x78] sm:$0xff] (%p1798_p5), %v875_v62 }
 0x162   : > { %v710_v39 = vadd.f32 %v1619_v56, %v485_v37  ;;  %v726_v40 = vadd.f32 %v1619_v56, %v565_v38  ;;  %v879_v0 = vld [vmem:[%s1625_s7 + $0x38] sm:$0xff] (%p1798_p5)  ;;  %906 = vst [vmem:[%s1696_s25 + $0x1e0] sm:$0xff] (%p1798_p5), %v905_v13  ;;  %908 = vst [vmem:[%s1696_s25 + $0x1f8] sm:$0xff] (%p1798_p5), %v907_v14 }
 0x163   : > { %743 = vst [vmem:[%s1625_s7 + $0x58] sm:$0xff] %v711_v35  ;;  %759 = vst [vmem:[%s1625_s7 + $0xd8] sm:$0xff] %v727_v36  ;;  %v877_v63 = vld [vmem:[%s1625_s7 + $0x30] sm:$0xff] (%p1798_p5)  ;;  %v911_v16 = vld [vmem:[%s1625_s7 + $0xb8] sm:$0xff] (%p1798_p5) }
 0x164   : > { %742 = vst [vmem:[%s1625_s7 + $0x50] sm:$0xff] %v710_v39  ;;  %758 = vst [vmem:[%s1625_s7 + $0xd0] sm:$0xff] %v726_v40  ;;  %v1150_v41 = vpop.f32.mrb[12].mxu0  ;;  %v1174_v42 = vpop.f32.mrb[12].mxu1  ;;  %v909_v15 = vld [vmem:[%s1625_s7 + $0xb0] sm:$0xff] (%p1798_p5) }
 0x165   : > { %v713_v43 = vadd.f32 %v1150_v41, %v1619_v56  ;;  %v729_v44 = vadd.f32 %v1174_v42, %v1619_v56  ;;  %v495_v45 = vpop.f32.mrb[13].mxu0  ;;  %v575_v46 = vpop.f32.mrb[13].mxu1  ;;  %878 = vst [vmem:[%s1696_s25 + $0x90] sm:$0xff] (%p1798_p5), %v877_v63  ;;  %880 = vst [vmem:[%s1696_s25 + $0xa8] sm:$0xff] (%p1798_p5), %v879_v0 }
 0x166   : > { %v712_v47 = vadd.f32 %v1619_v56, %v495_v45  ;;  %v728_v48 = vadd.f32 %v1619_v56, %v575_v46  ;;  %770 = sbr.rel (!%p1798_p5) target bundleno = 374 (0x176), region = 52  ;;  %v883_v2 = vld [vmem:[%s1625_s7 + $0x48] sm:$0xff] (%p1798_p5)  ;;  %910 = vst [vmem:[%s1696_s25 + $0x210] sm:$0xff] (%p1798_p5), %v909_v15  ;;  %912 = vst [vmem:[%s1696_s25 + $0x228] sm:$0xff] (%p1798_p5), %v911_v16 }
 0x167   : > { %745 = vst [vmem:[%s1625_s7 + $0x68] sm:$0xff] %v713_v43  ;;  %761 = vst [vmem:[%s1625_s7 + $0xe8] sm:$0xff] %v729_v44  ;;  %v881_v1 = vld [vmem:[%s1625_s7 + $0x40] sm:$0xff] (%p1798_p5)  ;;  %v915_v18 = vld [vmem:[%s1625_s7 + $0xc8] sm:$0xff] (%p1798_p5) }
 0x168   : > { %744 = vst [vmem:[%s1625_s7 + $0x60] sm:$0xff] %v712_v47  ;;  %760 = vst [vmem:[%s1625_s7 + $0xe0] sm:$0xff] %v728_v48  ;;  %v1153_v49 = vpop.f32.mrb[14].mxu0  ;;  %v1177_v50 = vpop.f32.mrb[14].mxu1  ;;  %v913_v17 = vld [vmem:[%s1625_s7 + $0xc0] sm:$0xff] (%p1798_p5) }
 0x169   : > { %v715_v51 = vadd.f32 %v1153_v49, %v1619_v56  ;;  %v731_v52 = vadd.f32 %v1177_v50, %v1619_v56  ;;  %v505_v53 = vpop.f32.mrb[15].mxu0  ;;  %v585_v54 = vpop.f32.mrb[15].mxu1  ;;  %882 = vst [vmem:[%s1696_s25 + $0xc0] sm:$0xff] (%p1798_p5), %v881_v1  ;;  %884 = vst [vmem:[%s1696_s25 + $0xd8] sm:$0xff] (%p1798_p5), %v883_v2 }
 0x16a   : > { %v714_v55 = vadd.f32 %v1619_v56, %v505_v53  ;;  %v730_v57 = vadd.f32 %v1619_v56, %v585_v54  ;;  %v867_v56 = vld [vmem:[%s1625_s7 + $0x8] sm:$0xff] (%p1798_p5)  ;;  %v887_v4 = vld [vmem:[%s1625_s7 + $0x58] sm:$0xff] (%p1798_p5)  ;;  %914 = vst [vmem:[%s1696_s25 + $0x240] sm:$0xff] (%p1798_p5), %v913_v17  ;;  %916 = vst [vmem:[%s1696_s25 + $0x258] sm:$0xff] (%p1798_p5), %v915_v18 }
 0x16b   : > { %747 = vst [vmem:[%s1625_s7 + $0x78] sm:$0xff] %v715_v51  ;;  %763 = vst [vmem:[%s1625_s7 + $0xf8] sm:$0xff] %v731_v52  ;;  %v885_v3 = vld [vmem:[%s1625_s7 + $0x50] sm:$0xff] (%p1798_p5)  ;;  %v919_v20 = vld [vmem:[%s1625_s7 + $0xd8] sm:$0xff] (%p1798_p5) }
 0x16c   : > { %746 = vst [vmem:[%s1625_s7 + $0x70] sm:$0xff] %v714_v55  ;;  %762 = vst [vmem:[%s1625_s7 + $0xf0] sm:$0xff] %v730_v57  ;;  %v917_v19 = vld [vmem:[%s1625_s7 + $0xd0] sm:$0xff] (%p1798_p5) }
 0x16d   : > { %868 = vst [vmem:[%s1696_s25 + $0x18] sm:$0xff] %v867_v56  ;;  %886 = vst [vmem:[%s1696_s25 + $0xf0] sm:$0xff] %v885_v3 }
 0x16e   : > { %888 = vst [vmem:[%s1696_s25 + $0x108] sm:$0xff] %v887_v4  ;;  %v891_v6 = vld [vmem:[%s1625_s7 + $0x68] sm:$0xff]  ;;  %918 = vst [vmem:[%s1696_s25 + $0x270] sm:$0xff] %v917_v19 }
 0x16f   : > { %v889_v5 = vld [vmem:[%s1625_s7 + $0x60] sm:$0xff]  ;;  %892 = vst [vmem:[%s1696_s25 + $0x138] sm:$0xff] %v891_v6  ;;  %v923_v22 = vld [vmem:[%s1625_s7 + $0xe8] sm:$0xff]  ;;  %920 = vst [vmem:[%s1696_s25 + $0x288] sm:$0xff] %v919_v20 }
 0x170   : > { %890 = vst [vmem:[%s1696_s25 + $0x120] sm:$0xff] %v889_v5  ;;  %v921_v21 = vld [vmem:[%s1625_s7 + $0xe0] sm:$0xff]  ;;  %924 = vst [vmem:[%s1696_s25 + $0x2b8] sm:$0xff] %v923_v22 }
 0x171   : > { %922 = vst [vmem:[%s1696_s25 + $0x2a0] sm:$0xff] %v921_v21 }
 0x172   : > { %v895_v8 = vld [vmem:[%s1625_s7 + $0x78] sm:$0xff] }
 0x173   : > { %v893_v7 = vld [vmem:[%s1625_s7 + $0x70] sm:$0xff]  ;;  %896 = vst [vmem:[%s1696_s25 + $0x168] sm:$0xff] %v895_v8  ;;  %v927_v24 = vld [vmem:[%s1625_s7 + $0xf8] sm:$0xff] }
 0x174   : > { %894 = vst [vmem:[%s1696_s25 + $0x150] sm:$0xff] %v893_v7  ;;  %v925_v23 = vld [vmem:[%s1625_s7 + $0xf0] sm:$0xff]  ;;  %928 = vst [vmem:[%s1696_s25 + $0x2e8] sm:$0xff] %v927_v24 }
 0x175   : > { %926 = vst [vmem:[%s1696_s25 + $0x2d0] sm:$0xff] %v925_v23 }
 0x176 PF: > { %s17_s17 = sadd.s32 1, %s1407_s17   ;;  %s1799_s12 = smov %s1391_s13 }
 0x177   : > { %p14_p9 = scmp.ge.s32.totalorder %s17_s17, 5   ;;  %s1800_s13 = smov %s1395_s14 }
 0x178   : > { %s1801_s14 = smov %s1546_s24  ;;  %s1802_s15 = smov %s1403_s16 }
 0x179   : > { %s1803_s16 = smov %s1805_s27  ;;  %16 = sbr.rel (!%p14_p9) target bundleno = 5 (0x5), region = 127 }
 0x180   :  { %944 = vsyncpa [#allocation4], 1 }
 0x181   :  { %946 = vsyncpa [#allocation4 + $0x1], 1 }
 0x182   :  { %947 = vsyncpa [#allocation6], 1 }
 0x183   :  { %949 = vsyncpa [#allocation6 + $0x1], 1 }

// kernel: multi_head_self_attention.4
= control target key start
LH: loop header
LB: loop body
LE: loop exit
PB: predicated region body
PF: predicated region fallthrough
CT: control target
= control target key end

     0   :  { %s7608_s12 = smov 0   ;;  %s7610_s13 = smov 0   ;;  %s11081_s0 = inlined_call_operand.vmem [shape: f32[2,128,384], index: 0, kind: input, shape index: {}, may-alias: {0,1,2}]   ;;  %s11082_s1 = inlined_call_operand.vmem [shape: f32[2,128,384], index: 1, kind: input, shape index: {}, may-alias: {0,1,2}]   ;;  %s11083_s2 = inlined_call_operand.vmem [shape: f32[2,128,384], index: 2, kind: input, shape index: {}, may-alias: {0,1,2}]   ;;  %s11084_s3 = inlined_call_operand.vmem [shape: f32[2,128,128], index: 3, kind: output, shape index: {}]  }
   0x1   :  { %s7612_s14 = smov 0   ;;  %s7614_s15 = smov 0  }
   0x2   :  { %s7616_s16 = smov 0  }
   0x3 LB: > { %s32_s17 = sadd.s32 1, %s7576_s15  ;;  %p48_p1 = scmp.ne.s32.totalorder %s7568_s13, %s7564_s12  ;;  %s7580_s16 = sphi %s7616_s16, %s13_s16   ;;  %s7576_s15 = sphi %s7614_s15, %s11533_s15   ;;  %s7572_s14 = sphi %s7612_s14, %s11532_s14   ;;  %s7568_s13 = sphi %s7610_s13, %s11531_s13   ;;  %s7564_s12 = sphi %s7608_s12, %s11530_s12  }
   0x4   : > { %p34_p0 = scmp.ge.s32.totalorder %s32_s17, 2  ;;  %p49_p2 = scmp.eq.s32.totalorder %s7580_s16, 0 }
   0x5   : > { %s41_s20 = sadd.s32 1, %s7568_s13  ;;  %p5666_p5 = scmp.ge.s32.totalorder %s7580_s16, 2 }
   0x6   : > { %s11535_s17 = smov (%p34_p0, %s32_s17), 0  ;;  %p7639_p3 = por %p49_p2, %p48_p1 }
   0x7   : > { %s36_s19 = ssub.s32 %s7576_s15, %s11535_s17  ;;  %158 = sbr.rel (%p5666_p5) target bundleno = 53 (0x35), region = 16 }
   0x8   : > { %p39_p4 = scmp.eq.s32.totalorder %s36_s19, 0 }
   0xa   : > { %s7647_s21 = scalar_select %p39_p4, %s7568_s13, %s41_s20  }
   0xe   : > { %161 = sbr.rel (!%p7639_p3) target bundleno = 27 (0x1b), region = 20  ;;  %s163_s22 = sand.u32 (%p7639_p3), 1, %s7568_s13  }
   0xf   : > { %s6866_s23 = smul.u32 (%p7639_p3), 384, %s7576_s15  ;;  %s5667_s24 = sshll.u32 (%p7639_p3), %s163_s22, 7 }
  0x10   : > { %s165_s28 = scalar_lea.vmem (%p7639_p3), [#allocation5], %s5667_s24 }
  0x11   : > { %s7657_s27 = scalar_lea.vmem (%p7639_p3), %s11081_s0, %s6866_s23 }
  0x12   : > { %v229_v0 = vld [vmem:[%s7657_s27] sm:$0xff] (%p7639_p3)  ;;  %v231_v1 = vld [vmem:[%s7657_s27 + $0x18] sm:$0xff] (%p7639_p3)  ;;  %v233_v2 = vld [vmem:[%s7657_s27 + $0x30] sm:$0xff] (%p7639_p3) }
  0x13   : > { %230 = vst [vmem:[%s165_s28] sm:$0xff] (%p7639_p3), %v229_v0  ;;  %232 = vst [vmem:[%s165_s28 + $0x8] sm:$0xff] (%p7639_p3), %v231_v1  ;;  %v235_v3 = vld [vmem:[%s7657_s27 + $0x48] sm:$0xff] (%p7639_p3)  ;;  %v237_v4 = vld [vmem:[%s7657_s27 + $0x60] sm:$0xff] (%p7639_p3) }
  0x14   : > { %234 = vst [vmem:[%s165_s28 + $0x10] sm:$0xff] (%p7639_p3), %v233_v2  ;;  %v239_v5 = vld [vmem:[%s7657_s27 + $0x78] sm:$0xff] (%p7639_p3)  ;;  %236 = vst [vmem:[%s165_s28 + $0x18] sm:$0xff] (%p7639_p3), %v235_v3  ;;  %v241_v6 = vld [vmem:[%s7657_s27 + $0x90] sm:$0xff] (%p7639_p3) }
  0x15   : > { %238 = vst [vmem:[%s165_s28 + $0x20] sm:$0xff] %v237_v4  ;;  %240 = vst [vmem:[%s165_s28 + $0x28] sm:$0xff] %v239_v5  ;;  %v243_v7 = vld [vmem:[%s7657_s27 + $0xa8] sm:$0xff]  ;;  %v245_v8 = vld [vmem:[%s7657_s27 + $0xc0] sm:$0xff] }
  0x16   : > { %242 = vst [vmem:[%s165_s28 + $0x30] sm:$0xff] %v241_v6  ;;  %244 = vst [vmem:[%s165_s28 + $0x38] sm:$0xff] %v243_v7  ;;  %v247_v9 = vld [vmem:[%s7657_s27 + $0xd8] sm:$0xff]  ;;  %v249_v10 = vld [vmem:[%s7657_s27 + $0xf0] sm:$0xff] }
  0x17   : > { %246 = vst [vmem:[%s165_s28 + $0x40] sm:$0xff] %v245_v8  ;;  %v251_v11 = vld [vmem:[%s7657_s27 + $0x108] sm:$0xff]  ;;  %248 = vst [vmem:[%s165_s28 + $0x48] sm:$0xff] %v247_v9  ;;  %v253_v12 = vld [vmem:[%s7657_s27 + $0x120] sm:$0xff] }
  0x18   : > { %250 = vst [vmem:[%s165_s28 + $0x50] sm:$0xff] %v249_v10  ;;  %252 = vst [vmem:[%s165_s28 + $0x58] sm:$0xff] %v251_v11  ;;  %v255_v13 = vld [vmem:[%s7657_s27 + $0x138] sm:$0xff]  ;;  %v257_v14 = vld [vmem:[%s7657_s27 + $0x150] sm:$0xff] }
  0x19   : > { %254 = vst [vmem:[%s165_s28 + $0x60] sm:$0xff] %v253_v12  ;;  %256 = vst [vmem:[%s165_s28 + $0x68] sm:$0xff] %v255_v13  ;;  %v259_v15 = vld [vmem:[%s7657_s27 + $0x168] sm:$0xff] }
  0x1a   : > { %258 = vst [vmem:[%s165_s28 + $0x70] sm:$0xff] %v257_v14  ;;  %260 = vst [vmem:[%s165_s28 + $0x78] sm:$0xff] %v259_v15 }
  0x1b PF: > { %266 = sbr.rel (!%p7639_p3) target bundleno = 40 (0x28), region = 58  ;;  %s268_s29 = sand.u32 (%p7639_p3), 1, %s7568_s13  }
  0x1c   : > { %s5670_s30 = smul.u32 (%p7639_p3), 384, %s7576_s15  ;;  %s5669_s4 = sshll.u32 (%p7639_p3), %s268_s29, 7 }
  0x1d   : > { %s270_s8 = scalar_lea.vmem (%p7639_p3), [#allocation6], %s5669_s4 }
  0x1e   : > { %s7682_s7 = scalar_lea.vmem (%p7639_p3), %s11082_s1, %s5670_s30 }
  0x1f   : > { %v5671_v16 = vld [vmem:[%s7682_s7 + $0x8] sm:$0xff] (%p7639_p3)  ;;  %v5672_v17 = vld [vmem:[%s7682_s7 + $0x20] sm:$0xff] (%p7639_p3)  ;;  %v5673_v18 = vld [vmem:[%s7682_s7 + $0x38] sm:$0xff] (%p7639_p3) }
  0x20   : > { %336 = vst [vmem:[%s270_s8] sm:$0xff] (%p7639_p3), %v5671_v16  ;;  %338 = vst [vmem:[%s270_s8 + $0x8] sm:$0xff] (%p7639_p3), %v5672_v17  ;;  %v5674_v19 = vld [vmem:[%s7682_s7 + $0x50] sm:$0xff] (%p7639_p3)  ;;  %v5675_v20 = vld [vmem:[%s7682_s7 + $0x68] sm:$0xff] (%p7639_p3) }
  0x21   : > { %340 = vst [vmem:[%s270_s8 + $0x10] sm:$0xff] (%p7639_p3), %v5673_v18  ;;  %v5676_v21 = vld [vmem:[%s7682_s7 + $0x80] sm:$0xff] (%p7639_p3)  ;;  %342 = vst [vmem:[%s270_s8 + $0x18] sm:$0xff] (%p7639_p3), %v5674_v19  ;;  %v5677_v22 = vld [vmem:[%s7682_s7 + $0x98] sm:$0xff] (%p7639_p3) }
  0x22   : > { %344 = vst [vmem:[%s270_s8 + $0x20] sm:$0xff] %v5675_v20  ;;  %346 = vst [vmem:[%s270_s8 + $0x28] sm:$0xff] %v5676_v21  ;;  %v5678_v23 = vld [vmem:[%s7682_s7 + $0xb0] sm:$0xff]  ;;  %v5679_v24 = vld [vmem:[%s7682_s7 + $0xc8] sm:$0xff] }
  0x23   : > { %348 = vst [vmem:[%s270_s8 + $0x30] sm:$0xff] %v5677_v22  ;;  %350 = vst [vmem:[%s270_s8 + $0x38] sm:$0xff] %v5678_v23  ;;  %v5680_v25 = vld [vmem:[%s7682_s7 + $0xe0] sm:$0xff]  ;;  %v5681_v26 = vld [vmem:[%s7682_s7 + $0xf8] sm:$0xff] }
  0x24   : > { %352 = vst [vmem:[%s270_s8 + $0x40] sm:$0xff] %v5679_v24  ;;  %v5682_v27 = vld [vmem:[%s7682_s7 + $0x110] sm:$0xff]  ;;  %354 = vst [vmem:[%s270_s8 + $0x48] sm:$0xff] %v5680_v25  ;;  %v5683_v28 = vld [vmem:[%s7682_s7 + $0x128] sm:$0xff] }
  0x25   : > { %356 = vst [vmem:[%s270_s8 + $0x50] sm:$0xff] %v5681_v26  ;;  %358 = vst [vmem:[%s270_s8 + $0x58] sm:$0xff] %v5682_v27  ;;  %v5684_v29 = vld [vmem:[%s7682_s7 + $0x140] sm:$0xff]  ;;  %v5685_v30 = vld [vmem:[%s7682_s7 + $0x158] sm:$0xff] }
  0x26   : > { %360 = vst [vmem:[%s270_s8 + $0x60] sm:$0xff] %v5683_v28  ;;  %362 = vst [vmem:[%s270_s8 + $0x68] sm:$0xff] %v5684_v29  ;;  %v5686_v31 = vld [vmem:[%s7682_s7 + $0x170] sm:$0xff] }
  0x27   : > { %364 = vst [vmem:[%s270_s8 + $0x70] sm:$0xff] %v5685_v30  ;;  %366 = vst [vmem:[%s270_s8 + $0x78] sm:$0xff] %v5686_v31 }
  0x28 PF: > { %372 = sbr.rel (!%p7639_p3) target bundleno = 53 (0x35), region = 96  ;;  %s374_s9 = sand.u32 (%p7639_p3), 1, %s7568_s13  }
  0x29   : > { %s5688_s10 = smul.u32 (%p7639_p3), 384, %s7576_s15  ;;  %s5687_s11 = sshll.u32 (%p7639_p3), %s374_s9, 7 }
  0x2a   : > { %s376_s18 = scalar_lea.vmem (%p7639_p3), [#allocation7], %s5687_s11 }
  0x2b   : > { %s7707_s22 = scalar_lea.vmem (%p7639_p3), %s11083_s2, %s5688_s10 }
  0x2c   : > { %v5689_v32 = vld [vmem:[%s7707_s22 + $0x10] sm:$0xff] (%p7639_p3)  ;;  %v5690_v33 = vld [vmem:[%s7707_s22 + $0x28] sm:$0xff] (%p7639_p3)  ;;  %v5691_v34 = vld [vmem:[%s7707_s22 + $0x40] sm:$0xff] (%p7639_p3) }
  0x2d   : > { %442 = vst [vmem:[%s376_s18] sm:$0xff] (%p7639_p3), %v5689_v32  ;;  %444 = vst [vmem:[%s376_s18 + $0x8] sm:$0xff] (%p7639_p3), %v5690_v33  ;;  %v5692_v35 = vld [vmem:[%s7707_s22 + $0x58] sm:$0xff] (%p7639_p3)  ;;  %v5693_v36 = vld [vmem:[%s7707_s22 + $0x70] sm:$0xff] (%p7639_p3) }
  0x2e   : > { %446 = vst [vmem:[%s376_s18 + $0x10] sm:$0xff] (%p7639_p3), %v5691_v34  ;;  %v5694_v37 = vld [vmem:[%s7707_s22 + $0x88] sm:$0xff] (%p7639_p3)  ;;  %448 = vst [vmem:[%s376_s18 + $0x18] sm:$0xff] (%p7639_p3), %v5692_v35  ;;  %v5695_v38 = vld [vmem:[%s7707_s22 + $0xa0] sm:$0xff] (%p7639_p3) }
  0x2f   : > { %450 = vst [vmem:[%s376_s18 + $0x20] sm:$0xff] %v5693_v36  ;;  %452 = vst [vmem:[%s376_s18 + $0x28] sm:$0xff] %v5694_v37  ;;  %v5696_v39 = vld [vmem:[%s7707_s22 + $0xb8] sm:$0xff]  ;;  %v5697_v40 = vld [vmem:[%s7707_s22 + $0xd0] sm:$0xff] }
  0x30   : > { %454 = vst [vmem:[%s376_s18 + $0x30] sm:$0xff] %v5695_v38  ;;  %456 = vst [vmem:[%s376_s18 + $0x38] sm:$0xff] %v5696_v39  ;;  %v5698_v41 = vld [vmem:[%s7707_s22 + $0xe8] sm:$0xff]  ;;  %v5699_v42 = vld [vmem:[%s7707_s22 + $0x100] sm:$0xff] }
  0x31   : > { %458 = vst [vmem:[%s376_s18 + $0x40] sm:$0xff] %v5697_v40  ;;  %v5700_v43 = vld [vmem:[%s7707_s22 + $0x118] sm:$0xff]  ;;  %460 = vst [vmem:[%s376_s18 + $0x48] sm:$0xff] %v5698_v41  ;;  %v5701_v44 = vld [vmem:[%s7707_s22 + $0x130] sm:$0xff] }
  0x32   : > { %462 = vst [vmem:[%s376_s18 + $0x50] sm:$0xff] %v5699_v42  ;;  %464 = vst [vmem:[%s376_s18 + $0x58] sm:$0xff] %v5700_v43  ;;  %v5702_v45 = vld [vmem:[%s7707_s22 + $0x148] sm:$0xff]  ;;  %v5703_v46 = vld [vmem:[%s7707_s22 + $0x160] sm:$0xff] }
  0x33   : > { %466 = vst [vmem:[%s376_s18 + $0x60] sm:$0xff] %v5701_v44  ;;  %468 = vst [vmem:[%s376_s18 + $0x68] sm:$0xff] %v5702_v45  ;;  %v5704_v47 = vld [vmem:[%s7707_s22 + $0x178] sm:$0xff] }
  0x34   : > { %470 = vst [vmem:[%s376_s18 + $0x70] sm:$0xff] %v5703_v46  ;;  %472 = vst [vmem:[%s376_s18 + $0x78] sm:$0xff] %v5704_v47 }
  0x35 PF: > { %p5705_p6 = scmp.ge.s32.totalorder %s7580_s16, 1  ;;  %p477_p7 = scmp.lt.s32.totalorder %s7580_s16, 3 }
  0x37   : > { %p478_p8 = pnand %p5705_p6, %p477_p7 }
  0x39   : > { %481 = sbr.rel (%p478_p8) target bundleno = 2849 (0xb21), region = 134 }
  0x40   : > { %s484_s23 = sand.u32 1, %s7564_s12   ;;  %vm743_vm0 = vcmask 261120   ;;  %vm550_vm2 = vcmask 7168   ;;  %v7582_v25 = vmov -inf   ;;  %v7583_v36 = vmov 0   ;;  %s7585_s27 = smov 96  }
  0x41   : > { %s7728_s24 = sshll.u32 %s484_s23, 7  ;;  %vm7732_vm1 = vmpackc.low %vm743_vm0, %vm743_vm0  ;;  %551 = vst.msk [vmem:[#allocation2] sm:$0xff] %vm550_vm2, %v7582_v25  ;;  %6913 = vset.pattern.permute.xlu0 %v7583_v36  ;;  %6914 = vset.pattern.permute.xlu1 %v7583_v36  ;;  %v7584_v41 = vmov 0.0   ;;  %p537_p9 = scmp.lt.s32.totalorder %s7572_s14, 1  ;;  %vm2866_vm3 = vcmask 523520   ;;  %vm4122_vm4 = vcmask 785920  }
  0x42   : > { %s7737_s25 = scalar_lea.vmem [#allocation6], %s7728_s24  ;;  %s7762_s12 = scalar_lea.vmem [#allocation5], %s7728_s24  ;;  %552 = vst.msk [vmem:[#allocation2 + $0x8] sm:$0xff] %vm550_vm2, %v7582_v25  ;;  %553 = vst.msk [vmem:[#allocation2 + $0x10] sm:$0xff] %vm550_vm2, %v7582_v25  ;;  %vm5378_vm5 = vcmask 1048320  }
  0x43   : > { %v7740_v49 = vld [vmem:[%s7737_s25] sm:$0xff]  ;;  %v7743_v50 = vld [vmem:[%s7737_s25 + $0x8] sm:$0xff]  ;;  %v7746_v51 = vld [vmem:[%s7737_s25 + $0x10] sm:$0xff]  ;;  %554 = vst.msk [vmem:[#allocation2 + $0x18] sm:$0xff] %vm550_vm2, %v7582_v25  ;;  %s8239_s26 = scalar_lea.vmem [#allocation7], %s7728_s24  ;;  %s11537_s14 = smov (!%p537_p9, %s7572_s14), 1 }
  0x44   : > { %v6546_v52 = vpack.c.bf16 %v7743_v50, %v7740_v49  ;;  %v7751_v53 = vld [vmem:[%s7737_s25 + $0x18] sm:$0xff]  ;;  %v7765_v55 = vld [vmem:[%s7762_s12] sm:$0xff]  ;;  %v7771_v57 = vld [vmem:[%s7737_s25 + $0x28] sm:$0xff]  ;;  %555 = vst.msk [vmem:[#allocation2 + $0x20] sm:$0xff] %vm550_vm2, %v7582_v25  ;;  %s5841_s28 = sshll.u32 %s11537_s14, 7  ;;  %s7586_s14 = smov 64  }
  0x45   : > { %v6552_v54 = vpack.c.bf16 %v7751_v53, %v7746_v51  ;;  %v7768_v56 = vld [vmem:[%s7737_s25 + $0x20] sm:$0xff]  ;;  %6130 = vmatprep.mubr.msk.f32.mxu0 %vm743_vm0, %v7765_v55  ;;  %v7782_v59 = vld [vmem:[%s7737_s25 + $0x30] sm:$0xff]  ;;  %v7785_v60 = vld [vmem:[%s7737_s25 + $0x38] sm:$0xff]  ;;  %556 = vst.msk [vmem:[#allocation2 + $0x28] sm:$0xff] %vm550_vm2, %v7582_v25  ;;  %s8875_s4 = scalar_lea.vmem %s11084_s3, %s5841_s28  ;;  %s7587_s5 = smov 32  }
  0x46   : > { %6548 = vmatprep.subr.msk.bf16.mxu0 %vm7732_vm1, %v6546_v52  ;;  %v6558_v58 = vpack.c.bf16 %v7771_v57, %v7768_v56  ;;  %v6564_v61 = vpack.c.bf16 %v7785_v60, %v7782_v59  ;;  %v7794_v62 = vld [vmem:[%s7737_s25 + $0x40] sm:$0xff]  ;;  %v7797_v63 = vld [vmem:[%s7737_s25 + $0x48] sm:$0xff]  ;;  %v7806_v1 = vld [vmem:[%s7737_s25 + $0x50] sm:$0xff]  ;;  %557 = vst.msk [vmem:[#allocation2 + $0x30] sm:$0xff] %vm550_vm2, %v7582_v25 }
  0x47   : > { %6551 = vmatpush3.bf16.xpose.msk.msra.mxu0 %vm7732_vm1, %v6546_v52  ;;  %v6570_v0 = vpack.c.bf16 %v7797_v63, %v7794_v62  ;;  %v7809_v2 = vld [vmem:[%s7737_s25 + $0x58] sm:$0xff]  ;;  %v7818_v4 = vld [vmem:[%s7737_s25 + $0x60] sm:$0xff]  ;;  %v7821_v5 = vld [vmem:[%s7737_s25 + $0x68] sm:$0xff]  ;;  %558 = vst.msk [vmem:[#allocation2 + $0x38] sm:$0xff] %vm550_vm2, %v7582_v25 }
  0x48   : > { %6554 = vmatprep.subr.msk.bf16.mxu0 %vm7732_vm1, %v6552_v54  ;;  %v6576_v3 = vpack.c.bf16 %v7809_v2, %v7806_v1  ;;  %v6582_v6 = vpack.c.bf16 %v7821_v5, %v7818_v4  ;;  %v7830_v7 = vld [vmem:[%s7737_s25 + $0x70] sm:$0xff]  ;;  %v7833_v8 = vld [vmem:[%s7737_s25 + $0x78] sm:$0xff]  ;;  %v7844_v10 = vld [vmem:[%s7762_s12 + $0x8] sm:$0xff]  ;;  %559 = vst.msk [vmem:[#allocation2 + $0x40] sm:$0xff] %vm550_vm2, %v7582_v25 }
  0x49   : > { %v6588_v9 = vpack.c.bf16 %v7833_v8, %v7830_v7  ;;  %v7847_v11 = vld [vmem:[%s7762_s12 + $0x10] sm:$0xff]  ;;  %v7854_v12 = vld [vmem:[%s7762_s12 + $0x18] sm:$0xff]  ;;  %v7857_v13 = vld [vmem:[%s7762_s12 + $0x20] sm:$0xff]  ;;  %560 = vst.msk [vmem:[#allocation2 + $0x48] sm:$0xff] %vm550_vm2, %v7582_v25 }
  0x4a   : > { %v7864_v14 = vld [vmem:[%s7762_s12 + $0x28] sm:$0xff]  ;;  %v7867_v15 = vld [vmem:[%s7762_s12 + $0x30] sm:$0xff]  ;;  %v7874_v16 = vld [vmem:[%s7762_s12 + $0x38] sm:$0xff]  ;;  %561 = vst.msk [vmem:[#allocation2 + $0x50] sm:$0xff] %vm550_vm2, %v7582_v25 }
  0x4b   : > { %v7877_v17 = vld [vmem:[%s7762_s12 + $0x40] sm:$0xff]  ;;  %v7884_v18 = vld [vmem:[%s7762_s12 + $0x48] sm:$0xff]  ;;  %v7887_v19 = vld [vmem:[%s7762_s12 + $0x50] sm:$0xff]  ;;  %562 = vst.msk [vmem:[#allocation2 + $0x58] sm:$0xff] %vm550_vm2, %v7582_v25 }
  0x4c   : > { %v7894_v20 = vld [vmem:[%s7762_s12 + $0x58] sm:$0xff]  ;;  %v7897_v21 = vld [vmem:[%s7762_s12 + $0x60] sm:$0xff]  ;;  %v7904_v22 = vld [vmem:[%s7762_s12 + $0x68] sm:$0xff]  ;;  %563 = vst.msk [vmem:[#allocation2 + $0x60] sm:$0xff] %vm550_vm2, %v7582_v25 }
  0x4d   : > { %v7907_v23 = vld [vmem:[%s7762_s12 + $0x70] sm:$0xff]  ;;  %v7914_v24 = vld [vmem:[%s7762_s12 + $0x78] sm:$0xff]  ;;  %564 = vst.msk [vmem:[#allocation2 + $0x68] sm:$0xff] %vm550_vm2, %v7582_v25  ;;  %565 = vst.msk [vmem:[#allocation2 + $0x70] sm:$0xff] %vm550_vm2, %v7582_v25 }
  0x4e   : > { %566 = vst.msk [vmem:[#allocation2 + $0x78] sm:$0xff] %vm550_vm2, %v7582_v25  ;;  %567 = vst.msk [vmem:[#allocation2 + $0x80] sm:$0xff] %vm550_vm2, %v7582_v25  ;;  %v8242_v44 = vld [vmem:[%s8239_s26] sm:$0xff]  ;;  %v8245_v45 = vld [vmem:[%s8239_s26 + $0x8] sm:$0xff] }
  0x4f   : > { %6557 = vmatpush3.bf16.xpose.msk.msra.mxu0 %vm7732_vm1, %v6552_v54  ;;  %568 = vst.msk [vmem:[#allocation2 + $0x88] sm:$0xff] %vm550_vm2, %v7582_v25  ;;  %569 = vst.msk [vmem:[#allocation2 + $0x90] sm:$0xff] %vm550_vm2, %v7582_v25  ;;  %v6594_v46 = vpack.c.bf16 %v8245_v45, %v8242_v44  ;;  %v729_v52 = vld [vmem:[%s8239_s26 + $0x10] sm:$0xff]  ;;  %v730_v54 = vld [vmem:[%s8239_s26 + $0x18] sm:$0xff] }
  0x50   : > { %6560 = vmatprep.subr.msk.bf16.mxu0 %vm7732_vm1, %v6558_v58  ;;  %570 = vst.msk [vmem:[#allocation2 + $0x98] sm:$0xff] %vm550_vm2, %v7582_v25  ;;  %571 = vst.msk [vmem:[#allocation2 + $0xa0] sm:$0xff] %vm550_vm2, %v7582_v25  ;;  %v8270_v36 = vld [vmem:[%s8239_s26 + $0x40] sm:$0xff]  ;;  %v738_v47 = vld [vmem:[%s8239_s26 + $0x58] sm:$0xff] }
  0x51   : > { %572 = vst.msk [vmem:[#allocation2 + $0xa8] sm:$0xff] %vm550_vm2, %v7582_v25  ;;  %573 = vst.msk [vmem:[#allocation2 + $0xb0] sm:$0xff] %vm550_vm2, %v7582_v25  ;;  %6595 = vmatprep.subr.bf16.mxu1 %v6594_v46 }
  0x52   : > { %574 = vst.msk [vmem:[#allocation2 + $0xb8] sm:$0xff] %vm550_vm2, %v7582_v25  ;;  %575 = vst.msk [vmem:[#allocation2 + $0xc0] sm:$0xff] %vm550_vm2, %v7582_v25  ;;  %6597 = vmatpush3.bf16.msra.mxu1 %v6594_v46  ;;  %v8275_v46 = vld [vmem:[#allocation2] sm:$0xff] }
  0x53   : > { %576 = vst.msk [vmem:[#allocation2 + $0xc8] sm:$0xff] %vm550_vm2, %v7582_v25  ;;  %577 = vst.msk [vmem:[#allocation2 + $0xd0] sm:$0xff] %vm550_vm2, %v7582_v25 }
  0x54   : > { %578 = vst.msk [vmem:[#allocation2 + $0xd8] sm:$0xff] %vm550_vm2, %v7582_v25  ;;  %579 = vst.msk [vmem:[#allocation2 + $0xe0] sm:$0xff] %vm550_vm2, %v7582_v25 }
  0x55   : > { %580 = vst.msk [vmem:[#allocation2 + $0xe8] sm:$0xff] %vm550_vm2, %v7582_v25  ;;  %581 = vst.msk [vmem:[#allocation2 + $0xf0] sm:$0xff] %vm550_vm2, %v7582_v25 }
  0x56   : > { %582 = vst.msk [vmem:[#allocation2 + $0xf8] sm:$0xff] %vm550_vm2, %v7582_v25  ;;  %583 = vst.msk [vmem:[#allocation2 + $0x100] sm:$0xff] %vm550_vm2, %v7582_v25 }
  0x57   : > { %6563 = vmatpush3.bf16.xpose.msk.msra.mxu0 %vm7732_vm1, %v6558_v58  ;;  %584 = vst.msk [vmem:[#allocation2 + $0x108] sm:$0xff] %vm550_vm2, %v7582_v25  ;;  %585 = vst.msk [vmem:[#allocation2 + $0x110] sm:$0xff] %vm550_vm2, %v7582_v25  ;;  %v6598_v58 = vpack.c.bf16 %v730_v54, %v729_v52 }
  0x58   : > { %6566 = vmatprep.subr.msk.bf16.mxu0 %vm7732_vm1, %v6564_v61  ;;  %586 = vst.msk [vmem:[#allocation2 + $0x118] sm:$0xff] %vm550_vm2, %v7582_v25  ;;  %587 = vst.msk [vmem:[#allocation2 + $0x120] sm:$0xff] %vm550_vm2, %v7582_v25 }
  0x59   : > { %588 = vst.msk [vmem:[#allocation2 + $0x128] sm:$0xff] %vm550_vm2, %v7582_v25  ;;  %589 = vst.msk [vmem:[#allocation2 + $0x130] sm:$0xff] %vm550_vm2, %v7582_v25  ;;  %6599 = vmatprep.subr.bf16.mxu1 %v6598_v58 }
  0x5a   : > { %590 = vst.msk [vmem:[#allocation2 + $0x138] sm:$0xff] %vm550_vm2, %v7582_v25  ;;  %591 = vst.msk [vmem:[#allocation2 + $0x140] sm:$0xff] %vm550_vm2, %v7582_v25  ;;  %6601 = vmatpush3.bf16.msra.mxu1 %v6598_v58 }
  0x5b   : > { %592 = vst.msk [vmem:[#allocation2 + $0x148] sm:$0xff] %vm550_vm2, %v7582_v25  ;;  %593 = vst.msk [vmem:[#allocation2 + $0x150] sm:$0xff] %vm550_vm2, %v7582_v25 }
  0x5c   : > { %594 = vst.msk [vmem:[#allocation2 + $0x158] sm:$0xff] %vm550_vm2, %v7582_v25  ;;  %595 = vst.msk [vmem:[#allocation2 + $0x160] sm:$0xff] %vm550_vm2, %v7582_v25 }
  0x5d   : > { %596 = vst.msk [vmem:[#allocation2 + $0x168] sm:$0xff] %vm550_vm2, %v7582_v25  ;;  %597 = vst.msk [vmem:[#allocation2 + $0x170] sm:$0xff] %vm550_vm2, %v7582_v25 }
  0x5e   : > { %598 = vst.msk [vmem:[#allocation2 + $0x178] sm:$0xff] %vm550_vm2, %v7582_v25  ;;  %599 = vst.msk [vmem:[#allocation2 + $0x180] sm:$0xff] %vm550_vm2, %v7582_v25 }
  0x5f   : > { %6569 = vmatpush3.bf16.xpose.msk.msra.mxu0 %vm7732_vm1, %v6564_v61  ;;  %600 = vst.msk [vmem:[#allocation2 + $0x188] sm:$0xff] %vm550_vm2, %v7582_v25  ;;  %601 = vst.msk [vmem:[#allocation2 + $0x190] sm:$0xff] %vm550_vm2, %v7582_v25  ;;  %v8254_v61 = vld [vmem:[%s8239_s26 + $0x20] sm:$0xff] }
  0x60   : > { %6572 = vmatprep.subr.msk.bf16.mxu0 %vm7732_vm1, %v6570_v0  ;;  %602 = vst.msk [vmem:[#allocation2 + $0x198] sm:$0xff] %vm550_vm2, %v7582_v25  ;;  %603 = vst.msk [vmem:[#allocation2 + $0x1a0] sm:$0xff] %vm550_vm2, %v7582_v25 }
  0x61   : > { %604 = vst.msk [vmem:[#allocation2 + $0x1a8] sm:$0xff] %vm550_vm2, %v7582_v25  ;;  %605 = vst.msk [vmem:[#allocation2 + $0x1b0] sm:$0xff] %vm550_vm2, %v7582_v25 }
  0x62   : > { %606 = vst.msk [vmem:[#allocation2 + $0x1b8] sm:$0xff] %vm550_vm2, %v7582_v25  ;;  %607 = vst.msk [vmem:[#allocation2 + $0x1c0] sm:$0xff] %vm550_vm2, %v7582_v25 }
  0x63   : > { %608 = vst.msk [vmem:[#allocation2 + $0x1c8] sm:$0xff] %vm550_vm2, %v7582_v25  ;;  %609 = vst.msk [vmem:[#allocation2 + $0x1d0] sm:$0xff] %vm550_vm2, %v7582_v25 }
  0x64   : > { %610 = vst.msk [vmem:[#allocation2 + $0x1d8] sm:$0xff] %vm550_vm2, %v7582_v25  ;;  %611 = vst.msk [vmem:[#allocation2 + $0x1e0] sm:$0xff] %vm550_vm2, %v7582_v25 }
  0x65   : > { %612 = vst.msk [vmem:[#allocation2 + $0x1e8] sm:$0xff] %vm550_vm2, %v7582_v25  ;;  %613 = vst.msk [vmem:[#allocation2 + $0x1f0] sm:$0xff] %vm550_vm2, %v7582_v25 }
  0x66   : > { %614 = vst.msk [vmem:[#allocation2 + $0x1f8] sm:$0xff] %vm550_vm2, %v7582_v25  ;;  %679 = vst [vmem:[#allocation4] sm:$0xff] %v7584_v41 }
  0x67   : > { %6575 = vmatpush3.bf16.xpose.msk.msra.mxu0 %vm7732_vm1, %v6570_v0  ;;  %615 = vst.msk [vmem:[#allocation3] sm:$0xff] %vm550_vm2, %v7584_v41  ;;  %616 = vst.msk [vmem:[#allocation3 + $0x8] sm:$0xff] %vm550_vm2, %v7584_v41  ;;  %v8257_v0 = vld [vmem:[%s8239_s26 + $0x28] sm:$0xff] }
  0x68   : > { %6578 = vmatprep.subr.msk.bf16.mxu0 %vm7732_vm1, %v6576_v3  ;;  %617 = vst.msk [vmem:[#allocation3 + $0x10] sm:$0xff] %vm550_vm2, %v7584_v41  ;;  %618 = vst.msk [vmem:[#allocation3 + $0x18] sm:$0xff] %vm550_vm2, %v7584_v41 }
  0x69   : > { %619 = vst.msk [vmem:[#allocation3 + $0x20] sm:$0xff] %vm550_vm2, %v7584_v41  ;;  %620 = vst.msk [vmem:[#allocation3 + $0x28] sm:$0xff] %vm550_vm2, %v7584_v41 }
  0x6a   : > { %621 = vst.msk [vmem:[#allocation3 + $0x30] sm:$0xff] %vm550_vm2, %v7584_v41  ;;  %622 = vst.msk [vmem:[#allocation3 + $0x38] sm:$0xff] %vm550_vm2, %v7584_v41 }
  0x6b   : > { %623 = vst.msk [vmem:[#allocation3 + $0x40] sm:$0xff] %vm550_vm2, %v7584_v41  ;;  %624 = vst.msk [vmem:[#allocation3 + $0x48] sm:$0xff] %vm550_vm2, %v7584_v41 }
  0x6c   : > { %625 = vst.msk [vmem:[#allocation3 + $0x50] sm:$0xff] %vm550_vm2, %v7584_v41  ;;  %626 = vst.msk [vmem:[#allocation3 + $0x58] sm:$0xff] %vm550_vm2, %v7584_v41 }
  0x6d   : > { %627 = vst.msk [vmem:[#allocation3 + $0x60] sm:$0xff] %vm550_vm2, %v7584_v41  ;;  %628 = vst.msk [vmem:[#allocation3 + $0x68] sm:$0xff] %vm550_vm2, %v7584_v41 }
  0x6e   : > { %629 = vst.msk [vmem:[#allocation3 + $0x70] sm:$0xff] %vm550_vm2, %v7584_v41  ;;  %630 = vst.msk [vmem:[#allocation3 + $0x78] sm:$0xff] %vm550_vm2, %v7584_v41 }
  0x6f   : > { %6581 = vmatpush3.bf16.xpose.msk.msra.mxu0 %vm7732_vm1, %v6576_v3  ;;  %631 = vst.msk [vmem:[#allocation3 + $0x80] sm:$0xff] %vm550_vm2, %v7584_v41  ;;  %632 = vst.msk [vmem:[#allocation3 + $0x88] sm:$0xff] %vm550_vm2, %v7584_v41  ;;  %v6602_v3 = vpack.c.bf16 %v8257_v0, %v8254_v61 }
  0x70   : > { %6584 = vmatprep.subr.msk.bf16.mxu0 %vm7732_vm1, %v6582_v6  ;;  %633 = vst.msk [vmem:[#allocation3 + $0x90] sm:$0xff] %vm550_vm2, %v7584_v41  ;;  %634 = vst.msk [vmem:[#allocation3 + $0x98] sm:$0xff] %vm550_vm2, %v7584_v41 }
  0x71   : > { %635 = vst.msk [vmem:[#allocation3 + $0xa0] sm:$0xff] %vm550_vm2, %v7584_v41  ;;  %636 = vst.msk [vmem:[#allocation3 + $0xa8] sm:$0xff] %vm550_vm2, %v7584_v41  ;;  %6603 = vmatprep.subr.bf16.mxu1 %v6602_v3 }
  0x72   : > { %637 = vst.msk [vmem:[#allocation3 + $0xb0] sm:$0xff] %vm550_vm2, %v7584_v41  ;;  %638 = vst.msk [vmem:[#allocation3 + $0xb8] sm:$0xff] %vm550_vm2, %v7584_v41  ;;  %6605 = vmatpush3.bf16.msra.mxu1 %v6602_v3  ;;  %v8282_v3 = vld [vmem:[#allocation2 + $0x18] sm:$0xff] }
  0x73   : > { %639 = vst.msk [vmem:[#allocation3 + $0xc0] sm:$0xff] %vm550_vm2, %v7584_v41  ;;  %640 = vst.msk [vmem:[#allocation3 + $0xc8] sm:$0xff] %vm550_vm2, %v7584_v41 }
  0x74   : > { %641 = vst.msk [vmem:[#allocation3 + $0xd0] sm:$0xff] %vm550_vm2, %v7584_v41  ;;  %642 = vst.msk [vmem:[#allocation3 + $0xd8] sm:$0xff] %vm550_vm2, %v7584_v41 }
  0x75   : > { %643 = vst.msk [vmem:[#allocation3 + $0xe0] sm:$0xff] %vm550_vm2, %v7584_v41  ;;  %644 = vst.msk [vmem:[#allocation3 + $0xe8] sm:$0xff] %vm550_vm2, %v7584_v41 }
  0x76   : > { %645 = vst.msk [vmem:[#allocation3 + $0xf0] sm:$0xff] %vm550_vm2, %v7584_v41  ;;  %646 = vst.msk [vmem:[#allocation3 + $0xf8] sm:$0xff] %vm550_vm2, %v7584_v41 }
  0x77   : > { %6587 = vmatpush3.bf16.xpose.msk.msra.mxu0 %vm7732_vm1, %v6582_v6  ;;  %647 = vst.msk [vmem:[#allocation3 + $0x100] sm:$0xff] %vm550_vm2, %v7584_v41  ;;  %648 = vst.msk [vmem:[#allocation3 + $0x108] sm:$0xff] %vm550_vm2, %v7584_v41  ;;  %v8262_v6 = vld [vmem:[%s8239_s26 + $0x30] sm:$0xff] }
  0x78   : > { %6590 = vmatprep.subr.msk.bf16.mxu0 %vm7732_vm1, %v6588_v9  ;;  %649 = vst.msk [vmem:[#allocation3 + $0x110] sm:$0xff] %vm550_vm2, %v7584_v41  ;;  %650 = vst.msk [vmem:[#allocation3 + $0x118] sm:$0xff] %vm550_vm2, %v7584_v41 }
  0x79   : > { %651 = vst.msk [vmem:[#allocation3 + $0x120] sm:$0xff] %vm550_vm2, %v7584_v41  ;;  %652 = vst.msk [vmem:[#allocation3 + $0x128] sm:$0xff] %vm550_vm2, %v7584_v41 }
  0x7a   : > { %653 = vst.msk [vmem:[#allocation3 + $0x130] sm:$0xff] %vm550_vm2, %v7584_v41  ;;  %654 = vst.msk [vmem:[#allocation3 + $0x138] sm:$0xff] %vm550_vm2, %v7584_v41 }
  0x7b   : > { %655 = vst.msk [vmem:[#allocation3 + $0x140] sm:$0xff] %vm550_vm2, %v7584_v41  ;;  %656 = vst.msk [vmem:[#allocation3 + $0x148] sm:$0xff] %vm550_vm2, %v7584_v41 }
  0x7c   : > { %657 = vst.msk [vmem:[#allocation3 + $0x150] sm:$0xff] %vm550_vm2, %v7584_v41  ;;  %658 = vst.msk [vmem:[#allocation3 + $0x158] sm:$0xff] %vm550_vm2, %v7584_v41 }
  0x7d   : > { %659 = vst.msk [vmem:[#allocation3 + $0x160] sm:$0xff] %vm550_vm2, %v7584_v41  ;;  %660 = vst.msk [vmem:[#allocation3 + $0x168] sm:$0xff] %vm550_vm2, %v7584_v41 }
  0x7e   : > { %661 = vst.msk [vmem:[#allocation3 + $0x170] sm:$0xff] %vm550_vm2, %v7584_v41  ;;  %662 = vst.msk [vmem:[#allocation3 + $0x178] sm:$0xff] %vm550_vm2, %v7584_v41 }
  0x7f   : > { %6593 = vmatpush3.bf16.xpose.msk.msra.mxu0 %vm7732_vm1, %v6588_v9  ;;  %663 = vst.msk [vmem:[#allocation3 + $0x180] sm:$0xff] %vm550_vm2, %v7584_v41  ;;  %664 = vst.msk [vmem:[#allocation3 + $0x188] sm:$0xff] %vm550_vm2, %v7584_v41  ;;  %v8265_v9 = vld [vmem:[%s8239_s26 + $0x38] sm:$0xff] }
  0x80   : > { %665 = vst.msk [vmem:[#allocation3 + $0x190] sm:$0xff] %vm550_vm2, %v7584_v41  ;;  %666 = vst.msk [vmem:[#allocation3 + $0x198] sm:$0xff] %vm550_vm2, %v7584_v41  ;;  %v6606_v25 = vpack.c.bf16 %v8265_v9, %v8262_v6 }
  0x81   : > { %667 = vst.msk [vmem:[#allocation3 + $0x1a0] sm:$0xff] %vm550_vm2, %v7584_v41  ;;  %668 = vst.msk [vmem:[#allocation3 + $0x1a8] sm:$0xff] %vm550_vm2, %v7584_v41 }
  0x82   : > { %669 = vst.msk [vmem:[#allocation3 + $0x1b0] sm:$0xff] %vm550_vm2, %v7584_v41  ;;  %670 = vst.msk [vmem:[#allocation3 + $0x1b8] sm:$0xff] %vm550_vm2, %v7584_v41  ;;  %6607 = vmatprep.subr.bf16.mxu1 %v6606_v25 }
  0x83   : > { %671 = vst.msk [vmem:[#allocation3 + $0x1c0] sm:$0xff] %vm550_vm2, %v7584_v41  ;;  %672 = vst.msk [vmem:[#allocation3 + $0x1c8] sm:$0xff] %vm550_vm2, %v7584_v41  ;;  %6609 = vmatpush3.bf16.msra.mxu1 %v6606_v25  ;;  %v737_v25 = vld [vmem:[%s8239_s26 + $0x50] sm:$0xff] }
  0x84   : > { %673 = vst.msk [vmem:[#allocation3 + $0x1d0] sm:$0xff] %vm550_vm2, %v7584_v41  ;;  %674 = vst.msk [vmem:[#allocation3 + $0x1d8] sm:$0xff] %vm550_vm2, %v7584_v41 }
  0x85   : > { %675 = vst.msk [vmem:[#allocation3 + $0x1e0] sm:$0xff] %vm550_vm2, %v7584_v41  ;;  %676 = vst.msk [vmem:[#allocation3 + $0x1e8] sm:$0xff] %vm550_vm2, %v7584_v41 }
  0x86   : > { %6131 = vmatmul.mubr.msk.f32.vlgmr.msra.gmra.mrb[0].mxu0 %vm743_vm0, %v7844_v10  ;;  %677 = vst.msk [vmem:[#allocation3 + $0x1f0] sm:$0xff] %vm550_vm2, %v7584_v41  ;;  %678 = vst.msk [vmem:[#allocation3 + $0x1f8] sm:$0xff] %vm550_vm2, %v7584_v41 }
  0x87   : > { %6133 = vmatprep.mubr.msk.f32.mxu0 %vm743_vm0, %v7847_v11  ;;  %680 = vst [vmem:[#allocation4 + $0x8] sm:$0xff] %v7584_v41  ;;  %681 = vst [vmem:[#allocation4 + $0x10] sm:$0xff] %v7584_v41 }
  0x88   : > { %682 = vst [vmem:[#allocation4 + $0x18] sm:$0xff] %v7584_v41  ;;  %683 = vst [vmem:[#allocation4 + $0x20] sm:$0xff] %v7584_v41 }
  0x89   : > { %684 = vst [vmem:[#allocation4 + $0x28] sm:$0xff] %v7584_v41  ;;  %685 = vst [vmem:[#allocation4 + $0x30] sm:$0xff] %v7584_v41 }
  0x8a   : > { %6134 = vmatmul.mubr.msk.f32.gmra.mrb[2].mxu0 %vm743_vm0, %v7854_v12  ;;  %686 = vst [vmem:[#allocation4 + $0x38] sm:$0xff] %v7584_v41  ;;  %687 = vst [vmem:[#allocation4 + $0x40] sm:$0xff] %v7584_v41 }
  0x8b   : > { %6136 = vmatprep.mubr.msk.f32.mxu0 %vm743_vm0, %v7857_v13  ;;  %688 = vst [vmem:[#allocation4 + $0x48] sm:$0xff] %v7584_v41  ;;  %689 = vst [vmem:[#allocation4 + $0x50] sm:$0xff] %v7584_v41 }
  0x8c   : > { %690 = vst [vmem:[#allocation4 + $0x58] sm:$0xff] %v7584_v41  ;;  %691 = vst [vmem:[#allocation4 + $0x60] sm:$0xff] %v7584_v41 }
  0x8d   : > { %692 = vst [vmem:[#allocation4 + $0x68] sm:$0xff] %v7584_v41  ;;  %693 = vst [vmem:[#allocation4 + $0x70] sm:$0xff] %v7584_v41 }
  0x8e   : > { %6137 = vmatmul.mubr.msk.f32.gmra.mrb[4].mxu0 %vm743_vm0, %v7864_v14  ;;  %694 = vst [vmem:[#allocation4 + $0x78] sm:$0xff] %v7584_v41  ;;  %11223 = vst [vmem:[#allocation22_spill] sm:$0xff] %v8254_v61  ;;  %v8273_v41 = vld [vmem:[%s8239_s26 + $0x48] sm:$0xff]  ;;  %v8299_v61 = vld [vmem:[#allocation2 + $0x10] sm:$0xff] }
  0x8f   : > { %6139 = vmatprep.mubr.msk.f32.mxu0 %vm743_vm0, %v7867_v15  ;;  %11224 = vst [vmem:[#allocation23_spill] sm:$0xff] %v8257_v0  ;;  %11225 = vst [vmem:[#allocation24_spill] sm:$0xff] %v8262_v6  ;;  %v6610_v52 = vpack.c.bf16 %v8273_v41, %v8270_v36  ;;  %v6614_v6 = vpack.c.bf16 %v738_v47, %v737_v25  ;;  %v739_v47 = vld [vmem:[%s8239_s26 + $0x60] sm:$0xff]  ;;  %v740_v25 = vld [vmem:[%s8239_s26 + $0x68] sm:$0xff] }
  0x90   : > { %11226 = vst [vmem:[#allocation25_spill] sm:$0xff] %v8265_v9  ;;  %11227 = vst [vmem:[#allocation26_spill] sm:$0xff] %v8270_v36  ;;  %v8286_v9 = vld [vmem:[#allocation2 + $0x8] sm:$0xff] }
  0x91   : > { %11228 = vst [vmem:[#allocation27_spill] sm:$0xff] %v8273_v41  ;;  %6611 = vmatprep.subr.bf16.mxu1 %v6610_v52 }
  0x92   : > { %6140 = vmatmul.mubr.msk.f32.gmra.mrb[6].mxu0 %vm743_vm0, %v7874_v16  ;;  %6613 = vmatpush3.bf16.msra.mxu1 %v6610_v52 }
  0x93   : > { %6142 = vmatprep.mubr.msk.f32.mxu0 %vm743_vm0, %v7877_v17  ;;  %6615 = vmatprep.subr.bf16.mxu1 %v6614_v6 }
  0x96   : > { %6143 = vmatmul.mubr.msk.f32.gmra.mrb[8].mxu0 %vm743_vm0, %v7884_v18  ;;  %6617 = vmatpush3.bf16.msra.mxu1 %v6614_v6  ;;  %v6915_v6 = vpack.i.bf16 %v7743_v50, %v7740_v49  ;;  %v8329_v49 = vld [vmem:[#allocation2 + $0x30] sm:$0xff] }
  0x97   : > { %6145 = vmatprep.mubr.msk.f32.mxu0 %vm743_vm0, %v7887_v19 }
  0x9a   : > { %6146 = vmatmul.mubr.msk.f32.gmra.mrb[10].mxu0 %vm743_vm0, %v7894_v20 }
  0x9b   : > { %6148 = vmatprep.mubr.msk.f32.mxu0 %vm743_vm0, %v7897_v21 }
  0x9e   : > { %6149 = vmatmul.mubr.msk.f32.gmra.mrb[12].mxu0 %vm743_vm0, %v7904_v22 }
  0x9f   : > { %6151 = vmatprep.mubr.msk.f32.mxu0 %vm743_vm0, %v7907_v23 }
  0xa2   : > { %6152 = vmatmul.mubr.msk.f32.gmra.mrb[14].mxu0 %vm743_vm0, %v7914_v24 }
 0x159   : > { %v8046_v26 = vpop.f32.mrb[0].mxu0 }
 0x15a   : > { %v8048_v27 = vpop.f32.mrb[1].mxu0 }
 0x15b   : > { %1017 = vmax.xlane.f32.xlu0 %v8048_v27 }
 0x15d   : > { %v8051_v28 = vpop.f32.mrb[2].mxu0 }
 0x15e   : > { %11209 = vst [vmem:[#allocation8_spill] sm:$0xff] %v8051_v28  ;;  %1023 = vmax.xlane.f32.xlu1 %v8051_v28  ;;  %v8054_v29 = vpop.f32.mrb[3].mxu0 }
 0x15f   : > { %11210 = vst [vmem:[#allocation9_spill] sm:$0xff] %v8054_v29  ;;  %1019 = vmax.xlane.f32.xlu0 %v8046_v26 }
 0x161   : > { %v8057_v30 = vpop.f32.mrb[4].mxu0 }
 0x162   : > { %11211 = vst [vmem:[#allocation10_spill] sm:$0xff] %v8057_v30  ;;  %1021 = vmax.xlane.f32.xlu1 %v8054_v29  ;;  %v8060_v31 = vpop.f32.mrb[5].mxu0  ;;  %v8417_v29 = vld [vmem:[#allocation2 + $0x78] sm:$0xff] }
 0x163   : > { %11212 = vst [vmem:[#allocation11_spill] sm:$0xff] %v8060_v31  ;;  %1025 = vmax.xlane.f32.xlu0 %v8060_v31  ;;  %v6950_v31 = vpack.i.bf16 %v7833_v8, %v7830_v7 }
 0x165   : > { %v8063_v32 = vpop.f32.mrb[6].mxu0 }
 0x166   : > { %11213 = vst [vmem:[#allocation12_spill] sm:$0xff] %v8063_v32  ;;  %1027 = vmax.xlane.f32.xlu1 %v8057_v30  ;;  %v8066_v33 = vpop.f32.mrb[7].mxu0 }
 0x167   : > { %11214 = vst [vmem:[#allocation13_spill] sm:$0xff] %v8066_v33  ;;  %1029 = vmax.xlane.f32.xlu0 %v8066_v33 }
 0x169   : > { %v8069_v34 = vpop.f32.mrb[8].mxu0 }
 0x16a   : > { %11215 = vst [vmem:[#allocation14_spill] sm:$0xff] %v8069_v34  ;;  %1031 = vmax.xlane.f32.xlu1 %v8063_v32  ;;  %v8072_v35 = vpop.f32.mrb[9].mxu0  ;;  %v8399_v32 = vld [vmem:[#allocation2 + $0x68] sm:$0xff] }
 0x16b   : > { %11216 = vst [vmem:[#allocation15_spill] sm:$0xff] %v8072_v35  ;;  %1033 = vmax.xlane.f32.xlu0 %v8072_v35 }
 0x16d   : > { %v8075_v37 = vpop.f32.mrb[10].mxu0 }
 0x16e   : > { %11217 = vst [vmem:[#allocation16_spill] sm:$0xff] %v8075_v37  ;;  %1035 = vmax.xlane.f32.xlu1 %v8069_v34  ;;  %v8078_v38 = vpop.f32.mrb[11].mxu0 }
 0x16f   : > { %11218 = vst [vmem:[#allocation17_spill] sm:$0xff] %v8078_v38  ;;  %1037 = vmax.xlane.f32.xlu0 %v8078_v38 }
 0x171   : > { %v8081_v39 = vpop.f32.mrb[12].mxu0 }
 0x172   : > { %11219 = vst [vmem:[#allocation18_spill] sm:$0xff] %v8081_v39  ;;  %1039 = vmax.xlane.f32.xlu1 %v8075_v37  ;;  %v8084_v40 = vpop.f32.mrb[13].mxu0  ;;  %v8386_v37 = vld [vmem:[#allocation2 + $0x60] sm:$0xff] }
 0x173   : > { %11220 = vst [vmem:[#allocation19_spill] sm:$0xff] %v8084_v40  ;;  %1041 = vmax.xlane.f32.xlu0 %v8084_v40 }
 0x175   : > { %v8231_v42 = vpop.f32.mrb[14].mxu0 }
 0x176   : > { %11221 = vst [vmem:[#allocation20_spill] sm:$0xff] %v8231_v42  ;;  %v8233_v43 = vpop.f32.mrb[15].mxu0  ;;  %1043 = vmax.xlane.f32.xlu1 %v8081_v39 }
 0x177   : > { %11222 = vst [vmem:[#allocation21_spill] sm:$0xff] %v8233_v43  ;;  %1045 = vmax.xlane.f32.xlu0 %v8233_v43  ;;  %v742_v43 = vld [vmem:[%s8239_s26 + $0x78] sm:$0xff] }
 0x17a   : > { %1047 = vmax.xlane.f32.xlu1 %v8231_v42  ;;  %v8305_v42 = vld [vmem:[#allocation2 + $0x20] sm:$0xff] }
 0x1e8   : > { %v1018_v54 = vpop.xlane.xlu0 %1017 }
 0x1e9   : > { %v8280_v58 = vmax.f32 %v8275_v46, %v1018_v54  ;;  %v6930_v54 = vpack.i.bf16 %v7785_v60, %v7782_v59  ;;  %v6618_v59 = vpack.c.bf16 %v740_v25, %v739_v47  ;;  %v8321_v25 = vld [vmem:[#allocation2 + $0x28] sm:$0xff]  ;;  %v741_v60 = vld [vmem:[%s8239_s26 + $0x70] sm:$0xff] }
 0x1ea   : > { %v6622_v50 = vpack.c.bf16 %v742_v43, %v741_v60  ;;  %v8344_v43 = vld [vmem:[#allocation2 + $0x38] sm:$0xff]  ;;  %v8348_v60 = vld [vmem:[#allocation2 + $0x40] sm:$0xff] }
 0x1eb   : > { %1579 = vst.msk [vmem:[#allocation2] sm:$0xff] %vm550_vm2, %v8280_v58  ;;  %v1024_v0 = vpop.xlane.xlu1 %1023  ;;  %1115 = vperm.xlu0 %6913, %v8280_v58   ;;  %6619 = vmatprep.subr.bf16.mxu1 %v6618_v59 }
 0x1ec   : > { %v8294_v41 = vmax.f32 %v8282_v3, %v1024_v0  ;;  %v1020_v36 = vpop.xlane.xlu0 %1019  ;;  %6621 = vmatpush3.bf16.msra.mxu1 %v6618_v59  ;;  %v6920_v59 = vpack.i.bf16 %v7751_v53, %v7746_v51  ;;  %v6925_v53 = vpack.i.bf16 %v7771_v57, %v7768_v56 }
 0x1ed   : > { %v8297_v52 = vmax.f32 %v8286_v9, %v1020_v36  ;;  %6623 = vmatprep.subr.bf16.mxu1 %v6622_v50 }
 0x1ee   : > { %1582 = vst.msk [vmem:[#allocation2 + $0x18] sm:$0xff] %vm550_vm2, %v8294_v41  ;;  %v1068_v7 = vsub.f32 %v8282_v3, %v8294_v41 }
 0x1ef   : > { %1580 = vst.msk [vmem:[#allocation2 + $0x8] sm:$0xff] %vm550_vm2, %v8297_v52  ;;  %v1022_v0 = vpop.xlane.xlu1 %1021  ;;  %1120 = vperm.xlu1 %6914, %v8297_v52   ;;  %6931 = vrot.lane.b32.xlu0 %v6930_v54, %s7585_s27 }
 0x1f0   : > { %v8316_v36 = vmax.f32 %v8299_v61, %v1022_v0  ;;  %v1026_v39 = vpop.xlane.xlu0 %1025  ;;  %6625 = vmatpush3.bf16.msra.mxu1 %v6622_v50  ;;  %v1087_v8 = vmul.f32 1.442695, %v1068_v7 }
 0x1f1   : > { %v8319_v47 = vmax.f32 %v8305_v42, %v1026_v39 }
 0x1f2   : > { %1581 = vst.msk [vmem:[#allocation2 + $0x10] sm:$0xff] %vm550_vm2, %v8316_v36 }
 0x1f3   : > { %1583 = vst.msk [vmem:[#allocation2 + $0x20] sm:$0xff] %vm550_vm2, %v8319_v47  ;;  %v1028_v39 = vpop.xlane.xlu1 %1027  ;;  %6916 = vrot.lane.b32.xlu1 %v6915_v6, %s7585_s27  ;;  %v8368_v6 = vld [vmem:[#allocation2 + $0x50] sm:$0xff] }
 0x1f4   : > { %v8339_v0 = vmax.f32 %v8321_v25, %v1028_v39  ;;  %v1030_v38 = vpop.xlane.xlu0 %1029  ;;  %v8361_v39 = vld [vmem:[#allocation2 + $0x48] sm:$0xff] }
 0x1f5   : > { %v8342_v40 = vmax.f32 %v8329_v49, %v1030_v38 }
 0x1f6   : > { %1584 = vst.msk [vmem:[#allocation2 + $0x28] sm:$0xff] %vm550_vm2, %v8339_v0 }
 0x1f7   : > { %1585 = vst.msk [vmem:[#allocation2 + $0x30] sm:$0xff] %vm550_vm2, %v8342_v40  ;;  %v1032_v51 = vpop.xlane.xlu1 %1031  ;;  %6921 = vrot.lane.b32.xlu1 %v6920_v59, %s7585_s27  ;;  %1145 = vperm.xlu0 %6913, %v8342_v40  }
 0x1f8   : > { %v8359_v38 = vmax.f32 %v8344_v43, %v1032_v51  ;;  %v1034_v50 = vpop.xlane.xlu0 %1033  ;;  %v8378_v51 = vld [vmem:[#allocation2 + $0x58] sm:$0xff] }
 0x1f9   : > { %v8364_v54 = vmax.f32 %v8348_v60, %v1034_v50 }
 0x1fa   : > { %1586 = vst.msk [vmem:[#allocation2 + $0x38] sm:$0xff] %vm550_vm2, %v8359_v38 }
 0x1fb   : > { %v1036_v59 = vpop.xlane.xlu1 %1035  ;;  %1587 = vst.msk [vmem:[#allocation2 + $0x40] sm:$0xff] %vm550_vm2, %v8364_v54  ;;  %6926 = vrot.lane.b32.xlu1 %v6925_v53, %s7585_s27  ;;  %v8404_v53 = vld [vmem:[#allocation2 + $0x70] sm:$0xff] }
 0x1fc   : > { %v8376_v56 = vmax.f32 %v8361_v39, %v1036_v59  ;;  %v1038_v57 = vpop.xlane.xlu0 %1037 }
 0x1fd   : > { %v8381_v50 = vmax.f32 %v8368_v6, %v1038_v57 }
 0x1fe   : > { %1588 = vst.msk [vmem:[#allocation2 + $0x48] sm:$0xff] %vm550_vm2, %v8376_v56  ;;  %1160 = vperm.xlu0 %6913, %v8376_v56  }
 0x1ff   : > { %v1040_v35 = vpop.xlane.xlu1 %1039  ;;  %1589 = vst.msk [vmem:[#allocation2 + $0x50] sm:$0xff] %vm550_vm2, %v8381_v50  ;;  %1130 = vperm.xlu1 %6914, %v8294_v41  }
 0x200   : > { %v8394_v59 = vmax.f32 %v8378_v51, %v1040_v35  ;;  %v1042_v57 = vpop.xlane.xlu0 %1041 }
 0x201   : > { %v8397_v34 = vmax.f32 %v8386_v37, %v1042_v57 }
 0x202   : > { %1590 = vst.msk [vmem:[#allocation2 + $0x58] sm:$0xff] %vm550_vm2, %v8394_v59  ;;  %1170 = vperm.xlu0 %6913, %v8394_v59  }
 0x203   : > { %1591 = vst.msk [vmem:[#allocation2 + $0x60] sm:$0xff] %vm550_vm2, %v8397_v34  ;;  %1125 = vperm.xlu1 %6914, %v8316_v36   ;;  %v1044_v35 = vpop.xlane.xlu1 %1043 }
 0x204   : > { %v1046_v57 = vpop.xlane.xlu0 %1045  ;;  %v8412_v33 = vmax.f32 %v8399_v32, %v1044_v35 }
 0x205   : > { %v8415_v30 = vmax.f32 %v8404_v53, %v1046_v57  ;;  %v6940_v57 = vpack.i.bf16 %v7809_v2, %v7806_v1  ;;  %v6935_v1 = vpack.i.bf16 %v7797_v63, %v7794_v62  ;;  %v1065_v2 = vsub.f32 %v8275_v46, %v8280_v58 }
 0x206   : > { %1175 = vperm.xlu0 %6913, %v8397_v34   ;;  %1592 = vst.msk [vmem:[#allocation2 + $0x68] sm:$0xff] %vm550_vm2, %v8412_v33  ;;  %v6945_v62 = vpack.i.bf16 %v7821_v5, %v7818_v4  ;;  %v1072_v5 = vsub.f32 %v8344_v43, %v8359_v38  ;;  %v11236_v43 = vpack.i.bf16 %v8245_v45, %v8242_v44 }
 0x207   : > { %1140 = vperm.xlu1 %6914, %v8339_v0   ;;  %1593 = vst.msk [vmem:[#allocation2 + $0x70] sm:$0xff] %vm550_vm2, %v8415_v30  ;;  %v1048_v35 = vpop.xlane.xlu1 %1047  ;;  %v1081_v63 = vmul.f32 1.442695, %v1065_v2 }
 0x208   : > { %v8428_v28 = vmax.f32 %v8417_v29, %v1048_v35 }
 0x209   : > { %7155 = vpow2.f32 %v1081_v63 }
 0x20a   : > { %1185 = vperm.xlu0 %6913, %v8415_v30   ;;  %1594 = vst.msk [vmem:[#allocation2 + $0x78] sm:$0xff] %vm550_vm2, %v8428_v28  ;;  %7157 = vpow2.f32 %v1087_v8  ;;  %v1080_v41 = vsub.f32 %v8417_v29, %v8428_v28 }
 0x20b   : > { %1135 = vperm.xlu1 %6914, %v8319_v47  }
 0x20e   : > { %6941 = vrot.lane.b32.xlu0 %v6940_v57, %s7585_s27 }
 0x20f   : > { %1150 = vperm.xlu1 %6914, %v8359_v38  }
 0x212   : > { %6951 = vrot.lane.b32.xlu0 %v6950_v31, %s7585_s27 }
 0x213   : > { %1155 = vperm.xlu1 %6914, %v8364_v54  }
 0x216   : > { %1824 = vrot.lane.b32.xlu0 %v7844_v10, %s7585_s27  ;;  %v1070_v10 = vsub.f32 %v8321_v25, %v8339_v0 }
 0x217   : > { %1165 = vperm.xlu1 %6914, %v8381_v50  }
 0x218   : > { %v1091_v4 = vmul.f32 1.442695, %v1070_v10 }
 0x21a   : > { %1828 = vrot.lane.b32.xlu0 %v7854_v12, %s7585_s27  ;;  %7159 = vpow2.f32 %v1091_v4  ;;  %v1095_v12 = vmul.f32 1.442695, %v1072_v5 }
 0x21b   : > { %6936 = vrot.lane.b32.xlu1 %v6935_v1, %s7585_s27 }
 0x21c   : > { %7161 = vpow2.f32 %v1095_v12  ;;  %v11238_v12 = vld [vmem:[#allocation8_spill] sm:$0xff] }
 0x21e   : > { %1832 = vrot.lane.b32.xlu0 %v7864_v14, %s7585_s27  ;;  %v1074_v14 = vsub.f32 %v8361_v39, %v8376_v56 }
 0x21f   : > { %1180 = vperm.xlu1 %6914, %v8412_v33  }
 0x222   : > { %1836 = vrot.lane.b32.xlu0 %v7874_v16, %s7585_s27  ;;  %v1099_v16 = vmul.f32 1.442695, %v1074_v14 }
 0x223   : > { %1190 = vperm.xlu1 %6914, %v8428_v28   ;;  %v11231_v28 = vsub.f32 %v8305_v42, %v8319_v47  ;;  %v11234_v47 = vsub.f32 %v8368_v6, %v8381_v50 }
 0x224   : > { %7163 = vpow2.f32 %v1099_v16 }
 0x225   : > { %v1089_v29 = vmul.f32 1.442695, %v11231_v28  ;;  %v1101_v25 = vmul.f32 1.442695, %v11234_v47 }
 0x226   : > { %1840 = vrot.lane.b32.xlu0 %v7884_v18, %s7585_s27 }
 0x227   : > { %6946 = vrot.lane.b32.xlu1 %v6945_v62, %s7585_s27 }
 0x22a   : > { %1844 = vrot.lane.b32.xlu0 %v7894_v20, %s7585_s27 }
 0x22b   : > { %1822 = vrot.lane.b32.xlu1 %v7765_v55, %s7585_s27  ;;  %v8483_v55 = vpop.eup %7155 }
 0x22c   : > { %v8490_v18 = vpop.eup %7157 }
 0x22d   : > { %v8500_v31 = vpop.eup %7159 }
 0x22e   : > { %1848 = vrot.lane.b32.xlu0 %v7904_v22, %s7585_s27  ;;  %v11229_v22 = vsub.f32 %v8286_v9, %v8297_v52  ;;  %v1111_v9 = vmul.f32 1.442695, %v1080_v41 }
 0x22f   : > { %1826 = vrot.lane.b32.xlu1 %v7847_v11, %s7585_s27  ;;  %v1076_v11 = vsub.f32 %v8378_v51, %v8394_v59 }
 0x231   : > { %v1103_v20 = vmul.f32 1.442695, %v1076_v11 }
 0x232   : > { %1852 = vrot.lane.b32.xlu0 %v7914_v24, %s7585_s27  ;;  %v1083_v24 = vmul.f32 1.442695, %v11229_v22 }
 0x233   : > { %1830 = vrot.lane.b32.xlu1 %v7857_v13, %s7585_s27  ;;  %v1078_v13 = vsub.f32 %v8399_v32, %v8412_v33  ;;  %7165 = vpow2.f32 %v1103_v20  ;;  %v8510_v33 = vpop.eup %7161 }
 0x234   : > { %7167 = vpow2.f32 %v1083_v24 }
 0x236   : > { %1468 = vperm.xlu0 %6913, %v8483_v55  }
 0x237   : > { %1834 = vrot.lane.b32.xlu1 %v7867_v15, %s7585_s27  ;;  %v1107_v15 = vmul.f32 1.442695, %v1078_v13  ;;  %v11239_v13 = vld [vmem:[#allocation9_spill] sm:$0xff] }
 0x239   : > { %7169 = vpow2.f32 %v1107_v15 }
 0x23a   : > { %1483 = vperm.xlu0 %6913, %v8490_v18  }
 0x23b   : > { %1838 = vrot.lane.b32.xlu1 %v7877_v17, %s7585_s27  ;;  %v11230_v17 = vsub.f32 %v8299_v61, %v8316_v36  ;;  %v11232_v61 = vsub.f32 %v8329_v49, %v8342_v40 }
 0x23d   : > { %v1085_v32 = vmul.f32 1.442695, %v11230_v17  ;;  %v1093_v46 = vmul.f32 1.442695, %v11232_v61 }
 0x23e   : > { %1493 = vperm.xlu0 %6913, %v8500_v31  }
 0x23f   : > { %1842 = vrot.lane.b32.xlu1 %v7887_v19, %s7585_s27  ;;  %7171 = vpow2.f32 %v1085_v32  ;;  %v8518_v19 = vpop.eup %7163 }
 0x240   : > { %7173 = vpow2.f32 %v1111_v9  ;;  %v8526_v58 = vpop.eup %7165  ;;  %v11240_v9 = vld [vmem:[#allocation10_spill] sm:$0xff] }
 0x241   : > { %7175 = vpow2.f32 %v1089_v29  ;;  %v11241_v29 = vld [vmem:[#allocation13_spill] sm:$0xff] }
 0x242   : > { %1503 = vperm.xlu0 %6913, %v8510_v33   ;;  %7177 = vpow2.f32 %v1093_v46 }
 0x243   : > { %1846 = vrot.lane.b32.xlu1 %v7897_v21, %s7585_s27  ;;  %v8528_v21 = vpop.eup %7167 }
 0x244   : > { %v8532_v42 = vpop.eup %7169 }
 0x246   : > { %1513 = vperm.xlu0 %6913, %v8518_v19  }
 0x247   : > { %1850 = vrot.lane.b32.xlu1 %v7907_v23, %s7585_s27  ;;  %v11233_v23 = vsub.f32 %v8348_v60, %v8364_v54  ;;  %v11235_v54 = vsub.f32 %v8386_v37, %v8397_v34  ;;  %v11237_v60 = vsub.f32 %v8404_v53, %v8415_v30 }
 0x249   : > { %v8534_v3 = vpop.eup %7171  ;;  %v1097_v40 = vmul.f32 1.442695, %v11233_v23  ;;  %v1105_v0 = vmul.f32 1.442695, %v11235_v54  ;;  %v1109_v6 = vmul.f32 1.442695, %v11237_v60 }
 0x24a   : > { %1523 = vperm.xlu0 %6913, %v8526_v58   ;;  %v8541_v52 = vpop.eup %7173 }
 0x24b   : > { %1473 = vperm.xlu1 %6914, %v8528_v21   ;;  %v8543_v36 = vpop.eup %7175  ;;  %7179 = vpow2.f32 %v1097_v40 }
 0x24c   : > { %v8550_v49 = vpop.eup %7177  ;;  %7181 = vpow2.f32 %v1101_v25  ;;  %v11242_v25 = vld [vmem:[#allocation11_spill] sm:$0xff] }
 0x24d   : > { %7183 = vpow2.f32 %v1105_v0 }
 0x24e   : > { %1533 = vperm.xlu0 %6913, %v8532_v42   ;;  %7185 = vpow2.f32 %v1109_v6 }
 0x24f   : > { %1478 = vperm.xlu1 %6914, %v8534_v3  }
 0x252   : > { %1543 = vperm.xlu0 %6913, %v8541_v52  }
 0x253   : > { %1488 = vperm.xlu1 %6914, %v8543_v36  }
 0x255   : > { %v8563_v38 = vpop.eup %7179 }
 0x256   : > { %v8566_v39 = vpop.eup %7181 }
 0x257   : > { %1498 = vperm.xlu1 %6914, %v8550_v49   ;;  %v8569_v34 = vpop.eup %7183 }
 0x258   : > { %v8572_v37 = vpop.eup %7185 }
 0x25b   : > { %6956 = vrot.lane.b32.xlu1 %v11236_v43, %s7585_s27 }
 0x25f   : > { %1508 = vperm.xlu1 %6914, %v8563_v38  }
 0x263   : > { %1518 = vperm.xlu1 %6914, %v8566_v39  }
 0x267   : > { %1528 = vperm.xlu1 %6914, %v8569_v34  }
 0x26a   : > { %v1116_v44 = vpop.permute.xlu0 %1115 }
 0x26b   : > { %v1193_v45 = vsub.f32 %v8048_v27, %v1116_v44  ;;  %1538 = vperm.xlu1 %6914, %v8572_v37  }
 0x26d   : > { %v1209_v30 = vmul.f32 1.442695, %v1193_v45  ;;  %v11243_v45 = vld [vmem:[#allocation12_spill] sm:$0xff] }
 0x26e   : > { %v1121_v56 = vpop.permute.xlu1 %1120  ;;  %v6932_v1 = vpop.permute.xlu0 %6931 }
 0x26f   : > { %7187 = vpow2.f32 %v1209_v30  ;;  %v1194_v51 = vsub.f32 %v8046_v26, %v1121_v56  ;;  %v6934_v23 = vunpack.i.h.bf16 %v6932_v1  ;;  %v6933_v40 = vunpack.i.l.bf16 %v6932_v1  ;;  %v11244_v56 = vld [vmem:[#allocation14_spill] sm:$0xff]  ;;  %v11245_v1 = vld [vmem:[#allocation15_spill] sm:$0xff] }
 0x271   : > { %v1211_v50 = vmul.f32 1.442695, %v1194_v51  ;;  %v6644_v6 = vpack.c.bf16 %v6934_v23, %v6933_v40  ;;  %v11250_v40 = vld [vmem:[#allocation18_spill] sm:$0xff] }
 0x272   : > { %v6917_v53 = vpop.permute.xlu1 %6916 }
 0x273   : > { %7189 = vpow2.f32 %v1211_v50  ;;  %v6919_v59 = vunpack.i.h.bf16 %v6917_v53  ;;  %v6918_v35 = vunpack.i.l.bf16 %v6917_v53 }
 0x275   : > { %v6626_v57 = vpack.c.bf16 %v6919_v59, %v6918_v35 }
 0x276   : > { %v6922_v2 = vpop.permute.xlu1 %6921  ;;  %v1146_v8 = vpop.permute.xlu0 %1145 }
 0x277   : > { %6628 = vmatprep.subr.msk.bf16.mxu1 %vm7732_vm1, %v6626_v57  ;;  %v6924_v27 = vunpack.i.h.bf16 %v6922_v2  ;;  %v6923_v63 = vunpack.i.l.bf16 %v6922_v2  ;;  %v1199_v61 = vsub.f32 %v11241_v29, %v1146_v8  ;;  %v11247_v8 = vld [vmem:[#allocation19_spill] sm:$0xff] }
 0x279   : > { %v7188_v62 = vpop.eup %7187  ;;  %v6632_v4 = vpack.c.bf16 %v6924_v27, %v6923_v63  ;;  %v1221_v43 = vmul.f32 1.442695, %v1199_v61 }
 0x27a   : > { %v6927_v7 = vpop.permute.xlu1 %6926  ;;  %6186 = vmatprep.mubr.f32.mxu1 %v7188_v62 }
 0x27b   : > { %v6929_v16 = vunpack.i.h.bf16 %v6927_v7  ;;  %v6928_v11 = vunpack.i.l.bf16 %v6927_v7 }
 0x27d   : > { %v7190_v10 = vpop.eup %7189  ;;  %v1161_v5 = vpop.permute.xlu0 %1160  ;;  %v6638_v41 = vpack.c.bf16 %v6929_v16, %v6928_v11 }
 0x27e   : > { %v1131_v26 = vpop.permute.xlu1 %1130  ;;  %1259 = vadd.xlane.f32.xlu0 %v7190_v10  ;;  %6187 = vmatmul.mubr.f32.vlgmr.msra.gmra.mrb[0].mxu1 %v7190_v10  ;;  %v1202_v51 = vsub.f32 %v11244_v56, %v1161_v5  ;;  %v11248_v5 = vld [vmem:[#allocation17_spill] sm:$0xff] }
 0x27f   : > { %6631 = vmatpush3.bf16.xpose.msk.msra.mxu1 %vm7732_vm1, %v6626_v57  ;;  %v1196_v14 = vsub.f32 %v11238_v12, %v1131_v26 }
 0x280   : > { %6634 = vmatprep.subr.msk.bf16.mxu1 %vm7732_vm1, %v6632_v4  ;;  %v1227_v27 = vmul.f32 1.442695, %v1202_v51 }
 0x281   : > { %v1215_v24 = vmul.f32 1.442695, %v1196_v14  ;;  %v1171_v17 = vpop.permute.xlu0 %1170 }
 0x282   : > { %v1126_v20 = vpop.permute.xlu1 %1125 }
 0x283   : > { %v1195_v22 = vsub.f32 %v11239_v13, %v1126_v20 }
 0x285   : > { %v1213_v15 = vmul.f32 1.442695, %v1195_v22  ;;  %v1176_v0 = vpop.permute.xlu0 %1175 }
 0x286   : > { %v1141_v32 = vpop.permute.xlu1 %1140  ;;  %v1205_v10 = vsub.f32 %v11247_v8, %v1176_v0 }
 0x287   : > { %7191 = vpow2.f32 %v1213_v15  ;;  %v1198_v28 = vsub.f32 %v11240_v9, %v1141_v32  ;;  %6637 = vmatpush3.bf16.xpose.msk.msra.mxu1 %vm7732_vm1, %v6632_v4  ;;  %v11249_v9 = vld [vmem:[#allocation21_spill] sm:$0xff] }
 0x288   : > { %7193 = vpow2.f32 %v1215_v24  ;;  %6640 = vmatprep.subr.msk.bf16.mxu1 %vm7732_vm1, %v6638_v41  ;;  %v1233_v20 = vmul.f32 1.442695, %v1205_v10 }
 0x289   : > { %v1219_v46 = vmul.f32 1.442695, %v1198_v28  ;;  %v1186_v35 = vpop.permute.xlu0 %1185 }
 0x28a   : > { %v1136_v47 = vpop.permute.xlu1 %1135  ;;  %v1207_v28 = vsub.f32 %v11249_v9, %v1186_v35 }
 0x28b   : > { %7195 = vpow2.f32 %v1219_v46  ;;  %v1197_v54 = vsub.f32 %v11242_v25, %v1136_v47 }
 0x28c   : > { %v1237_v25 = vmul.f32 1.442695, %v1207_v28 }
 0x28d   : > { %v1217_v60 = vmul.f32 1.442695, %v1197_v54  ;;  %v6942_v16 = vpop.permute.xlu0 %6941 }
 0x28e   : > { %v1151_v44 = vpop.permute.xlu1 %1150  ;;  %v6944_v13 = vunpack.i.h.bf16 %v6942_v16  ;;  %v6943_v22 = vunpack.i.l.bf16 %v6942_v16 }
 0x28f   : > { %7197 = vpow2.f32 %v1217_v60  ;;  %v1200_v30 = vsub.f32 %v11243_v45, %v1151_v44  ;;  %6643 = vmatpush3.bf16.xpose.msk.msra.mxu1 %vm7732_vm1, %v6638_v41  ;;  %1257 = vadd.xlane.f32.xlu1 %v7188_v62  ;;  %v11246_v62 = vld [vmem:[#allocation16_spill] sm:$0xff] }
 0x290   : > { %6646 = vmatprep.subr.msk.bf16.mxu1 %vm7732_vm1, %v6644_v6  ;;  %7199 = vpow2.f32 %v1221_v43  ;;  %v1204_v63 = vsub.f32 %v11246_v62, %v1171_v17  ;;  %v6656_v61 = vpack.c.bf16 %v6944_v13, %v6943_v22 }
 0x291   : > { %v7192_v50 = vpop.eup %7191  ;;  %v1223_v53 = vmul.f32 1.442695, %v1200_v30 }
 0x292   : > { %v7194_v59 = vpop.eup %7193  ;;  %v1156_v57 = vpop.permute.xlu1 %1155  ;;  %1261 = vadd.xlane.f32.xlu0 %v7192_v50  ;;  %6189 = vmatprep.mubr.f32.mxu1 %v7192_v50  ;;  %v1231_v14 = vmul.f32 1.442695, %v1204_v63 }
 0x293   : > { %7201 = vpow2.f32 %v1223_v53  ;;  %v1201_v2 = vsub.f32 %v11245_v1, %v1156_v57  ;;  %1263 = vadd.xlane.f32.xlu1 %v7194_v59  ;;  %6190 = vmatmul.mubr.f32.gmra.mrb[2].mxu1 %v7194_v59  ;;  %v6952_v53 = vpop.permute.xlu0 %6951 }
 0x294   : > { %v6954_v57 = vunpack.i.h.bf16 %v6952_v53  ;;  %v6953_v1 = vunpack.i.l.bf16 %v6952_v53 }
 0x295   : > { %v7196_v7 = vpop.eup %7195  ;;  %v1225_v4 = vmul.f32 1.442695, %v1201_v2 }
 0x296   : > { %v1166_v26 = vpop.permute.xlu1 %1165  ;;  %v6668_v63 = vpack.c.bf16 %v6954_v57, %v6953_v1 }
 0x297   : > { %7203 = vpow2.f32 %v1225_v4  ;;  %v1203_v12 = vsub.f32 %v11248_v5, %v1166_v26  ;;  %6649 = vmatpush3.bf16.xpose.msk.msra.mxu1 %vm7732_vm1, %v6644_v6  ;;  %1267 = vadd.xlane.f32.xlu1 %v7196_v7  ;;  %v11251_v6 = vld [vmem:[#allocation20_spill] sm:$0xff] }
 0x298   : > { %7205 = vpow2.f32 %v1227_v27 }
 0x299   : > { %v7198_v11 = vpop.eup %7197  ;;  %v1229_v24 = vmul.f32 1.442695, %v1203_v12 }
 0x29a   : > { %v6937_v15 = vpop.permute.xlu1 %6936  ;;  %1265 = vadd.xlane.f32.xlu0 %v7198_v11  ;;  %6192 = vmatprep.mubr.f32.mxu1 %v7198_v11  ;;  %v7200_v41 = vpop.eup %7199 }
 0x29b   : > { %7207 = vpow2.f32 %v1229_v24  ;;  %v6939_v17 = vunpack.i.h.bf16 %v6937_v15  ;;  %v6938_v32 = vunpack.i.l.bf16 %v6937_v15  ;;  %6193 = vmatmul.mubr.f32.gmra.mrb[4].mxu1 %v7196_v7  ;;  %v1825_v7 = vpop.permute.xlu0 %1824 }
 0x29c   : > { %7209 = vpow2.f32 %v1231_v14  ;;  %6195 = vmatprep.mubr.f32.mxu1 %v7200_v41 }
 0x29d   : > { %v7202_v29 = vpop.eup %7201  ;;  %7211 = vpow2.f32 %v1233_v20  ;;  %v6650_v46 = vpack.c.bf16 %v6939_v17, %v6938_v32 }
 0x29e   : > { %v1181_v23 = vpop.permute.xlu1 %1180  ;;  %1271 = vadd.xlane.f32.xlu1 %v7202_v29  ;;  %1269 = vadd.xlane.f32.xlu0 %v7200_v41 }
 0x29f   : > { %v1206_v47 = vsub.f32 %v11250_v40, %v1181_v23  ;;  %6196 = vmatmul.mubr.f32.gmra.mrb[6].mxu1 %v7202_v29  ;;  %6652 = vmatprep.subr.msk.bf16.mxu1 %vm7732_vm1, %v6650_v46  ;;  %v1829_v5 = vpop.permute.xlu0 %1828 }
 0x2a0   : > { %6655 = vmatpush3.bf16.xpose.msk.msra.mxu1 %vm7732_vm1, %v6650_v46 }
 0x2a1   : > { %v7204_v54 = vpop.eup %7203  ;;  %v1235_v0 = vmul.f32 1.442695, %v1206_v47  ;;  %6658 = vmatprep.subr.msk.bf16.mxu1 %vm7732_vm1, %v6656_v61 }
 0x2a2   : > { %v7206_v43 = vpop.eup %7205  ;;  %v1191_v60 = vpop.permute.xlu1 %1190  ;;  %1273 = vadd.xlane.f32.xlu0 %v7204_v54  ;;  %6198 = vmatprep.mubr.f32.mxu1 %v7204_v54  ;;  %v11252_v54 = vld [vmem:[#allocation22_spill] sm:$0xff] }
 0x2a3   : > { %7213 = vpow2.f32 %v1235_v0  ;;  %v1208_v44 = vsub.f32 %v11251_v6, %v1191_v60  ;;  %1275 = vadd.xlane.f32.xlu1 %v7206_v43  ;;  %6199 = vmatmul.mubr.f32.gmra.mrb[8].mxu1 %v7206_v43  ;;  %v1833_v14 = vpop.permute.xlu0 %1832  ;;  %v11253_v0 = vld [vmem:[#allocation23_spill] sm:$0xff]  ;;  %v11254_v6 = vld [vmem:[#allocation24_spill] sm:$0xff] }
 0x2a4   : > { %7215 = vpow2.f32 %v1237_v25  ;;  %v6965_v43 = vpack.i.bf16 %v11253_v0, %v11252_v54 }
 0x2a5   : > { %v7208_v45 = vpop.eup %7207  ;;  %v1239_v30 = vmul.f32 1.442695, %v1208_v44  ;;  %v11255_v44 = vld [vmem:[#allocation25_spill] sm:$0xff] }
 0x2a6   : > { %v7210_v56 = vpop.eup %7209  ;;  %v6947_v51 = vpop.permute.xlu1 %6946  ;;  %1277 = vadd.xlane.f32.xlu0 %v7208_v45  ;;  %6201 = vmatprep.mubr.f32.mxu1 %v7208_v45  ;;  %v6970_v45 = vpack.i.bf16 %v11255_v44, %v11254_v6  ;;  %v1009_v6 = vld [vmem:[#allocation3 + $0x40] sm:$0xff] }
 0x2a7   : > { %v7212_v50 = vpop.eup %7211  ;;  %7217 = vpow2.f32 %v1239_v30  ;;  %v6949_v59 = vunpack.i.h.bf16 %v6947_v51  ;;  %v6948_v35 = vunpack.i.l.bf16 %v6947_v51  ;;  %1279 = vadd.xlane.f32.xlu1 %v7210_v56  ;;  %6202 = vmatmul.mubr.f32.gmra.mrb[10].mxu1 %v7210_v56  ;;  %v1837_v20 = vpop.permute.xlu0 %1836  ;;  %v11256_v56 = vld [vmem:[#allocation26_spill] sm:$0xff]  ;;  %v11257_v51 = vld [vmem:[#allocation27_spill] sm:$0xff] }
 0x2a8   : > { %6204 = vmatprep.mubr.f32.mxu1 %v7212_v50  ;;  %6661 = vmatpush3.bf16.xpose.msk.msra.mxu1 %vm7732_vm1, %v6656_v61 }
 0x2a9   : > { %v6662_v2 = vpack.c.bf16 %v6949_v59, %v6948_v35 }
 0x2aa   : > { %v1823_v27 = vpop.permute.xlu1 %1822  ;;  %1281 = vadd.xlane.f32.xlu0 %v7212_v50  ;;  %v6975_v50 = vpack.i.bf16 %v11257_v51, %v11256_v56  ;;  %v1249_v56 = vmul.f32 %v8563_v38, %v1009_v6 }
 0x2ab   : > { %6664 = vmatprep.subr.msk.bf16.mxu1 %vm7732_vm1, %v6662_v2  ;;  %v1841_v22 = vpop.permute.xlu0 %1840 }
 0x2ad   : > { %v7214_v62 = vpop.eup %7213 }
 0x2ae   : > { %v7216_v8 = vpop.eup %7215  ;;  %v1827_v10 = vpop.permute.xlu1 %1826  ;;  %1283 = vadd.xlane.f32.xlu1 %v7214_v62  ;;  %6205 = vmatmul.mubr.f32.gmra.mrb[12].mxu1 %v7214_v62 }
 0x2af   : > { %1285 = vadd.xlane.f32.xlu0 %v7216_v8  ;;  %6207 = vmatprep.mubr.f32.mxu1 %v7216_v8  ;;  %v1845_v41 = vpop.permute.xlu0 %1844 }
 0x2b0   : > { %6667 = vmatpush3.bf16.xpose.msk.msra.mxu1 %vm7732_vm1, %v6662_v2  ;;  %v1002_v2 = vld [vmem:[#allocation3 + $0x8] sm:$0xff] }
 0x2b1   : > { %v7218_v4 = vpop.eup %7217  ;;  %6670 = vmatprep.subr.msk.bf16.mxu1 %vm7732_vm1, %v6668_v63 }
 0x2b2   : > { %v1831_v26 = vpop.permute.xlu1 %1830  ;;  %1287 = vadd.xlane.f32.xlu1 %v7218_v4  ;;  %6208 = vmatmul.mubr.f32.gmra.mrb[14].mxu1 %v7218_v4  ;;  %v1001_v4 = vld [vmem:[#allocation3] sm:$0xff] }
 0x2b3   : > { %6242 = vmatprep.mubr.msk.f32.mxu1 %vm743_vm0, %v1823_v27  ;;  %v1849_v32 = vpop.permute.xlu0 %1848  ;;  %v1242_v27 = vmul.f32 %v8528_v21, %v1002_v2 }
 0x2b6   : > { %v1835_v12 = vpop.permute.xlu1 %1834 }
 0x2b7   : > { %v1853_v29 = vpop.permute.xlu0 %1852 }
 0x2b8   : > { %6673 = vmatpush3.bf16.xpose.msk.msra.mxu1 %vm7732_vm1, %v6668_v63 }
 0x2ba   : > { %v1839_v16 = vpop.permute.xlu1 %1838 }
 0x2bb   : > { %v8647_v40 = vpop.permute.xlu0 %1468 }
 0x2be   : > { %v1843_v11 = vpop.permute.xlu1 %1842 }
 0x2bf   : > { %6243 = vmatmul.mubr.msk.f32.vlgmr.msra.gmra.mrb[16].mxu1 %vm743_vm0, %v1825_v7  ;;  %v8649_v25 = vpop.permute.xlu0 %1483 }
 0x2c0   : > { %6245 = vmatprep.mubr.msk.f32.mxu1 %vm743_vm0, %v1827_v10 }
 0x2c2   : > { %v1847_v13 = vpop.permute.xlu1 %1846 }
 0x2c3   : > { %6246 = vmatmul.mubr.msk.f32.gmra.mrb[18].mxu1 %vm743_vm0, %v1829_v5  ;;  %v8653_v60 = vpop.permute.xlu0 %1493  ;;  %6966 = vrot.lane.b32.xlu1 %v6965_v43, %s7585_s27  ;;  %v1003_v5 = vld [vmem:[#allocation3 + $0x10] sm:$0xff] }
 0x2c4   : > { %6248 = vmatprep.mubr.msk.f32.mxu1 %vm743_vm0, %v1831_v26  ;;  %v1241_v26 = vmul.f32 %v8483_v55, %v1001_v4  ;;  %v1243_v21 = vmul.f32 %v8534_v3, %v1003_v5  ;;  %v1005_v3 = vld [vmem:[#allocation3 + $0x20] sm:$0xff] }
 0x2c6   : > { %v1851_v24 = vpop.permute.xlu1 %1850 }
 0x2c7   : > { %6249 = vmatmul.mubr.msk.f32.gmra.mrb[20].mxu1 %vm743_vm0, %v1833_v14  ;;  %6971 = vrot.lane.b32.xlu1 %v6970_v45, %s7585_s27  ;;  %v8659_v30 = vpop.permute.xlu0 %1503  ;;  %v1004_v14 = vld [vmem:[#allocation3 + $0x18] sm:$0xff]  ;;  %v1010_v45 = vld [vmem:[#allocation3 + $0x48] sm:$0xff] }
 0x2c8   : > { %6251 = vmatprep.mubr.msk.f32.mxu1 %vm743_vm0, %v1835_v12 }
 0x2ca   : > { %v8630_v15 = vpop.permute.xlu1 %1473 }
 0x2cb   : > { %6252 = vmatmul.mubr.msk.f32.gmra.mrb[22].mxu1 %vm743_vm0, %v1837_v20  ;;  %6976 = vrot.lane.b32.xlu1 %v6975_v50, %s7585_s27  ;;  %v8664_v53 = vpop.permute.xlu0 %1513  ;;  %v1244_v20 = vmul.f32 %v8490_v18, %v1004_v14  ;;  %v1245_v18 = vmul.f32 %v8543_v36, %v1005_v3 }
 0x2cc   : > { %6254 = vmatprep.mubr.msk.f32.mxu1 %vm743_vm0, %v1839_v16 }
 0x2ce   : > { %v8634_v17 = vpop.permute.xlu1 %1478 }
 0x2cf   : > { %6255 = vmatmul.mubr.msk.f32.gmra.mrb[24].mxu1 %vm743_vm0, %v1841_v22  ;;  %v8666_v59 = vpop.permute.xlu0 %1523 }
 0x2d0   : > { %6257 = vmatprep.mubr.msk.f32.mxu1 %vm743_vm0, %v1843_v11 }
 0x2d2   : > { %v8638_v9 = vpop.permute.xlu1 %1488 }
 0x2d3   : > { %6258 = vmatmul.mubr.msk.f32.gmra.mrb[26].mxu1 %vm743_vm0, %v1845_v41  ;;  %v8668_v35 = vpop.permute.xlu0 %1533 }
 0x2d4   : > { %6260 = vmatprep.mubr.msk.f32.mxu1 %vm743_vm0, %v1847_v13 }
 0x2d6   : > { %v8642_v28 = vpop.permute.xlu1 %1498 }
 0x2d7   : > { %6261 = vmatmul.mubr.msk.f32.gmra.mrb[28].mxu1 %vm743_vm0, %v1849_v32  ;;  %v8672_v1 = vpop.permute.xlu0 %1543 }
 0x2d8   : > { %6263 = vmatprep.mubr.msk.f32.mxu1 %vm743_vm0, %v1851_v24  ;;  %v1006_v24 = vld [vmem:[#allocation3 + $0x28] sm:$0xff] }
 0x2d9   : > { %v1246_v55 = vmul.f32 %v8500_v31, %v1006_v24 }
 0x2da   : > { %v6957_v61 = vpop.permute.xlu1 %6956 }
 0x2db   : > { %v6959_v46 = vunpack.i.h.bf16 %v6957_v61  ;;  %v6958_v23 = vunpack.i.l.bf16 %v6957_v61  ;;  %6264 = vmatmul.mubr.msk.f32.gmra.mrb[30].mxu1 %vm743_vm0, %v1853_v29 }
 0x2dd   : > { %v6674_v47 = vpack.c.bf16 %v6959_v46, %v6958_v23  ;;  %v1008_v46 = vld [vmem:[#allocation3 + $0x38] sm:$0xff]  ;;  %v1007_v23 = vld [vmem:[#allocation3 + $0x30] sm:$0xff] }
 0x2de   : > { %v8670_v57 = vpop.permute.xlu1 %1508  ;;  %v1248_v54 = vmul.f32 %v8510_v33, %v1008_v46  ;;  %v1247_v31 = vmul.f32 %v8550_v49, %v1007_v23  ;;  %v1250_v33 = vmul.f32 %v8518_v19, %v1010_v45  ;;  %v1011_v49 = vld [vmem:[#allocation3 + $0x50] sm:$0xff]  ;;  %v1013_v19 = vld [vmem:[#allocation3 + $0x60] sm:$0xff] }
 0x2df   : > { %6675 = vmatprep.subr.bf16.mxu0 %v6674_v47  ;;  %v1251_v4 = vmul.f32 %v8566_v39, %v1011_v49 }
 0x2e0   : > { %6677 = vmatpush3.bf16.msra.mxu0 %v6674_v47 }
 0x2e2   : > { %v8675_v63 = vpop.permute.xlu1 %1518 }
 0x2e6   : > { %v8681_v8 = vpop.permute.xlu1 %1528 }
 0x2ea   : > { %v8683_v10 = vpop.permute.xlu1 %1538 }
 0x30b   : > { %v1260_v62 = vpop.xlane.xlu0 %1259 }
 0x30c   : > { %v8677_v7 = vadd.f32 %v1260_v62, %v1242_v27  ;;  %v1012_v27 = vld [vmem:[#allocation3 + $0x58] sm:$0xff] }
 0x30d   : > { %v1252_v38 = vmul.f32 %v8526_v58, %v1012_v27  ;;  %v1015_v58 = vld [vmem:[#allocation3 + $0x70] sm:$0xff] }
 0x30e   : > { %1596 = vst.msk [vmem:[#allocation3 + $0x8] sm:$0xff] %vm550_vm2, %v8677_v7  ;;  %v1255_v24 = vmul.f32 %v8572_v37, %v1015_v58 }
 0x31c   : > { %v1258_v12 = vpop.xlane.xlu1 %1257 }
 0x31d   : > { %v1289_v16 = vadd.f32 %v1258_v12, %v1241_v26 }
 0x31f   : > { %1595 = vst.msk [vmem:[#allocation3] sm:$0xff] %vm550_vm2, %v1289_v16  ;;  %1632 = vperm.xlu0 %6913, %v1289_v16   ;;  %v1262_v11 = vpop.xlane.xlu0 %1261  ;;  %v1253_v16 = vmul.f32 %v8569_v34, %v1013_v19 }
 0x320   : > { %v8689_v13 = vadd.f32 %v1262_v11, %v1243_v21  ;;  %v1264_v22 = vpop.xlane.xlu1 %1263  ;;  %v1014_v21 = vld [vmem:[#allocation3 + $0x68] sm:$0xff] }
 0x321   : > { %v8691_v41 = vadd.f32 %v1264_v22, %v1244_v20  ;;  %v1254_v20 = vmul.f32 %v8532_v42, %v1014_v21  ;;  %v7539_v42 = vld [vmem:[#allocation4] sm:$0xff] }
 0x322   : > { %1597 = vst.msk [vmem:[#allocation3 + $0x10] sm:$0xff] %vm550_vm2, %v8689_v13  ;;  %v1547_v37 = vmul.f32 %v7539_v42, %v8630_v15  ;;  %v1546_v23 = vmul.f32 %v7539_v42, %v8647_v40  ;;  %v1548_v6 = vmul.f32 %v7539_v42, %v8634_v17  ;;  %v1553_v27 = vmul.f32 %v7539_v42, %v8659_v30 }
 0x323   : > { %1598 = vst.msk [vmem:[#allocation3 + $0x18] sm:$0xff] %vm550_vm2, %v8691_v41  ;;  %v1555_v19 = vmul.f32 %v7539_v42, %v8664_v53  ;;  %v1554_v30 = vmul.f32 %v7539_v42, %v8670_v57  ;;  %v1557_v21 = vmul.f32 %v7539_v42, %v8666_v59  ;;  %v1556_v53 = vmul.f32 %v7539_v42, %v8675_v63 }
 0x324   : > { %v1268_v32 = vpop.xlane.xlu1 %1267  ;;  %v1559_v59 = vmul.f32 %v7539_v42, %v8668_v35 }
 0x325   : > { %v8698_v29 = vadd.f32 %v1268_v32, %v1246_v55  ;;  %v1016_v55 = vld [vmem:[#allocation3 + $0x78] sm:$0xff] }
 0x327   : > { %1600 = vst.msk [vmem:[#allocation3 + $0x28] sm:$0xff] %vm550_vm2, %v8698_v29  ;;  %v1266_v61 = vpop.xlane.xlu0 %1265 }
 0x328   : > { %v8703_v47 = vadd.f32 %v1266_v61, %v1245_v18  ;;  %v1256_v18 = vmul.f32 %v8541_v52, %v1016_v55  ;;  %v1549_v52 = vmul.f32 %v7539_v42, %v8649_v25 }
 0x32a   : > { %1599 = vst.msk [vmem:[#allocation3 + $0x20] sm:$0xff] %vm550_vm2, %v8703_v47 }
 0x32b   : > { %v1272_v0 = vpop.xlane.xlu1 %1271  ;;  %v1270_v43 = vpop.xlane.xlu0 %1269 }
 0x32c   : > { %v8709_v44 = vadd.f32 %v1272_v0, %v1248_v54  ;;  %v8711_v36 = vadd.f32 %v1270_v43, %v1247_v31 }
 0x32e   : > { %1602 = vst.msk [vmem:[#allocation3 + $0x38] sm:$0xff] %vm550_vm2, %v8709_v44  ;;  %1601 = vst.msk [vmem:[#allocation3 + $0x30] sm:$0xff] %vm550_vm2, %v8711_v36 }
 0x32f   : > { %v1274_v51 = vpop.xlane.xlu0 %1273 }
 0x330   : > { %v1276_v50 = vpop.xlane.xlu1 %1275  ;;  %v8719_v2 = vadd.f32 %v1274_v51, %v1249_v56  ;;  %v1550_v51 = vmul.f32 %v7539_v42, %v8638_v9 }
 0x331   : > { %v8721_v62 = vadd.f32 %v1276_v50, %v1250_v33  ;;  %v1551_v33 = vmul.f32 %v7539_v42, %v8653_v60 }
 0x332   : > { %1603 = vst.msk [vmem:[#allocation3 + $0x40] sm:$0xff] %vm550_vm2, %v8719_v2 }
 0x333   : > { %1604 = vst.msk [vmem:[#allocation3 + $0x48] sm:$0xff] %vm550_vm2, %v8721_v62  ;;  %v1278_v26 = vpop.xlane.xlu0 %1277 }
 0x334   : > { %v1280_v5 = vpop.xlane.xlu1 %1279  ;;  %v8729_v12 = vadd.f32 %v1278_v26, %v1251_v4  ;;  %v1552_v4 = vmul.f32 %v7539_v42, %v8642_v28 }
 0x335   : > { %v8731_v14 = vadd.f32 %v1280_v5, %v1252_v38 }
 0x336   : > { %1605 = vst.msk [vmem:[#allocation3 + $0x50] sm:$0xff] %vm550_vm2, %v8729_v12 }
 0x337   : > { %1606 = vst.msk [vmem:[#allocation3 + $0x58] sm:$0xff] %vm550_vm2, %v8731_v14  ;;  %v1282_v39 = vpop.xlane.xlu0 %1281 }
 0x338   : > { %v8738_v11 = vadd.f32 %v1282_v39, %v1253_v16 }
 0x33a   : > { %1607 = vst.msk [vmem:[#allocation3 + $0x60] sm:$0xff] %vm550_vm2, %v8738_v11 }
 0x33b   : > { %v1284_v22 = vpop.xlane.xlu1 %1283 }
 0x33c   : > { %v8744_v3 = vadd.f32 %v1284_v22, %v1254_v20  ;;  %v1286_v34 = vpop.xlane.xlu0 %1285 }
 0x33d   : > { %v8746_v32 = vadd.f32 %v1286_v34, %v1255_v24  ;;  %v1558_v24 = vmul.f32 %v7539_v42, %v8681_v8 }
 0x33e   : > { %1608 = vst.msk [vmem:[#allocation3 + $0x68] sm:$0xff] %vm550_vm2, %v8744_v3 }
 0x33f   : > { %1609 = vst.msk [vmem:[#allocation3 + $0x70] sm:$0xff] %vm550_vm2, %v8746_v32  ;;  %v1288_v61 = vpop.xlane.xlu1 %1287 }
 0x340   : > { %v8753_v46 = vadd.f32 %v1288_v61, %v1256_v18  ;;  %v1561_v61 = vmul.f32 %v7539_v42, %v8672_v1 }
 0x342   : > { %1610 = vst.msk [vmem:[#allocation3 + $0x78] sm:$0xff] %vm550_vm2, %v8753_v46 }
 0x351   : > { %v6188_v54 = vpop.f32.mrb[0].mxu1 }
 0x352   : > { %v8759_v31 = vadd.f32 %v6188_v54, %v1547_v37  ;;  %v1371_v0 = vpop.f32.mrb[1].mxu1  ;;  %v1560_v37 = vmul.f32 %v7539_v42, %v8683_v10 }
 0x353   : > { %v8761_v43 = vadd.f32 %v1546_v23, %v1371_v0 }
 0x354   : > { %11258 = vst [vmem:[#allocation8_spill] sm:$0xff] %v8759_v31  ;;  %1612 = vst.msk [vmem:[#allocation4 + $0x8] sm:$0xff] %vm743_vm0, %v8759_v31  ;;  %v3041_v31 = vld [vmem:[%s7737_s25 + $0x58] sm:$0xff] }
 0x355   : > { %1611 = vst.msk [vmem:[#allocation4] sm:$0xff] %vm743_vm0, %v8761_v43 }
 0x366   : > { %v6191_v45 = vpop.f32.mrb[2].mxu1 }
 0x367   : > { %v8769_v15 = vadd.f32 %v6191_v45, %v1549_v52  ;;  %v1381_v40 = vpop.f32.mrb[3].mxu1 }
 0x368   : > { %v8771_v56 = vadd.f32 %v1548_v6, %v1381_v40 }
 0x369   : > { %11259 = vst [vmem:[#allocation9_spill] sm:$0xff] %v8769_v15  ;;  %1614 = vst.msk [vmem:[#allocation4 + $0x18] sm:$0xff] %vm743_vm0, %v8769_v15  ;;  %v3039_v15 = vld [vmem:[%s7737_s25 + $0x48] sm:$0xff] }
 0x36a   : > { %11260 = vst [vmem:[#allocation10_spill] sm:$0xff] %v8771_v56  ;;  %1613 = vst.msk [vmem:[#allocation4 + $0x10] sm:$0xff] %vm743_vm0, %v8771_v56  ;;  %v3044_v56 = vld [vmem:[%s7737_s25 + $0x70] sm:$0xff] }
 0x36e   : > { %v6194_v49 = vpop.f32.mrb[4].mxu1 }
 0x36f   : > { %v8779_v25 = vadd.f32 %v6194_v49, %v1551_v33  ;;  %v1391_v17 = vpop.f32.mrb[5].mxu1  ;;  %v1793_v49 = vld [vmem:[%s8239_s26 + $0x18] sm:$0xff] }
 0x370   : > { %v8781_v50 = vadd.f32 %v1550_v51, %v1391_v17  ;;  %v1792_v51 = vld [vmem:[%s8239_s26 + $0x10] sm:$0xff] }
 0x371   : > { %11261 = vst [vmem:[#allocation13_spill] sm:$0xff] %v8779_v25  ;;  %1616 = vst.msk [vmem:[#allocation4 + $0x28] sm:$0xff] %vm743_vm0, %v8779_v25  ;;  %v8961_v25 = vld [vmem:[#allocation2 + $0xa0] sm:$0xff] }
 0x372   : > { %11262 = vst [vmem:[#allocation11_spill] sm:$0xff] %v8781_v50  ;;  %1615 = vst.msk [vmem:[#allocation4 + $0x20] sm:$0xff] %vm743_vm0, %v8781_v50  ;;  %v6197_v38 = vpop.f32.mrb[6].mxu1 }
 0x373   : > { %v8789_v60 = vadd.f32 %v6197_v38, %v1553_v27  ;;  %v1401_v9 = vpop.f32.mrb[7].mxu1 }
 0x374   : > { %v8791_v26 = vadd.f32 %v1552_v4, %v1401_v9  ;;  %v6960_v4 = vpack.i.bf16 %v1793_v49, %v1792_v51  ;;  %v6967_v51 = vpop.permute.xlu1 %6966 }
 0x375   : > { %11263 = vst [vmem:[#allocation12_spill] sm:$0xff] %v8789_v60  ;;  %1618 = vst.msk [vmem:[#allocation4 + $0x38] sm:$0xff] %vm743_vm0, %v8789_v60  ;;  %v9013_v60 = vld [vmem:[#allocation2 + $0xd0] sm:$0xff] }
 0x376   : > { %11264 = vst [vmem:[#allocation14_spill] sm:$0xff] %v8791_v26  ;;  %1617 = vst.msk [vmem:[#allocation4 + $0x30] sm:$0xff] %vm743_vm0, %v8791_v26  ;;  %v6200_v28 = vpop.f32.mrb[8].mxu1  ;;  %v3040_v26 = vld [vmem:[%s7737_s25 + $0x50] sm:$0xff] }
 0x377   : > { %v8799_v5 = vadd.f32 %v6200_v28, %v1555_v19  ;;  %v1411_v16 = vpop.f32.mrb[9].mxu1  ;;  %11280 = vst [vmem:[#allocation30_spill] sm:$0xff] %v9013_v60 }
 0x378   : > { %v8801_v39 = vadd.f32 %v1554_v30, %v1411_v16  ;;  %v6972_v49 = vpop.permute.xlu1 %6971 }
 0x379   : > { %11265 = vst [vmem:[#allocation15_spill] sm:$0xff] %v8799_v5  ;;  %1620 = vst.msk [vmem:[#allocation4 + $0x48] sm:$0xff] %vm743_vm0, %v8799_v5 }
 0x37a   : > { %11266 = vst [vmem:[#allocation16_spill] sm:$0xff] %v8801_v39  ;;  %1619 = vst.msk [vmem:[#allocation4 + $0x40] sm:$0xff] %vm743_vm0, %v8801_v39  ;;  %v6203_v57 = vpop.f32.mrb[10].mxu1 }
 0x37b   : > { %v8809_v58 = vadd.f32 %v6203_v57, %v1557_v21  ;;  %v1421_v20 = vpop.f32.mrb[11].mxu1  ;;  %v1801_v57 = vld [vmem:[%s8239_s26 + $0x58] sm:$0xff] }
 0x37c   : > { %v8811_v22 = vadd.f32 %v1556_v53, %v1421_v20 }
 0x37d   : > { %11267 = vst [vmem:[#allocation19_spill] sm:$0xff] %v8809_v58  ;;  %1622 = vst.msk [vmem:[#allocation4 + $0x58] sm:$0xff] %vm743_vm0, %v8809_v58  ;;  %v8949_v58 = vld [vmem:[#allocation2 + $0xa8] sm:$0xff] }
 0x37e   : > { %11268 = vst [vmem:[#allocation17_spill] sm:$0xff] %v8811_v22  ;;  %1621 = vst.msk [vmem:[#allocation4 + $0x50] sm:$0xff] %vm743_vm0, %v8811_v22  ;;  %v3034_v22 = vld [vmem:[%s7737_s25 + $0x20] sm:$0xff] }
 0x381   : > { %v6206_v63 = vpop.f32.mrb[12].mxu1 }
 0x382   : > { %v8819_v55 = vadd.f32 %v6206_v63, %v1559_v59  ;;  %v1431_v34 = vpop.f32.mrb[13].mxu1  ;;  %v7540_v59 = vld [vmem:[%s8239_s26 + $0x70] sm:$0xff] }
 0x383   : > { %v8821_v18 = vadd.f32 %v1558_v24, %v1431_v34  ;;  %v7541_v24 = vld [vmem:[%s8239_s26 + $0x78] sm:$0xff]  ;;  %v3032_v34 = vld [vmem:[%s7737_s25 + $0x10] sm:$0xff] }
 0x384   : > { %11269 = vst [vmem:[#allocation21_spill] sm:$0xff] %v8819_v55  ;;  %1624 = vst.msk [vmem:[#allocation4 + $0x68] sm:$0xff] %vm743_vm0, %v8819_v55  ;;  %v6990_v63 = vpack.i.bf16 %v7541_v24, %v7540_v59  ;;  %v1803_v24 = vld [vmem:[%s8239_s26 + $0x68] sm:$0xff] }
 0x385   : > { %11270 = vst [vmem:[#allocation18_spill] sm:$0xff] %v8821_v18  ;;  %1623 = vst.msk [vmem:[#allocation4 + $0x60] sm:$0xff] %vm743_vm0, %v8821_v18  ;;  %v6209_v23 = vpop.f32.mrb[14].mxu1 }
 0x386   : > { %v8829_v35 = vadd.f32 %v6209_v23, %v1561_v61  ;;  %v1441_v8 = vpop.f32.mrb[15].mxu1  ;;  %v3033_v61 = vld [vmem:[%s7737_s25 + $0x18] sm:$0xff]  ;;  %v3036_v23 = vld [vmem:[%s7737_s25 + $0x30] sm:$0xff] }
 0x387   : > { %v8831_v54 = vadd.f32 %v1560_v37, %v1441_v8  ;;  %v7000_v37 = vpack.i.bf16 %v3033_v61, %v3032_v34  ;;  %v3037_v8 = vld [vmem:[%s7737_s25 + $0x38] sm:$0xff]  ;;  %v8936_v34 = vld [vmem:[#allocation2 + $0x90] sm:$0xff] }
 0x388   : > { %11271 = vst [vmem:[#allocation20_spill] sm:$0xff] %v8829_v35  ;;  %1626 = vst.msk [vmem:[#allocation4 + $0x78] sm:$0xff] %vm743_vm0, %v8829_v35 }
 0x389   : > { %11272 = vst [vmem:[#allocation22_spill] sm:$0xff] %v8831_v54  ;;  %1625 = vst.msk [vmem:[#allocation4 + $0x70] sm:$0xff] %vm743_vm0, %v8831_v54  ;;  %v6973_v54 = vunpack.i.l.bf16 %v6972_v49 }
 0x392   : > { %v8837_v1 = vpop.f32.mrb[16].mxu1 }
 0x393   : > { %2147 = vmax.xlane.f32.xlu0 %v8837_v1  ;;  %v8840_v10 = vpop.f32.mrb[17].mxu1 }
 0x394   : > { %2145 = vmax.xlane.f32.xlu1 %v8840_v10 }
 0x396   : > { %v8843_v42 = vpop.f32.mrb[18].mxu1 }
 0x397   : > { %v8845_v0 = vpop.f32.mrb[19].mxu1 }
 0x398   : > { %2151 = vmax.xlane.f32.xlu1 %v8843_v42 }
 0x39a   : > { %v8848_v52 = vpop.f32.mrb[20].mxu1 }
 0x39b   : > { %v8850_v6 = vpop.f32.mrb[21].mxu1 }
 0x39c   : > { %2149 = vmax.xlane.f32.xlu1 %v8845_v0 }
 0x39e   : > { %v1633_v45 = vpop.permute.xlu0 %1632  ;;  %v8854_v40 = vpop.f32.mrb[22].mxu1 }
 0x39f   : > { %7219 = vrcp.f32 %v1633_v45  ;;  %v8856_v33 = vpop.f32.mrb[23].mxu1  ;;  %v7010_v45 = vpack.i.bf16 %v3037_v8, %v3036_v23  ;;  %v6968_v23 = vunpack.i.l.bf16 %v6967_v51 }
 0x3a0   : > { %2155 = vmax.xlane.f32.xlu1 %v8848_v52 }
 0x3a2   : > { %v8862_v17 = vpop.f32.mrb[24].mxu1 }
 0x3a3   : > { %v8864_v27 = vpop.f32.mrb[25].mxu1 }
 0x3a4   : > { %2153 = vmax.xlane.f32.xlu1 %v8850_v6 }
 0x3a6   : > { %v8867_v38 = vpop.f32.mrb[26].mxu1 }
 0x3a7   : > { %v8869_v9 = vpop.f32.mrb[27].mxu1 }
 0x3a8   : > { %2157 = vmax.xlane.f32.xlu1 %v8856_v33 }
 0x3a9   : > { %v7220_v19 = vpop.eup %7219  ;;  %6961 = vrot.lane.b32.xlu0 %v6960_v4, %s7585_s27  ;;  %v6977_v4 = vpop.permute.xlu1 %6976 }
 0x3aa   : > { %v1711_v30 = vmul.f32 %v7220_v19, %v8761_v43  ;;  %v8879_v28 = vpop.f32.mrb[28].mxu1  ;;  %v1800_v43 = vld [vmem:[%s8239_s26 + $0x50] sm:$0xff]  ;;  %v8910_v19 = vld [vmem:[#allocation2 + $0x88] sm:$0xff] }
 0x3ab   : > { %11273 = vst [vmem:[#allocation23_spill] sm:$0xff] %v8879_v28  ;;  %v8881_v16 = vpop.f32.mrb[29].mxu1  ;;  %v6980_v20 = vpack.i.bf16 %v1801_v57, %v1800_v43 }
 0x3ac   : > { %1742 = vst.msk [vmem:[%s8875_s4] sm:$0xff] %vm743_vm0, %v1711_v30  ;;  %2163 = vmax.xlane.f32.xlu1 %v8862_v17  ;;  %v8912_v30 = vld [vmem:[#allocation2 + $0x80] sm:$0xff] }
 0x3ae   : > { %v8886_v21 = vpop.f32.mrb[30].mxu1 }
 0x3af   : > { %11274 = vst [vmem:[#allocation24_spill] sm:$0xff] %v8886_v21  ;;  %v8888_v53 = vpop.f32.mrb[31].mxu1 }
 0x3b0   : > { %11275 = vst [vmem:[#allocation25_spill] sm:$0xff] %v8888_v53  ;;  %2161 = vmax.xlane.f32.xlu1 %v8864_v27 }
 0x3b4   : > { %2167 = vmax.xlane.f32.xlu1 %v8867_v38 }
 0x3b8   : > { %2165 = vmax.xlane.f32.xlu1 %v8869_v9 }
 0x3bc   : > { %2171 = vmax.xlane.f32.xlu1 %v8879_v28 }
 0x3c0   : > { %2169 = vmax.xlane.f32.xlu1 %v8881_v16 }
 0x3c8   : > { %2159 = vmax.xlane.f32.xlu0 %v8854_v40 }
 0x3cc   : > { %2175 = vmax.xlane.f32.xlu0 %v8886_v21  ;;  %v3045_v21 = vld [vmem:[%s7737_s25 + $0x78] sm:$0xff] }
 0x3cd   : > { %v7030_v50 = vpack.i.bf16 %v3045_v21, %v3044_v56  ;;  %v3014_v21 = vld [vmem:[%s7762_s12] sm:$0xff] }
 0x3d0   : > { %2173 = vmax.xlane.f32.xlu0 %v8888_v53 }
 0x3e6   : > { %6981 = vrot.lane.b32.xlu0 %v6980_v20, %s7585_s27 }
 0x3ea   : > { %6991 = vrot.lane.b32.xlu0 %v6990_v63, %s7585_s27  ;;  %v8924_v63 = vld [vmem:[#allocation2 + $0x98] sm:$0xff] }
 0x3ee   : > { %7001 = vrot.lane.b32.xlu0 %v7000_v37, %s7586_s14  ;;  %v6969_v37 = vunpack.i.h.bf16 %v6967_v51 }
 0x3f2   : > { %7011 = vrot.lane.b32.xlu0 %v7010_v45, %s7586_s14 }
 0x420   : > { %v2148_v43 = vpop.xlane.xlu0 %2147 }
 0x421   : > { %v8915_v57 = vmax.f32 %v8910_v19, %v2148_v43  ;;  %v2146_v20 = vpop.xlane.xlu1 %2145 }
 0x422   : > { %v8918_v59 = vmax.f32 %v8912_v30, %v2146_v20  ;;  %v1802_v20 = vld [vmem:[%s8239_s26 + $0x60] sm:$0xff] }
 0x423   : > { %2835 = vst.msk [vmem:[#allocation2 + $0x88] sm:$0xff] %vm550_vm2, %v8915_v57  ;;  %v6985_v51 = vpack.i.bf16 %v1803_v24, %v1802_v20  ;;  %v6979_v24 = vunpack.i.h.bf16 %v6977_v4 }
 0x424   : > { %2834 = vst.msk [vmem:[#allocation2 + $0x80] sm:$0xff] %vm550_vm2, %v8918_v59  ;;  %v6962_v61 = vpop.permute.xlu0 %6961  ;;  %2243 = vperm.xlu1 %6914, %v8918_v59  }
 0x425   : > { %v6964_v8 = vunpack.i.h.bf16 %v6962_v61  ;;  %v6963_v45 = vunpack.i.l.bf16 %v6962_v61  ;;  %v2152_v43 = vpop.xlane.xlu1 %2151  ;;  %v6974_v61 = vunpack.i.h.bf16 %v6972_v49 }
 0x426   : > { %v8934_v35 = vmax.f32 %v8924_v63, %v2152_v43  ;;  %v6682_v43 = vpack.c.bf16 %v6969_v37, %v6968_v23  ;;  %v6978_v37 = vunpack.i.l.bf16 %v6977_v4 }
 0x427   : > { %v6678_v55 = vpack.c.bf16 %v6964_v8, %v6963_v45  ;;  %v3030_v8 = vld [vmem:[%s7737_s25] sm:$0xff]  ;;  %v3031_v45 = vld [vmem:[%s7737_s25 + $0x8] sm:$0xff]  ;;  %v6686_v20 = vpack.c.bf16 %v6974_v61, %v6973_v54 }
 0x428   : > { %2837 = vst.msk [vmem:[#allocation2 + $0x98] sm:$0xff] %vm550_vm2, %v8934_v35  ;;  %2248 = vperm.xlu1 %6914, %v8915_v57   ;;  %2258 = vperm.xlu0 %6913, %v8934_v35   ;;  %v6995_v49 = vpack.i.bf16 %v3031_v45, %v3030_v8  ;;  %v6690_v54 = vpack.c.bf16 %v6979_v24, %v6978_v37  ;;  %v9023_v8 = vld [vmem:[#allocation2 + $0xe8] sm:$0xff] }
 0x429   : > { %6679 = vmatprep.subr.bf16.mxu0 %v6678_v55  ;;  %v2150_v5 = vpop.xlane.xlu1 %2149  ;;  %11281 = vst [vmem:[#allocation31_spill] sm:$0xff] %v9023_v8 }
 0x42a   : > { %v8947_v18 = vmax.f32 %v8936_v34, %v2150_v5  ;;  %6681 = vmatpush3.bf16.msra.mxu0 %v6678_v55  ;;  %v3035_v5 = vld [vmem:[%s7737_s25 + $0x28] sm:$0xff] }
 0x42b   : > { %6683 = vmatprep.subr.bf16.mxu0 %v6682_v43  ;;  %v7005_v4 = vpack.i.bf16 %v3035_v5, %v3034_v22 }
 0x42c   : > { %2836 = vst.msk [vmem:[#allocation2 + $0x90] sm:$0xff] %vm550_vm2, %v8947_v18  ;;  %6986 = vrot.lane.b32.xlu1 %v6985_v51, %s7585_s27 }
 0x42d   : > { %v2156_v23 = vpop.xlane.xlu1 %2155 }
 0x42e   : > { %v8959_v55 = vmax.f32 %v8949_v58, %v2156_v23  ;;  %6685 = vmatpush3.bf16.msra.mxu0 %v6682_v43  ;;  %v8971_v43 = vld [vmem:[#allocation2 + $0xb0] sm:$0xff] }
 0x42f   : > { %6687 = vmatprep.subr.bf16.mxu0 %v6686_v20 }
 0x430   : > { %2839 = vst.msk [vmem:[#allocation2 + $0xa8] sm:$0xff] %vm550_vm2, %v8959_v55  ;;  %6996 = vrot.lane.b32.xlu1 %v6995_v49, %s7586_s14  ;;  %v8982_v49 = vld [vmem:[#allocation2 + $0xc8] sm:$0xff] }
 0x431   : > { %v2154_v51 = vpop.xlane.xlu1 %2153  ;;  %11276 = vst [vmem:[#allocation26_spill] sm:$0xff] %v8982_v49 }
 0x432   : > { %v8969_v61 = vmax.f32 %v8961_v25, %v2154_v51  ;;  %6689 = vmatpush3.bf16.msra.mxu0 %v6686_v20  ;;  %v8993_v20 = vld [vmem:[#allocation2 + $0xc0] sm:$0xff] }
 0x433   : > { %6691 = vmatprep.subr.bf16.mxu0 %v6690_v54 }
 0x434   : > { %2838 = vst.msk [vmem:[#allocation2 + $0xa0] sm:$0xff] %vm550_vm2, %v8969_v61  ;;  %7006 = vrot.lane.b32.xlu1 %v7005_v4, %s7586_s14  ;;  %2263 = vperm.xlu0 %6913, %v8969_v61  }
 0x435   : > { %v2158_v22 = vpop.xlane.xlu1 %2157 }
 0x436   : > { %v8980_v45 = vmax.f32 %v8971_v43, %v2158_v22  ;;  %6693 = vmatpush3.bf16.msra.mxu0 %v6690_v54  ;;  %v9004_v54 = vld [vmem:[#allocation2 + $0xd8] sm:$0xff] }
 0x437   : > { %11278 = vst [vmem:[#allocation28_spill] sm:$0xff] %v9004_v54 }
 0x438   : > { %2840 = vst.msk [vmem:[#allocation2 + $0xb0] sm:$0xff] %vm550_vm2, %v8980_v45  ;;  %2253 = vperm.xlu1 %6914, %v8947_v18   ;;  %2273 = vperm.xlu0 %6913, %v8980_v45  }
 0x439   : > { %v2164_v37 = vpop.xlane.xlu1 %2163 }
 0x43a   : > { %v8991_v23 = vmax.f32 %v8982_v49, %v2164_v37 }
 0x43c   : > { %11277 = vst [vmem:[#allocation27_spill] sm:$0xff] %v8991_v23  ;;  %2843 = vst.msk [vmem:[#allocation2 + $0xc8] sm:$0xff] %vm550_vm2, %v8991_v23  ;;  %2268 = vperm.xlu1 %6914, %v8959_v55   ;;  %2288 = vperm.xlu0 %6913, %v8991_v23  }
 0x43d   : > { %v2162_v4 = vpop.xlane.xlu1 %2161 }
 0x43e   : > { %v9002_v51 = vmax.f32 %v8993_v20, %v2162_v4 }
 0x440   : > { %2842 = vst.msk [vmem:[#allocation2 + $0xc0] sm:$0xff] %vm550_vm2, %v9002_v51 }
 0x441   : > { %v2168_v37 = vpop.xlane.xlu1 %2167 }
 0x442   : > { %v9011_v5 = vmax.f32 %v9004_v54, %v2168_v37  ;;  %v9032_v54 = vld [vmem:[#allocation2 + $0xe0] sm:$0xff] }
 0x443   : > { %11282 = vst [vmem:[#allocation32_spill] sm:$0xff] %v9032_v54  ;;  %v3038_v37 = vld [vmem:[%s7737_s25 + $0x40] sm:$0xff] }
 0x444   : > { %11279 = vst [vmem:[#allocation29_spill] sm:$0xff] %v9011_v5  ;;  %2845 = vst.msk [vmem:[#allocation2 + $0xd8] sm:$0xff] %vm550_vm2, %v9011_v5  ;;  %2298 = vperm.xlu0 %6913, %v9011_v5  }
 0x445   : > { %v2166_v4 = vpop.xlane.xlu1 %2165 }
 0x446   : > { %v9021_v22 = vmax.f32 %v9013_v60, %v2166_v4 }
 0x448   : > { %2844 = vst.msk [vmem:[#allocation2 + $0xd0] sm:$0xff] %vm550_vm2, %v9021_v22 }
 0x449   : > { %v2172_v23 = vpop.xlane.xlu1 %2171 }
 0x44a   : > { %v9030_v24 = vmax.f32 %v9023_v8, %v2172_v23  ;;  %v9046_v23 = vld [vmem:[#allocation2 + $0xb8] sm:$0xff]  ;;  %v9061_v8 = vld [vmem:[#allocation2 + $0xf0] sm:$0xff] }
 0x44b   : > { %11285 = vst [vmem:[#allocation35_spill] sm:$0xff] %v9061_v8 }
 0x44c   : > { %2847 = vst.msk [vmem:[#allocation2 + $0xe8] sm:$0xff] %vm550_vm2, %v9030_v24 }
 0x44d   : > { %v2170_v4 = vpop.xlane.xlu1 %2169 }
 0x44e   : > { %v9039_v49 = vmax.f32 %v9032_v54, %v2170_v4  ;;  %v9051_v4 = vld [vmem:[#allocation2 + $0xf8] sm:$0xff] }
 0x44f   : > { %11284 = vst [vmem:[#allocation34_spill] sm:$0xff] %v9051_v4 }
 0x450   : > { %11283 = vst [vmem:[#allocation33_spill] sm:$0xff] %v9039_v49  ;;  %2846 = vst.msk [vmem:[#allocation2 + $0xe0] sm:$0xff] %vm550_vm2, %v9039_v49  ;;  %2303 = vperm.xlu0 %6913, %v9039_v49  }
 0x455   : > { %v2160_v5 = vpop.xlane.xlu0 %2159 }
 0x456   : > { %v9049_v60 = vmax.f32 %v9046_v23, %v2160_v5  ;;  %v7015_v5 = vpack.i.bf16 %v3039_v15, %v3038_v37  ;;  %v3042_v15 = vld [vmem:[%s7737_s25 + $0x60] sm:$0xff] }
 0x457   : > { %v3018_v37 = vld [vmem:[%s7762_s12 + $0x20] sm:$0xff] }
 0x458   : > { %2841 = vst.msk [vmem:[#allocation2 + $0xb8] sm:$0xff] %vm550_vm2, %v9049_v60  ;;  %2278 = vperm.xlu1 %6914, %v9049_v60  }
 0x459   : > { %v2176_v49 = vpop.xlane.xlu0 %2175 }
 0x45a   : > { %v9059_v54 = vmax.f32 %v9051_v4, %v2176_v49  ;;  %v7020_v4 = vpack.i.bf16 %v3041_v31, %v3040_v26  ;;  %v3015_v31 = vld [vmem:[%s7762_s12 + $0x8] sm:$0xff] }
 0x45b   : > { %v3043_v26 = vld [vmem:[%s7737_s25 + $0x68] sm:$0xff] }
 0x45c   : > { %2849 = vst.msk [vmem:[#allocation2 + $0xf8] sm:$0xff] %vm550_vm2, %v9059_v54  ;;  %2283 = vperm.xlu1 %6914, %v9002_v51   ;;  %v7025_v56 = vpack.i.bf16 %v3043_v26, %v3042_v15  ;;  %v3027_v15 = vld [vmem:[%s7762_s12 + $0x68] sm:$0xff]  ;;  %v3024_v26 = vld [vmem:[%s7762_s12 + $0x50] sm:$0xff] }
 0x45d   : > { %v2174_v39 = vpop.xlane.xlu0 %2173 }
 0x45e   : > { %v9073_v49 = vmax.f32 %v9061_v8, %v2174_v39 }
 0x460   : > { %2848 = vst.msk [vmem:[#allocation2 + $0xf0] sm:$0xff] %vm550_vm2, %v9073_v49  ;;  %2293 = vperm.xlu1 %6914, %v9021_v22   ;;  %2313 = vperm.xlu0 %6913, %v9073_v49  }
 0x461   : > { %v6982_v28 = vpop.permute.xlu0 %6981 }
 0x462   : > { %v6984_v39 = vunpack.i.h.bf16 %v6982_v28  ;;  %v6983_v53 = vunpack.i.l.bf16 %v6982_v28  ;;  %v3017_v28 = vld [vmem:[%s7762_s12 + $0x18] sm:$0xff] }
 0x464   : > { %7016 = vrot.lane.b32.xlu1 %v7015_v5, %s7586_s14  ;;  %7021 = vrot.lane.b32.xlu0 %v7020_v4, %s7586_s14  ;;  %v6694_v8 = vpack.c.bf16 %v6984_v39, %v6983_v53  ;;  %v3016_v53 = vld [vmem:[%s7762_s12 + $0x10] sm:$0xff]  ;;  %v3023_v4 = vld [vmem:[%s7762_s12 + $0x48] sm:$0xff] }
 0x465   : > { %v3020_v5 = vld [vmem:[%s7762_s12 + $0x30] sm:$0xff]  ;;  %v3025_v39 = vld [vmem:[%s7762_s12 + $0x58] sm:$0xff] }
 0x466   : > { %6695 = vmatprep.subr.bf16.mxu0 %v6694_v8 }
 0x467   : > { %6697 = vmatpush3.bf16.msra.mxu0 %v6694_v8  ;;  %v3021_v8 = vld [vmem:[%s7762_s12 + $0x38] sm:$0xff] }
 0x468   : > { %2308 = vperm.xlu1 %6914, %v9030_v24   ;;  %7031 = vrot.lane.b32.xlu0 %v7030_v50, %s7586_s14  ;;  %v3019_v50 = vld [vmem:[%s7762_s12 + $0x28] sm:$0xff] }
 0x46c   : > { %2318 = vperm.xlu1 %6914, %v9059_v54   ;;  %3080 = vrot.lane.b32.xlu0 %v3015_v31, %s7586_s14  ;;  %v3022_v31 = vld [vmem:[%s7762_s12 + $0x40] sm:$0xff] }
 0x470   : > { %7026 = vrot.lane.b32.xlu1 %v7025_v56, %s7586_s14  ;;  %3084 = vrot.lane.b32.xlu0 %v3017_v28, %s7586_s14  ;;  %v3029_v56 = vld [vmem:[%s7762_s12 + $0x78] sm:$0xff]  ;;  %v3026_v28 = vld [vmem:[%s7762_s12 + $0x60] sm:$0xff] }
 0x474   : > { %3078 = vrot.lane.b32.xlu1 %v3014_v21, %s7586_s14  ;;  %3088 = vrot.lane.b32.xlu0 %v3019_v50, %s7586_s14  ;;  %v3028_v21 = vld [vmem:[%s7762_s12 + $0x70] sm:$0xff]  ;;  %v11286_v50 = vsub.f32 %v8910_v19, %v8915_v57 }
 0x478   : > { %3082 = vrot.lane.b32.xlu1 %v3016_v53, %s7586_s14  ;;  %3092 = vrot.lane.b32.xlu0 %v3021_v8, %s7586_s14  ;;  %v2211_v53 = vmul.f32 1.442695, %v11286_v50 }
 0x47a   : > { %7221 = vpow2.f32 %v2211_v53 }
 0x47c   : > { %3086 = vrot.lane.b32.xlu1 %v3018_v37, %s7586_s14  ;;  %3096 = vrot.lane.b32.xlu0 %v3023_v4, %s7586_s14 }
 0x480   : > { %3090 = vrot.lane.b32.xlu1 %v3020_v5, %s7586_s14  ;;  %3100 = vrot.lane.b32.xlu0 %v3025_v39, %s7586_s14 }
 0x484   : > { %3094 = vrot.lane.b32.xlu1 %v3022_v31, %s7586_s14  ;;  %3104 = vrot.lane.b32.xlu0 %v3027_v15, %s7586_s14 }
 0x488   : > { %3098 = vrot.lane.b32.xlu1 %v3024_v26, %s7586_s14  ;;  %3108 = vrot.lane.b32.xlu0 %v3029_v56, %s7586_s14 }
 0x48c   : > { %3102 = vrot.lane.b32.xlu1 %v3026_v28, %s7586_s14  ;;  %1642 = vperm.xlu0 %6913, %v8689_v13   ;;  %v11287_v13 = vsub.f32 %v8961_v25, %v8969_v61  ;;  %v9153_v61 = vpop.eup %7221 }
 0x490   : > { %3106 = vrot.lane.b32.xlu1 %v3028_v21, %s7586_s14  ;;  %1652 = vperm.xlu0 %6913, %v8703_v47   ;;  %v2217_v47 = vmul.f32 1.442695, %v11287_v13 }
 0x492   : > { %7223 = vpow2.f32 %v2217_v47 }
 0x494   : > { %1637 = vperm.xlu1 %6914, %v8677_v7   ;;  %1662 = vperm.xlu0 %6913, %v8711_v36   ;;  %v6992_v7 = vpop.permute.xlu0 %6991 }
 0x498   : > { %1647 = vperm.xlu1 %6914, %v8691_v41   ;;  %1672 = vperm.xlu0 %6913, %v8719_v2   ;;  %v11288_v41 = vsub.f32 %v8971_v43, %v8980_v45 }
 0x49a   : > { %v2221_v36 = vmul.f32 1.442695, %v11288_v41 }
 0x49c   : > { %1657 = vperm.xlu1 %6914, %v8698_v29   ;;  %1682 = vperm.xlu0 %6913, %v8729_v12   ;;  %v11289_v29 = vsub.f32 %v8912_v30, %v8918_v59  ;;  %v9145_v12 = vpop.permute.xlu0 %7001  ;;  %7225 = vpow2.f32 %v2221_v36  ;;  %v9163_v45 = vpop.eup %7223 }
 0x49d   : > { %v7004_v36 = vunpack.i.h.bf16 %v9145_v12 }
 0x49e   : > { %v2209_v2 = vmul.f32 1.442695, %v11289_v29  ;;  %v7003_v29 = vunpack.i.l.bf16 %v9145_v12 }
 0x4a0   : > { %1667 = vperm.xlu1 %6914, %v8709_v44   ;;  %1692 = vperm.xlu0 %6913, %v8738_v11   ;;  %v11290_v44 = vsub.f32 %v8993_v20, %v9002_v51  ;;  %7227 = vpow2.f32 %v2209_v2  ;;  %v6994_v20 = vunpack.i.h.bf16 %v6992_v7  ;;  %v6993_v51 = vunpack.i.l.bf16 %v6992_v7 }
 0x4a2   : > { %v2225_v11 = vmul.f32 1.442695, %v11290_v44  ;;  %v6702_v31 = vpack.c.bf16 %v6994_v20, %v6993_v51 }
 0x4a3   : > { %v2244_v19 = vpop.permute.xlu1 %2243 }
 0x4a4   : > { %v2321_v25 = vsub.f32 %v8840_v10, %v2244_v19  ;;  %1677 = vperm.xlu1 %6914, %v8721_v62   ;;  %1702 = vperm.xlu0 %6913, %v8746_v32   ;;  %v11291_v62 = vsub.f32 %v8936_v34, %v8947_v18  ;;  %v9161_v10 = vpop.permute.xlu0 %7011 }
 0x4a6   : > { %v2337_v57 = vmul.f32 1.442695, %v2321_v25  ;;  %v2213_v32 = vmul.f32 1.442695, %v11291_v62  ;;  %v9170_v4 = vpop.eup %7225 }
 0x4a7   : > { %v2249_v30 = vpop.permute.xlu1 %2248 }
 0x4a8   : > { %7229 = vpow2.f32 %v2337_v57  ;;  %v2322_v59 = vsub.f32 %v8837_v1, %v2249_v30  ;;  %1687 = vperm.xlu1 %6914, %v8731_v14   ;;  %2665 = vperm.xlu0 %6913, %v9153_v61   ;;  %v11292_v14 = vsub.f32 %v8924_v63, %v8934_v35  ;;  %v2259_v5 = vpop.permute.xlu0 %2258  ;;  %v11293_v35 = vsub.f32 %v8949_v58, %v8959_v55 }
 0x4a9   : > { %7231 = vpow2.f32 %v2225_v11  ;;  %v11294_v58 = vsub.f32 %v9046_v23, %v9049_v60  ;;  %v2324_v13 = vsub.f32 %v8843_v42, %v2259_v5  ;;  %v6712_v11 = vpack.c.bf16 %v7004_v36, %v7003_v29 }
 0x4aa   : > { %v2339_v43 = vmul.f32 1.442695, %v2322_v59  ;;  %v2215_v18 = vmul.f32 1.442695, %v11292_v14  ;;  %v2219_v63 = vmul.f32 1.442695, %v11293_v35  ;;  %v7014_v14 = vunpack.i.h.bf16 %v9161_v10 }
 0x4ab   : > { %v6987_v8 = vpop.permute.xlu1 %6986  ;;  %v2223_v55 = vmul.f32 1.442695, %v11294_v58  ;;  %v2343_v42 = vmul.f32 1.442695, %v2324_v13  ;;  %v3047_v59 = vld [vmem:[%s8239_s26 + $0x8] sm:$0xff] }
 0x4ac   : > { %7233 = vpow2.f32 %v2339_v43  ;;  %v6989_v37 = vunpack.i.h.bf16 %v6987_v8  ;;  %v6988_v1 = vunpack.i.l.bf16 %v6987_v8  ;;  %1697 = vperm.xlu1 %6914, %v8744_v3   ;;  %2680 = vperm.xlu0 %6913, %v9163_v45   ;;  %v9174_v3 = vpop.eup %7227 }
 0x4ad   : > { %7235 = vpow2.f32 %v2213_v32 }
 0x4ae   : > { %v6698_v34 = vpack.c.bf16 %v6989_v37, %v6988_v1  ;;  %7237 = vpow2.f32 %v2215_v18  ;;  %v7013_v18 = vunpack.i.l.bf16 %v9161_v10 }
 0x4af   : > { %v6997_v39 = vpop.permute.xlu1 %6996  ;;  %7239 = vpow2.f32 %v2219_v63 }
 0x4b0   : > { %v6999_v15 = vunpack.i.h.bf16 %v6997_v39  ;;  %v6998_v26 = vunpack.i.l.bf16 %v6997_v39  ;;  %1707 = vperm.xlu1 %6914, %v8753_v46   ;;  %2690 = vperm.xlu0 %6913, %v9170_v4   ;;  %7241 = vpow2.f32 %v2223_v55  ;;  %v6724_v5 = vpack.c.bf16 %v7014_v14, %v7013_v18 }
 0x4b1   : > { %6699 = vmatprep.subr.bf16.mxu0 %v6698_v34 }
 0x4b2   : > { %v9179_v56 = vpop.eup %7229  ;;  %6701 = vmatpush3.bf16.msra.mxu0 %v6698_v34  ;;  %v6706_v21 = vpack.c.bf16 %v6999_v15, %v6998_v26 }
 0x4b3   : > { %v9181_v28 = vpop.eup %7231  ;;  %6298 = vmatprep.mubr.f32.mxu0 %v9179_v56  ;;  %v7007_v50 = vpop.permute.xlu1 %7006  ;;  %6703 = vmatprep.subr.bf16.mxu0 %v6702_v31 }
 0x4b4   : > { %v2264_v46 = vpop.permute.xlu0 %2263  ;;  %2660 = vperm.xlu1 %6914, %v9174_v3   ;;  %2700 = vperm.xlu0 %6913, %v9181_v28   ;;  %v7008_v62 = vunpack.i.l.bf16 %v7007_v50 }
 0x4b5   : > { %v2325_v7 = vsub.f32 %v8850_v6, %v2264_v46 }
 0x4b6   : > { %v9189_v53 = vpop.eup %7233  ;;  %6705 = vmatpush3.bf16.msra.mxu0 %v6702_v31 }
 0x4b7   : > { %v9192_v47 = vpop.eup %7235  ;;  %v2254_v41 = vpop.permute.xlu1 %2253  ;;  %6708 = vmatprep.subr.msk.bf16.mxu0 %vm7732_vm1, %v6706_v21  ;;  %v2345_v6 = vmul.f32 1.442695, %v2325_v7 }
 0x4b8   : > { %v2323_v60 = vsub.f32 %v8845_v0, %v2254_v41  ;;  %v2274_v23 = vpop.permute.xlu0 %2273  ;;  %2670 = vperm.xlu1 %6914, %v9192_v47   ;;  %v9202_v19 = vpop.eup %7237 }
 0x4b9   : > { %6299 = vmatmul.mubr.f32.vlgmr.msra.gmra.mrb[16].mxu0 %v9189_v53  ;;  %v2327_v25 = vsub.f32 %v8856_v33, %v2274_v23  ;;  %v9207_v57 = vpop.eup %7239  ;;  %v3046_v33 = vld [vmem:[%s8239_s26] sm:$0xff] }
 0x4ba   : > { %v2341_v2 = vmul.f32 1.442695, %v2323_v60  ;;  %v9216_v32 = vpop.eup %7241  ;;  %v7035_v43 = vpack.i.bf16 %v3047_v59, %v3046_v33 }
 0x4bb   : > { %v2269_v44 = vpop.permute.xlu1 %2268  ;;  %v2349_v30 = vmul.f32 1.442695, %v2327_v25 }
 0x4bc   : > { %7243 = vpow2.f32 %v2341_v2  ;;  %v2326_v0 = vsub.f32 %v8848_v52, %v2269_v44  ;;  %2675 = vperm.xlu1 %6914, %v9202_v19   ;;  %v7009_v52 = vunpack.i.h.bf16 %v7007_v50  ;;  %v2289_v39 = vpop.permute.xlu0 %2288 }
 0x4bd   : > { %7245 = vpow2.f32 %v2343_v42  ;;  %v2330_v31 = vsub.f32 %v8862_v17, %v2289_v39  ;;  %v11295_v42 = vld [vmem:[#allocation25_spill] sm:$0xff] }
 0x4be   : > { %v2347_v12 = vmul.f32 1.442695, %v2326_v0  ;;  %7247 = vpow2.f32 %v2345_v6  ;;  %v6718_v51 = vpack.c.bf16 %v7009_v52, %v7008_v62 }
 0x4bf   : > { %6711 = vmatpush3.bf16.xpose.msk.msra.mxu0 %vm7732_vm1, %v6706_v21  ;;  %v2355_v63 = vmul.f32 1.442695, %v2330_v31 }
 0x4c0   : > { %7249 = vpow2.f32 %v2347_v12  ;;  %6714 = vmatprep.subr.msk.bf16.mxu0 %vm7732_vm1, %v6712_v11  ;;  %2685 = vperm.xlu1 %6914, %v9207_v57  }
 0x4c1   : > { %7251 = vpow2.f32 %v2349_v30 }
 0x4c3   : > { %v2299_v10 = vpop.permute.xlu0 %2298 }
 0x4c4   : > { %2695 = vperm.xlu1 %6914, %v9216_v32   ;;  %v2332_v21 = vsub.f32 %v8867_v38, %v2299_v10 }
 0x4c6   : > { %v7244_v20 = vpop.eup %7243  ;;  %v2359_v55 = vmul.f32 1.442695, %v2332_v21 }
 0x4c7   : > { %6717 = vmatpush3.bf16.xpose.msk.msra.mxu0 %vm7732_vm1, %v6712_v11  ;;  %6301 = vmatprep.mubr.f32.mxu0 %v7244_v20  ;;  %v7246_v8 = vpop.eup %7245 }
 0x4c8   : > { %6720 = vmatprep.subr.msk.bf16.mxu0 %vm7732_vm1, %v6718_v51  ;;  %7036 = vrot.lane.b32.xlu1 %v7035_v43, %s7586_s14  ;;  %v9224_v37 = vpop.eup %7247 }
 0x4c9   : > { %6302 = vmatmul.mubr.f32.gmra.mrb[18].mxu0 %v7246_v8 }
 0x4ca   : > { %v7250_v1 = vpop.eup %7249  ;;  %6304 = vmatprep.mubr.f32.mxu0 %v9224_v37 }
 0x4cb   : > { %v9229_v34 = vpop.eup %7251 }
 0x4cd   : > { %6305 = vmatmul.mubr.f32.gmra.mrb[20].mxu0 %v7250_v1 }
 0x4ce   : > { %6307 = vmatprep.mubr.f32.mxu0 %v9229_v34 }
 0x4cf   : > { %6723 = vmatpush3.bf16.xpose.msk.msra.mxu0 %vm7732_vm1, %v6718_v51  ;;  %v2304_v50 = vpop.permute.xlu0 %2303 }
 0x4d0   : > { %6726 = vmatprep.subr.msk.bf16.mxu0 %vm7732_vm1, %v6724_v5  ;;  %v2333_v17 = vsub.f32 %v8881_v16, %v2304_v50 }
 0x4d2   : > { %v2361_v41 = vmul.f32 1.442695, %v2333_v17 }
 0x4d3   : > { %2385 = vadd.xlane.f32.xlu0 %v9179_v56 }
 0x4d7   : > { %6729 = vmatpush3.bf16.xpose.msk.msra.mxu0 %vm7732_vm1, %v6724_v5  ;;  %v2279_v15 = vpop.permute.xlu1 %2278  ;;  %2391 = vadd.xlane.f32.xlu0 %v7246_v8 }
 0x4d8   : > { %v2328_v26 = vsub.f32 %v8854_v40, %v2279_v15 }
 0x4da   : > { %v2351_v35 = vmul.f32 1.442695, %v2328_v26 }
 0x4db   : > { %v2284_v46 = vpop.permute.xlu1 %2283  ;;  %2389 = vadd.xlane.f32.xlu0 %v7244_v20  ;;  %v11297_v20 = vld [vmem:[#allocation24_spill] sm:$0xff] }
 0x4dc   : > { %7253 = vpow2.f32 %v2351_v35  ;;  %v2329_v56 = vsub.f32 %v8864_v27, %v2284_v46 }
 0x4dd   : > { %7255 = vpow2.f32 %v2355_v63 }
 0x4de   : > { %v2353_v58 = vmul.f32 1.442695, %v2329_v56 }
 0x4df   : > { %v2294_v13 = vpop.permute.xlu1 %2293  ;;  %2395 = vadd.xlane.f32.xlu0 %v7250_v1  ;;  %v2314_v7 = vpop.permute.xlu0 %2313 }
 0x4e0   : > { %7257 = vpow2.f32 %v2353_v58  ;;  %v2331_v40 = vsub.f32 %v8869_v9, %v2294_v13  ;;  %v2335_v16 = vsub.f32 %v11295_v42, %v2314_v7  ;;  %v11296_v9 = vld [vmem:[#allocation23_spill] sm:$0xff] }
 0x4e1   : > { %7259 = vpow2.f32 %v2359_v55 }
 0x4e2   : > { %v2357_v36 = vmul.f32 1.442695, %v2331_v40  ;;  %v2365_v33 = vmul.f32 1.442695, %v2335_v16 }
 0x4e3   : > { %v7017_v38 = vpop.permute.xlu1 %7016  ;;  %v7022_v29 = vpop.permute.xlu0 %7021 }
 0x4e4   : > { %7261 = vpow2.f32 %v2357_v36  ;;  %v7019_v60 = vunpack.i.h.bf16 %v7017_v38  ;;  %v7018_v23 = vunpack.i.l.bf16 %v7017_v38  ;;  %v7024_v27 = vunpack.i.h.bf16 %v7022_v29 }
 0x4e5   : > { %v7023_v2 = vunpack.i.l.bf16 %v7022_v29  ;;  %7263 = vpow2.f32 %v2361_v41 }
 0x4e6   : > { %v7254_v6 = vpop.eup %7253  ;;  %v6730_v25 = vpack.c.bf16 %v7019_v60, %v7018_v23 }
 0x4e7   : > { %v6736_v44 = vpack.c.bf16 %v7024_v27, %v7023_v2  ;;  %v2309_v11 = vpop.permute.xlu1 %2308  ;;  %2399 = vadd.xlane.f32.xlu0 %v7254_v6  ;;  %v7032_v0 = vpop.permute.xlu0 %7031  ;;  %6308 = vmatmul.mubr.f32.gmra.mrb[22].mxu0 %v7254_v6  ;;  %v11298_v2 = vld [vmem:[#allocation10_spill] sm:$0xff] }
 0x4e8   : > { %v2334_v12 = vsub.f32 %v11296_v9, %v2309_v11  ;;  %6732 = vmatprep.subr.msk.bf16.mxu0 %vm7732_vm1, %v6730_v25  ;;  %v7256_v30 = vpop.eup %7255  ;;  %v7033_v15 = vunpack.i.l.bf16 %v7032_v0 }
 0x4e9   : > { %6735 = vmatpush3.bf16.xpose.msk.msra.mxu0 %vm7732_vm1, %v6730_v25 }
 0x4ea   : > { %v7258_v59 = vpop.eup %7257  ;;  %v2363_v52 = vmul.f32 1.442695, %v2334_v12  ;;  %6738 = vmatprep.subr.msk.bf16.mxu0 %vm7732_vm1, %v6736_v44 }
 0x4eb   : > { %v2319_v62 = vpop.permute.xlu1 %2318  ;;  %2403 = vadd.xlane.f32.xlu0 %v7256_v30  ;;  %v3081_v43 = vpop.permute.xlu0 %3080  ;;  %6310 = vmatprep.mubr.f32.mxu0 %v7258_v59 }
 0x4ec   : > { %7265 = vpow2.f32 %v2363_v52  ;;  %v2336_v51 = vsub.f32 %v11297_v20, %v2319_v62  ;;  %2387 = vadd.xlane.f32.xlu1 %v9189_v53  ;;  %6311 = vmatmul.mubr.f32.gmra.mrb[24].mxu0 %v7256_v30  ;;  %v7260_v8 = vpop.eup %7259  ;;  %v7034_v53 = vunpack.i.h.bf16 %v7032_v0  ;;  %v11299_v0 = vld [vmem:[#allocation11_spill] sm:$0xff]  ;;  %v11300_v52 = vld [vmem:[#allocation8_spill] sm:$0xff] }
 0x4ed   : > { %7267 = vpow2.f32 %v2365_v33 }
 0x4ee   : > { %v7262_v1 = vpop.eup %7261  ;;  %v2367_v14 = vmul.f32 1.442695, %v2336_v51  ;;  %v6748_v50 = vpack.c.bf16 %v7034_v53, %v7033_v15  ;;  %v11301_v51 = vld [vmem:[#allocation14_spill] sm:$0xff] }
 0x4ef   : > { %v7027_v18 = vpop.permute.xlu1 %7026  ;;  %2407 = vadd.xlane.f32.xlu0 %v7260_v8  ;;  %v3085_v5 = vpop.permute.xlu0 %3084  ;;  %6313 = vmatprep.mubr.f32.mxu0 %v7262_v1 }
 0x4f0   : > { %v7264_v39 = vpop.eup %7263  ;;  %7269 = vpow2.f32 %v2367_v14  ;;  %v7029_v31 = vunpack.i.h.bf16 %v7027_v18  ;;  %v7028_v10 = vunpack.i.l.bf16 %v7027_v18  ;;  %2393 = vadd.xlane.f32.xlu1 %v9224_v37  ;;  %6314 = vmatmul.mubr.f32.gmra.mrb[26].mxu0 %v7260_v8  ;;  %v11302_v18 = vld [vmem:[#allocation9_spill] sm:$0xff] }
 0x4f1   : > { %6316 = vmatprep.mubr.f32.mxu0 %v7264_v39  ;;  %6741 = vmatpush3.bf16.xpose.msk.msra.mxu0 %vm7732_vm1, %v6736_v44 }
 0x4f2   : > { %v6742_v26 = vpack.c.bf16 %v7029_v31, %v7028_v10  ;;  %v11303_v10 = vld [vmem:[#allocation16_spill] sm:$0xff] }
 0x4f3   : > { %v3079_v35 = vpop.permute.xlu1 %3078  ;;  %v3089_v63 = vpop.permute.xlu0 %3088 }
 0x4f4   : > { %2397 = vadd.xlane.f32.xlu1 %v9229_v34  ;;  %6744 = vmatprep.subr.msk.bf16.mxu0 %vm7732_vm1, %v6742_v26 }
 0x4f6   : > { %v7266_v21 = vpop.eup %7265 }
 0x4f7   : > { %v7268_v46 = vpop.eup %7267  ;;  %v3083_v56 = vpop.permute.xlu1 %3082  ;;  %2411 = vadd.xlane.f32.xlu0 %v7266_v21  ;;  %6317 = vmatmul.mubr.f32.gmra.mrb[28].mxu0 %v7266_v21 }
 0x4f8   : > { %v3093_v37 = vpop.permute.xlu0 %3092  ;;  %2401 = vadd.xlane.f32.xlu1 %v7258_v59  ;;  %6319 = vmatprep.mubr.f32.mxu0 %v7268_v46 }
 0x4f9   : > { %6747 = vmatpush3.bf16.xpose.msk.msra.mxu0 %vm7732_vm1, %v6742_v26 }
 0x4fa   : > { %v7270_v17 = vpop.eup %7269  ;;  %6750 = vmatprep.subr.msk.bf16.mxu0 %vm7732_vm1, %v6748_v50 }
 0x4fb   : > { %v3087_v34 = vpop.permute.xlu1 %3086  ;;  %2415 = vadd.xlane.f32.xlu0 %v7270_v17  ;;  %6320 = vmatmul.mubr.f32.gmra.mrb[30].mxu0 %v7270_v17  ;;  %v11306_v17 = vld [vmem:[#allocation12_spill] sm:$0xff] }
 0x4fc   : > { %v3097_v58 = vpop.permute.xlu0 %3096  ;;  %2405 = vadd.xlane.f32.xlu1 %v7262_v1  ;;  %6354 = vmatprep.mubr.msk.f32.mxu0 %vm743_vm0, %v3079_v35  ;;  %v11304_v35 = vld [vmem:[#allocation13_spill] sm:$0xff] }
 0x4ff   : > { %v3091_v55 = vpop.permute.xlu1 %3090 }
 0x500   : > { %v3101_v13 = vpop.permute.xlu0 %3100  ;;  %2409 = vadd.xlane.f32.xlu1 %v7264_v39 }
 0x501   : > { %6753 = vmatpush3.bf16.xpose.msk.msra.mxu0 %vm7732_vm1, %v6748_v50  ;;  %v11305_v50 = vld [vmem:[#allocation17_spill] sm:$0xff] }
 0x503   : > { %v3095_v7 = vpop.permute.xlu1 %3094 }
 0x504   : > { %v3105_v40 = vpop.permute.xlu0 %3104  ;;  %2413 = vadd.xlane.f32.xlu1 %v7268_v46 }
 0x507   : > { %v3099_v41 = vpop.permute.xlu1 %3098 }
 0x508   : > { %v3109_v36 = vpop.permute.xlu0 %3108  ;;  %6355 = vmatmul.mubr.msk.f32.vlgmr.msra.gmra.mrb[32].mxu0 %vm743_vm0, %v3081_v43 }
 0x509   : > { %6357 = vmatprep.mubr.msk.f32.mxu0 %vm743_vm0, %v3083_v56 }
 0x50b   : > { %v3103_v38 = vpop.permute.xlu1 %3102 }
 0x50c   : > { %v1643_v29 = vpop.permute.xlu0 %1642  ;;  %6358 = vmatmul.mubr.msk.f32.gmra.mrb[34].mxu0 %vm743_vm0, %v3085_v5 }
 0x50d   : > { %7271 = vrcp.f32 %v1643_v29  ;;  %6360 = vmatprep.mubr.msk.f32.mxu0 %vm743_vm0, %v3087_v34  ;;  %v11309_v29 = vld [vmem:[#allocation22_spill] sm:$0xff] }
 0x50f   : > { %v3107_v60 = vpop.permute.xlu1 %3106 }
 0x510   : > { %v1653_v23 = vpop.permute.xlu0 %1652  ;;  %6361 = vmatmul.mubr.msk.f32.gmra.mrb[36].mxu0 %vm743_vm0, %v3089_v63 }
 0x511   : > { %7273 = vrcp.f32 %v1653_v23  ;;  %6363 = vmatprep.mubr.msk.f32.mxu0 %vm743_vm0, %v3091_v55  ;;  %v11307_v55 = vld [vmem:[#allocation18_spill] sm:$0xff] }
 0x513   : > { %v1638_v27 = vpop.permute.xlu1 %1637 }
 0x514   : > { %v1663_v42 = vpop.permute.xlu0 %1662  ;;  %7275 = vrcp.f32 %v1638_v27  ;;  %6364 = vmatmul.mubr.msk.f32.gmra.mrb[38].mxu0 %vm743_vm0, %v3093_v37  ;;  %v11310_v27 = vld [vmem:[#allocation19_spill] sm:$0xff] }
 0x515   : > { %7277 = vrcp.f32 %v1663_v42  ;;  %6366 = vmatprep.mubr.msk.f32.mxu0 %vm743_vm0, %v3095_v7 }
 0x517   : > { %v7272_v16 = vpop.eup %7271  ;;  %v1648_v25 = vpop.permute.xlu1 %1647 }
 0x518   : > { %v1715_v6 = vmul.f32 %v7272_v16, %v11298_v2  ;;  %v1673_v44 = vpop.permute.xlu0 %1672  ;;  %7279 = vrcp.f32 %v1648_v25  ;;  %6367 = vmatmul.mubr.msk.f32.gmra.mrb[40].mxu0 %vm743_vm0, %v3097_v58  ;;  %v11311_v2 = vld [vmem:[#allocation21_spill] sm:$0xff] }
 0x519   : > { %7281 = vrcp.f32 %v1673_v44  ;;  %6369 = vmatprep.mubr.msk.f32.mxu0 %vm743_vm0, %v3099_v41  ;;  %v11308_v41 = vld [vmem:[#allocation15_spill] sm:$0xff]  ;;  %v11312_v44 = vld [vmem:[#allocation20_spill] sm:$0xff] }
 0x51a   : > { %1744 = vst.msk [vmem:[%s8875_s4 + $0x10] sm:$0xff] %vm743_vm0, %v1715_v6 }
 0x51b   : > { %v7274_v11 = vpop.eup %7273  ;;  %v1658_v12 = vpop.permute.xlu1 %1657 }
 0x51c   : > { %v1719_v9 = vmul.f32 %v7274_v11, %v11299_v0  ;;  %v1683_v30 = vpop.permute.xlu0 %1682  ;;  %7283 = vrcp.f32 %v1658_v12  ;;  %6370 = vmatmul.mubr.msk.f32.gmra.mrb[42].mxu0 %vm743_vm0, %v3101_v13 }
 0x51d   : > { %7285 = vrcp.f32 %v1683_v30  ;;  %6372 = vmatprep.mubr.msk.f32.mxu0 %vm743_vm0, %v3103_v38 }
 0x51e   : > { %1746 = vst.msk [vmem:[%s8875_s4 + $0x20] sm:$0xff] %vm743_vm0, %v1719_v9  ;;  %v7276_v33 = vpop.eup %7275 }
 0x51f   : > { %v7278_v59 = vpop.eup %7277  ;;  %v1713_v62 = vmul.f32 %v7276_v33, %v11300_v52  ;;  %v1668_v43 = vpop.permute.xlu1 %1667  ;;  %v2129_v52 = vld [vmem:[#allocation3 + $0x80] sm:$0xff] }
 0x520   : > { %v1693_v20 = vpop.permute.xlu0 %1692  ;;  %v1723_v8 = vmul.f32 %v7278_v59, %v11301_v51  ;;  %7287 = vrcp.f32 %v1668_v43  ;;  %6373 = vmatmul.mubr.msk.f32.gmra.mrb[44].mxu0 %vm743_vm0, %v3105_v40  ;;  %v2132_v51 = vld [vmem:[#allocation3 + $0x98] sm:$0xff] }
 0x521   : > { %1743 = vst.msk [vmem:[%s8875_s4 + $0x8] sm:$0xff] %vm743_vm0, %v1713_v62  ;;  %7289 = vrcp.f32 %v1693_v20  ;;  %6375 = vmatprep.mubr.msk.f32.mxu0 %vm743_vm0, %v3107_v60  ;;  %v2369_v62 = vmul.f32 %v9174_v3, %v2129_v52 }
 0x522   : > { %v7280_v1 = vpop.eup %7279  ;;  %1748 = vst.msk [vmem:[%s8875_s4 + $0x30] sm:$0xff] %vm743_vm0, %v1723_v8 }
 0x523   : > { %v7282_v14 = vpop.eup %7281  ;;  %v1717_v5 = vmul.f32 %v7280_v1, %v11302_v18  ;;  %v1678_v39 = vpop.permute.xlu1 %1677  ;;  %v2372_v1 = vmul.f32 %v9202_v19, %v2132_v51  ;;  %v2131_v18 = vld [vmem:[#allocation3 + $0x90] sm:$0xff]  ;;  %v11324_v19 = vld [vmem:[#allocation28_spill] sm:$0xff] }
 0x524   : > { %v1703_v31 = vpop.permute.xlu0 %1702  ;;  %v1727_v53 = vmul.f32 %v7282_v14, %v11303_v10  ;;  %7291 = vrcp.f32 %v1678_v39  ;;  %6376 = vmatmul.mubr.msk.f32.gmra.mrb[46].mxu0 %vm743_vm0, %v3109_v36  ;;  %v11320_v39 = vld [vmem:[#allocation26_spill] sm:$0xff]  ;;  %v2133_v51 = vld [vmem:[#allocation3 + $0xa0] sm:$0xff] }
 0x525   : > { %1745 = vst.msk [vmem:[%s8875_s4 + $0x18] sm:$0xff] %vm743_vm0, %v1717_v5  ;;  %7293 = vrcp.f32 %v1703_v31  ;;  %v11321_v31 = vld [vmem:[#allocation27_spill] sm:$0xff] }
 0x526   : > { %v7284_v15 = vpop.eup %7283  ;;  %1750 = vst.msk [vmem:[%s8875_s4 + $0x40] sm:$0xff] %vm743_vm0, %v1727_v53  ;;  %v11322_v10 = vsub.f32 %v11320_v39, %v11321_v31 }
 0x527   : > { %v7286_v26 = vpop.eup %7285  ;;  %v1721_v63 = vmul.f32 %v7284_v15, %v11304_v35  ;;  %v1688_v21 = vpop.permute.xlu1 %1687  ;;  %v2371_v15 = vmul.f32 %v9192_v47, %v2131_v18  ;;  %v2134_v35 = vld [vmem:[#allocation3 + $0xa8] sm:$0xff]  ;;  %v2136_v47 = vld [vmem:[#allocation3 + $0xb8] sm:$0xff] }
 0x528   : > { %v1731_v46 = vmul.f32 %v7286_v26, %v11305_v50  ;;  %7295 = vrcp.f32 %v1688_v21  ;;  %v9328_v0 = vpop.permute.xlu0 %2665  ;;  %v2227_v53 = vmul.f32 1.442695, %v11322_v10  ;;  %v11325_v21 = vld [vmem:[#allocation29_spill] sm:$0xff]  ;;  %v2373_v10 = vmul.f32 %v9163_v45, %v2133_v51 }
 0x529   : > { %1747 = vst.msk [vmem:[%s8875_s4 + $0x28] sm:$0xff] %vm743_vm0, %v1721_v63  ;;  %11313 = vst [vmem:[#allocation25_spill] sm:$0xff] %v9328_v0  ;;  %v11326_v50 = vsub.f32 %v11324_v19, %v11325_v21  ;;  %v11338_v19 = vld [vmem:[#allocation35_spill] sm:$0xff] }
 0x52a   : > { %v7288_v56 = vpop.eup %7287  ;;  %1752 = vst.msk [vmem:[%s8875_s4 + $0x50] sm:$0xff] %vm743_vm0, %v1731_v46  ;;  %v11339_v21 = vsub.f32 %v11338_v19, %v9073_v49 }
 0x52b   : > { %v7290_v37 = vpop.eup %7289  ;;  %v1725_v34 = vmul.f32 %v7288_v56, %v11306_v17  ;;  %v1698_v58 = vpop.permute.xlu1 %1697  ;;  %v2231_v46 = vmul.f32 1.442695, %v11326_v50  ;;  %v2374_v56 = vmul.f32 %v9207_v57, %v2134_v35 }
 0x52c   : > { %v1735_v13 = vmul.f32 %v7290_v37, %v11307_v55  ;;  %7297 = vrcp.f32 %v1698_v58  ;;  %v9330_v9 = vpop.permute.xlu0 %2680  ;;  %v2237_v50 = vmul.f32 1.442695, %v11339_v21 }
 0x52d   : > { %1749 = vst.msk [vmem:[%s8875_s4 + $0x38] sm:$0xff] %vm743_vm0, %v1725_v34  ;;  %11314 = vst [vmem:[#allocation23_spill] sm:$0xff] %v9330_v9  ;;  %v3055_v9 = vld [vmem:[%s8239_s26 + $0x48] sm:$0xff] }
 0x52e   : > { %v7292_v7 = vpop.eup %7291  ;;  %1754 = vst.msk [vmem:[%s8875_s4 + $0x60] sm:$0xff] %vm743_vm0, %v1735_v13 }
 0x52f   : > { %v7294_v40 = vpop.eup %7293  ;;  %v1729_v36 = vmul.f32 %v7292_v7, %v11308_v41  ;;  %v1708_v38 = vpop.permute.xlu1 %1707  ;;  %v11328_v7 = vld [vmem:[#allocation31_spill] sm:$0xff] }
 0x530   : > { %v1739_v60 = vmul.f32 %v7294_v40, %v11309_v29  ;;  %7299 = vrcp.f32 %v1708_v38  ;;  %v9334_v30 = vpop.permute.xlu0 %2690  ;;  %v11329_v40 = vsub.f32 %v11328_v7, %v9030_v24  ;;  %v2138_v29 = vld [vmem:[#allocation3 + $0xc8] sm:$0xff] }
 0x531   : > { %1751 = vst.msk [vmem:[%s8875_s4 + $0x48] sm:$0xff] %vm743_vm0, %v1729_v36  ;;  %11316 = vst [vmem:[#allocation10_spill] sm:$0xff] %v9334_v30  ;;  %7301 = vpow2.f32 %v2227_v53  ;;  %v2376_v36 = vmul.f32 %v9216_v32, %v2136_v47  ;;  %v2137_v47 = vld [vmem:[#allocation3 + $0xc0] sm:$0xff] }
 0x532   : > { %v7296_v23 = vpop.eup %7295  ;;  %1756 = vst.msk [vmem:[%s8875_s4 + $0x70] sm:$0xff] %vm743_vm0, %v1739_v60  ;;  %7303 = vpow2.f32 %v2231_v46  ;;  %v2235_v41 = vmul.f32 1.442695, %v11329_v40  ;;  %v2377_v7 = vmul.f32 %v9181_v28, %v2137_v47  ;;  %v2144_v40 = vld [vmem:[#allocation3 + $0xf8] sm:$0xff] }
 0x533   : > { %v1733_v42 = vmul.f32 %v7296_v23, %v11310_v27  ;;  %v9332_v12 = vpop.permute.xlu1 %2660  ;;  %v2130_v23 = vld [vmem:[#allocation3 + $0x88] sm:$0xff] }
 0x534   : > { %11315 = vst [vmem:[#allocation24_spill] sm:$0xff] %v9332_v12  ;;  %v9338_v59 = vpop.permute.xlu0 %2700  ;;  %7305 = vpow2.f32 %v2235_v41  ;;  %v2370_v52 = vmul.f32 %v9153_v61, %v2130_v23 }
 0x535   : > { %1753 = vst.msk [vmem:[%s8875_s4 + $0x58] sm:$0xff] %vm743_vm0, %v1733_v42  ;;  %11318 = vst [vmem:[#allocation8_spill] sm:$0xff] %v9338_v59  ;;  %v11330_v42 = vld [vmem:[#allocation34_spill] sm:$0xff]  ;;  %v3049_v59 = vld [vmem:[%s8239_s26 + $0x18] sm:$0xff] }
 0x536   : > { %v7298_v16 = vpop.eup %7297 }
 0x537   : > { %v1737_v6 = vmul.f32 %v7298_v16, %v11311_v2  ;;  %v9336_v33 = vpop.permute.xlu1 %2670  ;;  %v11331_v16 = vsub.f32 %v11330_v42, %v9059_v54 }
 0x538   : > { %11317 = vst [vmem:[#allocation11_spill] sm:$0xff] %v9336_v33 }
 0x539   : > { %1755 = vst.msk [vmem:[%s8875_s4 + $0x68] sm:$0xff] %vm743_vm0, %v1737_v6  ;;  %v2239_v2 = vmul.f32 1.442695, %v11331_v16  ;;  %v11332_v6 = vld [vmem:[#allocation30_spill] sm:$0xff] }
 0x53a   : > { %v7300_v25 = vpop.eup %7299 }
 0x53b   : > { %v1741_v11 = vmul.f32 %v7300_v25, %v11312_v44  ;;  %v9341_v43 = vpop.permute.xlu1 %2675  ;;  %v9376_v57 = vpop.eup %7301  ;;  %v11333_v25 = vsub.f32 %v11332_v6, %v9021_v22  ;;  %7307 = vpow2.f32 %v2239_v2  ;;  %v2141_v6 = vld [vmem:[#allocation3 + $0xe0] sm:$0xff] }
 0x53c   : > { %11319 = vst [vmem:[#allocation14_spill] sm:$0xff] %v9341_v43  ;;  %v2378_v32 = vmul.f32 %v9376_v57, %v2138_v29  ;;  %v9389_v44 = vpop.eup %7303 }
 0x53d   : > { %1757 = vst.msk [vmem:[%s8875_s4 + $0x78] sm:$0xff] %vm743_vm0, %v1741_v11  ;;  %v2229_v24 = vmul.f32 1.442695, %v11333_v25 }
 0x53e   : > { %v9414_v46 = vpop.eup %7305 }
 0x53f   : > { %v9353_v3 = vpop.permute.xlu1 %2685  ;;  %7309 = vpow2.f32 %v2229_v24 }
 0x540   : > { %11323 = vst [vmem:[#allocation9_spill] sm:$0xff] %v9353_v3  ;;  %v3054_v3 = vld [vmem:[%s8239_s26 + $0x40] sm:$0xff] }
 0x543   : > { %v9366_v37 = vpop.permute.xlu1 %2695 }
 0x544   : > { %11327 = vst [vmem:[#allocation16_spill] sm:$0xff] %v9366_v37 }
 0x545   : > { %v9422_v49 = vpop.eup %7307 }
 0x546   : > { %v2384_v23 = vmul.f32 %v9422_v49, %v2144_v40 }
 0x547   : > { %v7037_v58 = vpop.permute.xlu1 %7036 }
 0x548   : > { %v7039_v55 = vunpack.i.h.bf16 %v7037_v58  ;;  %v7038_v13 = vunpack.i.l.bf16 %v7037_v58 }
 0x549   : > { %v9427_v41 = vpop.eup %7309 }
 0x54a   : > { %v6754_v27 = vpack.c.bf16 %v7039_v55, %v7038_v13 }
 0x54c   : > { %6755 = vmatprep.subr.bf16.mxu1 %v6754_v27 }
 0x54d   : > { %6757 = vmatpush3.bf16.msra.mxu1 %v6754_v27 }
 0x560   : > { %v2386_v20 = vpop.xlane.xlu0 %2385 }
 0x561   : > { %v9343_v8 = vadd.f32 %v2386_v20, %v2369_v62  ;;  %v2140_v62 = vld [vmem:[#allocation3 + $0xd8] sm:$0xff] }
 0x562   : > { %v2380_v31 = vmul.f32 %v9389_v44, %v2140_v62 }
 0x563   : > { %2850 = vst.msk [vmem:[#allocation3 + $0x80] sm:$0xff] %vm550_vm2, %v9343_v8 }
 0x564   : > { %v2392_v14 = vpop.xlane.xlu0 %2391 }
 0x565   : > { %v9348_v5 = vadd.f32 %v2392_v14, %v2372_v1  ;;  %v11334_v1 = vld [vmem:[#allocation32_spill] sm:$0xff]  ;;  %v11335_v14 = vld [vmem:[#allocation33_spill] sm:$0xff] }
 0x566   : > { %v11336_v18 = vsub.f32 %v11334_v1, %v11335_v14 }
 0x567   : > { %2853 = vst.msk [vmem:[#allocation3 + $0x98] sm:$0xff] %vm550_vm2, %v9348_v5 }
 0x568   : > { %v2390_v26 = vpop.xlane.xlu0 %2389  ;;  %v2233_v39 = vmul.f32 1.442695, %v11336_v18 }
 0x569   : > { %v9358_v63 = vadd.f32 %v2390_v26, %v2371_v15  ;;  %v2135_v26 = vld [vmem:[#allocation3 + $0xb0] sm:$0xff] }
 0x56a   : > { %7311 = vpow2.f32 %v2233_v39  ;;  %v2375_v45 = vmul.f32 %v9170_v4, %v2135_v26 }
 0x56b   : > { %2852 = vst.msk [vmem:[#allocation3 + $0x90] sm:$0xff] %vm550_vm2, %v9358_v63  ;;  %7313 = vpow2.f32 %v2237_v50 }
 0x56c   : > { %v2396_v17 = vpop.xlane.xlu0 %2395 }
 0x56d   : > { %v9368_v34 = vadd.f32 %v2396_v17, %v2374_v56  ;;  %v2142_v56 = vld [vmem:[#allocation3 + $0xe8] sm:$0xff] }
 0x56e   : > { %v2382_v55 = vmul.f32 %v9414_v46, %v2142_v56 }
 0x56f   : > { %2855 = vst.msk [vmem:[#allocation3 + $0xa8] sm:$0xff] %vm550_vm2, %v9368_v34 }
 0x574   : > { %v2400_v38 = vpop.xlane.xlu0 %2399  ;;  %v9439_v42 = vpop.eup %7311 }
 0x575   : > { %v9378_v60 = vadd.f32 %v2400_v38, %v2376_v36  ;;  %v2139_v38 = vld [vmem:[#allocation3 + $0xd0] sm:$0xff] }
 0x576   : > { %v2379_v28 = vmul.f32 %v9427_v41, %v2139_v38 }
 0x577   : > { %2857 = vst.msk [vmem:[#allocation3 + $0xb8] sm:$0xff] %vm550_vm2, %v9378_v60 }
 0x578   : > { %v2404_v11 = vpop.xlane.xlu0 %2403 }
 0x579   : > { %v9392_v20 = vadd.f32 %v2404_v11, %v2378_v32  ;;  %v2388_v54 = vpop.xlane.xlu1 %2387  ;;  %v2381_v32 = vmul.f32 %v9439_v42, %v2141_v6  ;;  %v9452_v11 = vpop.eup %7313 }
 0x57a   : > { %v9394_v22 = vadd.f32 %v2388_v54, %v2370_v52  ;;  %v2143_v54 = vld [vmem:[#allocation3 + $0xf0] sm:$0xff] }
 0x57b   : > { %2859 = vst.msk [vmem:[#allocation3 + $0xc8] sm:$0xff] %vm550_vm2, %v9392_v20  ;;  %v2383_v1 = vmul.f32 %v9452_v11, %v2143_v54  ;;  %v3053_v54 = vld [vmem:[%s8239_s26 + $0x38] sm:$0xff] }
 0x57c   : > { %2851 = vst.msk [vmem:[#allocation3 + $0x88] sm:$0xff] %vm550_vm2, %v9394_v22  ;;  %v2408_v61 = vpop.xlane.xlu0 %2407 }
 0x57d   : > { %v9405_v53 = vadd.f32 %v2408_v61, %v2380_v31  ;;  %v2394_v15 = vpop.xlane.xlu1 %2393 }
 0x57e   : > { %v9407_v35 = vadd.f32 %v2394_v15, %v2373_v10 }
 0x57f   : > { %11337 = vst [vmem:[#allocation13_spill] sm:$0xff] %v9405_v53  ;;  %2861 = vst.msk [vmem:[#allocation3 + $0xd8] sm:$0xff] %vm550_vm2, %v9405_v53 }
 0x580   : > { %2854 = vst.msk [vmem:[#allocation3 + $0xa0] sm:$0xff] %vm550_vm2, %v9407_v35 }
 0x581   : > { %v2398_v17 = vpop.xlane.xlu1 %2397 }
 0x582   : > { %v9419_v58 = vadd.f32 %v2398_v17, %v2375_v45 }
 0x584   : > { %2856 = vst.msk [vmem:[#allocation3 + $0xb0] sm:$0xff] %vm550_vm2, %v9419_v58  ;;  %v2412_v13 = vpop.xlane.xlu0 %2411 }
 0x585   : > { %v9429_v4 = vadd.f32 %v2412_v13, %v2382_v55  ;;  %v2402_v36 = vpop.xlane.xlu1 %2401 }
 0x586   : > { %v9431_v29 = vadd.f32 %v2402_v36, %v2377_v7 }
 0x587   : > { %11340 = vst [vmem:[#allocation17_spill] sm:$0xff] %v9429_v4  ;;  %2863 = vst.msk [vmem:[#allocation3 + $0xe8] sm:$0xff] %vm550_vm2, %v9429_v4 }
 0x588   : > { %2858 = vst.msk [vmem:[#allocation3 + $0xc0] sm:$0xff] %vm550_vm2, %v9431_v29  ;;  %v2416_v27 = vpop.xlane.xlu0 %2415 }
 0x589   : > { %v9441_v16 = vadd.f32 %v2416_v27, %v2384_v23  ;;  %v2406_v2 = vpop.xlane.xlu1 %2405  ;;  %v3050_v27 = vld [vmem:[%s8239_s26 + $0x20] sm:$0xff] }
 0x58a   : > { %v9443_v25 = vadd.f32 %v2406_v2, %v2379_v28  ;;  %v3051_v28 = vld [vmem:[%s8239_s26 + $0x28] sm:$0xff] }
 0x58b   : > { %11341 = vst [vmem:[#allocation12_spill] sm:$0xff] %v9441_v16  ;;  %2865 = vst.msk [vmem:[#allocation3 + $0xf8] sm:$0xff] %vm550_vm2, %v9441_v16  ;;  %v4286_v16 = vld [vmem:[%s7737_s25] sm:$0xff] }
 0x58c   : > { %11342 = vst [vmem:[#allocation18_spill] sm:$0xff] %v9443_v25  ;;  %2860 = vst.msk [vmem:[#allocation3 + $0xd0] sm:$0xff] %vm550_vm2, %v9443_v25  ;;  %v9449_v24 = vpop.f32.mrb[16].mxu0  ;;  %v4291_v25 = vld [vmem:[%s7737_s25 + $0x28] sm:$0xff] }
 0x58d   : > { %v9454_v52 = vpop.f32.mrb[17].mxu0  ;;  %v2410_v62 = vpop.xlane.xlu1 %2409 }
 0x58e   : > { %v9456_v51 = vadd.f32 %v2410_v62, %v2381_v32  ;;  %v7045_v32 = vpack.i.bf16 %v3051_v28, %v3050_v27  ;;  %v3052_v62 = vld [vmem:[%s8239_s26 + $0x30] sm:$0xff]  ;;  %v7055_v27 = vpack.i.bf16 %v3055_v9, %v3054_v3 }
 0x58f   : > { %v7050_v30 = vpack.i.bf16 %v3053_v54, %v3052_v62  ;;  %v3056_v9 = vld [vmem:[%s8239_s26 + $0x50] sm:$0xff]  ;;  %v3061_v62 = vld [vmem:[%s8239_s26 + $0x78] sm:$0xff] }
 0x590   : > { %11343 = vst [vmem:[#allocation15_spill] sm:$0xff] %v9456_v51  ;;  %2862 = vst.msk [vmem:[#allocation3 + $0xe0] sm:$0xff] %vm550_vm2, %v9456_v51  ;;  %v3060_v3 = vld [vmem:[%s8239_s26 + $0x70] sm:$0xff] }
 0x591   : > { %v2414_v14 = vpop.xlane.xlu1 %2413  ;;  %v7070_v54 = vpack.i.bf16 %v3061_v62, %v3060_v3 }
 0x592   : > { %v9461_v18 = vadd.f32 %v2414_v14, %v2383_v1  ;;  %v3048_v14 = vld [vmem:[%s8239_s26 + $0x10] sm:$0xff] }
 0x593   : > { %v7040_v43 = vpack.i.bf16 %v3049_v59, %v3048_v14  ;;  %v4288_v14 = vld [vmem:[%s7737_s25 + $0x10] sm:$0xff] }
 0x594   : > { %11344 = vst [vmem:[#allocation22_spill] sm:$0xff] %v9461_v18  ;;  %2864 = vst.msk [vmem:[#allocation3 + $0xf0] sm:$0xff] %vm550_vm2, %v9461_v18  ;;  %v4293_v18 = vld [vmem:[%s7737_s25 + $0x38] sm:$0xff] }
 0x59c   : > { %v9465_v39 = vpop.f32.mrb[18].mxu0 }
 0x59d   : > { %v9467_v31 = vpop.f32.mrb[19].mxu0 }
 0x5a0   : > { %v9469_v61 = vpop.f32.mrb[20].mxu0 }
 0x5a1   : > { %v9471_v10 = vpop.f32.mrb[21].mxu0 }
 0x5ba   : > { %v9473_v15 = vpop.f32.mrb[22].mxu0 }
 0x5bb   : > { %v9475_v26 = vpop.f32.mrb[23].mxu0 }
 0x5bf   : > { %v9477_v19 = vpop.f32.mrb[24].mxu0 }
 0x5c0   : > { %v9479_v21 = vpop.f32.mrb[25].mxu0 }
 0x5c3   : > { %v9481_v50 = vpop.f32.mrb[26].mxu0 }
 0x5c4   : > { %v9483_v45 = vpop.f32.mrb[27].mxu0 }
 0x5ca   : > { %v9485_v56 = vpop.f32.mrb[28].mxu0 }
 0x5cb   : > { %v9487_v17 = vpop.f32.mrb[29].mxu0 }
 0x5ce   : > { %v9489_v47 = vpop.f32.mrb[30].mxu0 }
 0x5cf   : > { %v9491_v55 = vpop.f32.mrb[31].mxu0 }
 0x5db   : > { %v9493_v13 = vpop.f32.mrb[32].mxu0 }
 0x5dc   : > { %3403 = vmax.xlane.f32.xlu1 %v9493_v13  ;;  %v9496_v7 = vpop.f32.mrb[33].mxu0 }
 0x5dd   : > { %3401 = vmax.xlane.f32.xlu0 %v9496_v7 }
 0x5df   : > { %v9499_v40 = vpop.f32.mrb[34].mxu0 }
 0x5e0   : > { %v9501_v36 = vpop.f32.mrb[35].mxu0 }
 0x5e3   : > { %v9503_v38 = vpop.f32.mrb[36].mxu0 }
 0x5e4   : > { %v9505_v23 = vpop.f32.mrb[37].mxu0 }
 0x5e7   : > { %v9509_v2 = vpop.f32.mrb[38].mxu0 }
 0x5e8   : > { %v9511_v6 = vpop.f32.mrb[39].mxu0 }
 0x5eb   : > { %v9515_v1 = vpop.f32.mrb[40].mxu0 }
 0x5ec   : > { %11345 = vst [vmem:[#allocation19_spill] sm:$0xff] %v9515_v1  ;;  %v9519_v37 = vpop.f32.mrb[41].mxu0 }
 0x5ed   : > { %11346 = vst [vmem:[#allocation21_spill] sm:$0xff] %v9519_v37  ;;  %7046 = vrot.lane.b32.xlu1 %v7045_v32, %s7586_s14 }
 0x5ef   : > { %v9524_v33 = vpop.f32.mrb[42].mxu0 }
 0x5f0   : > { %11347 = vst [vmem:[#allocation20_spill] sm:$0xff] %v9524_v33  ;;  %v9526_v12 = vpop.f32.mrb[43].mxu0 }
 0x5f1   : > { %11348 = vst [vmem:[#allocation26_spill] sm:$0xff] %v9526_v12  ;;  %7051 = vrot.lane.b32.xlu1 %v7050_v30, %s7586_s14  ;;  %v3057_v30 = vld [vmem:[%s8239_s26 + $0x58] sm:$0xff] }
 0x5f3   : > { %7041 = vrot.lane.b32.xlu0 %v7040_v43, %s7586_s14  ;;  %v9530_v28 = vpop.f32.mrb[44].mxu0  ;;  %v7060_v43 = vpack.i.bf16 %v3057_v30, %v3056_v9  ;;  %v9565_v30 = vld [vmem:[#allocation2 + $0x108] sm:$0xff] }
 0x5f4   : > { %11349 = vst [vmem:[#allocation27_spill] sm:$0xff] %v9530_v28  ;;  %v9532_v0 = vpop.f32.mrb[45].mxu0  ;;  %11353 = vst [vmem:[#allocation34_spill] sm:$0xff] %v9565_v30 }
 0x5f5   : > { %11350 = vst [vmem:[#allocation28_spill] sm:$0xff] %v9532_v0  ;;  %7056 = vrot.lane.b32.xlu1 %v7055_v27, %s7586_s14  ;;  %v4289_v27 = vld [vmem:[%s7737_s25 + $0x18] sm:$0xff] }
 0x5f7   : > { %v9535_v59 = vpop.f32.mrb[46].mxu0 }
 0x5f8   : > { %11351 = vst [vmem:[#allocation29_spill] sm:$0xff] %v9535_v59  ;;  %v9537_v32 = vpop.f32.mrb[47].mxu0 }
 0x5f9   : > { %11352 = vst [vmem:[#allocation31_spill] sm:$0xff] %v9537_v32 }
 0x612   : > { %3415 = vmax.xlane.f32.xlu0 %v9509_v2 }
 0x616   : > { %3431 = vmax.xlane.f32.xlu0 %v9535_v59  ;;  %v4292_v59 = vld [vmem:[%s7737_s25 + $0x30] sm:$0xff] }
 0x617   : > { %v7090_v9 = vpack.i.bf16 %v4293_v18, %v4292_v59 }
 0x619   : > { %3407 = vmax.xlane.f32.xlu1 %v9499_v40 }
 0x61a   : > { %3429 = vmax.xlane.f32.xlu0 %v9537_v32  ;;  %v7080_v32 = vpack.i.bf16 %v4289_v27, %v4288_v14 }
 0x61d   : > { %3405 = vmax.xlane.f32.xlu1 %v9501_v36 }
 0x621   : > { %3411 = vmax.xlane.f32.xlu1 %v9503_v38 }
 0x625   : > { %3409 = vmax.xlane.f32.xlu1 %v9505_v23 }
 0x629   : > { %3413 = vmax.xlane.f32.xlu1 %v9511_v6 }
 0x62d   : > { %3419 = vmax.xlane.f32.xlu1 %v9515_v1 }
 0x630   : > { %7061 = vrot.lane.b32.xlu0 %v7060_v43, %s7586_s14  ;;  %v9567_v43 = vld [vmem:[#allocation2 + $0x100] sm:$0xff] }
 0x631   : > { %3417 = vmax.xlane.f32.xlu1 %v9519_v37  ;;  %11354 = vst [vmem:[#allocation30_spill] sm:$0xff] %v9567_v43 }
 0x634   : > { %7071 = vrot.lane.b32.xlu0 %v7070_v54, %s7586_s14 }
 0x635   : > { %3423 = vmax.xlane.f32.xlu1 %v9524_v33 }
 0x638   : > { %7081 = vrot.lane.b32.xlu0 %v7080_v32, %s7587_s5 }
 0x639   : > { %3421 = vmax.xlane.f32.xlu1 %v9526_v12  ;;  %v4287_v12 = vld [vmem:[%s7737_s25 + $0x8] sm:$0xff] }
 0x63c   : > { %7091 = vrot.lane.b32.xlu0 %v7090_v9, %s7587_s5  ;;  %v3058_v9 = vld [vmem:[%s8239_s26 + $0x60] sm:$0xff] }
 0x63d   : > { %3427 = vmax.xlane.f32.xlu1 %v9530_v28 }
 0x641   : > { %3425 = vmax.xlane.f32.xlu1 %v9532_v0 }
 0x669   : > { %v3404_v3 = vpop.xlane.xlu1 %3403 }
 0x66a   : > { %v9570_v62 = vmax.f32 %v9565_v30, %v3404_v3  ;;  %v3402_v32 = vpop.xlane.xlu0 %3401  ;;  %v3059_v3 = vld [vmem:[%s8239_s26 + $0x68] sm:$0xff] }
 0x66b   : > { %v9573_v18 = vmax.f32 %v9567_v43, %v3402_v32  ;;  %v7065_v43 = vpack.i.bf16 %v3059_v3, %v3058_v9 }
 0x66c   : > { %4091 = vst.msk [vmem:[#allocation2 + $0x108] sm:$0xff] %vm550_vm2, %v9570_v62 }
 0x66d   : > { %11355 = vst [vmem:[#allocation32_spill] sm:$0xff] %v9573_v18  ;;  %4090 = vst.msk [vmem:[#allocation2 + $0x100] sm:$0xff] %vm550_vm2, %v9573_v18  ;;  %v7047_v14 = vpop.permute.xlu1 %7046  ;;  %3499 = vperm.xlu1 %6914, %v9573_v18  }
 0x66e   : > { %v7042_v27 = vpop.permute.xlu0 %7041  ;;  %v7049_v32 = vunpack.i.h.bf16 %v7047_v14  ;;  %v7048_v0 = vunpack.i.l.bf16 %v7047_v14  ;;  %v7075_v14 = vpack.i.bf16 %v4287_v12, %v4286_v16  ;;  %v9599_v16 = vld [vmem:[#allocation2 + $0x178] sm:$0xff] }
 0x66f   : > { %v7044_v59 = vunpack.i.h.bf16 %v7042_v27  ;;  %v7043_v30 = vunpack.i.l.bf16 %v7042_v27  ;;  %v4290_v27 = vld [vmem:[%s7737_s25 + $0x20] sm:$0xff]  ;;  %11357 = vst [vmem:[#allocation35_spill] sm:$0xff] %v9599_v16 }
 0x670   : > { %v6762_v18 = vpack.c.bf16 %v7049_v32, %v7048_v0  ;;  %v9594_v0 = vld [vmem:[#allocation2 + $0x138] sm:$0xff] }
 0x671   : > { %v7052_v28 = vpop.permute.xlu1 %7051  ;;  %3504 = vperm.xlu1 %6914, %v9570_v62   ;;  %v6758_v54 = vpack.c.bf16 %v7044_v59, %v7043_v30  ;;  %v7085_v30 = vpack.i.bf16 %v4291_v25, %v4290_v27  ;;  %v9610_v25 = vld [vmem:[#allocation2 + $0x170] sm:$0xff] }
 0x672   : > { %v7054_v51 = vunpack.i.h.bf16 %v7052_v28  ;;  %v7053_v33 = vunpack.i.l.bf16 %v7052_v28  ;;  %11359 = vst [vmem:[#allocation37_spill] sm:$0xff] %v9610_v25 }
 0x673   : > { %6759 = vmatprep.subr.bf16.mxu1 %v6758_v54 }
 0x674   : > { %6761 = vmatpush3.bf16.msra.mxu1 %v6758_v54  ;;  %v6766_v1 = vpack.c.bf16 %v7054_v51, %v7053_v33  ;;  %v9619_v54 = vld [vmem:[#allocation2 + $0x110] sm:$0xff] }
 0x675   : > { %v7057_v4 = vpop.permute.xlu1 %7056  ;;  %6763 = vmatprep.subr.bf16.mxu1 %v6762_v18  ;;  %7066 = vrot.lane.b32.xlu1 %v7065_v43, %s7586_s14 }
 0x676   : > { %v7059_v53 = vunpack.i.h.bf16 %v7057_v4  ;;  %v7058_v37 = vunpack.i.l.bf16 %v7057_v4 }
 0x678   : > { %6765 = vmatpush3.bf16.msra.mxu1 %v6762_v18  ;;  %v6770_v59 = vpack.c.bf16 %v7059_v53, %v7058_v37  ;;  %v9605_v53 = vld [vmem:[#allocation2 + $0x118] sm:$0xff] }
 0x679   : > { %6767 = vmatprep.subr.bf16.mxu1 %v6766_v1  ;;  %7076 = vrot.lane.b32.xlu1 %v7075_v14, %s7587_s5 }
 0x67c   : > { %6769 = vmatpush3.bf16.msra.mxu1 %v6766_v1 }
 0x67d   : > { %6771 = vmatprep.subr.bf16.mxu1 %v6770_v59  ;;  %7086 = vrot.lane.b32.xlu1 %v7085_v30, %s7587_s5 }
 0x680   : > { %6773 = vmatpush3.bf16.msra.mxu1 %v6770_v59  ;;  %v9636_v59 = vld [vmem:[#allocation2 + $0x128] sm:$0xff] }
 0x69f   : > { %v3416_v28 = vpop.xlane.xlu0 %3415 }
 0x6a0   : > { %v9597_v12 = vmax.f32 %v9594_v0, %v3416_v28 }
 0x6a2   : > { %11356 = vst [vmem:[#allocation33_spill] sm:$0xff] %v9597_v12  ;;  %4097 = vst.msk [vmem:[#allocation2 + $0x138] sm:$0xff] %vm550_vm2, %v9597_v12 }
 0x6a3   : > { %v3432_v37 = vpop.xlane.xlu0 %3431 }
 0x6a4   : > { %v9608_v4 = vmax.f32 %v9599_v16, %v3432_v37 }
 0x6a6   : > { %11358 = vst [vmem:[#allocation36_spill] sm:$0xff] %v9608_v4  ;;  %v3408_v51 = vpop.xlane.xlu1 %3407  ;;  %4105 = vst.msk [vmem:[#allocation2 + $0x178] sm:$0xff] %vm550_vm2, %v9608_v4 }
 0x6a7   : > { %v9617_v43 = vmax.f32 %v9605_v53, %v3408_v51  ;;  %v3430_v18 = vpop.xlane.xlu0 %3429 }
 0x6a8   : > { %v9622_v9 = vmax.f32 %v9610_v25, %v3430_v18  ;;  %v9677_v25 = vld [vmem:[#allocation2 + $0x140] sm:$0xff] }
 0x6a9   : > { %4093 = vst.msk [vmem:[#allocation2 + $0x118] sm:$0xff] %vm550_vm2, %v9617_v43  ;;  %3514 = vperm.xlu0 %6913, %v9617_v43   ;;  %11367 = vst [vmem:[#allocation45_spill] sm:$0xff] %v9677_v25 }
 0x6aa   : > { %11360 = vst [vmem:[#allocation38_spill] sm:$0xff] %v9622_v9  ;;  %v3406_v32 = vpop.xlane.xlu1 %3405  ;;  %4104 = vst.msk [vmem:[#allocation2 + $0x170] sm:$0xff] %vm550_vm2, %v9622_v9 }
 0x6ab   : > { %v9634_v27 = vmax.f32 %v9619_v54, %v3406_v32  ;;  %v7062_v30 = vpop.permute.xlu0 %7061  ;;  %v9646_v32 = vld [vmem:[#allocation2 + $0x120] sm:$0xff] }
 0x6ac   : > { %v7064_v28 = vunpack.i.h.bf16 %v7062_v30  ;;  %v7063_v37 = vunpack.i.l.bf16 %v7062_v30  ;;  %11361 = vst [vmem:[#allocation39_spill] sm:$0xff] %v9646_v32 }
 0x6ad   : > { %4092 = vst.msk [vmem:[#allocation2 + $0x110] sm:$0xff] %vm550_vm2, %v9634_v27  ;;  %3509 = vperm.xlu1 %6914, %v9634_v27  }
 0x6ae   : > { %v3412_v18 = vpop.xlane.xlu1 %3411  ;;  %v6774_v14 = vpack.c.bf16 %v7064_v28, %v7063_v37  ;;  %v9656_v28 = vld [vmem:[#allocation2 + $0x130] sm:$0xff] }
 0x6af   : > { %v9644_v1 = vmax.f32 %v9636_v59, %v3412_v18  ;;  %11363 = vst [vmem:[#allocation41_spill] sm:$0xff] %v9656_v28 }
 0x6b0   : > { %6775 = vmatprep.subr.bf16.mxu1 %v6774_v14 }
 0x6b1   : > { %4095 = vst.msk [vmem:[#allocation2 + $0x128] sm:$0xff] %vm550_vm2, %v9644_v1  ;;  %3524 = vperm.xlu1 %6914, %v9644_v1   ;;  %6777 = vmatpush3.bf16.msra.mxu1 %v6774_v14  ;;  %v9667_v14 = vld [vmem:[#allocation2 + $0x148] sm:$0xff] }
 0x6b2   : > { %v3410_v30 = vpop.xlane.xlu1 %3409  ;;  %11365 = vst [vmem:[#allocation43_spill] sm:$0xff] %v9667_v14 }
 0x6b3   : > { %v9654_v51 = vmax.f32 %v9646_v32, %v3410_v30  ;;  %v4299_v32 = vld [vmem:[%s7737_s25 + $0x68] sm:$0xff] }
 0x6b5   : > { %11362 = vst [vmem:[#allocation40_spill] sm:$0xff] %v9654_v51  ;;  %4094 = vst.msk [vmem:[#allocation2 + $0x120] sm:$0xff] %vm550_vm2, %v9654_v51  ;;  %3534 = vperm.xlu1 %6914, %v9597_v12   ;;  %3519 = vperm.xlu0 %6913, %v9654_v51  }
 0x6b6   : > { %v3414_v18 = vpop.xlane.xlu1 %3413 }
 0x6b7   : > { %v9665_v33 = vmax.f32 %v9656_v28, %v3414_v18  ;;  %v9697_v28 = vld [vmem:[#allocation2 + $0x150] sm:$0xff] }
 0x6b8   : > { %11371 = vst [vmem:[#allocation49_spill] sm:$0xff] %v9697_v28 }
 0x6b9   : > { %11364 = vst [vmem:[#allocation42_spill] sm:$0xff] %v9665_v33  ;;  %4096 = vst.msk [vmem:[#allocation2 + $0x130] sm:$0xff] %vm550_vm2, %v9665_v33  ;;  %3529 = vperm.xlu0 %6913, %v9665_v33   ;;  %v9687_v33 = vld [vmem:[#allocation2 + $0x158] sm:$0xff] }
 0x6ba   : > { %v3420_v37 = vpop.xlane.xlu1 %3419  ;;  %11369 = vst [vmem:[#allocation47_spill] sm:$0xff] %v9687_v33 }
 0x6bb   : > { %v9675_v3 = vmax.f32 %v9667_v14, %v3420_v37 }
 0x6bd   : > { %11366 = vst [vmem:[#allocation44_spill] sm:$0xff] %v9675_v3  ;;  %4099 = vst.msk [vmem:[#allocation2 + $0x148] sm:$0xff] %vm550_vm2, %v9675_v3  ;;  %3544 = vperm.xlu0 %6913, %v9675_v3   ;;  %v4295_v3 = vld [vmem:[%s7737_s25 + $0x48] sm:$0xff] }
 0x6be   : > { %v3418_v30 = vpop.xlane.xlu1 %3417 }
 0x6bf   : > { %v9685_v16 = vmax.f32 %v9677_v25, %v3418_v30  ;;  %v4294_v25 = vld [vmem:[%s7737_s25 + $0x40] sm:$0xff] }
 0x6c0   : > { %v7095_v30 = vpack.i.bf16 %v4295_v3, %v4294_v25 }
 0x6c1   : > { %11368 = vst [vmem:[#allocation46_spill] sm:$0xff] %v9685_v16  ;;  %4098 = vst.msk [vmem:[#allocation2 + $0x140] sm:$0xff] %vm550_vm2, %v9685_v16  ;;  %3539 = vperm.xlu1 %6914, %v9685_v16   ;;  %v9709_v16 = vld [vmem:[#allocation2 + $0x168] sm:$0xff] }
 0x6c2   : > { %v3424_v18 = vpop.xlane.xlu1 %3423  ;;  %11373 = vst [vmem:[#allocation51_spill] sm:$0xff] %v9709_v16 }
 0x6c3   : > { %v9695_v14 = vmax.f32 %v9687_v33, %v3424_v18 }
 0x6c5   : > { %11370 = vst [vmem:[#allocation48_spill] sm:$0xff] %v9695_v14  ;;  %4101 = vst.msk [vmem:[#allocation2 + $0x158] sm:$0xff] %vm550_vm2, %v9695_v14  ;;  %3554 = vperm.xlu0 %6913, %v9695_v14  }
 0x6c6   : > { %v3422_v37 = vpop.xlane.xlu1 %3421 }
 0x6c7   : > { %v9707_v51 = vmax.f32 %v9697_v28, %v3422_v37  ;;  %v9719_v37 = vld [vmem:[#allocation2 + $0x160] sm:$0xff] }
 0x6c8   : > { %11375 = vst [vmem:[#allocation53_spill] sm:$0xff] %v9719_v37 }
 0x6c9   : > { %11372 = vst [vmem:[#allocation50_spill] sm:$0xff] %v9707_v51  ;;  %4100 = vst.msk [vmem:[#allocation2 + $0x150] sm:$0xff] %vm550_vm2, %v9707_v51  ;;  %3549 = vperm.xlu1 %6914, %v9707_v51   ;;  %v4301_v51 = vld [vmem:[%s7737_s25 + $0x78] sm:$0xff] }
 0x6ca   : > { %v3428_v14 = vpop.xlane.xlu1 %3427 }
 0x6cb   : > { %v9717_v33 = vmax.f32 %v9709_v16, %v3428_v14  ;;  %v4298_v14 = vld [vmem:[%s7737_s25 + $0x60] sm:$0xff]  ;;  %v4297_v16 = vld [vmem:[%s7737_s25 + $0x58] sm:$0xff] }
 0x6cd   : > { %11374 = vst [vmem:[#allocation52_spill] sm:$0xff] %v9717_v33  ;;  %4103 = vst.msk [vmem:[#allocation2 + $0x168] sm:$0xff] %vm550_vm2, %v9717_v33  ;;  %7096 = vrot.lane.b32.xlu1 %v7095_v30, %s7587_s5  ;;  %v4296_v30 = vld [vmem:[%s7737_s25 + $0x50] sm:$0xff] }
 0x6ce   : > { %v3426_v18 = vpop.xlane.xlu1 %3425  ;;  %v7100_v3 = vpack.i.bf16 %v4297_v16, %v4296_v30  ;;  %v4274_v16 = vld [vmem:[%s7762_s12 + $0x20] sm:$0xff] }
 0x6cf   : > { %v9727_v25 = vmax.f32 %v9719_v37, %v3426_v18  ;;  %v7105_v18 = vpack.i.bf16 %v4299_v32, %v4298_v14  ;;  %v4300_v37 = vld [vmem:[%s7737_s25 + $0x70] sm:$0xff]  ;;  %v4273_v32 = vld [vmem:[%s7762_s12 + $0x18] sm:$0xff]  ;;  %v4279_v14 = vld [vmem:[%s7762_s12 + $0x48] sm:$0xff] }
 0x6d1   : > { %11376 = vst [vmem:[#allocation54_spill] sm:$0xff] %v9727_v25  ;;  %4102 = vst.msk [vmem:[#allocation2 + $0x160] sm:$0xff] %vm550_vm2, %v9727_v25  ;;  %3564 = vperm.xlu1 %6914, %v9717_v33   ;;  %3559 = vperm.xlu0 %6913, %v9727_v25   ;;  %v7110_v25 = vpack.i.bf16 %v4301_v51, %v4300_v37  ;;  %v4270_v33 = vld [vmem:[%s7762_s12] sm:$0xff]  ;;  %v4276_v51 = vld [vmem:[%s7762_s12 + $0x30] sm:$0xff] }
 0x6d2   : > { %v4275_v37 = vld [vmem:[%s7762_s12 + $0x28] sm:$0xff] }
 0x6d5   : > { %3574 = vperm.xlu1 %6914, %v9608_v4   ;;  %3569 = vperm.xlu0 %6913, %v9622_v9   ;;  %v4272_v9 = vld [vmem:[%s7762_s12 + $0x10] sm:$0xff]  ;;  %v4271_v4 = vld [vmem:[%s7762_s12 + $0x8] sm:$0xff] }
 0x6d9   : > { %7106 = vrot.lane.b32.xlu1 %v7105_v18, %s7587_s5  ;;  %7101 = vrot.lane.b32.xlu0 %v7100_v3, %s7587_s5  ;;  %v4280_v3 = vld [vmem:[%s7762_s12 + $0x50] sm:$0xff] }
 0x6dd   : > { %4334 = vrot.lane.b32.xlu1 %v4270_v33, %s7587_s5  ;;  %7111 = vrot.lane.b32.xlu0 %v7110_v25, %s7587_s5  ;;  %v4278_v33 = vld [vmem:[%s7762_s12 + $0x40] sm:$0xff] }
 0x6e1   : > { %4338 = vrot.lane.b32.xlu1 %v4272_v9, %s7587_s5  ;;  %4336 = vrot.lane.b32.xlu0 %v4271_v4, %s7587_s5  ;;  %v4277_v9 = vld [vmem:[%s7762_s12 + $0x38] sm:$0xff] }
 0x6e5   : > { %4342 = vrot.lane.b32.xlu1 %v4274_v16, %s7587_s5  ;;  %4340 = vrot.lane.b32.xlu0 %v4273_v32, %s7587_s5  ;;  %v7072_v32 = vpop.permute.xlu0 %7071 }
 0x6e9   : > { %4346 = vrot.lane.b32.xlu1 %v4276_v51, %s7587_s5  ;;  %4344 = vrot.lane.b32.xlu0 %v4275_v37, %s7587_s5  ;;  %v4282_v51 = vld [vmem:[%s7762_s12 + $0x60] sm:$0xff] }
 0x6ec   : > { %v3500_v25 = vpop.permute.xlu1 %3499 }
 0x6ed   : > { %v3577_v4 = vsub.f32 %v9496_v7, %v3500_v25  ;;  %4350 = vrot.lane.b32.xlu1 %v4278_v33, %s7587_s5  ;;  %4348 = vrot.lane.b32.xlu0 %v4277_v9, %s7587_s5  ;;  %v4281_v7 = vld [vmem:[%s7762_s12 + $0x58] sm:$0xff]  ;;  %v7074_v25 = vunpack.i.h.bf16 %v7072_v32  ;;  %v7073_v9 = vunpack.i.l.bf16 %v7072_v32 }
 0x6ee   : > { %v4285_v32 = vld [vmem:[%s7762_s12 + $0x78] sm:$0xff] }
 0x6ef   : > { %v3593_v30 = vmul.f32 1.442695, %v3577_v4 }
 0x6f0   : > { %v3505_v18 = vpop.permute.xlu1 %3504 }
 0x6f1   : > { %7315 = vpow2.f32 %v3593_v30  ;;  %v3578_v16 = vsub.f32 %v9493_v13, %v3505_v18  ;;  %4354 = vrot.lane.b32.xlu1 %v4280_v3, %s7587_s5  ;;  %4352 = vrot.lane.b32.xlu0 %v4279_v14, %s7587_s5  ;;  %v4284_v13 = vld [vmem:[%s7762_s12 + $0x70] sm:$0xff]  ;;  %v4283_v30 = vld [vmem:[%s7762_s12 + $0x68] sm:$0xff]  ;;  %v6782_v18 = vpack.c.bf16 %v7074_v25, %v7073_v9 }
 0x6f3   : > { %v3595_v37 = vmul.f32 1.442695, %v3578_v16 }
 0x6f4   : > { %v7067_v33 = vpop.permute.xlu1 %7066 }
 0x6f5   : > { %7317 = vpow2.f32 %v3595_v37  ;;  %v7069_v4 = vunpack.i.h.bf16 %v7067_v33  ;;  %v7068_v28 = vunpack.i.l.bf16 %v7067_v33  ;;  %4358 = vrot.lane.b32.xlu1 %v4282_v51, %s7587_s5  ;;  %4356 = vrot.lane.b32.xlu0 %v4281_v7, %s7587_s5  ;;  %v7082_v7 = vpop.permute.xlu0 %7081 }
 0x6f6   : > { %v7084_v33 = vunpack.i.h.bf16 %v7082_v7  ;;  %v7083_v25 = vunpack.i.l.bf16 %v7082_v7 }
 0x6f7   : > { %v6778_v3 = vpack.c.bf16 %v7069_v4, %v7068_v28 }
 0x6f8   : > { %v7077_v14 = vpop.permute.xlu1 %7076 }
 0x6f9   : > { %4362 = vrot.lane.b32.xlu1 %v4284_v13, %s7587_s5  ;;  %4360 = vrot.lane.b32.xlu0 %v4283_v30, %s7587_s5  ;;  %v7079_v16 = vunpack.i.h.bf16 %v7077_v14  ;;  %v7078_v12 = vunpack.i.l.bf16 %v7077_v14  ;;  %v11382_v30 = vld [vmem:[#allocation20_spill] sm:$0xff] }
 0x6fa   : > { %6779 = vmatprep.subr.bf16.mxu1 %v6778_v3 }
 0x6fb   : > { %v9779_v37 = vpop.eup %7315  ;;  %6781 = vmatpush3.bf16.msra.mxu1 %v6778_v3  ;;  %v6786_v51 = vpack.c.bf16 %v7079_v16, %v7078_v12 }
 0x6fc   : > { %6410 = vmatprep.mubr.f32.mxu1 %v9779_v37  ;;  %6783 = vmatprep.subr.bf16.mxu1 %v6782_v18  ;;  %v7087_v12 = vpop.permute.xlu1 %7086 }
 0x6fd   : > { %2705 = vperm.xlu1 %6914, %v9376_v57   ;;  %4364 = vrot.lane.b32.xlu0 %v4285_v32, %s7587_s5  ;;  %v6792_v57 = vpack.c.bf16 %v7084_v33, %v7083_v25  ;;  %v11385_v33 = vld [vmem:[#allocation12_spill] sm:$0xff] }
 0x6ff   : > { %v9784_v28 = vpop.eup %7317  ;;  %6785 = vmatpush3.bf16.msra.mxu1 %v6782_v18  ;;  %v11383_v18 = vld [vmem:[#allocation15_spill] sm:$0xff] }
 0x700   : > { %6788 = vmatprep.subr.msk.bf16.mxu1 %vm7732_vm1, %v6786_v51 }
 0x701   : > { %2715 = vperm.xlu1 %6914, %v9389_v44   ;;  %2710 = vperm.xlu0 %6913, %v9427_v41   ;;  %v7089_v44 = vunpack.i.h.bf16 %v7087_v12  ;;  %v7088_v41 = vunpack.i.l.bf16 %v7087_v12 }
 0x702   : > { %6411 = vmatmul.mubr.f32.vlgmr.msra.gmra.mrb[32].mxu1 %v9784_v28 }
 0x705   : > { %2725 = vperm.xlu1 %6914, %v9414_v46   ;;  %2720 = vperm.xlu0 %6913, %v9439_v42   ;;  %v6798_v46 = vpack.c.bf16 %v7089_v44, %v7088_v41 }
 0x708   : > { %6791 = vmatpush3.bf16.xpose.msk.msra.mxu1 %vm7732_vm1, %v6786_v51  ;;  %v11384_v51 = vld [vmem:[#allocation26_spill] sm:$0xff] }
 0x709   : > { %2735 = vperm.xlu1 %6914, %v9422_v49   ;;  %2730 = vperm.xlu0 %6913, %v9452_v11   ;;  %v7092_v49 = vpop.permute.xlu0 %7091 }
 0x70a   : > { %6794 = vmatprep.subr.msk.bf16.mxu1 %vm7732_vm1, %v6792_v57  ;;  %v7094_v42 = vunpack.i.h.bf16 %v7092_v49  ;;  %v7093_v11 = vunpack.i.l.bf16 %v7092_v49 }
 0x70d   : > { %2772 = vrot.lane.b32.xlu1 %v9449_v24, %s7587_s5  ;;  %2770 = vrot.lane.b32.xlu0 %v9454_v52, %s7587_s5  ;;  %v6804_v24 = vpack.c.bf16 %v7094_v42, %v7093_v11 }
 0x710   : > { %6797 = vmatpush3.bf16.xpose.msk.msra.mxu1 %vm7732_vm1, %v6792_v57  ;;  %v11386_v57 = vld [vmem:[#allocation22_spill] sm:$0xff] }
 0x711   : > { %2776 = vrot.lane.b32.xlu1 %v9465_v39, %s7587_s5  ;;  %2774 = vrot.lane.b32.xlu0 %v9467_v31, %s7587_s5 }
 0x712   : > { %6800 = vmatprep.subr.msk.bf16.mxu1 %vm7732_vm1, %v6798_v46 }
 0x715   : > { %2780 = vrot.lane.b32.xlu1 %v9469_v61, %s7587_s5  ;;  %2778 = vrot.lane.b32.xlu0 %v9471_v10, %s7587_s5 }
 0x718   : > { %6803 = vmatpush3.bf16.xpose.msk.msra.mxu1 %vm7732_vm1, %v6798_v46 }
 0x719   : > { %2784 = vrot.lane.b32.xlu1 %v9473_v15, %s7587_s5  ;;  %2782 = vrot.lane.b32.xlu0 %v9475_v26, %s7587_s5 }
 0x71a   : > { %6806 = vmatprep.subr.msk.bf16.mxu1 %vm7732_vm1, %v6804_v24 }
 0x71d   : > { %2788 = vrot.lane.b32.xlu1 %v9477_v19, %s7587_s5  ;;  %2786 = vrot.lane.b32.xlu0 %v9479_v21, %s7587_s5 }
 0x720   : > { %6809 = vmatpush3.bf16.xpose.msk.msra.mxu1 %vm7732_vm1, %v6804_v24 }
 0x721   : > { %2792 = vrot.lane.b32.xlu1 %v9481_v50, %s7587_s5  ;;  %2790 = vrot.lane.b32.xlu0 %v9483_v45, %s7587_s5 }
 0x725   : > { %2796 = vrot.lane.b32.xlu1 %v9485_v56, %s7587_s5  ;;  %2794 = vrot.lane.b32.xlu0 %v9487_v17, %s7587_s5 }
 0x728   : > { %v3515_v52 = vpop.permute.xlu0 %3514 }
 0x729   : > { %2800 = vrot.lane.b32.xlu1 %v9489_v47, %s7587_s5  ;;  %2798 = vrot.lane.b32.xlu0 %v9491_v55, %s7587_s5  ;;  %v3580_v39 = vsub.f32 %v9499_v40, %v3515_v52  ;;  %v11377_v40 = vld [vmem:[#allocation19_spill] sm:$0xff] }
 0x72b   : > { %v3599_v10 = vmul.f32 1.442695, %v3580_v39  ;;  %v11387_v39 = vld [vmem:[#allocation27_spill] sm:$0xff] }
 0x72c   : > { %v3510_v31 = vpop.permute.xlu1 %3509 }
 0x72d   : > { %v3579_v61 = vsub.f32 %v9501_v36, %v3510_v31  ;;  %2893 = vperm.xlu1 %6914, %v9394_v22   ;;  %2888 = vperm.xlu0 %6913, %v9343_v8   ;;  %v11378_v36 = vld [vmem:[#allocation21_spill] sm:$0xff] }
 0x72f   : > { %v3597_v15 = vmul.f32 1.442695, %v3579_v61  ;;  %v11388_v61 = vld [vmem:[#allocation28_spill] sm:$0xff] }
 0x730   : > { %v3525_v26 = vpop.permute.xlu1 %3524 }
 0x731   : > { %7319 = vpow2.f32 %v3597_v15  ;;  %2903 = vperm.xlu1 %6914, %v9348_v5   ;;  %2898 = vperm.xlu0 %6913, %v9358_v63   ;;  %v3582_v19 = vsub.f32 %v9503_v38, %v3525_v26 }
 0x732   : > { %7321 = vpow2.f32 %v3599_v10 }
 0x733   : > { %v3603_v8 = vmul.f32 1.442695, %v3582_v19 }
 0x734   : > { %v3535_v21 = vpop.permute.xlu1 %3534  ;;  %v3520_v50 = vpop.permute.xlu0 %3519 }
 0x735   : > { %v3581_v45 = vsub.f32 %v9505_v23, %v3520_v50  ;;  %2913 = vperm.xlu1 %6914, %v9368_v34   ;;  %2908 = vperm.xlu0 %6913, %v9407_v35   ;;  %v3584_v22 = vsub.f32 %v9509_v2, %v3535_v21  ;;  %v11379_v23 = vld [vmem:[#allocation13_spill] sm:$0xff]  ;;  %v11380_v2 = vld [vmem:[#allocation18_spill] sm:$0xff] }
 0x736   : > { %v11389_v50 = vld [vmem:[#allocation29_spill] sm:$0xff] }
 0x737   : > { %v3601_v56 = vmul.f32 1.442695, %v3581_v45  ;;  %v3607_v47 = vmul.f32 1.442695, %v3584_v22 }
 0x738   : > { %v3530_v17 = vpop.permute.xlu0 %3529 }
 0x739   : > { %v3583_v5 = vsub.f32 %v9511_v6, %v3530_v17  ;;  %2923 = vperm.xlu1 %6914, %v9378_v60   ;;  %2918 = vperm.xlu0 %6913, %v9419_v58   ;;  %7323 = vpow2.f32 %v3601_v56 }
 0x73a   : > { %7325 = vpow2.f32 %v3603_v8  ;;  %v11390_v8 = vld [vmem:[#allocation31_spill] sm:$0xff] }
 0x73b   : > { %v9855_v63 = vpop.eup %7319  ;;  %v3605_v55 = vmul.f32 1.442695, %v3583_v5 }
 0x73c   : > { %v3545_v34 = vpop.permute.xlu0 %3544  ;;  %6413 = vmatprep.mubr.f32.mxu1 %v9855_v63  ;;  %v9858_v35 = vpop.eup %7321 }
 0x73d   : > { %7327 = vpow2.f32 %v3605_v55  ;;  %2933 = vperm.xlu1 %6914, %v9392_v20   ;;  %2928 = vperm.xlu0 %6913, %v9431_v29   ;;  %v3586_v60 = vsub.f32 %v11377_v40, %v3545_v34  ;;  %v11381_v29 = vld [vmem:[#allocation17_spill] sm:$0xff] }
 0x73e   : > { %6414 = vmatmul.mubr.f32.gmra.mrb[34].mxu1 %v9858_v35  ;;  %7329 = vpow2.f32 %v3607_v47 }
 0x73f   : > { %v3611_v6 = vmul.f32 1.442695, %v3586_v60 }
 0x740   : > { %v3540_v58 = vpop.permute.xlu1 %3539 }
 0x741   : > { %v3585_v38 = vsub.f32 %v11378_v36, %v3540_v58  ;;  %2943 = vperm.xlu1 %6914, %v11379_v23   ;;  %2938 = vperm.xlu0 %6913, %v11380_v2  }
 0x743   : > { %v3609_v9 = vmul.f32 1.442695, %v3585_v38  ;;  %v9867_v4 = vpop.eup %7323 }
 0x744   : > { %v3555_v13 = vpop.permute.xlu0 %3554  ;;  %v9869_v20 = vpop.eup %7325  ;;  %6416 = vmatprep.mubr.f32.mxu1 %v9867_v4 }
 0x745   : > { %7331 = vpow2.f32 %v3609_v9  ;;  %2953 = vperm.xlu1 %6914, %v11381_v29   ;;  %v3588_v3 = vsub.f32 %v11382_v30, %v3555_v13  ;;  %2948 = vperm.xlu0 %6913, %v11383_v18  }
 0x746   : > { %7333 = vpow2.f32 %v3611_v6  ;;  %6417 = vmatmul.mubr.f32.gmra.mrb[36].mxu1 %v9869_v20 }
 0x747   : > { %v9876_v14 = vpop.eup %7327  ;;  %v3615_v25 = vmul.f32 1.442695, %v3588_v3 }
 0x748   : > { %v3550_v16 = vpop.permute.xlu1 %3549  ;;  %6419 = vmatprep.mubr.f32.mxu1 %v9876_v14  ;;  %v9879_v32 = vpop.eup %7329 }
 0x749   : > { %v3587_v7 = vsub.f32 %v11384_v51, %v3550_v16  ;;  %2963 = vperm.xlu1 %6914, %v11385_v33   ;;  %2958 = vperm.xlu0 %6913, %v11386_v57  }
 0x74a   : > { %6420 = vmatmul.mubr.f32.gmra.mrb[38].mxu1 %v9879_v32 }
 0x74b   : > { %v3613_v12 = vmul.f32 1.442695, %v3587_v7 }
 0x74c   : > { %v7097_v44 = vpop.permute.xlu1 %7096 }
 0x74d   : > { %7335 = vpow2.f32 %v3613_v12  ;;  %v7099_v41 = vunpack.i.h.bf16 %v7097_v44  ;;  %v7098_v46 = vunpack.i.l.bf16 %v7097_v44 }
 0x74e   : > { %7337 = vpow2.f32 %v3615_v25 }
 0x74f   : > { %v9885_v49 = vpop.eup %7331  ;;  %v6810_v42 = vpack.c.bf16 %v7099_v41, %v7098_v46 }
 0x750   : > { %v9887_v11 = vpop.eup %7333  ;;  %v3565_v24 = vpop.permute.xlu1 %3564  ;;  %6422 = vmatprep.mubr.f32.mxu1 %v9885_v49 }
 0x751   : > { %v3560_v52 = vpop.permute.xlu0 %3559  ;;  %v3590_v31 = vsub.f32 %v11387_v39, %v3565_v24  ;;  %6423 = vmatmul.mubr.f32.gmra.mrb[40].mxu1 %v9887_v11  ;;  %6812 = vmatprep.subr.msk.bf16.mxu1 %vm7732_vm1, %v6810_v42  ;;  %v2642_v39 = vld [vmem:[#allocation4] sm:$0xff] }
 0x752   : > { %v3589_v10 = vsub.f32 %v11388_v61, %v3560_v52  ;;  %6815 = vmatpush3.bf16.xpose.msk.msra.mxu1 %vm7732_vm1, %v6810_v42 }
 0x753   : > { %v3619_v15 = vmul.f32 1.442695, %v3590_v31  ;;  %v11391_v31 = vld [vmem:[#allocation25_spill] sm:$0xff] }
 0x754   : > { %v3617_v26 = vmul.f32 1.442695, %v3589_v10  ;;  %v3575_v19 = vpop.permute.xlu1 %3574  ;;  %v11392_v10 = vld [vmem:[#allocation24_spill] sm:$0xff] }
 0x755   : > { %v3570_v21 = vpop.permute.xlu0 %3569  ;;  %7339 = vpow2.f32 %v3619_v15  ;;  %v3592_v45 = vsub.f32 %v11389_v50, %v3575_v19  ;;  %v2738_v15 = vmul.f32 %v11392_v10, %v2642_v39  ;;  %v2652_v39 = vld [vmem:[#allocation4 + $0x50] sm:$0xff] }
 0x756   : > { %v3591_v22 = vsub.f32 %v11390_v8, %v3570_v21  ;;  %7341 = vpow2.f32 %v3617_v26  ;;  %v2645_v8 = vld [vmem:[#allocation4 + $0x18] sm:$0xff] }
 0x757   : > { %v9899_v56 = vpop.eup %7335  ;;  %v3623_v17 = vmul.f32 1.442695, %v3592_v45  ;;  %v2644_v45 = vld [vmem:[#allocation4 + $0x10] sm:$0xff] }
 0x758   : > { %v3621_v5 = vmul.f32 1.442695, %v3591_v22  ;;  %v7338_v47 = vpop.eup %7337  ;;  %v7107_v55 = vpop.permute.xlu1 %7106  ;;  %6425 = vmatprep.mubr.f32.mxu1 %v9899_v56  ;;  %v11393_v22 = vld [vmem:[#allocation11_spill] sm:$0xff] }
 0x759   : > { %v7102_v34 = vpop.permute.xlu0 %7101  ;;  %7343 = vpow2.f32 %v3623_v17  ;;  %v7109_v40 = vunpack.i.h.bf16 %v7107_v55  ;;  %v7108_v60 = vunpack.i.l.bf16 %v7107_v55  ;;  %6426 = vmatmul.mubr.f32.gmra.mrb[42].mxu1 %v7338_v47  ;;  %v11394_v17 = vld [vmem:[#allocation14_spill] sm:$0xff] }
 0x75a   : > { %v7104_v58 = vunpack.i.h.bf16 %v7102_v34  ;;  %7345 = vpow2.f32 %v3621_v5  ;;  %v7103_v36 = vunpack.i.l.bf16 %v7102_v34  ;;  %v2741_v5 = vmul.f32 %v11394_v17, %v2645_v8 }
 0x75b   : > { %v6822_v38 = vpack.c.bf16 %v7109_v40, %v7108_v60  ;;  %v2646_v60 = vld [vmem:[#allocation4 + $0x20] sm:$0xff] }
 0x75c   : > { %v6816_v23 = vpack.c.bf16 %v7104_v58, %v7103_v36  ;;  %v4335_v2 = vpop.permute.xlu1 %4334  ;;  %v2647_v58 = vld [vmem:[#allocation4 + $0x28] sm:$0xff]  ;;  %v11395_v36 = vld [vmem:[#allocation23_spill] sm:$0xff] }
 0x75d   : > { %v7112_v6 = vpop.permute.xlu0 %7111 }
 0x75e   : > { %6818 = vmatprep.subr.msk.bf16.mxu1 %vm7732_vm1, %v6816_v23  ;;  %v7114_v29 = vunpack.i.h.bf16 %v7112_v6  ;;  %v7113_v30 = vunpack.i.l.bf16 %v7112_v6 }
 0x75f   : > { %v7340_v9 = vpop.eup %7339  ;;  %6821 = vmatpush3.bf16.xpose.msk.msra.mxu1 %vm7732_vm1, %v6816_v23  ;;  %v11396_v23 = vld [vmem:[#allocation9_spill] sm:$0xff] }
 0x760   : > { %v7342_v13 = vpop.eup %7341  ;;  %v4339_v3 = vpop.permute.xlu1 %4338  ;;  %6824 = vmatprep.subr.msk.bf16.mxu1 %vm7732_vm1, %v6822_v38  ;;  %v6828_v7 = vpack.c.bf16 %v7114_v29, %v7113_v30  ;;  %v2648_v30 = vld [vmem:[#allocation4 + $0x30] sm:$0xff] }
 0x761   : > { %v4337_v18 = vpop.permute.xlu0 %4336  ;;  %6428 = vmatprep.mubr.f32.mxu1 %v7342_v13 }
 0x762   : > { %6429 = vmatmul.mubr.f32.gmra.mrb[44].mxu1 %v7340_v9 }
 0x763   : > { %v7344_v16 = vpop.eup %7343 }
 0x764   : > { %v7346_v51 = vpop.eup %7345  ;;  %v4343_v33 = vpop.permute.xlu1 %4342 }
 0x765   : > { %v4341_v25 = vpop.permute.xlu0 %4340  ;;  %6431 = vmatprep.mubr.f32.mxu1 %v7346_v51 }
 0x766   : > { %6432 = vmatmul.mubr.f32.gmra.mrb[46].mxu1 %v7344_v16 }
 0x767   : > { %6827 = vmatpush3.bf16.xpose.msk.msra.mxu1 %vm7732_vm1, %v6822_v38  ;;  %6466 = vmatprep.mubr.msk.f32.mxu1 %vm743_vm0, %v4335_v2  ;;  %v2742_v38 = vmul.f32 %v11395_v36, %v2646_v60  ;;  %v2743_v2 = vmul.f32 %v11396_v23, %v2647_v58 }
 0x768   : > { %v4347_v57 = vpop.permute.xlu1 %4346  ;;  %6830 = vmatprep.subr.msk.bf16.mxu1 %vm7732_vm1, %v6828_v7  ;;  %3641 = vadd.xlane.f32.xlu0 %v9779_v37 }
 0x769   : > { %v4345_v12 = vpop.permute.xlu0 %4344 }
 0x76c   : > { %v4351_v44 = vpop.permute.xlu1 %4350  ;;  %3647 = vadd.xlane.f32.xlu0 %v9858_v35 }
 0x76d   : > { %v4349_v41 = vpop.permute.xlu0 %4348  ;;  %3643 = vadd.xlane.f32.xlu1 %v9784_v28 }
 0x76f   : > { %6833 = vmatpush3.bf16.xpose.msk.msra.mxu1 %vm7732_vm1, %v6828_v7 }
 0x770   : > { %v4355_v46 = vpop.permute.xlu1 %4354  ;;  %3645 = vadd.xlane.f32.xlu0 %v9855_v63 }
 0x771   : > { %v4353_v42 = vpop.permute.xlu0 %4352  ;;  %3651 = vadd.xlane.f32.xlu1 %v9869_v20 }
 0x774   : > { %v4359_v24 = vpop.permute.xlu1 %4358  ;;  %3649 = vadd.xlane.f32.xlu0 %v9867_v4 }
 0x775   : > { %v4357_v52 = vpop.permute.xlu0 %4356  ;;  %3655 = vadd.xlane.f32.xlu1 %v9879_v32 }
 0x776   : > { %6467 = vmatmul.mubr.msk.f32.vlgmr.msra.gmra.mrb[48].mxu1 %vm743_vm0, %v4337_v18  ;;  %v11397_v18 = vld [vmem:[#allocation10_spill] sm:$0xff] }
 0x777   : > { %6469 = vmatprep.mubr.msk.f32.mxu1 %vm743_vm0, %v4339_v3  ;;  %v2649_v3 = vld [vmem:[#allocation4 + $0x38] sm:$0xff] }
 0x778   : > { %v4363_v37 = vpop.permute.xlu1 %4362  ;;  %3653 = vadd.xlane.f32.xlu0 %v9876_v14 }
 0x779   : > { %v4361_v28 = vpop.permute.xlu0 %4360  ;;  %3659 = vadd.xlane.f32.xlu1 %v9887_v11  ;;  %v2643_v11 = vld [vmem:[#allocation4 + $0x8] sm:$0xff] }
 0x77a   : > { %6470 = vmatmul.mubr.msk.f32.gmra.mrb[50].mxu1 %vm743_vm0, %v4341_v25  ;;  %v2739_v61 = vmul.f32 %v11391_v31, %v2643_v11  ;;  %v2653_v11 = vld [vmem:[#allocation4 + $0x58] sm:$0xff] }
 0x77b   : > { %6472 = vmatprep.mubr.msk.f32.mxu1 %vm743_vm0, %v4343_v33 }
 0x77c   : > { %v9928_v48 = vpop.permute.xlu1 %2705  ;;  %3657 = vadd.xlane.f32.xlu0 %v9885_v49 }
 0x77d   : > { %v4365_v63 = vpop.permute.xlu0 %4364  ;;  %3663 = vadd.xlane.f32.xlu1 %v7338_v47 }
 0x77e   : > { %6473 = vmatmul.mubr.msk.f32.gmra.mrb[52].mxu1 %vm743_vm0, %v4345_v12 }
 0x77f   : > { %6475 = vmatprep.mubr.msk.f32.mxu1 %vm743_vm0, %v4347_v57 }
 0x780   : > { %v9933_v35 = vpop.permute.xlu1 %2715  ;;  %3661 = vadd.xlane.f32.xlu0 %v9899_v56  ;;  %v2740_v56 = vmul.f32 %v11393_v22, %v2644_v45  ;;  %v2654_v45 = vld [vmem:[#allocation4 + $0x60] sm:$0xff] }
 0x781   : > { %v9935_v4 = vpop.permute.xlu0 %2710  ;;  %3667 = vadd.xlane.f32.xlu1 %v7340_v9  ;;  %v2749_v31 = vmul.f32 %v9933_v35, %v2653_v11 }
 0x782   : > { %6476 = vmatmul.mubr.msk.f32.gmra.mrb[54].mxu1 %vm743_vm0, %v4349_v41  ;;  %v2651_v41 = vld [vmem:[#allocation4 + $0x48] sm:$0xff] }
 0x783   : > { %6478 = vmatprep.mubr.msk.f32.mxu1 %vm743_vm0, %v4351_v44  ;;  %v2650_v44 = vld [vmem:[#allocation4 + $0x40] sm:$0xff] }
 0x784   : > { %v9940_v20 = vpop.permute.xlu1 %2725  ;;  %3665 = vadd.xlane.f32.xlu0 %v7342_v13 }
 0x785   : > { %v9942_v14 = vpop.permute.xlu0 %2720  ;;  %3671 = vadd.xlane.f32.xlu1 %v7344_v16  ;;  %v2744_v16 = vmul.f32 %v11397_v18, %v2648_v30 }
 0x786   : > { %6479 = vmatmul.mubr.msk.f32.gmra.mrb[56].mxu1 %vm743_vm0, %v4353_v42  ;;  %v2750_v35 = vmul.f32 %v9942_v14, %v2654_v45 }
 0x787   : > { %6481 = vmatprep.mubr.msk.f32.mxu1 %vm743_vm0, %v4355_v46  ;;  %v11399_v46 = vld [vmem:[#allocation8_spill] sm:$0xff] }
 0x788   : > { %v9946_v32 = vpop.permute.xlu1 %2735  ;;  %3669 = vadd.xlane.f32.xlu0 %v7346_v51  ;;  %v11398_v51 = vld [vmem:[#allocation16_spill] sm:$0xff]  ;;  %v2746_v42 = vmul.f32 %v11399_v46, %v2650_v44 }
 0x789   : > { %v9948_v49 = vpop.permute.xlu0 %2730  ;;  %v2745_v7 = vmul.f32 %v11398_v51, %v2649_v3 }
 0x78a   : > { %6482 = vmatmul.mubr.msk.f32.gmra.mrb[58].mxu1 %vm743_vm0, %v4357_v52 }
 0x78b   : > { %6484 = vmatprep.mubr.msk.f32.mxu1 %vm743_vm0, %v4359_v24  ;;  %v2747_v24 = vmul.f32 %v9928_v48, %v2651_v41 }
 0x78c   : > { %v2773_v26 = vpop.permute.xlu1 %2772 }
 0x78d   : > { %v2771_v19 = vpop.permute.xlu0 %2770  ;;  %v9954_v21 = vadd.f32 %v2773_v26, %v2739_v61  ;;  %v2748_v61 = vmul.f32 %v9935_v4, %v2652_v39 }
 0x78e   : > { %v9956_v50 = vadd.f32 %v2771_v19, %v2738_v15  ;;  %6485 = vmatmul.mubr.msk.f32.gmra.mrb[60].mxu1 %vm743_vm0, %v4361_v28  ;;  %v2655_v19 = vld [vmem:[#allocation4 + $0x68] sm:$0xff] }
 0x78f   : > { %2868 = vst.msk [vmem:[#allocation4 + $0x8] sm:$0xff] %vm2866_vm3, %v9954_v21  ;;  %6487 = vmatprep.mubr.msk.f32.mxu1 %vm743_vm0, %v4363_v37  ;;  %v2751_v8 = vmul.f32 %v9940_v20, %v2655_v19 }
 0x790   : > { %2867 = vst.msk [vmem:[#allocation4] sm:$0xff] %vm2866_vm3, %v9956_v50  ;;  %v2777_v47 = vpop.permute.xlu1 %2776 }
 0x791   : > { %v2775_v55 = vpop.permute.xlu0 %2774  ;;  %v9966_v34 = vadd.f32 %v2777_v47, %v2741_v5  ;;  %v2657_v5 = vld [vmem:[#allocation4 + $0x78] sm:$0xff]  ;;  %v2656_v47 = vld [vmem:[#allocation4 + $0x70] sm:$0xff] }
 0x792   : > { %v9968_v40 = vadd.f32 %v2775_v55, %v2740_v56  ;;  %6488 = vmatmul.mubr.msk.f32.gmra.mrb[62].mxu1 %vm743_vm0, %v4365_v63  ;;  %v2753_v55 = vmul.f32 %v9946_v32, %v2657_v5  ;;  %v2752_v20 = vmul.f32 %v9948_v49, %v2656_v47 }
 0x793   : > { %2870 = vst.msk [vmem:[#allocation4 + $0x18] sm:$0xff] %vm2866_vm3, %v9966_v34 }
 0x794   : > { %2869 = vst.msk [vmem:[#allocation4 + $0x10] sm:$0xff] %vm2866_vm3, %v9968_v40  ;;  %v2781_v6 = vpop.permute.xlu1 %2780 }
 0x795   : > { %v2779_v9 = vpop.permute.xlu0 %2778  ;;  %v9977_v13 = vadd.f32 %v2781_v6, %v2743_v2 }
 0x796   : > { %v9979_v29 = vadd.f32 %v2779_v9, %v2742_v38 }
 0x797   : > { %2872 = vst.msk [vmem:[#allocation4 + $0x28] sm:$0xff] %vm2866_vm3, %v9977_v13 }
 0x798   : > { %2871 = vst.msk [vmem:[#allocation4 + $0x20] sm:$0xff] %vm2866_vm3, %v9979_v29  ;;  %v2785_v33 = vpop.permute.xlu1 %2784 }
 0x799   : > { %v2783_v25 = vpop.permute.xlu0 %2782  ;;  %v9987_v57 = vadd.f32 %v2785_v33, %v2745_v7 }
 0x79a   : > { %v9989_v12 = vadd.f32 %v2783_v25, %v2744_v16 }
 0x79b   : > { %2874 = vst.msk [vmem:[#allocation4 + $0x38] sm:$0xff] %vm2866_vm3, %v9987_v57 }
 0x79c   : > { %2873 = vst.msk [vmem:[#allocation4 + $0x30] sm:$0xff] %vm2866_vm3, %v9989_v12  ;;  %v2789_v52 = vpop.permute.xlu1 %2788 }
 0x79d   : > { %v2787_v37 = vpop.permute.xlu0 %2786  ;;  %v9997_v28 = vadd.f32 %v2789_v52, %v2747_v24 }
 0x79e   : > { %v9999_v63 = vadd.f32 %v2787_v37, %v2746_v42 }
 0x79f   : > { %2876 = vst.msk [vmem:[#allocation4 + $0x48] sm:$0xff] %vm2866_vm3, %v9997_v28 }
 0x7a0   : > { %2875 = vst.msk [vmem:[#allocation4 + $0x40] sm:$0xff] %vm2866_vm3, %v9999_v63  ;;  %v2793_v48 = vpop.permute.xlu1 %2792 }
 0x7a1   : > { %v2791_v10 = vpop.permute.xlu0 %2790  ;;  %v10007_v15 = vadd.f32 %v2793_v48, %v2749_v31 }
 0x7a2   : > { %v10009_v26 = vadd.f32 %v2791_v10, %v2748_v61 }
 0x7a3   : > { %2878 = vst.msk [vmem:[#allocation4 + $0x58] sm:$0xff] %vm2866_vm3, %v10007_v15 }
 0x7a4   : > { %2877 = vst.msk [vmem:[#allocation4 + $0x50] sm:$0xff] %vm2866_vm3, %v10009_v26  ;;  %v2797_v4 = vpop.permute.xlu1 %2796 }
 0x7a5   : > { %v2795_v22 = vpop.permute.xlu0 %2794  ;;  %v10017_v56 = vadd.f32 %v2797_v4, %v2751_v8 }
 0x7a6   : > { %v10019_v17 = vadd.f32 %v2795_v22, %v2750_v35 }
 0x7a7   : > { %2880 = vst.msk [vmem:[#allocation4 + $0x68] sm:$0xff] %vm2866_vm3, %v10017_v56 }
 0x7a8   : > { %2879 = vst.msk [vmem:[#allocation4 + $0x60] sm:$0xff] %vm2866_vm3, %v10019_v17  ;;  %v2801_v14 = vpop.permute.xlu1 %2800 }
 0x7a9   : > { %v2799_v60 = vpop.permute.xlu0 %2798  ;;  %v10027_v58 = vadd.f32 %v2801_v14, %v2753_v55 }
 0x7aa   : > { %v10029_v36 = vadd.f32 %v2799_v60, %v2752_v20 }
 0x7ab   : > { %2882 = vst.msk [vmem:[#allocation4 + $0x78] sm:$0xff] %vm2866_vm3, %v10027_v58 }
 0x7ac   : > { %2881 = vst.msk [vmem:[#allocation4 + $0x70] sm:$0xff] %vm2866_vm3, %v10029_v36  ;;  %v2894_v32 = vpop.permute.xlu1 %2893 }
 0x7ad   : > { %v2889_v49 = vpop.permute.xlu0 %2888  ;;  %7347 = vrcp.f32 %v2894_v32  ;;  %v11403_v32 = vld [vmem:[#allocation34_spill] sm:$0xff] }
 0x7ae   : > { %7349 = vrcp.f32 %v2889_v49  ;;  %v11404_v49 = vsub.f32 %v11403_v32, %v9570_v62 }
 0x7b0   : > { %v2904_v38 = vpop.permute.xlu1 %2903 }
 0x7b1   : > { %v2899_v23 = vpop.permute.xlu0 %2898  ;;  %7351 = vrcp.f32 %v2904_v38  ;;  %v3467_v38 = vmul.f32 1.442695, %v11404_v49 }
 0x7b2   : > { %7353 = vrcp.f32 %v2899_v23  ;;  %v11406_v23 = vsub.f32 %v9619_v54, %v9634_v27  ;;  %v11413_v54 = vld [vmem:[#allocation41_spill] sm:$0xff]  ;;  %v11414_v27 = vld [vmem:[#allocation42_spill] sm:$0xff] }
 0x7b4   : > { %v2914_v2 = vpop.permute.xlu1 %2913 }
 0x7b5   : > { %v2909_v6 = vpop.permute.xlu0 %2908  ;;  %7355 = vrcp.f32 %v2914_v2  ;;  %v3469_v2 = vmul.f32 1.442695, %v11406_v23 }
 0x7b6   : > { %7357 = vrcp.f32 %v2909_v6  ;;  %v11407_v6 = vsub.f32 %v9636_v59, %v9644_v1  ;;  %v11416_v1 = vld [vmem:[#allocation43_spill] sm:$0xff]  ;;  %v11417_v59 = vld [vmem:[#allocation44_spill] sm:$0xff] }
 0x7b7   : > { %v7348_v9 = vpop.eup %7347 }
 0x7b8   : > { %v7350_v30 = vpop.eup %7349  ;;  %v2969_v3 = vmul.f32 %v7348_v9, %v9954_v21  ;;  %v2924_v18 = vpop.permute.xlu1 %2923  ;;  %v3475_v9 = vmul.f32 1.442695, %v11407_v6  ;;  %v11434_v6 = vld [vmem:[#allocation53_spill] sm:$0xff] }
 0x7b9   : > { %v2919_v16 = vpop.permute.xlu0 %2918  ;;  %v2967_v51 = vmul.f32 %v7350_v30, %v9956_v50  ;;  %7359 = vrcp.f32 %v2924_v18  ;;  %v11408_v30 = vld [vmem:[#allocation33_spill] sm:$0xff]  ;;  %v11410_v18 = vld [vmem:[#allocation39_spill] sm:$0xff] }
 0x7ba   : > { %2999 = vst.msk [vmem:[%s8875_s4 + $0x8] sm:$0xff] %vm2866_vm3, %v2969_v3  ;;  %7361 = vrcp.f32 %v2919_v16  ;;  %v11409_v62 = vsub.f32 %v9594_v0, %v11408_v30  ;;  %v11411_v16 = vld [vmem:[#allocation40_spill] sm:$0xff] }
 0x7bb   : > { %v7352_v7 = vpop.eup %7351  ;;  %2998 = vst.msk [vmem:[%s8875_s4] sm:$0xff] %vm2866_vm3, %v2967_v51 }
 0x7bc   : > { %v7354_v33 = vpop.eup %7353  ;;  %v2973_v25 = vmul.f32 %v7352_v7, %v9966_v34  ;;  %v2934_v44 = vpop.permute.xlu1 %2933  ;;  %v3479_v3 = vmul.f32 1.442695, %v11409_v62  ;;  %v3385_v7 = vld [vmem:[#allocation3 + $0x100] sm:$0xff] }
 0x7bd   : > { %v2929_v41 = vpop.permute.xlu0 %2928  ;;  %v2971_v21 = vmul.f32 %v7354_v33, %v9968_v40  ;;  %7363 = vrcp.f32 %v2934_v44  ;;  %v11415_v33 = vsub.f32 %v11413_v54, %v11414_v27  ;;  %v11418_v44 = vsub.f32 %v11416_v1, %v11417_v59  ;;  %v3391_v1 = vld [vmem:[#allocation3 + $0x130] sm:$0xff]  ;;  %v3394_v59 = vld [vmem:[#allocation3 + $0x148] sm:$0xff] }
 0x7be   : > { %3001 = vst.msk [vmem:[%s8875_s4 + $0x18] sm:$0xff] %vm2866_vm3, %v2973_v25  ;;  %7365 = vrcp.f32 %v2929_v41 }
 0x7bf   : > { %v7356_v50 = vpop.eup %7355  ;;  %3000 = vst.msk [vmem:[%s8875_s4 + $0x10] sm:$0xff] %vm2866_vm3, %v2971_v21  ;;  %v3477_v25 = vmul.f32 1.442695, %v11415_v33  ;;  %v3483_v41 = vmul.f32 1.442695, %v11418_v44 }
 0x7c0   : > { %v7358_v46 = vpop.eup %7357  ;;  %v2977_v42 = vmul.f32 %v7356_v50, %v9977_v13  ;;  %v2944_v24 = vpop.permute.xlu1 %2943 }
 0x7c1   : > { %v2939_v52 = vpop.permute.xlu0 %2938  ;;  %v2975_v34 = vmul.f32 %v7358_v46, %v9979_v29  ;;  %7367 = vrcp.f32 %v2944_v24  ;;  %v3386_v24 = vld [vmem:[#allocation3 + $0x108] sm:$0xff] }
 0x7c2   : > { %3003 = vst.msk [vmem:[%s8875_s4 + $0x28] sm:$0xff] %vm2866_vm3, %v2977_v42  ;;  %7369 = vrcp.f32 %v2939_v52  ;;  %v3388_v42 = vld [vmem:[#allocation3 + $0x118] sm:$0xff]  ;;  %v11419_v52 = vld [vmem:[#allocation45_spill] sm:$0xff] }
 0x7c3   : > { %v7360_v40 = vpop.eup %7359  ;;  %3002 = vst.msk [vmem:[%s8875_s4 + $0x20] sm:$0xff] %vm2866_vm3, %v2975_v34  ;;  %v11420_v34 = vld [vmem:[#allocation46_spill] sm:$0xff] }
 0x7c4   : > { %v7362_v37 = vpop.eup %7361  ;;  %v2981_v11 = vmul.f32 %v7360_v40, %v9987_v57  ;;  %v2954_v39 = vpop.permute.xlu1 %2953  ;;  %v11421_v40 = vsub.f32 %v11419_v52, %v11420_v34 }
 0x7c5   : > { %v2979_v31 = vmul.f32 %v7362_v37, %v9989_v12  ;;  %7371 = vrcp.f32 %v2954_v39  ;;  %v2949_v13 = vpop.permute.xlu0 %2948  ;;  %v11422_v39 = vld [vmem:[#allocation47_spill] sm:$0xff] }
 0x7c6   : > { %3005 = vst.msk [vmem:[%s8875_s4 + $0x38] sm:$0xff] %vm2866_vm3, %v2981_v11  ;;  %7373 = vrcp.f32 %v2949_v13  ;;  %v3481_v37 = vmul.f32 1.442695, %v11421_v40 }
 0x7c7   : > { %v7364_v29 = vpop.eup %7363  ;;  %3004 = vst.msk [vmem:[%s8875_s4 + $0x30] sm:$0xff] %vm2866_vm3, %v2979_v31  ;;  %v11423_v31 = vld [vmem:[#allocation48_spill] sm:$0xff] }
 0x7c8   : > { %v7366_v61 = vpop.eup %7365  ;;  %v2985_v48 = vmul.f32 %v7364_v29, %v9997_v28  ;;  %v2964_v10 = vpop.permute.xlu1 %2963  ;;  %v11424_v13 = vsub.f32 %v11422_v39, %v11423_v31 }
 0x7c9   : > { %v2983_v57 = vmul.f32 %v7366_v61, %v9999_v63  ;;  %7375 = vrcp.f32 %v2964_v10  ;;  %v2959_v12 = vpop.permute.xlu0 %2958 }
 0x7ca   : > { %3007 = vst.msk [vmem:[%s8875_s4 + $0x48] sm:$0xff] %vm2866_vm3, %v2985_v48  ;;  %7377 = vrcp.f32 %v2959_v12  ;;  %v3487_v29 = vmul.f32 1.442695, %v11424_v13  ;;  %v3393_v13 = vld [vmem:[#allocation3 + $0x140] sm:$0xff] }
 0x7cb   : > { %v7368_v19 = vpop.eup %7367  ;;  %3006 = vst.msk [vmem:[%s8875_s4 + $0x40] sm:$0xff] %vm2866_vm3, %v2983_v57 }
 0x7cc   : > { %v7370_v45 = vpop.eup %7369  ;;  %v2989_v8 = vmul.f32 %v7368_v19, %v10007_v15 }
 0x7cd   : > { %v2987_v35 = vmul.f32 %v7370_v45, %v10009_v26  ;;  %v3387_v45 = vld [vmem:[#allocation3 + $0x110] sm:$0xff] }
 0x7ce   : > { %3009 = vst.msk [vmem:[%s8875_s4 + $0x58] sm:$0xff] %vm2866_vm3, %v2989_v8  ;;  %v3390_v8 = vld [vmem:[#allocation3 + $0x128] sm:$0xff] }
 0x7cf   : > { %v7372_v28 = vpop.eup %7371  ;;  %3008 = vst.msk [vmem:[%s8875_s4 + $0x50] sm:$0xff] %vm2866_vm3, %v2987_v35  ;;  %v11425_v35 = vld [vmem:[#allocation49_spill] sm:$0xff] }
 0x7d0   : > { %v7374_v63 = vpop.eup %7373  ;;  %v2993_v4 = vmul.f32 %v7372_v28, %v10017_v56  ;;  %v11400_v56 = vld [vmem:[#allocation30_spill] sm:$0xff] }
 0x7d1   : > { %v2991_v22 = vmul.f32 %v7374_v63, %v10019_v17  ;;  %v11401_v17 = vld [vmem:[#allocation32_spill] sm:$0xff]  ;;  %v11426_v28 = vld [vmem:[#allocation50_spill] sm:$0xff] }
 0x7d2   : > { %3011 = vst.msk [vmem:[%s8875_s4 + $0x68] sm:$0xff] %vm2866_vm3, %v2993_v4  ;;  %v11402_v14 = vsub.f32 %v11400_v56, %v11401_v17  ;;  %v11427_v63 = vsub.f32 %v11425_v35, %v11426_v28 }
 0x7d3   : > { %v7376_v5 = vpop.eup %7375  ;;  %3010 = vst.msk [vmem:[%s8875_s4 + $0x60] sm:$0xff] %vm2866_vm3, %v2991_v22 }
 0x7d4   : > { %v7378_v47 = vpop.eup %7377  ;;  %v2997_v15 = vmul.f32 %v7376_v5, %v10027_v58  ;;  %v3465_v60 = vmul.f32 1.442695, %v11402_v14  ;;  %v11405_v58 = vsub.f32 %v9605_v53, %v9617_v43  ;;  %v11412_v53 = vsub.f32 %v11410_v18, %v11411_v16  ;;  %v11437_v18 = vld [vmem:[#allocation35_spill] sm:$0xff]  ;;  %v11438_v16 = vld [vmem:[#allocation36_spill] sm:$0xff] }
 0x7d5   : > { %v2995_v26 = vmul.f32 %v7378_v47, %v10029_v36  ;;  %v10079_v55 = vpop.f32.mrb[32].mxu1  ;;  %v3485_v4 = vmul.f32 1.442695, %v11427_v63  ;;  %v11430_v47 = vld [vmem:[#allocation51_spill] sm:$0xff]  ;;  %v3395_v63 = vld [vmem:[#allocation3 + $0x150] sm:$0xff] }
 0x7d6   : > { %3013 = vst.msk [vmem:[%s8875_s4 + $0x78] sm:$0xff] %vm2866_vm3, %v2997_v15  ;;  %v10083_v20 = vpop.f32.mrb[33].mxu1  ;;  %7379 = vpow2.f32 %v3465_v60  ;;  %v3471_v36 = vmul.f32 1.442695, %v11405_v58  ;;  %v3473_v43 = vmul.f32 1.442695, %v11412_v53  ;;  %v11439_v53 = vsub.f32 %v11437_v18, %v11438_v16 }
 0x7d7   : > { %3012 = vst.msk [vmem:[%s8875_s4 + $0x70] sm:$0xff] %vm2866_vm3, %v2995_v26  ;;  %7381 = vpow2.f32 %v3467_v38  ;;  %v11431_v15 = vld [vmem:[#allocation52_spill] sm:$0xff] }
 0x7d8   : > { %7383 = vpow2.f32 %v3471_v36  ;;  %v11432_v26 = vsub.f32 %v11430_v47, %v11431_v15  ;;  %v3389_v58 = vld [vmem:[#allocation3 + $0x120] sm:$0xff]  ;;  %v3392_v36 = vld [vmem:[#allocation3 + $0x138] sm:$0xff] }
 0x7d9   : > { %7385 = vpow2.f32 %v3469_v2 }
 0x7da   : > { %7387 = vpow2.f32 %v3475_v9  ;;  %v3491_v56 = vmul.f32 1.442695, %v11432_v26  ;;  %v11435_v9 = vld [vmem:[#allocation54_spill] sm:$0xff] }
 0x7db   : > { %7389 = vpow2.f32 %v3479_v3  ;;  %v11436_v30 = vsub.f32 %v11434_v6, %v11435_v9  ;;  %v3400_v9 = vld [vmem:[#allocation3 + $0x178] sm:$0xff] }
 0x7dc   : > { %7391 = vpow2.f32 %v3473_v43  ;;  %v3495_v43 = vmul.f32 1.442695, %v11439_v53 }
 0x7dd   : > { %7393 = vpow2.f32 %v3477_v25  ;;  %v3489_v62 = vmul.f32 1.442695, %v11436_v30 }
 0x7de   : > { %7395 = vpow2.f32 %v3483_v41 }
 0x7df   : > { %7397 = vpow2.f32 %v3481_v37 }
 0x7e0   : > { %v10108_v51 = vpop.eup %7379  ;;  %7399 = vpow2.f32 %v3487_v29  ;;  %v3396_v29 = vld [vmem:[#allocation3 + $0x158] sm:$0xff] }
 0x7e1   : > { %v10116_v0 = vpop.eup %7381  ;;  %v3625_v21 = vmul.f32 %v10108_v51, %v3385_v7  ;;  %7401 = vpow2.f32 %v3485_v4  ;;  %v3398_v4 = vld [vmem:[#allocation3 + $0x168] sm:$0xff] }
 0x7e2   : > { %v10119_v50 = vpop.eup %7383  ;;  %v3626_v10 = vmul.f32 %v10116_v0, %v3386_v24  ;;  %7403 = vpow2.f32 %v3491_v56 }
 0x7e3   : > { %v10129_v61 = vpop.eup %7385  ;;  %v3628_v48 = vmul.f32 %v10119_v50, %v3388_v42  ;;  %7405 = vpow2.f32 %v3489_v62 }
 0x7e4   : > { %v10135_v57 = vpop.eup %7387  ;;  %v3627_v14 = vmul.f32 %v10129_v61, %v3387_v45  ;;  %7407 = vpow2.f32 %v3495_v43 }
 0x7e5   : > { %v10147_v17 = vpop.eup %7389  ;;  %v3630_v60 = vmul.f32 %v10135_v57, %v3390_v8 }
 0x7e6   : > { %v10155_v32 = vpop.eup %7391  ;;  %v3632_v54 = vmul.f32 %v10147_v17, %v3392_v36 }
 0x7e7   : > { %v10164_v3 = vpop.eup %7393  ;;  %v3629_v7 = vmul.f32 %v10155_v32, %v3389_v58 }
 0x7e8   : > { %v10175_v27 = vpop.eup %7395  ;;  %v3631_v34 = vmul.f32 %v10164_v3, %v3391_v1 }
 0x7e9   : > { %v10184_v52 = vpop.eup %7397  ;;  %v3634_v40 = vmul.f32 %v10175_v27, %v3394_v59 }
 0x7ea   : > { %v10192_v37 = vpop.eup %7399 }
 0x7eb   : > { %v3636_v45 = vmul.f32 %v10192_v37, %v3396_v29 }
 0x7f5   : > { %v3642_v46 = vpop.xlane.xlu0 %3641 }
 0x7f6   : > { %v10124_v11 = vadd.f32 %v3642_v46, %v3625_v21  ;;  %v11441_v21 = vld [vmem:[#allocation37_spill] sm:$0xff]  ;;  %v11442_v46 = vld [vmem:[#allocation38_spill] sm:$0xff] }
 0x7f7   : > { %v11443_v42 = vsub.f32 %v11441_v21, %v11442_v46 }
 0x7f8   : > { %4106 = vst.msk [vmem:[#allocation3 + $0x100] sm:$0xff] %vm550_vm2, %v10124_v11 }
 0x7f9   : > { %v3648_v12 = vpop.xlane.xlu0 %3647  ;;  %v3493_v24 = vmul.f32 1.442695, %v11443_v42 }
 0x7fa   : > { %v3644_v19 = vpop.xlane.xlu1 %3643  ;;  %v10140_v22 = vadd.f32 %v3648_v12, %v3628_v48  ;;  %v10198_v12 = vpop.eup %7401 }
 0x7fb   : > { %v10142_v5 = vadd.f32 %v3644_v19, %v3626_v10  ;;  %7409 = vpow2.f32 %v3493_v24  ;;  %v3633_v19 = vmul.f32 %v10184_v52, %v3393_v13  ;;  %v10206_v8 = vpop.eup %7403  ;;  %v3635_v26 = vmul.f32 %v10198_v12, %v3395_v63 }
 0x7fc   : > { %11428 = vst [vmem:[#allocation19_spill] sm:$0xff] %v10140_v22  ;;  %4109 = vst.msk [vmem:[#allocation3 + $0x118] sm:$0xff] %vm550_vm2, %v10140_v22  ;;  %v3638_v56 = vmul.f32 %v10206_v8, %v3398_v4 }
 0x7fd   : > { %11429 = vst [vmem:[#allocation21_spill] sm:$0xff] %v10142_v5  ;;  %4107 = vst.msk [vmem:[#allocation3 + $0x108] sm:$0xff] %vm550_vm2, %v10142_v5  ;;  %v3646_v49 = vpop.xlane.xlu0 %3645  ;;  %v4317_v5 = vld [vmem:[%s8239_s26 + $0x78] sm:$0xff] }
 0x7fe   : > { %v3652_v38 = vpop.xlane.xlu1 %3651  ;;  %v10157_v23 = vadd.f32 %v3646_v49, %v3627_v14  ;;  %v10218_v14 = vpop.eup %7405 }
 0x7ff   : > { %v10159_v2 = vadd.f32 %v3652_v38, %v3630_v60  ;;  %v3397_v38 = vld [vmem:[#allocation3 + $0x160] sm:$0xff]  ;;  %v10220_v58 = vpop.eup %7407 }
 0x800   : > { %4108 = vst.msk [vmem:[#allocation3 + $0x110] sm:$0xff] %vm550_vm2, %v10157_v23  ;;  %v3637_v62 = vmul.f32 %v10218_v14, %v3397_v38  ;;  %v3640_v43 = vmul.f32 %v10220_v58, %v3400_v9 }
 0x801   : > { %11433 = vst [vmem:[#allocation13_spill] sm:$0xff] %v10159_v2  ;;  %4111 = vst.msk [vmem:[#allocation3 + $0x128] sm:$0xff] %vm550_vm2, %v10159_v2  ;;  %v3650_v33 = vpop.xlane.xlu0 %3649  ;;  %v4309_v2 = vld [vmem:[%s8239_s26 + $0x38] sm:$0xff] }
 0x802   : > { %v3656_v25 = vpop.xlane.xlu1 %3655  ;;  %v10177_v44 = vadd.f32 %v3650_v33, %v3629_v7  ;;  %v3399_v7 = vld [vmem:[#allocation3 + $0x170] sm:$0xff] }
 0x803   : > { %v10179_v41 = vadd.f32 %v3656_v25, %v3632_v54 }
 0x804   : > { %4110 = vst.msk [vmem:[#allocation3 + $0x120] sm:$0xff] %vm550_vm2, %v10177_v44 }
 0x805   : > { %11440 = vst [vmem:[#allocation18_spill] sm:$0xff] %v10179_v41  ;;  %4113 = vst.msk [vmem:[#allocation3 + $0x138] sm:$0xff] %vm550_vm2, %v10179_v41  ;;  %v3654_v39 = vpop.xlane.xlu0 %3653  ;;  %v10233_v18 = vpop.eup %7409  ;;  %v4305_v41 = vld [vmem:[%s8239_s26 + $0x18] sm:$0xff] }
 0x806   : > { %v3660_v31 = vpop.xlane.xlu1 %3659  ;;  %v10194_v48 = vadd.f32 %v3654_v39, %v3631_v34  ;;  %v3639_v1 = vmul.f32 %v10233_v18, %v3399_v7 }
 0x807   : > { %v10196_v10 = vadd.f32 %v3660_v31, %v3634_v40 }
 0x808   : > { %4112 = vst.msk [vmem:[#allocation3 + $0x130] sm:$0xff] %vm550_vm2, %v10194_v48 }
 0x809   : > { %11444 = vst [vmem:[#allocation17_spill] sm:$0xff] %v10196_v10  ;;  %4115 = vst.msk [vmem:[#allocation3 + $0x148] sm:$0xff] %vm550_vm2, %v10196_v10  ;;  %v3658_v35 = vpop.xlane.xlu0 %3657  ;;  %v4304_v10 = vld [vmem:[%s8239_s26 + $0x10] sm:$0xff] }
 0x80a   : > { %v3664_v28 = vpop.xlane.xlu1 %3663  ;;  %v10208_v47 = vadd.f32 %v3658_v35, %v3633_v19 }
 0x80b   : > { %v10210_v15 = vadd.f32 %v3664_v28, %v3636_v45 }
 0x80c   : > { %4114 = vst.msk [vmem:[#allocation3 + $0x140] sm:$0xff] %vm550_vm2, %v10208_v47 }
 0x80d   : > { %11445 = vst [vmem:[#allocation20_spill] sm:$0xff] %v10210_v15  ;;  %4117 = vst.msk [vmem:[#allocation3 + $0x158] sm:$0xff] %vm550_vm2, %v10210_v15  ;;  %v3662_v60 = vpop.xlane.xlu0 %3661 }
 0x80e   : > { %v3668_v49 = vpop.xlane.xlu1 %3667  ;;  %v10222_v36 = vadd.f32 %v3662_v60, %v3635_v26 }
 0x80f   : > { %v10224_v6 = vadd.f32 %v3668_v49, %v3638_v56 }
 0x810   : > { %4116 = vst.msk [vmem:[#allocation3 + $0x150] sm:$0xff] %vm550_vm2, %v10222_v36 }
 0x811   : > { %11446 = vst [vmem:[#allocation15_spill] sm:$0xff] %v10224_v6  ;;  %4119 = vst.msk [vmem:[#allocation3 + $0x168] sm:$0xff] %vm550_vm2, %v10224_v6  ;;  %v10230_v30 = vpop.f32.mrb[34].mxu1  ;;  %v3666_v16 = vpop.xlane.xlu0 %3665  ;;  %v4303_v6 = vld [vmem:[%s8239_s26 + $0x8] sm:$0xff] }
 0x812   : > { %v10235_v53 = vpop.f32.mrb[35].mxu1  ;;  %v10238_v54 = vadd.f32 %v3666_v16, %v3637_v62  ;;  %v3672_v33 = vpop.xlane.xlu1 %3671 }
 0x813   : > { %v10240_v25 = vadd.f32 %v3672_v33, %v3640_v43 }
 0x814   : > { %4118 = vst.msk [vmem:[#allocation3 + $0x160] sm:$0xff] %vm550_vm2, %v10238_v54 }
 0x815   : > { %11447 = vst [vmem:[#allocation26_spill] sm:$0xff] %v10240_v25  ;;  %4121 = vst.msk [vmem:[#allocation3 + $0x178] sm:$0xff] %vm550_vm2, %v10240_v25  ;;  %v3670_v59 = vpop.xlane.xlu0 %3669  ;;  %v4302_v25 = vld [vmem:[%s8239_s26] sm:$0xff] }
 0x816   : > { %v10247_v21 = vadd.f32 %v3670_v59, %v3639_v1  ;;  %v7115_v15 = vpack.i.bf16 %v4303_v6, %v4302_v25  ;;  %v4313_v6 = vld [vmem:[%s8239_s26 + $0x58] sm:$0xff] }
 0x818   : > { %4120 = vst.msk [vmem:[#allocation3 + $0x170] sm:$0xff] %vm550_vm2, %v10247_v21 }
 0x819   : > { %v10251_v46 = vpop.f32.mrb[36].mxu1 }
 0x81a   : > { %v10253_v42 = vpop.f32.mrb[37].mxu1 }
 0x81d   : > { %v10255_v24 = vpop.f32.mrb[38].mxu1 }
 0x81e   : > { %v10257_v34 = vpop.f32.mrb[39].mxu1 }
 0x824   : > { %v10259_v40 = vpop.f32.mrb[40].mxu1 }
 0x825   : > { %v10261_v39 = vpop.f32.mrb[41].mxu1 }
 0x82c   : > { %v10263_v31 = vpop.f32.mrb[42].mxu1 }
 0x82d   : > { %11448 = vst [vmem:[#allocation12_spill] sm:$0xff] %v10263_v31  ;;  %v10265_v13 = vpop.f32.mrb[43].mxu1 }
 0x835   : > { %v10267_v29 = vpop.f32.mrb[44].mxu1 }
 0x836   : > { %11449 = vst [vmem:[#allocation22_spill] sm:$0xff] %v10267_v29  ;;  %v10269_v19 = vpop.f32.mrb[45].mxu1  ;;  %v10463_v29 = vld [vmem:[#allocation2 + $0x1e0] sm:$0xff] }
 0x839   : > { %v10271_v45 = vpop.f32.mrb[46].mxu1 }
 0x83a   : > { %11450 = vst [vmem:[#allocation27_spill] sm:$0xff] %v10271_v45  ;;  %v10273_v35 = vpop.f32.mrb[47].mxu1 }
 0x849   : > { %v10275_v28 = vpop.f32.mrb[48].mxu1 }
 0x84a   : > { %4659 = vmax.xlane.f32.xlu0 %v10275_v28  ;;  %v10278_v63 = vpop.f32.mrb[49].mxu1 }
 0x84b   : > { %4657 = vmax.xlane.f32.xlu1 %v10278_v63 }
 0x84d   : > { %v10281_v4 = vpop.f32.mrb[50].mxu1 }
 0x84e   : > { %11451 = vst [vmem:[#allocation28_spill] sm:$0xff] %v10281_v4  ;;  %4663 = vmax.xlane.f32.xlu0 %v10281_v4  ;;  %v10284_v26 = vpop.f32.mrb[51].mxu1 }
 0x84f   : > { %11452 = vst [vmem:[#allocation29_spill] sm:$0xff] %v10284_v26  ;;  %4661 = vmax.xlane.f32.xlu1 %v10284_v26 }
 0x851   : > { %v10287_v56 = vpop.f32.mrb[52].mxu1 }
 0x852   : > { %11453 = vst [vmem:[#allocation31_spill] sm:$0xff] %v10287_v56  ;;  %4667 = vmax.xlane.f32.xlu0 %v10287_v56  ;;  %v10290_v60 = vpop.f32.mrb[53].mxu1 }
 0x853   : > { %11454 = vst [vmem:[#allocation25_spill] sm:$0xff] %v10290_v60  ;;  %4665 = vmax.xlane.f32.xlu1 %v10290_v60  ;;  %v10457_v60 = vld [vmem:[#allocation2 + $0x1e8] sm:$0xff] }
 0x854   : > { %11477 = vst [vmem:[#allocation49_spill] sm:$0xff] %v10457_v60 }
 0x855   : > { %v10293_v49 = vpop.f32.mrb[54].mxu1 }
 0x856   : > { %11455 = vst [vmem:[#allocation24_spill] sm:$0xff] %v10293_v49  ;;  %4671 = vmax.xlane.f32.xlu0 %v10293_v49  ;;  %v10296_v38 = vpop.f32.mrb[55].mxu1 }
 0x857   : > { %11456 = vst [vmem:[#allocation11_spill] sm:$0xff] %v10296_v38  ;;  %4669 = vmax.xlane.f32.xlu1 %v10296_v38  ;;  %v10437_v38 = vld [vmem:[#allocation2 + $0x1d8] sm:$0xff] }
 0x858   : > { %11475 = vst [vmem:[#allocation47_spill] sm:$0xff] %v10437_v38 }
 0x859   : > { %v10299_v9 = vpop.f32.mrb[56].mxu1 }
 0x85a   : > { %11457 = vst [vmem:[#allocation14_spill] sm:$0xff] %v10299_v9  ;;  %4675 = vmax.xlane.f32.xlu0 %v10299_v9  ;;  %v10302_v62 = vpop.f32.mrb[57].mxu1  ;;  %v4315_v9 = vld [vmem:[%s8239_s26 + $0x68] sm:$0xff] }
 0x85b   : > { %11458 = vst [vmem:[#allocation23_spill] sm:$0xff] %v10302_v62  ;;  %4673 = vmax.xlane.f32.xlu1 %v10302_v62  ;;  %v10421_v62 = vld [vmem:[#allocation2 + $0x1c0] sm:$0xff] }
 0x85d   : > { %v10305_v16 = vpop.f32.mrb[58].mxu1 }
 0x85e   : > { %11459 = vst [vmem:[#allocation9_spill] sm:$0xff] %v10305_v16  ;;  %4679 = vmax.xlane.f32.xlu0 %v10305_v16  ;;  %v10308_v43 = vpop.f32.mrb[59].mxu1  ;;  %v4312_v16 = vld [vmem:[%s8239_s26 + $0x50] sm:$0xff] }
 0x85f   : > { %11460 = vst [vmem:[#allocation10_spill] sm:$0xff] %v10308_v43  ;;  %4677 = vmax.xlane.f32.xlu1 %v10308_v43  ;;  %v7140_v25 = vpack.i.bf16 %v4313_v6, %v4312_v16  ;;  %v4311_v43 = vld [vmem:[%s8239_s26 + $0x48] sm:$0xff] }
 0x860   : > { %v10345_v16 = vld [vmem:[#allocation2 + $0x188] sm:$0xff] }
 0x861   : > { %v10311_v7 = vpop.f32.mrb[60].mxu1  ;;  %11465 = vst [vmem:[#allocation34_spill] sm:$0xff] %v10345_v16 }
 0x862   : > { %11461 = vst [vmem:[#allocation16_spill] sm:$0xff] %v10311_v7  ;;  %4683 = vmax.xlane.f32.xlu0 %v10311_v7  ;;  %v10314_v33 = vpop.f32.mrb[61].mxu1  ;;  %v7120_v7 = vpack.i.bf16 %v4305_v41, %v4304_v10  ;;  %v4306_v41 = vld [vmem:[%s8239_s26 + $0x20] sm:$0xff]  ;;  %v4307_v10 = vld [vmem:[%s8239_s26 + $0x28] sm:$0xff] }
 0x863   : > { %11462 = vst [vmem:[#allocation8_spill] sm:$0xff] %v10314_v33  ;;  %4681 = vmax.xlane.f32.xlu1 %v10314_v33  ;;  %v4308_v33 = vld [vmem:[%s8239_s26 + $0x30] sm:$0xff] }
 0x865   : > { %v10317_v1 = vpop.f32.mrb[62].mxu1 }
 0x866   : > { %11463 = vst [vmem:[#allocation30_spill] sm:$0xff] %v10317_v1  ;;  %4687 = vmax.xlane.f32.xlu0 %v10317_v1  ;;  %v10320_v59 = vpop.f32.mrb[63].mxu1  ;;  %v7130_v1 = vpack.i.bf16 %v4309_v2, %v4308_v33  ;;  %v10347_v33 = vld [vmem:[#allocation2 + $0x180] sm:$0xff] }
 0x867   : > { %11464 = vst [vmem:[#allocation32_spill] sm:$0xff] %v10320_v59 }
 0x874   : > { %7116 = vrot.lane.b32.xlu1 %v7115_v15, %s7587_s5  ;;  %v7125_v15 = vpack.i.bf16 %v4307_v10, %v4306_v41 }
 0x878   : > { %7121 = vrot.lane.b32.xlu1 %v7120_v7, %s7587_s5  ;;  %v4310_v7 = vld [vmem:[%s8239_s26 + $0x40] sm:$0xff] }
 0x879   : > { %v7135_v22 = vpack.i.bf16 %v4311_v43, %v4310_v7  ;;  %v10355_v43 = vld [vmem:[#allocation2 + $0x198] sm:$0xff] }
 0x87a   : > { %11467 = vst [vmem:[#allocation39_spill] sm:$0xff] %v10355_v43 }
 0x87c   : > { %3916 = vperm.xlu0 %6913, %v10108_v51   ;;  %v4314_v51 = vld [vmem:[%s8239_s26 + $0x60] sm:$0xff] }
 0x87d   : > { %v7145_v2 = vpack.i.bf16 %v4315_v9, %v4314_v51  ;;  %v10362_v9 = vld [vmem:[#allocation2 + $0x190] sm:$0xff] }
 0x880   : > { %7131 = vrot.lane.b32.xlu0 %v7130_v1, %s7587_s5 }
 0x884   : > { %7141 = vrot.lane.b32.xlu0 %v7140_v25, %s7587_s5 }
 0x89c   : > { %4685 = vmax.xlane.f32.xlu1 %v10320_v59 }
 0x8ad   : > { %7126 = vrot.lane.b32.xlu1 %v7125_v15, %s7587_s5 }
 0x8b1   : > { %7136 = vrot.lane.b32.xlu1 %v7135_v22, %s7587_s5  ;;  %v10381_v22 = vld [vmem:[#allocation2 + $0x1a0] sm:$0xff] }
 0x8b5   : > { %7146 = vrot.lane.b32.xlu1 %v7145_v2, %s7587_s5 }
 0x8d7   : > { %v4660_v1 = vpop.xlane.xlu0 %4659 }
 0x8d8   : > { %v10350_v6 = vmax.f32 %v10345_v16, %v4660_v1  ;;  %v4658_v25 = vpop.xlane.xlu1 %4657  ;;  %v10375_v1 = vld [vmem:[#allocation2 + $0x1a8] sm:$0xff] }
 0x8d9   : > { %v10353_v41 = vmax.f32 %v10347_v33, %v4658_v25  ;;  %11469 = vst [vmem:[#allocation41_spill] sm:$0xff] %v10375_v1  ;;  %v10415_v16 = vld [vmem:[#allocation2 + $0x1c8] sm:$0xff] }
 0x8da   : > { %11466 = vst [vmem:[#allocation33_spill] sm:$0xff] %v10350_v6  ;;  %5347 = vst.msk [vmem:[#allocation2 + $0x188] sm:$0xff] %vm550_vm2, %v10350_v6  ;;  %4760 = vperm.xlu1 %6914, %v10350_v6   ;;  %v10401_v6 = vld [vmem:[#allocation2 + $0x1b0] sm:$0xff] }
 0x8db   : > { %5346 = vst.msk [vmem:[#allocation2 + $0x180] sm:$0xff] %vm550_vm2, %v10353_v41  ;;  %v4664_v15 = vpop.xlane.xlu0 %4663  ;;  %4755 = vperm.xlu0 %6913, %v10353_v41   ;;  %11473 = vst [vmem:[#allocation45_spill] sm:$0xff] %v10415_v16 }
 0x8dc   : > { %v10370_v7 = vmax.f32 %v10355_v43, %v4664_v15  ;;  %v4662_v51 = vpop.xlane.xlu1 %4661  ;;  %v10395_v43 = vld [vmem:[#allocation2 + $0x1b8] sm:$0xff] }
 0x8dd   : > { %v10373_v2 = vmax.f32 %v10362_v9, %v4662_v51  ;;  %11471 = vst [vmem:[#allocation43_spill] sm:$0xff] %v10395_v43 }
 0x8de   : > { %11468 = vst [vmem:[#allocation40_spill] sm:$0xff] %v10370_v7  ;;  %5349 = vst.msk [vmem:[#allocation2 + $0x198] sm:$0xff] %vm550_vm2, %v10370_v7 }
 0x8df   : > { %5348 = vst.msk [vmem:[#allocation2 + $0x190] sm:$0xff] %vm550_vm2, %v10373_v2  ;;  %v4668_v15 = vpop.xlane.xlu0 %4667  ;;  %4770 = vperm.xlu0 %6913, %v10370_v7   ;;  %4765 = vperm.xlu1 %6914, %v10373_v2  }
 0x8e0   : > { %v10390_v51 = vmax.f32 %v10375_v1, %v4668_v15  ;;  %v4666_v25 = vpop.xlane.xlu1 %4665 }
 0x8e1   : > { %v10393_v59 = vmax.f32 %v10381_v22, %v4666_v25 }
 0x8e2   : > { %11470 = vst [vmem:[#allocation42_spill] sm:$0xff] %v10390_v51  ;;  %5351 = vst.msk [vmem:[#allocation2 + $0x1a8] sm:$0xff] %vm550_vm2, %v10390_v51 }
 0x8e3   : > { %5350 = vst.msk [vmem:[#allocation2 + $0x1a0] sm:$0xff] %vm550_vm2, %v10393_v59  ;;  %v4672_v15 = vpop.xlane.xlu0 %4671  ;;  %4775 = vperm.xlu0 %6913, %v10393_v59   ;;  %4780 = vperm.xlu1 %6914, %v10390_v51  }
 0x8e4   : > { %v10410_v25 = vmax.f32 %v10395_v43, %v4672_v15  ;;  %v4670_v10 = vpop.xlane.xlu1 %4669  ;;  %v4316_v43 = vld [vmem:[%s8239_s26 + $0x70] sm:$0xff] }
 0x8e5   : > { %v10413_v1 = vmax.f32 %v10401_v6, %v4670_v10 }
 0x8e6   : > { %11472 = vst [vmem:[#allocation44_spill] sm:$0xff] %v10410_v25  ;;  %5353 = vst.msk [vmem:[#allocation2 + $0x1b8] sm:$0xff] %vm550_vm2, %v10410_v25 }
 0x8e7   : > { %5352 = vst.msk [vmem:[#allocation2 + $0x1b0] sm:$0xff] %vm550_vm2, %v10413_v1  ;;  %v4676_v15 = vpop.xlane.xlu0 %4675  ;;  %4790 = vperm.xlu0 %6913, %v10410_v25   ;;  %4785 = vperm.xlu1 %6914, %v10413_v1   ;;  %v10443_v25 = vld [vmem:[#allocation2 + $0x1d0] sm:$0xff] }
 0x8e8   : > { %v10430_v10 = vmax.f32 %v10415_v16, %v4676_v15  ;;  %v4674_v7 = vpop.xlane.xlu1 %4673 }
 0x8e9   : > { %v10435_v49 = vmax.f32 %v10421_v62, %v4674_v7  ;;  %v7150_v7 = vpack.i.bf16 %v4317_v5, %v4316_v43 }
 0x8ea   : > { %11474 = vst [vmem:[#allocation46_spill] sm:$0xff] %v10430_v10  ;;  %5355 = vst.msk [vmem:[#allocation2 + $0x1c8] sm:$0xff] %vm550_vm2, %v10430_v10 }
 0x8eb   : > { %5354 = vst.msk [vmem:[#allocation2 + $0x1c0] sm:$0xff] %vm550_vm2, %v10435_v49  ;;  %v4680_v45 = vpop.xlane.xlu0 %4679  ;;  %4795 = vperm.xlu0 %6913, %v10435_v49   ;;  %4800 = vperm.xlu1 %6914, %v10430_v10  }
 0x8ec   : > { %v10452_v56 = vmax.f32 %v10437_v38, %v4680_v45  ;;  %v4678_v51 = vpop.xlane.xlu1 %4677  ;;  %v10477_v38 = vld [vmem:[#allocation2 + $0x1f8] sm:$0xff] }
 0x8ed   : > { %v10455_v16 = vmax.f32 %v10443_v25, %v4678_v51 }
 0x8ee   : > { %11476 = vst [vmem:[#allocation48_spill] sm:$0xff] %v10452_v56  ;;  %5357 = vst.msk [vmem:[#allocation2 + $0x1d8] sm:$0xff] %vm550_vm2, %v10452_v56 }
 0x8ef   : > { %5356 = vst.msk [vmem:[#allocation2 + $0x1d0] sm:$0xff] %vm550_vm2, %v10455_v16  ;;  %v4684_v45 = vpop.xlane.xlu0 %4683  ;;  %7151 = vrot.lane.b32.xlu0 %v7150_v7, %s7587_s5  ;;  %4805 = vperm.xlu1 %6914, %v10455_v16  }
 0x8f0   : > { %v10472_v43 = vmax.f32 %v10457_v60, %v4684_v45  ;;  %v4682_v51 = vpop.xlane.xlu1 %4681 }
 0x8f1   : > { %v10475_v15 = vmax.f32 %v10463_v29, %v4682_v51 }
 0x8f2   : > { %5359 = vst.msk [vmem:[#allocation2 + $0x1e8] sm:$0xff] %vm550_vm2, %v10472_v43 }
 0x8f3   : > { %5358 = vst.msk [vmem:[#allocation2 + $0x1e0] sm:$0xff] %vm550_vm2, %v10475_v15  ;;  %4810 = vperm.xlu0 %6913, %v10452_v56   ;;  %4815 = vperm.xlu1 %6914, %v10475_v15   ;;  %v4688_v45 = vpop.xlane.xlu0 %4687 }
 0x8f4   : > { %v7117_v51 = vpop.permute.xlu1 %7116  ;;  %v10490_v10 = vmax.f32 %v10477_v38, %v4688_v45 }
 0x8f5   : > { %v7119_v4 = vunpack.i.h.bf16 %v7117_v51  ;;  %v7118_v5 = vunpack.i.l.bf16 %v7117_v51 }
 0x8f6   : > { %v4720_v60 = vsub.f32 %v10477_v38, %v10490_v10  ;;  %5361 = vst.msk [vmem:[#allocation2 + $0x1f8] sm:$0xff] %vm550_vm2, %v10490_v10 }
 0x8f7   : > { %4820 = vperm.xlu0 %6913, %v10472_v43   ;;  %v6834_v7 = vpack.c.bf16 %v7119_v4, %v7118_v5 }
 0x8f8   : > { %v7122_v26 = vpop.permute.xlu1 %7121 }
 0x8f9   : > { %v7124_v56 = vunpack.i.h.bf16 %v7122_v26  ;;  %v7123_v31 = vunpack.i.l.bf16 %v7122_v26  ;;  %6835 = vmatprep.subr.bf16.mxu0 %v6834_v7 }
 0x8fa   : > { %6837 = vmatpush3.bf16.msra.mxu0 %v6834_v7 }
 0x8fb   : > { %4830 = vperm.xlu0 %6913, %v10490_v10   ;;  %v6838_v45 = vpack.c.bf16 %v7124_v56, %v7123_v31  ;;  %v11528_v10 = vld [vmem:[#allocation30_spill] sm:$0xff] }
 0x8fd   : > { %6839 = vmatprep.subr.bf16.mxu0 %v6838_v45 }
 0x8fe   : > { %6841 = vmatpush3.bf16.msra.mxu0 %v6838_v45 }
 0x8ff   : > { %3926 = vperm.xlu0 %6913, %v10129_v61   ;;  %v10511_v61 = vpop.permute.xlu0 %3916 }
 0x903   : > { %3936 = vperm.xlu0 %6913, %v10155_v32   ;;  %v10515_v32 = vld [vmem:[#allocation2 + $0x1f0] sm:$0xff] }
 0x907   : > { %3946 = vperm.xlu0 %6913, %v10164_v3  }
 0x90b   : > { %3956 = vperm.xlu0 %6913, %v10184_v52  }
 0x90f   : > { %3966 = vperm.xlu0 %6913, %v10198_v12  }
 0x913   : > { %3976 = vperm.xlu0 %6913, %v10218_v14  }
 0x917   : > { %3986 = vperm.xlu0 %6913, %v10233_v18  }
 0x91b   : > { %4026 = vrot.lane.b32.xlu0 %v10083_v20, %s7586_s14  ;;  %v7132_v20 = vpop.permute.xlu0 %7131 }
 0x91c   : > { %v7134_v12 = vunpack.i.h.bf16 %v7132_v20  ;;  %v7133_v14 = vunpack.i.l.bf16 %v7132_v20 }
 0x91e   : > { %v6846_v31 = vpack.c.bf16 %v7134_v12, %v7133_v14  ;;  %v11489_v12 = vld [vmem:[#allocation25_spill] sm:$0xff] }
 0x91f   : > { %4030 = vrot.lane.b32.xlu0 %v10235_v53, %s7586_s14  ;;  %v7142_v56 = vpop.permute.xlu0 %7141 }
 0x920   : > { %v7144_v5 = vunpack.i.h.bf16 %v7142_v56  ;;  %v7143_v7 = vunpack.i.l.bf16 %v7142_v56  ;;  %v11492_v56 = vld [vmem:[#allocation11_spill] sm:$0xff] }
 0x923   : > { %4034 = vrot.lane.b32.xlu0 %v10253_v42, %s7586_s14 }
 0x927   : > { %4038 = vrot.lane.b32.xlu0 %v10257_v34, %s7586_s14 }
 0x929   : > { %v4686_v3 = vpop.xlane.xlu1 %4685 }
 0x92a   : > { %v10518_v52 = vmax.f32 %v10515_v32, %v4686_v3  ;;  %v6854_v3 = vpack.c.bf16 %v7144_v5, %v7143_v7 }
 0x92b   : > { %4042 = vrot.lane.b32.xlu0 %v10261_v39, %s7586_s14 }
 0x92c   : > { %5360 = vst.msk [vmem:[#allocation2 + $0x1f0] sm:$0xff] %vm550_vm2, %v10518_v52  ;;  %4825 = vperm.xlu1 %6914, %v10518_v52  }
 0x92d   : > { %v7127_v18 = vpop.permute.xlu1 %7126 }
 0x92e   : > { %v7129_v53 = vunpack.i.h.bf16 %v7127_v18  ;;  %v7128_v42 = vunpack.i.l.bf16 %v7127_v18 }
 0x92f   : > { %4046 = vrot.lane.b32.xlu0 %v10265_v13, %s7586_s14 }
 0x930   : > { %3921 = vperm.xlu1 %6914, %v10116_v0   ;;  %v6842_v34 = vpack.c.bf16 %v7129_v53, %v7128_v42 }
 0x931   : > { %v7137_v4 = vpop.permute.xlu1 %7136 }
 0x932   : > { %v7139_v39 = vunpack.i.h.bf16 %v7137_v4  ;;  %v7138_v26 = vunpack.i.l.bf16 %v7137_v4  ;;  %6843 = vmatprep.subr.bf16.mxu0 %v6842_v34 }
 0x933   : > { %4050 = vrot.lane.b32.xlu0 %v10269_v19, %s7586_s14  ;;  %6845 = vmatpush3.bf16.msra.mxu0 %v6842_v34 }
 0x934   : > { %3931 = vperm.xlu1 %6914, %v10119_v50   ;;  %6847 = vmatprep.subr.bf16.mxu0 %v6846_v31  ;;  %v6850_v51 = vpack.c.bf16 %v7139_v39, %v7138_v26  ;;  %v11491_v39 = vld [vmem:[#allocation27_spill] sm:$0xff] }
 0x935   : > { %v7147_v0 = vpop.permute.xlu1 %7146 }
 0x936   : > { %v7149_v13 = vunpack.i.h.bf16 %v7147_v0  ;;  %v7148_v45 = vunpack.i.l.bf16 %v7147_v0 }
 0x937   : > { %4054 = vrot.lane.b32.xlu0 %v10273_v35, %s7586_s14  ;;  %6849 = vmatpush3.bf16.msra.mxu0 %v6846_v31  ;;  %v11483_v35 = vsub.f32 %v10443_v25, %v10455_v16  ;;  %v11490_v31 = vld [vmem:[#allocation31_spill] sm:$0xff] }
 0x938   : > { %3941 = vperm.xlu1 %6914, %v10135_v57   ;;  %6851 = vmatprep.subr.bf16.mxu0 %v6850_v51  ;;  %v6858_v50 = vpack.c.bf16 %v7149_v13, %v7148_v45 }
 0x93b   : > { %4144 = vperm.xlu0 %6913, %v10124_v11   ;;  %6853 = vmatpush3.bf16.msra.mxu0 %v6850_v51  ;;  %v11478_v11 = vsub.f32 %v10347_v33, %v10353_v41  ;;  %v11484_v33 = vsub.f32 %v10463_v29, %v10475_v15  ;;  %v11485_v41 = vld [vmem:[#allocation12_spill] sm:$0xff]  ;;  %v11488_v29 = vld [vmem:[#allocation22_spill] sm:$0xff] }
 0x93c   : > { %3951 = vperm.xlu1 %6914, %v10147_v17   ;;  %6855 = vmatprep.subr.bf16.mxu0 %v6854_v3  ;;  %v11479_v17 = vsub.f32 %v10362_v9, %v10373_v2 }
 0x93d   : > { %v4721_v57 = vmul.f32 1.442695, %v11478_v11 }
 0x93f   : > { %4154 = vperm.xlu0 %6913, %v10157_v23   ;;  %6857 = vmatpush3.bf16.msra.mxu0 %v6854_v3  ;;  %7411 = vpow2.f32 %v4721_v57  ;;  %v4725_v23 = vmul.f32 1.442695, %v11479_v17  ;;  %v11493_v3 = vld [vmem:[#allocation24_spill] sm:$0xff]  ;;  %v11494_v57 = vld [vmem:[#allocation21_spill] sm:$0xff] }
 0x940   : > { %3961 = vperm.xlu1 %6914, %v10175_v27   ;;  %6859 = vmatprep.subr.bf16.mxu0 %v6858_v50  ;;  %v11480_v27 = vsub.f32 %v10381_v22, %v10393_v59  ;;  %v4719_v59 = vsub.f32 %v10515_v32, %v10518_v52  ;;  %v11487_v52 = vld [vmem:[#allocation28_spill] sm:$0xff] }
 0x941   : > { %7413 = vpow2.f32 %v4725_v23  ;;  %v11495_v23 = vld [vmem:[#allocation23_spill] sm:$0xff] }
 0x942   : > { %v4749_v25 = vmul.f32 1.442695, %v4719_v59 }
 0x943   : > { %4164 = vperm.xlu0 %6913, %v10177_v44   ;;  %6861 = vmatpush3.bf16.msra.mxu0 %v6858_v50  ;;  %v4729_v44 = vmul.f32 1.442695, %v11480_v27 }
 0x944   : > { %3971 = vperm.xlu1 %6914, %v10192_v37   ;;  %v11481_v37 = vsub.f32 %v10401_v6, %v10413_v1  ;;  %v4745_v6 = vmul.f32 1.442695, %v11484_v33  ;;  %v11499_v33 = vld [vmem:[#allocation9_spill] sm:$0xff] }
 0x945   : > { %7415 = vpow2.f32 %v4729_v44 }
 0x947   : > { %4174 = vperm.xlu0 %6913, %v10194_v48   ;;  %v4733_v48 = vmul.f32 1.442695, %v11481_v37 }
 0x948   : > { %3981 = vperm.xlu1 %6914, %v10206_v8  }
 0x949   : > { %v10565_v8 = vpop.eup %7411  ;;  %7417 = vpow2.f32 %v4733_v48 }
 0x94b   : > { %4184 = vperm.xlu0 %6913, %v10208_v47  }
 0x94c   : > { %3991 = vperm.xlu1 %6914, %v10220_v58  }
 0x94f   : > { %4194 = vperm.xlu0 %6913, %v10222_v36   ;;  %v11482_v36 = vsub.f32 %v10421_v62, %v10435_v49 }
 0x950   : > { %4028 = vrot.lane.b32.xlu1 %v10079_v55, %s7586_s14 }
 0x953   : > { %4204 = vperm.xlu0 %6913, %v10238_v54  }
 0x954   : > { %4032 = vrot.lane.b32.xlu1 %v10230_v30, %s7586_s14  ;;  %v4737_v30 = vmul.f32 1.442695, %v11482_v36  ;;  %v11497_v36 = vld [vmem:[#allocation19_spill] sm:$0xff] }
 0x957   : > { %4214 = vperm.xlu0 %6913, %v10247_v21   ;;  %v10574_v21 = vpop.eup %7413 }
 0x958   : > { %4036 = vrot.lane.b32.xlu1 %v10251_v46, %s7586_s14  ;;  %v10582_v49 = vpop.eup %7415 }
 0x959   : > { %v4761_v55 = vpop.permute.xlu1 %4760  ;;  %v10594_v9 = vpop.eup %7417 }
 0x95a   : > { %v4756_v47 = vpop.permute.xlu0 %4755  ;;  %v4834_v16 = vsub.f32 %v10275_v28, %v4761_v55 }
 0x95b   : > { %v4833_v58 = vsub.f32 %v10278_v63, %v4756_v47  ;;  %5172 = vperm.xlu0 %6913, %v10565_v8   ;;  %v4741_v63 = vmul.f32 1.442695, %v11483_v35  ;;  %v11496_v47 = vld [vmem:[#allocation14_spill] sm:$0xff] }
 0x95c   : > { %4040 = vrot.lane.b32.xlu1 %v10255_v24, %s7586_s14  ;;  %v4851_v32 = vmul.f32 1.442695, %v4834_v16  ;;  %v11500_v16 = vld [vmem:[#allocation13_spill] sm:$0xff] }
 0x95d   : > { %v4849_v54 = vmul.f32 1.442695, %v4833_v58 }
 0x95e   : > { %v4771_v46 = vpop.permute.xlu0 %4770  ;;  %v4766_v19 = vpop.permute.xlu1 %4765 }
 0x95f   : > { %7419 = vpow2.f32 %v4849_v54  ;;  %5182 = vperm.xlu0 %6913, %v10574_v21   ;;  %v4836_v20 = vsub.f32 %v11487_v52, %v4771_v46  ;;  %v11498_v46 = vld [vmem:[#allocation10_spill] sm:$0xff]  ;;  %v11502_v52 = vld [vmem:[#allocation16_spill] sm:$0xff] }
 0x960   : > { %7421 = vpow2.f32 %v4737_v30  ;;  %4044 = vrot.lane.b32.xlu1 %v10259_v40, %s7586_s14  ;;  %v11486_v40 = vld [vmem:[#allocation29_spill] sm:$0xff] }
 0x961   : > { %7423 = vpow2.f32 %v4741_v63  ;;  %v4835_v22 = vsub.f32 %v11486_v40, %v4766_v19  ;;  %v4855_v34 = vmul.f32 1.442695, %v4836_v20  ;;  %v11501_v40 = vld [vmem:[#allocation8_spill] sm:$0xff] }
 0x962   : > { %v4776_v62 = vpop.permute.xlu0 %4775  ;;  %v4781_v24 = vpop.permute.xlu1 %4780  ;;  %7425 = vpow2.f32 %v4745_v6 }
 0x963   : > { %5192 = vperm.xlu0 %6913, %v10582_v49   ;;  %v4853_v15 = vmul.f32 1.442695, %v4835_v22  ;;  %v4837_v14 = vsub.f32 %v11489_v12, %v4776_v62  ;;  %7427 = vpow2.f32 %v4749_v25  ;;  %v4838_v4 = vsub.f32 %v11490_v31, %v4781_v24  ;;  %v11505_v31 = vld [vmem:[#allocation34_spill] sm:$0xff] }
 0x964   : > { %4048 = vrot.lane.b32.xlu1 %v11485_v41, %s7586_s14  ;;  %7429 = vpow2.f32 %v4851_v32 }
 0x965   : > { %7431 = vpow2.f32 %v4853_v15  ;;  %v4857_v26 = vmul.f32 1.442695, %v4837_v14  ;;  %v4859_v45 = vmul.f32 1.442695, %v4838_v4  ;;  %v11506_v4 = vld [vmem:[#allocation33_spill] sm:$0xff] }
 0x966   : > { %v4791_v2 = vpop.permute.xlu0 %4790  ;;  %v4786_v1 = vpop.permute.xlu1 %4785  ;;  %7433 = vpow2.f32 %v4855_v34  ;;  %v11504_v34 = vld [vmem:[#allocation17_spill] sm:$0xff] }
 0x967   : > { %5202 = vperm.xlu0 %6913, %v10594_v9   ;;  %v4839_v5 = vsub.f32 %v11492_v56, %v4786_v1  ;;  %v4840_v50 = vsub.f32 %v11493_v3, %v4791_v2  ;;  %7435 = vpow2.f32 %v4857_v26 }
 0x968   : > { %4052 = vrot.lane.b32.xlu1 %v11488_v29, %s7586_s14  ;;  %7437 = vpow2.f32 %v4859_v45  ;;  %v11503_v29 = vld [vmem:[#allocation18_spill] sm:$0xff]  ;;  %v11510_v45 = vld [vmem:[#allocation40_spill] sm:$0xff] }
 0x969   : > { %v10600_v28 = vpop.eup %7419  ;;  %v4861_v17 = vmul.f32 1.442695, %v4839_v5  ;;  %v4863_v55 = vmul.f32 1.442695, %v4840_v50 }
 0x96a   : > { %v10603_v18 = vpop.eup %7421  ;;  %6522 = vmatprep.mubr.f32.mxu0 %v10600_v28  ;;  %v4796_v53 = vpop.permute.xlu0 %4795 }
 0x96b   : > { %v4801_v42 = vpop.permute.xlu1 %4800  ;;  %5212 = vperm.xlu0 %6913, %v10603_v18   ;;  %v10611_v7 = vpop.eup %7423  ;;  %v4841_v27 = vsub.f32 %v11495_v23, %v4796_v53  ;;  %7439 = vpow2.f32 %v4861_v17  ;;  %v11512_v23 = vld [vmem:[#allocation15_spill] sm:$0xff] }
 0x96c   : > { %4056 = vrot.lane.b32.xlu1 %v11491_v39, %s7586_s14  ;;  %v10617_v37 = vpop.eup %7425  ;;  %v4842_v58 = vsub.f32 %v11496_v47, %v4801_v42  ;;  %7441 = vpow2.f32 %v4863_v55  ;;  %v11507_v39 = vsub.f32 %v11505_v31, %v11506_v4  ;;  %v3898_v4 = vld [vmem:[#allocation4] sm:$0xff] }
 0x96d   : > { %v10622_v30 = vpop.eup %7427  ;;  %v4865_v54 = vmul.f32 1.442695, %v4841_v27  ;;  %v11513_v27 = vld [vmem:[#allocation41_spill] sm:$0xff] }
 0x96e   : > { %v7152_v51 = vpop.permute.xlu0 %7151  ;;  %v10625_v35 = vpop.eup %7429  ;;  %v4867_v59 = vmul.f32 1.442695, %v4842_v58  ;;  %v4723_v26 = vmul.f32 1.442695, %v11507_v39  ;;  %v11526_v39 = vld [vmem:[#allocation49_spill] sm:$0xff] }
 0x96f   : > { %v7154_v0 = vunpack.i.h.bf16 %v7152_v51  ;;  %v7153_v13 = vunpack.i.l.bf16 %v7152_v51  ;;  %5222 = vperm.xlu0 %6913, %v10611_v7   ;;  %v4806_v11 = vpop.permute.xlu1 %4805  ;;  %v10627_v24 = vpop.eup %7431  ;;  %7443 = vpow2.f32 %v4865_v54  ;;  %v11516_v54 = vld [vmem:[#allocation26_spill] sm:$0xff] }
 0x970   : > { %4149 = vperm.xlu1 %6914, %v11494_v57   ;;  %v4843_v19 = vsub.f32 %v11498_v46, %v4806_v11  ;;  %v10635_v2 = vpop.eup %7433  ;;  %7445 = vpow2.f32 %v4867_v59  ;;  %v11517_v46 = vld [vmem:[#allocation43_spill] sm:$0xff] }
 0x971   : > { %v6862_v44 = vpack.c.bf16 %v7154_v0, %v7153_v13  ;;  %v10639_v25 = vpop.eup %7435  ;;  %v11508_v0 = vld [vmem:[#allocation20_spill] sm:$0xff]  ;;  %v11509_v13 = vld [vmem:[#allocation39_spill] sm:$0xff] }
 0x972   : > { %v4811_v48 = vpop.permute.xlu0 %4810  ;;  %v4869_v41 = vmul.f32 1.442695, %v4843_v19  ;;  %v10645_v12 = vpop.eup %7437  ;;  %v11511_v3 = vsub.f32 %v11509_v13, %v11510_v45  ;;  %v11518_v19 = vld [vmem:[#allocation44_spill] sm:$0xff]  ;;  %v3994_v13 = vmul.f32 %v10511_v61, %v3898_v4 }
 0x973   : > { %5232 = vperm.xlu0 %6913, %v10617_v37   ;;  %6863 = vmatprep.subr.bf16.mxu0 %v6862_v44  ;;  %v4816_v63 = vpop.permute.xlu1 %4815  ;;  %v4844_v6 = vsub.f32 %v11499_v33, %v4811_v48 }
 0x974   : > { %4159 = vperm.xlu1 %6914, %v11497_v36   ;;  %6865 = vmatpush3.bf16.msra.mxu0 %v6862_v44  ;;  %v4845_v22 = vsub.f32 %v11501_v40, %v4816_v63  ;;  %7447 = vpow2.f32 %v4869_v41  ;;  %v4727_v50 = vmul.f32 1.442695, %v11511_v3  ;;  %v11514_v44 = vld [vmem:[#allocation42_spill] sm:$0xff]  ;;  %v11519_v63 = vsub.f32 %v11517_v46, %v11518_v19 }
 0x975   : > { %v4871_v32 = vmul.f32 1.442695, %v4844_v6  ;;  %v10649_v53 = vpop.eup %7439  ;;  %v11515_v48 = vsub.f32 %v11513_v27, %v11514_v44  ;;  %v11521_v41 = vld [vmem:[#allocation46_spill] sm:$0xff]  ;;  %v3902_v44 = vld [vmem:[#allocation4 + $0x20] sm:$0xff] }
 0x976   : > { %v4821_v62 = vpop.permute.xlu0 %4820  ;;  %v4873_v15 = vmul.f32 1.442695, %v4845_v22  ;;  %v10657_v56 = vpop.eup %7441 }
 0x977   : > { %5242 = vperm.xlu0 %6913, %v10622_v30   ;;  %6523 = vmatmul.mubr.f32.vlgmr.msra.gmra.mrb[48].mxu0 %v10625_v35  ;;  %v4846_v20 = vsub.f32 %v11502_v52, %v4821_v62  ;;  %7449 = vpow2.f32 %v4871_v32  ;;  %v4731_v55 = vmul.f32 1.442695, %v11515_v48  ;;  %v4735_v62 = vmul.f32 1.442695, %v11519_v63  ;;  %v3906_v63 = vld [vmem:[#allocation4 + $0x40] sm:$0xff] }
 0x978   : > { %4169 = vperm.xlu1 %6914, %v11500_v16   ;;  %6525 = vmatprep.mubr.f32.mxu0 %v10627_v24  ;;  %7451 = vpow2.f32 %v4873_v15  ;;  %v11520_v16 = vld [vmem:[#allocation45_spill] sm:$0xff] }
 0x979   : > { %v4875_v42 = vmul.f32 1.442695, %v4846_v20  ;;  %v10659_v51 = vpop.eup %7443  ;;  %v11522_v40 = vsub.f32 %v11520_v16, %v11521_v41  ;;  %v11523_v20 = vld [vmem:[#allocation47_spill] sm:$0xff]  ;;  %v3908_v41 = vld [vmem:[#allocation4 + $0x50] sm:$0xff] }
 0x97a   : > { %v10637_v1 = vpop.permute.xlu0 %4830  ;;  %v10667_v11 = vpop.eup %7445 }
 0x97b   : > { %6526 = vmatmul.mubr.f32.gmra.mrb[50].mxu0 %v10635_v2  ;;  %7453 = vpow2.f32 %v4875_v42  ;;  %v4739_v22 = vmul.f32 1.442695, %v11522_v40  ;;  %v11529_v40 = vld [vmem:[#allocation32_spill] sm:$0xff] }
 0x97c   : > { %4179 = vperm.xlu1 %6914, %v11503_v29   ;;  %6528 = vmatprep.mubr.f32.mxu0 %v10639_v25  ;;  %7455 = vpow2.f32 %v4723_v26  ;;  %v11524_v29 = vld [vmem:[#allocation48_spill] sm:$0xff]  ;;  %v11527_v26 = vsub.f32 %v11526_v39, %v10472_v43 }
 0x97d   : > { %7457 = vpow2.f32 %v4727_v50  ;;  %v11525_v15 = vsub.f32 %v11523_v20, %v11524_v29 }
 0x97e   : > { %v10647_v14 = vpop.permute.xlu0 %3926  ;;  %v10669_v17 = vpop.eup %7447  ;;  %7459 = vpow2.f32 %v4731_v55  ;;  %v3904_v55 = vld [vmem:[#allocation4 + $0x30] sm:$0xff] }
 0x97f   : > { %6529 = vmatmul.mubr.f32.gmra.mrb[52].mxu0 %v10645_v12  ;;  %7461 = vpow2.f32 %v4735_v62  ;;  %v4743_v42 = vmul.f32 1.442695, %v11525_v15 }
 0x980   : > { %4189 = vperm.xlu1 %6914, %v11504_v34   ;;  %6531 = vmatprep.mubr.f32.mxu0 %v10649_v53  ;;  %7463 = vpow2.f32 %v4739_v22 }
 0x981   : > { %v10677_v47 = vpop.eup %7449  ;;  %7465 = vpow2.f32 %v4743_v42  ;;  %v3910_v42 = vld [vmem:[#allocation4 + $0x60] sm:$0xff] }
 0x982   : > { %v3937_v5 = vpop.permute.xlu0 %3936  ;;  %v10681_v36 = vpop.eup %7451 }
 0x983   : > { %6532 = vmatmul.mubr.f32.gmra.mrb[54].mxu0 %v10657_v56  ;;  %v3998_v48 = vmul.f32 %v3937_v5, %v3902_v44 }
 0x984   : > { %4199 = vperm.xlu1 %6914, %v11508_v0   ;;  %6534 = vmatprep.mubr.f32.mxu0 %v10659_v51  ;;  %v4747_v0 = vmul.f32 1.442695, %v11527_v26 }
 0x985   : > { %v10689_v59 = vpop.eup %7453 }
 0x986   : > { %v3947_v57 = vpop.permute.xlu0 %3946  ;;  %v10693_v6 = vpop.eup %7455  ;;  %7467 = vpow2.f32 %v4747_v0  ;;  %v3912_v0 = vld [vmem:[#allocation4 + $0x70] sm:$0xff] }
 0x987   : > { %6535 = vmatmul.mubr.f32.gmra.mrb[56].mxu0 %v10667_v11  ;;  %v10702_v52 = vpop.eup %7457 }
 0x988   : > { %4209 = vperm.xlu1 %6914, %v11512_v23   ;;  %6537 = vmatprep.mubr.f32.mxu0 %v10669_v17  ;;  %v10711_v31 = vpop.eup %7459  ;;  %v4751_v23 = vmul.f32 1.442695, %v4720_v60 }
 0x989   : > { %v10719_v3 = vpop.eup %7461 }
 0x98a   : > { %v10679_v58 = vpop.permute.xlu0 %3956  ;;  %7469 = vpow2.f32 %v4751_v23 }
 0x98b   : > { %6538 = vmatmul.mubr.f32.gmra.mrb[58].mxu0 %v10677_v47 }
 0x98c   : > { %4219 = vperm.xlu1 %6914, %v11516_v54   ;;  %6540 = vmatprep.mubr.f32.mxu0 %v10681_v36  ;;  %v4000_v54 = vmul.f32 %v3947_v57, %v3904_v55 }
 0x98e   : > { %v10691_v33 = vpop.permute.xlu0 %3966 }
 0x98f   : > { %6541 = vmatmul.mubr.f32.gmra.mrb[60].mxu0 %v10689_v59  ;;  %v4004_v20 = vmul.f32 %v10691_v33, %v3908_v41 }
 0x990   : > { %5177 = vperm.xlu1 %6914, %v10693_v6  }
 0x992   : > { %v10700_v32 = vpop.permute.xlu0 %3976 }
 0x993   : > { %v4006_v4 = vmul.f32 %v10700_v32, %v3910_v42 }
 0x994   : > { %5187 = vperm.xlu1 %6914, %v10702_v52  }
 0x996   : > { %v10708_v34 = vpop.permute.xlu0 %3986  ;;  %4899 = vadd.xlane.f32.xlu0 %v10625_v35  ;;  %v3900_v35 = vld [vmem:[#allocation4 + $0x10] sm:$0xff] }
 0x997   : > { %v3996_v43 = vmul.f32 %v10647_v14, %v3900_v35 }
 0x998   : > { %5197 = vperm.xlu1 %6914, %v10711_v31  }
 0x99a   : > { %v4027_v45 = vpop.permute.xlu0 %4026  ;;  %4903 = vadd.xlane.f32.xlu0 %v10635_v2  ;;  %v10731_v2 = vpop.eup %7463 }
 0x99b   : > { %v10721_v50 = vadd.f32 %v4027_v45, %v3994_v13  ;;  %v10739_v38 = vpop.eup %7465 }
 0x99c   : > { %5207 = vperm.xlu1 %6914, %v10719_v3   ;;  %v10749_v46 = vpop.eup %7467 }
 0x99d   : > { %4123 = vst.msk [vmem:[#allocation4] sm:$0xff] %vm4122_vm4, %v10721_v50  ;;  %v10758_v62 = vpop.eup %7469 }
 0x99e   : > { %v4031_v61 = vpop.permute.xlu0 %4030  ;;  %4901 = vadd.xlane.f32.xlu0 %v10627_v24  ;;  %v4848_v24 = vsub.f32 %v11528_v10, %v10637_v1  ;;  %v4002_v1 = vmul.f32 %v10679_v58, %v3906_v63 }
 0x99f   : > { %v10733_v27 = vadd.f32 %v4031_v61, %v3996_v43 }
 0x9a0   : > { %5217 = vperm.xlu1 %6914, %v10731_v2  }
 0x9a1   : > { %4125 = vst.msk [vmem:[#allocation4 + $0x10] sm:$0xff] %vm4122_vm4, %v10733_v27 }
 0x9a2   : > { %v4035_v60 = vpop.permute.xlu0 %4034  ;;  %4907 = vadd.xlane.f32.xlu0 %v10645_v12  ;;  %v4879_v12 = vmul.f32 1.442695, %v4848_v24 }
 0x9a3   : > { %v10743_v14 = vadd.f32 %v4035_v60, %v3998_v48 }
 0x9a4   : > { %5227 = vperm.xlu1 %6914, %v10739_v38   ;;  %7471 = vpow2.f32 %v4879_v12 }
 0x9a5   : > { %4127 = vst.msk [vmem:[#allocation4 + $0x20] sm:$0xff] %vm4122_vm4, %v10743_v14 }
 0x9a6   : > { %v4039_v5 = vpop.permute.xlu0 %4038  ;;  %4911 = vadd.xlane.f32.xlu0 %v10657_v56 }
 0x9a7   : > { %v10751_v19 = vadd.f32 %v4039_v5, %v4000_v54 }
 0x9a8   : > { %5237 = vperm.xlu1 %6914, %v10749_v46  }
 0x9a9   : > { %4129 = vst.msk [vmem:[#allocation4 + $0x30] sm:$0xff] %vm4122_vm4, %v10751_v19 }
 0x9aa   : > { %v4043_v57 = vpop.permute.xlu0 %4042  ;;  %4915 = vadd.xlane.f32.xlu0 %v10667_v11 }
 0x9ab   : > { %v10760_v56 = vadd.f32 %v4043_v57, %v4002_v1  ;;  %v4826_v16 = vpop.permute.xlu1 %4825  ;;  %v3899_v57 = vld [vmem:[#allocation4 + $0x8] sm:$0xff] }
 0x9ac   : > { %v4847_v22 = vsub.f32 %v11529_v40, %v4826_v16  ;;  %5247 = vperm.xlu1 %6914, %v10758_v62  }
 0x9ad   : > { %4131 = vst.msk [vmem:[#allocation4 + $0x40] sm:$0xff] %vm4122_vm4, %v10760_v56 }
 0x9ae   : > { %v4877_v58 = vmul.f32 1.442695, %v4847_v22  ;;  %v4047_v29 = vpop.permute.xlu0 %4046  ;;  %4919 = vadd.xlane.f32.xlu0 %v10677_v47  ;;  %v7472_v13 = vpop.eup %7471  ;;  %v4008_v47 = vmul.f32 %v10708_v34, %v3912_v0 }
 0x9af   : > { %v10768_v11 = vadd.f32 %v4047_v29, %v4004_v20  ;;  %v3922_v15 = vpop.permute.xlu1 %3921  ;;  %v3901_v20 = vld [vmem:[#allocation4 + $0x18] sm:$0xff] }
 0x9b0   : > { %7473 = vpow2.f32 %v4877_v58  ;;  %v3995_v16 = vmul.f32 %v3922_v15, %v3899_v57 }
 0x9b1   : > { %4133 = vst.msk [vmem:[#allocation4 + $0x50] sm:$0xff] %vm4122_vm4, %v10768_v11 }
 0x9b2   : > { %v4051_v39 = vpop.permute.xlu0 %4050  ;;  %4923 = vadd.xlane.f32.xlu0 %v10689_v59 }
 0x9b3   : > { %v10774_v33 = vadd.f32 %v4051_v39, %v4006_v4  ;;  %v3932_v26 = vpop.permute.xlu1 %3931 }
 0x9b4   : > { %v3997_v58 = vmul.f32 %v3932_v26, %v3901_v20 }
 0x9b5   : > { %4135 = vst.msk [vmem:[#allocation4 + $0x60] sm:$0xff] %vm4122_vm4, %v10774_v33 }
 0x9b6   : > { %v4055_v45 = vpop.permute.xlu0 %4054  ;;  %4927 = vadd.xlane.f32.xlu0 %v7472_v13 }
 0x9b7   : > { %v10779_v35 = vadd.f32 %v4055_v45, %v4008_v47  ;;  %v3942_v32 = vpop.permute.xlu1 %3941 }
 0x9b9   : > { %4137 = vst.msk [vmem:[#allocation4 + $0x70] sm:$0xff] %vm4122_vm4, %v10779_v35 }
 0x9ba   : > { %v10783_v23 = vpop.eup %7473  ;;  %v4145_v59 = vpop.permute.xlu0 %4144 }
 0x9bb   : > { %7475 = vrcp.f32 %v4145_v59  ;;  %v3952_v43 = vpop.permute.xlu1 %3951  ;;  %6543 = vmatprep.mubr.f32.mxu0 %v10783_v23 }
 0x9bc   : > { %6544 = vmatmul.mubr.f32.gmra.mrb[62].mxu0 %v7472_v13 }
 0x9be   : > { %v4155_v34 = vpop.permute.xlu0 %4154 }
 0x9bf   : > { %7477 = vrcp.f32 %v4155_v34  ;;  %v3962_v61 = vpop.permute.xlu1 %3961 }
 0x9c2   : > { %v4165_v44 = vpop.permute.xlu0 %4164 }
 0x9c3   : > { %7479 = vrcp.f32 %v4165_v44  ;;  %v10786_v48 = vpop.permute.xlu1 %3971  ;;  %v3907_v44 = vld [vmem:[#allocation4 + $0x48] sm:$0xff] }
 0x9c5   : > { %v7476_v60 = vpop.eup %7475 }
 0x9c6   : > { %v4223_v10 = vmul.f32 %v7476_v60, %v10721_v50  ;;  %v4175_v24 = vpop.permute.xlu0 %4174  ;;  %v4003_v60 = vmul.f32 %v3962_v61, %v3907_v44  ;;  %v3911_v61 = vld [vmem:[#allocation4 + $0x68] sm:$0xff] }
 0x9c7   : > { %7481 = vrcp.f32 %v4175_v24  ;;  %v10789_v55 = vpop.permute.xlu1 %3981  ;;  %v3909_v24 = vld [vmem:[#allocation4 + $0x58] sm:$0xff] }
 0x9c8   : > { %4254 = vst.msk [vmem:[%s8875_s4] sm:$0xff] %vm4122_vm4, %v4223_v10 }
 0x9c9   : > { %v7478_v54 = vpop.eup %7477 }
 0x9ca   : > { %v4227_v5 = vmul.f32 %v7478_v54, %v10733_v27  ;;  %v4185_v12 = vpop.permute.xlu0 %4184  ;;  %v4005_v54 = vmul.f32 %v10786_v48, %v3909_v24  ;;  %v3913_v48 = vld [vmem:[#allocation4 + $0x78] sm:$0xff] }
 0x9cb   : > { %7483 = vrcp.f32 %v4185_v12  ;;  %v10794_v63 = vpop.permute.xlu1 %3991  ;;  %v4007_v12 = vmul.f32 %v10789_v55, %v3911_v61  ;;  %v4644_v24 = vld [vmem:[#allocation3 + $0x198] sm:$0xff] }
 0x9cc   : > { %4256 = vst.msk [vmem:[%s8875_s4 + $0x10] sm:$0xff] %vm4122_vm4, %v4227_v5 }
 0x9cd   : > { %v7480_v1 = vpop.eup %7479 }
 0x9ce   : > { %v4231_v50 = vmul.f32 %v7480_v1, %v10743_v14  ;;  %v4195_v41 = vpop.permute.xlu0 %4194 }
 0x9cf   : > { %7485 = vrcp.f32 %v4195_v41  ;;  %v4029_v40 = vpop.permute.xlu1 %4028 }
 0x9d0   : > { %4258 = vst.msk [vmem:[%s8875_s4 + $0x20] sm:$0xff] %vm4122_vm4, %v4231_v50  ;;  %v10801_v22 = vadd.f32 %v4029_v40, %v3995_v16  ;;  %4897 = vadd.xlane.f32.xlu1 %v10600_v28  ;;  %v3903_v28 = vld [vmem:[#allocation4 + $0x28] sm:$0xff] }
 0x9d1   : > { %v7482_v27 = vpop.eup %7481  ;;  %v3999_v39 = vmul.f32 %v3942_v32, %v3903_v28 }
 0x9d2   : > { %v4235_v29 = vmul.f32 %v7482_v27, %v10751_v19  ;;  %4124 = vst.msk [vmem:[#allocation4 + $0x8] sm:$0xff] %vm4122_vm4, %v10801_v22  ;;  %v4205_v15 = vpop.permute.xlu0 %4204 }
 0x9d3   : > { %7487 = vrcp.f32 %v4205_v15  ;;  %v4033_v14 = vpop.permute.xlu1 %4032 }
 0x9d4   : > { %4260 = vst.msk [vmem:[%s8875_s4 + $0x30] sm:$0xff] %vm4122_vm4, %v4235_v29  ;;  %v10809_v42 = vadd.f32 %v4033_v14, %v3997_v58  ;;  %4905 = vadd.xlane.f32.xlu1 %v10639_v25  ;;  %v3905_v25 = vld [vmem:[#allocation4 + $0x38] sm:$0xff] }
 0x9d5   : > { %v7484_v4 = vpop.eup %7483  ;;  %v4001_v45 = vmul.f32 %v3952_v43, %v3905_v25 }
 0x9d6   : > { %v4239_v26 = vmul.f32 %v7484_v4, %v10760_v56  ;;  %4126 = vst.msk [vmem:[#allocation4 + $0x18] sm:$0xff] %vm4122_vm4, %v10809_v42  ;;  %v4215_v19 = vpop.permute.xlu0 %4214 }
 0x9d7   : > { %7489 = vrcp.f32 %v4215_v19  ;;  %v4037_v0 = vpop.permute.xlu1 %4036 }
 0x9d8   : > { %4262 = vst.msk [vmem:[%s8875_s4 + $0x40] sm:$0xff] %vm4122_vm4, %v4239_v26  ;;  %v4079_v13 = vadd.f32 %v4037_v0, %v3999_v39  ;;  %4909 = vadd.xlane.f32.xlu1 %v10649_v53 }
 0x9d9   : > { %v7486_v47 = vpop.eup %7485 }
 0x9da   : > { %v4243_v59 = vmul.f32 %v7486_v47, %v10768_v11  ;;  %4128 = vst.msk [vmem:[#allocation4 + $0x28] sm:$0xff] %vm4122_vm4, %v4079_v13  ;;  %v10840_v55 = vpop.permute.xlu0 %5172 }
 0x9db   : > { %v4041_v56 = vpop.permute.xlu1 %4040 }
 0x9dc   : > { %4264 = vst.msk [vmem:[%s8875_s4 + $0x50] sm:$0xff] %vm4122_vm4, %v4243_v59  ;;  %v4081_v32 = vadd.f32 %v4041_v56, %v4001_v45  ;;  %4913 = vadd.xlane.f32.xlu1 %v10659_v51 }
 0x9dd   : > { %v7488_v34 = vpop.eup %7487 }
 0x9de   : > { %v4247_v53 = vmul.f32 %v7488_v34, %v10774_v33  ;;  %4130 = vst.msk [vmem:[#allocation4 + $0x38] sm:$0xff] %vm4122_vm4, %v4081_v32  ;;  %v10842_v40 = vpop.permute.xlu0 %5182 }
 0x9df   : > { %v4045_v10 = vpop.permute.xlu1 %4044 }
 0x9e0   : > { %4266 = vst.msk [vmem:[%s8875_s4 + $0x60] sm:$0xff] %vm4122_vm4, %v4247_v53  ;;  %v4083_v11 = vadd.f32 %v4045_v10, %v4003_v60  ;;  %4917 = vadd.xlane.f32.xlu1 %v10669_v17  ;;  %v4642_v10 = vld [vmem:[#allocation3 + $0x188] sm:$0xff] }
 0x9e1   : > { %v7490_v43 = vpop.eup %7489 }
 0x9e2   : > { %v4251_v51 = vmul.f32 %v7490_v43, %v10779_v35  ;;  %4132 = vst.msk [vmem:[#allocation4 + $0x48] sm:$0xff] %vm4122_vm4, %v4083_v11  ;;  %v4009_v35 = vmul.f32 %v10794_v63, %v3913_v48  ;;  %v10848_v15 = vpop.permute.xlu0 %5192 }
 0x9e3   : > { %v4049_v5 = vpop.permute.xlu1 %4048 }
 0x9e4   : > { %4268 = vst.msk [vmem:[%s8875_s4 + $0x70] sm:$0xff] %vm4122_vm4, %v4251_v51  ;;  %v4085_v33 = vadd.f32 %v4049_v5, %v4005_v54  ;;  %4921 = vadd.xlane.f32.xlu1 %v10681_v36  ;;  %v4884_v51 = vmul.f32 %v10702_v52, %v4644_v24  ;;  %v4641_v24 = vld [vmem:[#allocation3 + $0x180] sm:$0xff] }
 0x9e6   : > { %4134 = vst.msk [vmem:[#allocation4 + $0x58] sm:$0xff] %vm4122_vm4, %v4085_v33  ;;  %v10854_v39 = vpop.permute.xlu0 %5202 }
 0x9e7   : > { %v4053_v17 = vpop.permute.xlu1 %4052 }
 0x9e8   : > { %v4087_v1 = vadd.f32 %v4053_v17, %v4007_v12  ;;  %4925 = vadd.xlane.f32.xlu1 %v10783_v23 }
 0x9ea   : > { %4136 = vst.msk [vmem:[#allocation4 + $0x68] sm:$0xff] %vm4122_vm4, %v4087_v1 }
 0x9eb   : > { %v4057_v57 = vpop.permute.xlu1 %4056 }
 0x9ec   : > { %v4089_v16 = vadd.f32 %v4057_v57, %v4009_v35  ;;  %v4648_v57 = vld [vmem:[#allocation3 + $0x1b8] sm:$0xff] }
 0x9ee   : > { %4138 = vst.msk [vmem:[#allocation4 + $0x78] sm:$0xff] %vm4122_vm4, %v4089_v16 }
 0x9ef   : > { %v4150_v36 = vpop.permute.xlu1 %4149 }
 0x9f0   : > { %7491 = vrcp.f32 %v4150_v36  ;;  %v4888_v36 = vmul.f32 %v10719_v3, %v4648_v57  ;;  %v4647_v57 = vld [vmem:[#allocation3 + $0x1b0] sm:$0xff] }
 0x9f3   : > { %v4160_v50 = vpop.permute.xlu1 %4159 }
 0x9f4   : > { %7493 = vrcp.f32 %v4160_v50  ;;  %v4650_v50 = vld [vmem:[#allocation3 + $0x1c8] sm:$0xff] }
 0x9f7   : > { %v4170_v41 = vpop.permute.xlu1 %4169 }
 0x9f8   : > { %7495 = vrcp.f32 %v4170_v41 }
 0x9fa   : > { %v7492_v23 = vpop.eup %7491 }
 0x9fb   : > { %v4225_v63 = vmul.f32 %v7492_v23, %v10801_v22  ;;  %v4180_v27 = vpop.permute.xlu1 %4179 }
 0x9fc   : > { %7497 = vrcp.f32 %v4180_v27  ;;  %v4652_v27 = vld [vmem:[#allocation3 + $0x1d8] sm:$0xff] }
 0x9fd   : > { %4255 = vst.msk [vmem:[%s8875_s4 + $0x8] sm:$0xff] %vm4122_vm4, %v4225_v63  ;;  %v4892_v3 = vmul.f32 %v10739_v38, %v4652_v27 }
 0x9fe   : > { %v7494_v20 = vpop.eup %7493 }
 0x9ff   : > { %v4229_v58 = vmul.f32 %v7494_v20, %v10809_v42  ;;  %v4190_v29 = vpop.permute.xlu1 %4189 }
 0xa00   : > { %7499 = vrcp.f32 %v4190_v29 }
 0xa01   : > { %4257 = vst.msk [vmem:[%s8875_s4 + $0x18] sm:$0xff] %vm4122_vm4, %v4229_v58 }
 0xa02   : > { %v7496_v14 = vpop.eup %7495 }
 0xa03   : > { %v4233_v4 = vmul.f32 %v7496_v14, %v4079_v13  ;;  %v4200_v28 = vpop.permute.xlu1 %4199  ;;  %v10858_v13 = vpop.permute.xlu0 %5212  ;;  %v4654_v14 = vld [vmem:[#allocation3 + $0x1e8] sm:$0xff] }
 0xa04   : > { %7501 = vrcp.f32 %v4200_v28 }
 0xa05   : > { %4259 = vst.msk [vmem:[%s8875_s4 + $0x28] sm:$0xff] %vm4122_vm4, %v4233_v4 }
 0xa06   : > { %v7498_v22 = vpop.eup %7497 }
 0xa07   : > { %v4237_v26 = vmul.f32 %v7498_v22, %v4081_v32  ;;  %v4210_v42 = vpop.permute.xlu1 %4209  ;;  %v10864_v56 = vpop.permute.xlu0 %5222  ;;  %v4656_v22 = vld [vmem:[#allocation3 + $0x1f8] sm:$0xff] }
 0xa08   : > { %7503 = vrcp.f32 %v4210_v42  ;;  %v4896_v38 = vmul.f32 %v10758_v62, %v4656_v22  ;;  %v4655_v22 = vld [vmem:[#allocation3 + $0x1f0] sm:$0xff] }
 0xa09   : > { %4261 = vst.msk [vmem:[%s8875_s4 + $0x38] sm:$0xff] %vm4122_vm4, %v4237_v26 }
 0xa0a   : > { %v7500_v19 = vpop.eup %7499 }
 0xa0b   : > { %v4241_v0 = vmul.f32 %v7500_v19, %v4083_v11  ;;  %v4220_v47 = vpop.permute.xlu1 %4219  ;;  %v10868_v60 = vpop.permute.xlu0 %5232  ;;  %v4882_v11 = vmul.f32 %v10693_v6, %v4642_v10 }
 0xa0c   : > { %7505 = vrcp.f32 %v4220_v47 }
 0xa0d   : > { %4263 = vst.msk [vmem:[%s8875_s4 + $0x48] sm:$0xff] %vm4122_vm4, %v4241_v0 }
 0xa0e   : > { %v7502_v25 = vpop.eup %7501 }
 0xa0f   : > { %v4245_v45 = vmul.f32 %v7502_v25, %v4085_v33  ;;  %v10872_v53 = vpop.permute.xlu0 %5242  ;;  %v4643_v33 = vld [vmem:[#allocation3 + $0x190] sm:$0xff]  ;;  %v10884_v35 = vpop.permute.xlu1 %5177 }
 0xa10   : > { %v4883_v12 = vmul.f32 %v10574_v21, %v4643_v33 }
 0xa11   : > { %4265 = vst.msk [vmem:[%s8875_s4 + $0x58] sm:$0xff] %vm4122_vm4, %v4245_v45 }
 0xa12   : > { %v7504_v59 = vpop.eup %7503 }
 0xa13   : > { %v4249_v32 = vmul.f32 %v7504_v59, %v4087_v1  ;;  %v4646_v1 = vld [vmem:[#allocation3 + $0x1a8] sm:$0xff]  ;;  %v10893_v23 = vpop.permute.xlu1 %5187 }
 0xa14   : > { %v4886_v48 = vmul.f32 %v10711_v31, %v4646_v1  ;;  %v4890_v31 = vmul.f32 %v10731_v2, %v4650_v50  ;;  %v4894_v2 = vmul.f32 %v10749_v46, %v4654_v14 }
 0xa15   : > { %4267 = vst.msk [vmem:[%s8875_s4 + $0x68] sm:$0xff] %vm4122_vm4, %v4249_v32 }
 0xa16   : > { %v7506_v34 = vpop.eup %7505 }
 0xa17   : > { %v4253_v44 = vmul.f32 %v7506_v34, %v4089_v16  ;;  %v10903_v58 = vpop.permute.xlu1 %5197 }
 0xa19   : > { %4269 = vst.msk [vmem:[%s8875_s4 + $0x78] sm:$0xff] %vm4122_vm4, %v4253_v44 }
 0xa1b   : > { %v10912_v42 = vpop.permute.xlu1 %5207 }
 0xa1f   : > { %v10921_v47 = vpop.permute.xlu1 %5217 }
 0xa23   : > { %v4900_v43 = vpop.xlane.xlu0 %4899  ;;  %v10927_v45 = vpop.permute.xlu1 %5227 }
 0xa24   : > { %v4930_v54 = vadd.f32 %v4900_v43, %v4882_v11 }
 0xa26   : > { %5363 = vst.msk [vmem:[#allocation3 + $0x188] sm:$0xff] %vm550_vm2, %v4930_v54  ;;  %5405 = vperm.xlu1 %6914, %v4930_v54  }
 0xa27   : > { %v4904_v5 = vpop.xlane.xlu0 %4903  ;;  %v10935_v62 = vpop.permute.xlu1 %5237 }
 0xa28   : > { %v10877_v61 = vadd.f32 %v4904_v5, %v4884_v51  ;;  %v4881_v5 = vmul.f32 %v10565_v8, %v4641_v24  ;;  %v4887_v8 = vmul.f32 %v10594_v9, %v4647_v57 }
 0xa2a   : > { %5365 = vst.msk [vmem:[#allocation3 + $0x198] sm:$0xff] %vm550_vm2, %v10877_v61 }
 0xa2b   : > { %v4902_v17 = vpop.xlane.xlu0 %4901  ;;  %v10939_v43 = vpop.permute.xlu1 %5247 }
 0xa2c   : > { %v4931_v6 = vadd.f32 %v4902_v17, %v4883_v12  ;;  %v4645_v12 = vld [vmem:[#allocation3 + $0x1a0] sm:$0xff] }
 0xa2e   : > { %5364 = vst.msk [vmem:[#allocation3 + $0x190] sm:$0xff] %vm550_vm2, %v4931_v6  ;;  %5410 = vperm.xlu0 %6913, %v4931_v6  }
 0xa2f   : > { %v4908_v52 = vpop.xlane.xlu0 %4907 }
 0xa30   : > { %v10886_v16 = vadd.f32 %v4908_v52, %v4886_v48  ;;  %v4885_v48 = vmul.f32 %v10582_v49, %v4645_v12 }
 0xa32   : > { %5367 = vst.msk [vmem:[#allocation3 + $0x1a8] sm:$0xff] %vm550_vm2, %v10886_v16 }
 0xa33   : > { %v4912_v21 = vpop.xlane.xlu0 %4911 }
 0xa34   : > { %v10891_v41 = vadd.f32 %v4912_v21, %v4888_v36 }
 0xa36   : > { %5369 = vst.msk [vmem:[#allocation3 + $0x1b8] sm:$0xff] %vm550_vm2, %v10891_v41 }
 0xa37   : > { %v4916_v63 = vpop.xlane.xlu0 %4915 }
 0xa38   : > { %v10898_v20 = vadd.f32 %v4916_v63, %v4890_v31  ;;  %v4649_v63 = vld [vmem:[#allocation3 + $0x1c0] sm:$0xff] }
 0xa39   : > { %v4889_v49 = vmul.f32 %v10603_v18, %v4649_v63 }
 0xa3a   : > { %5371 = vst.msk [vmem:[#allocation3 + $0x1c8] sm:$0xff] %vm550_vm2, %v10898_v20 }
 0xa3b   : > { %v4920_v29 = vpop.xlane.xlu0 %4919 }
 0xa3c   : > { %v10905_v4 = vadd.f32 %v4920_v29, %v4892_v3  ;;  %v4651_v29 = vld [vmem:[#allocation3 + $0x1d0] sm:$0xff] }
 0xa3d   : > { %v4891_v9 = vmul.f32 %v10611_v7, %v4651_v29  ;;  %v4895_v7 = vmul.f32 %v10622_v30, %v4655_v22  ;;  %v5159_v22 = vld [vmem:[#allocation4 + $0x28] sm:$0xff] }
 0xa3e   : > { %5373 = vst.msk [vmem:[#allocation3 + $0x1d8] sm:$0xff] %vm550_vm2, %v10905_v4 }
 0xa3f   : > { %v4924_v28 = vpop.xlane.xlu0 %4923 }
 0xa40   : > { %v10910_v26 = vadd.f32 %v4924_v28, %v4894_v2  ;;  %v4653_v2 = vld [vmem:[#allocation3 + $0x1e0] sm:$0xff] }
 0xa41   : > { %v4893_v18 = vmul.f32 %v10617_v37, %v4653_v2 }
 0xa42   : > { %5375 = vst.msk [vmem:[#allocation3 + $0x1e8] sm:$0xff] %vm550_vm2, %v10910_v26 }
 0xa43   : > { %v4928_v19 = vpop.xlane.xlu0 %4927 }
 0xa44   : > { %v10917_v0 = vadd.f32 %v4928_v19, %v4896_v38 }
 0xa46   : > { %5377 = vst.msk [vmem:[#allocation3 + $0x1f8] sm:$0xff] %vm550_vm2, %v10917_v0 }
 0xa4a   : > { %v10923_v46 = vpop.f32.mrb[48].mxu0 }
 0xa4b   : > { %v10925_v25 = vpop.f32.mrb[49].mxu0 }
 0xa4e   : > { %v10929_v59 = vpop.f32.mrb[50].mxu0 }
 0xa4f   : > { %v10931_v32 = vpop.f32.mrb[51].mxu0 }
 0xa52   : > { %v10933_v34 = vpop.f32.mrb[52].mxu0 }
 0xa53   : > { %v5095_v44 = vpop.f32.mrb[53].mxu0 }
 0xa56   : > { %v10937_v10 = vpop.f32.mrb[54].mxu0 }
 0xa57   : > { %v5105_v11 = vpop.f32.mrb[55].mxu0 }
 0xa5a   : > { %v10941_v54 = vpop.f32.mrb[56].mxu0 }
 0xa5b   : > { %v5115_v51 = vpop.f32.mrb[57].mxu0 }
 0xa5d   : > { %v4898_v33 = vpop.xlane.xlu1 %4897 }
 0xa5e   : > { %v4929_v17 = vadd.f32 %v4898_v33, %v4881_v5  ;;  %v6539_v1 = vpop.f32.mrb[58].mxu0  ;;  %v5154_v5 = vld [vmem:[#allocation4] sm:$0xff] }
 0xa5f   : > { %v5125_v6 = vpop.f32.mrb[59].mxu0  ;;  %v5250_v33 = vmul.f32 %v10840_v55, %v5154_v5 }
 0xa60   : > { %5362 = vst.msk [vmem:[#allocation3 + $0x180] sm:$0xff] %vm550_vm2, %v4929_v17  ;;  %5400 = vperm.xlu1 %6914, %v4929_v17  }
 0xa61   : > { %v4906_v52 = vpop.xlane.xlu1 %4905 }
 0xa62   : > { %v4933_v36 = vadd.f32 %v4906_v52, %v4885_v48  ;;  %v6542_v21 = vpop.f32.mrb[60].mxu0  ;;  %v5156_v48 = vld [vmem:[#allocation4 + $0x10] sm:$0xff]  ;;  %v5155_v52 = vld [vmem:[#allocation4 + $0x8] sm:$0xff] }
 0xa63   : > { %v5135_v50 = vpop.f32.mrb[61].mxu0  ;;  %v5252_v57 = vmul.f32 %v10842_v40, %v5156_v48 }
 0xa64   : > { %5366 = vst.msk [vmem:[#allocation3 + $0x1a0] sm:$0xff] %vm550_vm2, %v4933_v36  ;;  %5415 = vperm.xlu1 %6914, %v10877_v61   ;;  %5420 = vperm.xlu0 %6913, %v4933_v36   ;;  %v5251_v36 = vmul.f32 %v10884_v35, %v5155_v52 }
 0xa65   : > { %v4910_v31 = vpop.xlane.xlu1 %4909 }
 0xa66   : > { %v4935_v27 = vadd.f32 %v4910_v31, %v4887_v8  ;;  %v5158_v31 = vld [vmem:[#allocation4 + $0x20] sm:$0xff] }
 0xa67   : > { %v5254_v40 = vmul.f32 %v10848_v15, %v5158_v31 }
 0xa68   : > { %5368 = vst.msk [vmem:[#allocation3 + $0x1b0] sm:$0xff] %vm550_vm2, %v4935_v27  ;;  %5425 = vperm.xlu1 %6914, %v10886_v16   ;;  %5430 = vperm.xlu0 %6913, %v4935_v27  }
 0xa69   : > { %v4914_v3 = vpop.xlane.xlu1 %4913 }
 0xa6a   : > { %v4937_v14 = vadd.f32 %v4914_v3, %v4889_v49  ;;  %v5157_v3 = vld [vmem:[#allocation4 + $0x18] sm:$0xff] }
 0xa6b   : > { %v5253_v35 = vmul.f32 %v10893_v23, %v5157_v3 }
 0xa6c   : > { %5370 = vst.msk [vmem:[#allocation3 + $0x1c0] sm:$0xff] %vm550_vm2, %v4937_v14  ;;  %5435 = vperm.xlu1 %6914, %v10891_v41   ;;  %5440 = vperm.xlu0 %6913, %v4937_v14  }
 0xa6d   : > { %v4918_v61 = vpop.xlane.xlu1 %4917 }
 0xa6e   : > { %v4939_v28 = vadd.f32 %v4918_v61, %v4891_v9 }
 0xa70   : > { %5372 = vst.msk [vmem:[#allocation3 + $0x1d0] sm:$0xff] %vm550_vm2, %v4939_v28  ;;  %5445 = vperm.xlu1 %6914, %v10898_v20   ;;  %5450 = vperm.xlu0 %6913, %v4939_v28   ;;  %v5160_v28 = vld [vmem:[#allocation4 + $0x30] sm:$0xff] }
 0xa71   : > { %v4922_v16 = vpop.xlane.xlu1 %4921 }
 0xa72   : > { %v4941_v38 = vadd.f32 %v4922_v16, %v4893_v18  ;;  %v5256_v16 = vmul.f32 %v10854_v39, %v5160_v28 }
 0xa74   : > { %5374 = vst.msk [vmem:[#allocation3 + $0x1e0] sm:$0xff] %vm550_vm2, %v4941_v38  ;;  %5455 = vperm.xlu1 %6914, %v10905_v4   ;;  %5460 = vperm.xlu0 %6913, %v4941_v38   ;;  %v5255_v38 = vmul.f32 %v10903_v58, %v5159_v22 }
 0xa75   : > { %v4926_v41 = vpop.xlane.xlu1 %4925 }
 0xa76   : > { %v4943_v19 = vadd.f32 %v4926_v41, %v4895_v7 }
 0xa78   : > { %5376 = vst.msk [vmem:[#allocation3 + $0x1f0] sm:$0xff] %vm550_vm2, %v4943_v19  ;;  %5465 = vperm.xlu1 %6914, %v10910_v26   ;;  %5470 = vperm.xlu0 %6913, %v4943_v19  }
 0xa7c   : > { %5475 = vperm.xlu1 %6914, %v10917_v0   ;;  %5282 = vrot.lane.b32.xlu0 %v10925_v25, %s7585_s27 }
 0xa80   : > { %5284 = vrot.lane.b32.xlu1 %v10923_v46, %s7585_s27  ;;  %5286 = vrot.lane.b32.xlu0 %v10931_v32, %s7585_s27 }
 0xa84   : > { %5288 = vrot.lane.b32.xlu1 %v10929_v59, %s7585_s27  ;;  %5290 = vrot.lane.b32.xlu0 %v5095_v44, %s7585_s27 }
 0xa88   : > { %5292 = vrot.lane.b32.xlu1 %v10933_v34, %s7585_s27  ;;  %5294 = vrot.lane.b32.xlu0 %v5105_v11, %s7585_s27 }
 0xa8c   : > { %5296 = vrot.lane.b32.xlu1 %v10937_v10, %s7585_s27  ;;  %5298 = vrot.lane.b32.xlu0 %v5115_v51, %s7585_s27 }
 0xa8f   : > { %v6545_v37 = vpop.f32.mrb[62].mxu0 }
 0xa90   : > { %5300 = vrot.lane.b32.xlu1 %v10941_v54, %s7585_s27  ;;  %5302 = vrot.lane.b32.xlu0 %v5125_v6, %s7585_s27  ;;  %v5145_v30 = vpop.f32.mrb[63].mxu0 }
 0xa94   : > { %5304 = vrot.lane.b32.xlu1 %v6539_v1, %s7585_s27  ;;  %5306 = vrot.lane.b32.xlu0 %v5135_v50, %s7585_s27 }
 0xa98   : > { %5308 = vrot.lane.b32.xlu1 %v6542_v21, %s7585_s27  ;;  %5310 = vrot.lane.b32.xlu0 %v5145_v30, %s7585_s27 }
 0xa9c   : > { %5312 = vrot.lane.b32.xlu1 %v6545_v37, %s7585_s27 }
 0xaa5   : > { %v5406_v20 = vpop.permute.xlu1 %5405 }
 0xaad   : > { %v5411_v4 = vpop.permute.xlu0 %5410 }
 0xadf   : > { %v5401_v26 = vpop.permute.xlu1 %5400 }
 0xae0   : > { %7507 = vrcp.f32 %v5401_v26 }
 0xae1   : > { %7509 = vrcp.f32 %v5406_v20  ;;  %v5162_v20 = vld [vmem:[#allocation4 + $0x40] sm:$0xff] }
 0xae2   : > { %7511 = vrcp.f32 %v5411_v4  ;;  %v5258_v26 = vmul.f32 %v10858_v13, %v5162_v20 }
 0xae3   : > { %v5421_v0 = vpop.permute.xlu0 %5420  ;;  %v5416_v46 = vpop.permute.xlu1 %5415 }
 0xae4   : > { %7513 = vrcp.f32 %v5421_v0  ;;  %v5161_v0 = vld [vmem:[#allocation4 + $0x38] sm:$0xff] }
 0xae5   : > { %7515 = vrcp.f32 %v5416_v46  ;;  %v5257_v46 = vmul.f32 %v10912_v42, %v5161_v0 }
 0xae7   : > { %v5431_v25 = vpop.permute.xlu0 %5430  ;;  %v5426_v59 = vpop.permute.xlu1 %5425 }
 0xae8   : > { %7517 = vrcp.f32 %v5431_v25 }
 0xae9   : > { %7519 = vrcp.f32 %v5426_v59 }
 0xaea   : > { %v7508_v6 = vpop.eup %7507 }
 0xaeb   : > { %v5441_v32 = vpop.permute.xlu0 %5440  ;;  %v5436_v34 = vpop.permute.xlu1 %5435 }
 0xaec   : > { %v7510_v8 = vpop.eup %7509  ;;  %7521 = vrcp.f32 %v5441_v32 }
 0xaed   : > { %v7512_v49 = vpop.eup %7511  ;;  %7523 = vrcp.f32 %v5436_v34 }
 0xaee   : > { %v7514_v2 = vpop.eup %7513 }
 0xaef   : > { %v5451_v44 = vpop.permute.xlu0 %5450  ;;  %v5446_v10 = vpop.permute.xlu1 %5445 }
 0xaf0   : > { %v7516_v23 = vpop.eup %7515  ;;  %7525 = vrcp.f32 %v5451_v44 }
 0xaf1   : > { %7527 = vrcp.f32 %v5446_v10  ;;  %v5164_v10 = vld [vmem:[#allocation4 + $0x50] sm:$0xff] }
 0xaf2   : > { %v7518_v30 = vpop.eup %7517  ;;  %v5260_v5 = vmul.f32 %v10864_v56, %v5164_v10 }
 0xaf3   : > { %v10987_v11 = vpop.permute.xlu0 %5460  ;;  %v10989_v24 = vpop.permute.xlu1 %5455 }
 0xaf4   : > { %v7520_v58 = vpop.eup %7519  ;;  %7529 = vrcp.f32 %v10987_v11 }
 0xaf5   : > { %7531 = vrcp.f32 %v10989_v24 }
 0xaf6   : > { %v7522_v44 = vpop.eup %7521 }
 0xaf7   : > { %v10991_v54 = vpop.permute.xlu0 %5470  ;;  %v10993_v51 = vpop.permute.xlu1 %5465 }
 0xaf8   : > { %v7524_v11 = vpop.eup %7523  ;;  %7533 = vrcp.f32 %v10991_v54 }
 0xaf9   : > { %7535 = vrcp.f32 %v10993_v51 }
 0xafa   : > { %v7526_v52 = vpop.eup %7525 }
 0xafb   : > { %v10996_v12 = vpop.permute.xlu1 %5475  ;;  %v5283_v17 = vpop.permute.xlu0 %5282 }
 0xafc   : > { %v5330_v1 = vadd.f32 %v5283_v17, %v5250_v33  ;;  %v5163_v33 = vld [vmem:[#allocation4 + $0x48] sm:$0xff]  ;;  %v7528_v54 = vpop.eup %7527  ;;  %7537 = vrcp.f32 %v10996_v12 }
 0xafd   : > { %v5259_v17 = vmul.f32 %v10921_v47, %v5163_v33 }
 0xafe   : > { %5379 = vst.msk [vmem:[#allocation4] sm:$0xff] %vm5378_vm5, %v5330_v1  ;;  %v5479_v21 = vmul.f32 %v7508_v6, %v5330_v1 }
 0xaff   : > { %v5285_v55 = vpop.permute.xlu1 %5284  ;;  %v5287_v50 = vpop.permute.xlu0 %5286 }
 0xb00   : > { %5510 = vst.msk [vmem:[%s8875_s4] sm:$0xff] %vm5378_vm5, %v5479_v21  ;;  %v5331_v63 = vadd.f32 %v5285_v55, %v5251_v36  ;;  %v5332_v27 = vadd.f32 %v5287_v50, %v5252_v57  ;;  %v5166_v57 = vld [vmem:[#allocation4 + $0x60] sm:$0xff]  ;;  %v5165_v36 = vld [vmem:[#allocation4 + $0x58] sm:$0xff] }
 0xb01   : > { %v5262_v21 = vmul.f32 %v10868_v60, %v5166_v57  ;;  %v5261_v55 = vmul.f32 %v10927_v45, %v5165_v36 }
 0xb02   : > { %5380 = vst.msk [vmem:[#allocation4 + $0x8] sm:$0xff] %vm5378_vm5, %v5331_v63  ;;  %v5481_v29 = vmul.f32 %v7510_v8, %v5331_v63  ;;  %5381 = vst.msk [vmem:[#allocation4 + $0x10] sm:$0xff] %vm5378_vm5, %v5332_v27  ;;  %v5483_v14 = vmul.f32 %v7512_v49, %v5332_v27  ;;  %v7530_v63 = vpop.eup %7529  ;;  %v5168_v49 = vld [vmem:[#allocation4 + $0x70] sm:$0xff] }
 0xb03   : > { %v5289_v9 = vpop.permute.xlu1 %5288  ;;  %v5291_v61 = vpop.permute.xlu0 %5290  ;;  %v5264_v3 = vmul.f32 %v10872_v53, %v5168_v49 }
 0xb04   : > { %5511 = vst.msk [vmem:[%s8875_s4 + $0x8] sm:$0xff] %vm5378_vm5, %v5481_v29  ;;  %5512 = vst.msk [vmem:[%s8875_s4 + $0x10] sm:$0xff] %vm5378_vm5, %v5483_v14  ;;  %v5333_v15 = vadd.f32 %v5289_v9, %v5253_v35  ;;  %v5334_v18 = vadd.f32 %v5291_v61, %v5254_v40  ;;  %v7532_v45 = vpop.eup %7531  ;;  %v5167_v40 = vld [vmem:[#allocation4 + $0x68] sm:$0xff] }
 0xb05   : > { %v5263_v35 = vmul.f32 %v10935_v62, %v5167_v40  ;;  %v7534_v61 = vpop.eup %7533  ;;  %v5169_v62 = vld [vmem:[#allocation4 + $0x78] sm:$0xff] }
 0xb06   : > { %5382 = vst.msk [vmem:[#allocation4 + $0x18] sm:$0xff] %vm5378_vm5, %v5333_v15  ;;  %v5485_v7 = vmul.f32 %v7516_v23, %v5333_v15  ;;  %5383 = vst.msk [vmem:[#allocation4 + $0x20] sm:$0xff] %vm5378_vm5, %v5334_v18  ;;  %v5487_v41 = vmul.f32 %v7514_v2, %v5334_v18  ;;  %v7536_v28 = vpop.eup %7535  ;;  %v5265_v15 = vmul.f32 %v10939_v43, %v5169_v62 }
 0xb07   : > { %v5293_v19 = vpop.permute.xlu1 %5292  ;;  %v5295_v37 = vpop.permute.xlu0 %5294 }
 0xb08   : > { %5513 = vst.msk [vmem:[%s8875_s4 + $0x18] sm:$0xff] %vm5378_vm5, %v5485_v7  ;;  %5514 = vst.msk [vmem:[%s8875_s4 + $0x20] sm:$0xff] %vm5378_vm5, %v5487_v41  ;;  %v5335_v39 = vadd.f32 %v5293_v19, %v5255_v38  ;;  %v5336_v4 = vadd.f32 %v5295_v37, %v5256_v16  ;;  %v7538_v38 = vpop.eup %7537 }
 0xb0a   : > { %5384 = vst.msk [vmem:[#allocation4 + $0x28] sm:$0xff] %vm5378_vm5, %v5335_v39  ;;  %v5489_v25 = vmul.f32 %v7520_v58, %v5335_v39  ;;  %5385 = vst.msk [vmem:[#allocation4 + $0x30] sm:$0xff] %vm5378_vm5, %v5336_v4  ;;  %v5491_v59 = vmul.f32 %v7518_v30, %v5336_v4 }
 0xb0b   : > { %v5297_v32 = vpop.permute.xlu1 %5296  ;;  %v5299_v34 = vpop.permute.xlu0 %5298 }
 0xb0c   : > { %5515 = vst.msk [vmem:[%s8875_s4 + $0x28] sm:$0xff] %vm5378_vm5, %v5489_v25  ;;  %5516 = vst.msk [vmem:[%s8875_s4 + $0x30] sm:$0xff] %vm5378_vm5, %v5491_v59  ;;  %v5337_v13 = vadd.f32 %v5297_v32, %v5257_v46  ;;  %v5338_v42 = vadd.f32 %v5299_v34, %v5258_v26 }
 0xb0e   : > { %5386 = vst.msk [vmem:[#allocation4 + $0x38] sm:$0xff] %vm5378_vm5, %v5337_v13  ;;  %v5493_v24 = vmul.f32 %v7524_v11, %v5337_v13  ;;  %5387 = vst.msk [vmem:[#allocation4 + $0x40] sm:$0xff] %vm5378_vm5, %v5338_v42  ;;  %v5495_v1 = vmul.f32 %v7522_v44, %v5338_v42 }
 0xb0f   : > { %v5301_v6 = vpop.permute.xlu1 %5300  ;;  %v5303_v48 = vpop.permute.xlu0 %5302 }
 0xb10   : > { %5517 = vst.msk [vmem:[%s8875_s4 + $0x38] sm:$0xff] %vm5378_vm5, %v5493_v24  ;;  %5518 = vst.msk [vmem:[%s8875_s4 + $0x40] sm:$0xff] %vm5378_vm5, %v5495_v1  ;;  %v5339_v56 = vadd.f32 %v5301_v6, %v5259_v17  ;;  %v5340_v47 = vadd.f32 %v5303_v48, %v5260_v5 }
 0xb12   : > { %5388 = vst.msk [vmem:[#allocation4 + $0x48] sm:$0xff] %vm5378_vm5, %v5339_v56  ;;  %v5497_v51 = vmul.f32 %v7528_v54, %v5339_v56  ;;  %5389 = vst.msk [vmem:[#allocation4 + $0x50] sm:$0xff] %vm5378_vm5, %v5340_v47  ;;  %v5499_v50 = vmul.f32 %v7526_v52, %v5340_v47 }
 0xb13   : > { %v5305_v8 = vpop.permute.xlu1 %5304  ;;  %v5307_v31 = vpop.permute.xlu0 %5306 }
 0xb14   : > { %5519 = vst.msk [vmem:[%s8875_s4 + $0x48] sm:$0xff] %vm5378_vm5, %v5497_v51  ;;  %5520 = vst.msk [vmem:[%s8875_s4 + $0x50] sm:$0xff] %vm5378_vm5, %v5499_v50  ;;  %v5341_v60 = vadd.f32 %v5305_v8, %v5261_v55  ;;  %v5342_v27 = vadd.f32 %v5307_v31, %v5262_v21 }
 0xb16   : > { %5390 = vst.msk [vmem:[#allocation4 + $0x58] sm:$0xff] %vm5378_vm5, %v5341_v60  ;;  %v5501_v12 = vmul.f32 %v7532_v45, %v5341_v60  ;;  %5391 = vst.msk [vmem:[#allocation4 + $0x60] sm:$0xff] %vm5378_vm5, %v5342_v27  ;;  %v5503_v29 = vmul.f32 %v7530_v63, %v5342_v27 }
 0xb17   : > { %v5309_v14 = vpop.permute.xlu1 %5308  ;;  %v5311_v9 = vpop.permute.xlu0 %5310 }
 0xb18   : > { %5521 = vst.msk [vmem:[%s8875_s4 + $0x58] sm:$0xff] %vm5378_vm5, %v5501_v12  ;;  %5522 = vst.msk [vmem:[%s8875_s4 + $0x60] sm:$0xff] %vm5378_vm5, %v5503_v29  ;;  %v5343_v2 = vadd.f32 %v5309_v14, %v5263_v35  ;;  %v5344_v53 = vadd.f32 %v5311_v9, %v5264_v3 }
 0xb1a   : > { %5392 = vst.msk [vmem:[#allocation4 + $0x68] sm:$0xff] %vm5378_vm5, %v5343_v2  ;;  %v5505_v18 = vmul.f32 %v7536_v28, %v5343_v2  ;;  %5393 = vst.msk [vmem:[#allocation4 + $0x70] sm:$0xff] %vm5378_vm5, %v5344_v53  ;;  %v5507_v23 = vmul.f32 %v7534_v61, %v5344_v53 }
 0xb1b   : > { %v5313_v16 = vpop.permute.xlu1 %5312 }
 0xb1c   : > { %5523 = vst.msk [vmem:[%s8875_s4 + $0x68] sm:$0xff] %vm5378_vm5, %v5505_v18  ;;  %5524 = vst.msk [vmem:[%s8875_s4 + $0x70] sm:$0xff] %vm5378_vm5, %v5507_v23  ;;  %v5345_v22 = vadd.f32 %v5313_v16, %v5265_v15 }
 0xb1e   : > { %5394 = vst.msk [vmem:[#allocation4 + $0x78] sm:$0xff] %vm5378_vm5, %v5345_v22  ;;  %v5509_v7 = vmul.f32 %v7538_v38, %v5345_v22 }
 0xb20   : > { %5525 = vst.msk [vmem:[%s8875_s4 + $0x78] sm:$0xff] %vm5378_vm5, %v5509_v7 }
 0xb21 PF: > { %s13_s16 = sadd.s32 1, %s7580_s16   ;;  %s11530_s12 = smov %s7568_s13 }
 0xb22   : > { %p10_p10 = scmp.ge.s32.totalorder %s13_s16, 4   ;;  %s11531_s13 = smov %s7647_s21 }
 0xb23   : > { %s11532_s14 = smov %s7576_s15  ;;  %s11533_s15 = smov %s11535_s17 }
 0xb24   :  { %12 = sbr.rel (!%p10_p10) target bundleno = 3 (0x3), region = 223 }

</bundles_post_ra>
